<compile_context>
chip_gen: v5e
topology: v5e:2x2
jax: 0.10.0
libtpu: 0.0.40
codegen_flags: <defaults>
</compile_context>

<pallas_src>
import functools

import jax
import jax.numpy as jnp
from jax.experimental import pallas as pl
from jax.experimental.pallas import tpu as pltpu

BN_EPS = 1e-5


# ---------------------------------------------------------------------------
# Fused stage kernel: conv (one matmul) + bias + BN batch stats + BN affine + ReLU
# + 2x2 max-pool, for the whole batch in one invocation.
# ---------------------------------------------------------------------------
def fused_stage_kernel(p_ref, w_ref, v_ref, o_ref, acc_ref, *, Q):
    # p_ref  : (4*Q, 9*Cin) bf16  im2col patches, rows ordered (r, n, hh, ww),
    #                             r = 2*dy + dx = position inside the 2x2 pool window
    # w_ref  : (9*Cin, Co)  bf16  conv weight flattened (ky, kx, cin) -> rows
    # v_ref  : (3, Co)      f32   row 0 = conv bias, row 1 = BN gamma, row 2 = BN beta
    # o_ref  : (Q, Co)      f32   pooled output, rows ordered (n, hh, ww)
    # acc_ref: (4*Q, Co)    f32   VMEM scratch holding the full conv output
    bias = v_ref[0:1, :]
    gamma = v_ref[1:2, :]
    beta = v_ref[2:3, :]

    # Conv as a single MXU matmul (bf16 x bf16 -> f32 accumulate) + bias.
    acc_ref[...] = (
        jnp.dot(p_ref[...], w_ref[...], preferred_element_type=jnp.float32) + bias
    )

    # BatchNorm2d training-mode statistics over all N*H*W rows (biased variance).
    a = acc_ref[...]
    inv_cnt = 1.0 / (4 * Q)
    mean = jnp.sum(a, axis=0, keepdims=True) * inv_cnt                    # (1, Co)
    var = jnp.sum(a * a, axis=0, keepdims=True) * inv_cnt - mean * mean   # (1, Co)
    var = jnp.maximum(var, 0.0)  # guard single-pass cancellation for low-variance channels
    scale = gamma * jax.lax.rsqrt(var + BN_EPS)
    shift = beta - mean * scale

    # BN affine + ReLU per pool-window position; 2x2 max-pool is an elementwise max over
    # the four contiguous row blocks (each block is one full (n, hh, ww) slab).
    def bn_relu(r):
        q = acc_ref[pl.ds(r * Q, Q), :]
        return jnp.maximum(q * scale + shift, 0.0)

    o_ref[...] = jnp.maximum(jnp.maximum(bn_relu(0), bn_relu(1)),
                             jnp.maximum(bn_relu(2), bn_relu(3)))


# ---------------------------------------------------------------------------
# Wrapper glue (XLA): im2col with pool-friendly row ordering, built in bf16.
# ---------------------------------------------------------------------------
def _im2col_pool_ordered(x_nhwc):
    """(N, H, W, Cin) -> (4*N*(H//2)*(W//2), 9*Cin) bf16 patches for a 3x3/s1/p1 conv.

    Rows are ordered (2*dy + dx, n, hh, ww), so a 2x2 max-pool over the conv output
    becomes a max over four contiguous row blocks of size N*(H//2)*(W//2)."""
    N, H, W, Cin = x_nhwc.shape
    Hh, Wh = H // 2, W // 2
    xb = x_nhwc.astype(jnp.bfloat16)                           # cast BEFORE 9x expansion
    xp = jnp.pad(xb, ((0, 0), (1, 1), (1, 1), (0, 0)))
    cols = [xp[:, ky:ky + H, kx:kx + W, :] for ky in range(3) for kx in range(3)]
    pat = jnp.concatenate(cols, axis=-1)                       # (N, H, W, 9*Cin)
    pat = pat.reshape(N, Hh, 2, Wh, 2, 9 * Cin)                # (n, hh, dy, ww, dx, k)
    pat = jnp.transpose(pat, (2, 4, 0, 1, 3, 5))               # (dy, dx, n, hh, ww, k)
    return pat.reshape(4 * N * Hh * Wh, 9 * Cin)


def conv_block_pool(x_nhwc, w2d_bf16, vecs_f32):
    N, H, W, _ = x_nhwc.shape
    Co = w2d_bf16.shape[-1]
    Hh, Wh = H // 2, W // 2
    Q = N * Hh * Wh

    patches = _im2col_pool_ordered(x_nhwc)

    pooled = pl.pallas_call(
        functools.partial(fused_stage_kernel, Q=Q),
        out_shape=jax.ShapeDtypeStruct((Q, Co), jnp.float32),
        scratch_shapes=[pltpu.VMEM((4 * Q, Co), jnp.float32)],
    )(patches, w2d_bf16, vecs_f32)

    return pooled.reshape(N, Hh, Wh, Co)


# ---------------------------------------------------------------------------
# Deterministic parameter init (synthetic; shapes match nn.Conv2d / nn.BatchNorm2d).
# ---------------------------------------------------------------------------
def init_params(key, channels=(1, 64, 128, 256, 512)):
    params = []
    for i in range(len(channels) - 1):
        cin, cout = channels[i], channels[i + 1]
        key, kw, kb, kg, kbt = jax.random.split(key, 5)
        fan_in = 9 * cin
        w = jax.random.normal(kw, (3, 3, cin, cout), jnp.float32) / jnp.sqrt(fan_in)
        b = 0.01 * jax.random.normal(kb, (cout,), jnp.float32)
        gamma = 1.0 + 0.1 * jax.random.normal(kg, (cout,), jnp.float32)
        beta = 0.05 * jax.random.normal(kbt, (cout,), jnp.float32)
        params.append((w, b, gamma, beta))
    return params


def prepare_params(params):
    """Pre-flatten conv weights into (9*Cin, Co) bf16 matmul form and pack the
    per-channel vectors (bias, gamma, beta) into one lane-aligned (3, Co) f32 operand."""
    prepped = []
    for (w, b, gamma, beta) in params:
        _, _, cin, cout = w.shape
        w2d = w.reshape(9 * cin, cout).astype(jnp.bfloat16)
        vecs = jnp.stack([b, gamma, beta], axis=0).astype(jnp.float32)   # (3, Co)
        prepped.append((w2d, vecs))
    return prepped


@jax.jit
def normnet_forward(x_nchw, prepped_params):
    # Returns [e0, e1, e2, e3] in NCHW to match the PyTorch module.
    x = jnp.transpose(x_nchw, (0, 2, 3, 1)).astype(jnp.float32)  # NCHW -> NHWC
    feats = []
    for (w2d, vecs) in prepped_params:
        x = conv_block_pool(x, w2d, vecs)
        feats.append(jnp.transpose(x, (0, 3, 1, 2)))             # NHWC -> NCHW
    return feats


if __name__ == "__main__":
    key = jax.random.PRNGKey(0)
    x = jax.random.normal(key, (2, 1, 16, 16), jnp.float32)      # NCHW, in_channels=1

    params = prepare_params(init_params(jax.random.PRNGKey(42)))

    outs = normnet_forward(x, params)
    outs = [jax.block_until_ready(o) for o in outs]

    expected = [(2, 64, 8, 8), (2, 128, 4, 4), (2, 256, 2, 2), (2, 512, 1, 1)]
    assert [tuple(o.shape) for o in outs] == expected, [o.shape for o in outs]
    assert all(bool(jnp.all(jnp.isfinite(o))) for o in outs)

    print("KERNEL_OK")
</pallas_src>

<mosaic_0001>
module attributes {stable_mosaic.version = 11 : i64} {
  func.func @fused_stage_kernel(%arg0: memref<512x9xbf16, #tpu.memory_space<vmem>>, %arg1: memref<9x64xbf16, #tpu.memory_space<vmem>>, %arg2: memref<3x64xf32, #tpu.memory_space<vmem>>, %arg3: memref<128x64xf32, #tpu.memory_space<vmem>>, %arg4: memref<512x64xf32, #tpu.memory_space<vmem>>) attributes {dimension_semantics = [], scalar_prefetch = 0 : i64, scratch_operands = 1 : i64, tpu.core_type = #tpu.core_type<tc>} {
    %c0 = arith.constant 0 : index
    %c0_0 = arith.constant 0 : index
    %0 = vector.load %arg2[%c0, %c0_0] : memref<3x64xf32, #tpu.memory_space<vmem>>, vector<1x64xf32>
    %c1 = arith.constant 1 : index
    %c0_1 = arith.constant 0 : index
    %1 = vector.load %arg2[%c1, %c0_1] : memref<3x64xf32, #tpu.memory_space<vmem>>, vector<1x64xf32>
    %c2 = arith.constant 2 : index
    %c0_2 = arith.constant 0 : index
    %2 = vector.load %arg2[%c2, %c0_2] : memref<3x64xf32, #tpu.memory_space<vmem>>, vector<1x64xf32>
    %c0_3 = arith.constant 0 : index
    %c0_4 = arith.constant 0 : index
    %3 = vector.load %arg0[%c0_3, %c0_4] : memref<512x9xbf16, #tpu.memory_space<vmem>>, vector<512x9xbf16>
    %c0_5 = arith.constant 0 : index
    %c0_6 = arith.constant 0 : index
    %4 = vector.load %arg1[%c0_5, %c0_6] : memref<9x64xbf16, #tpu.memory_space<vmem>>, vector<9x64xbf16>
    %cst = arith.constant dense<0.000000e+00> : vector<512x64xf32>
    %5 = tpu.matmul %3, %4, %cst {dimension_numbers = #tpu.dot_dimension_numbers<[1], [0], [0], [1], [0, 0, 1, 1], [], []>} : vector<512x9xbf16>, vector<9x64xbf16>, vector<512x64xf32> -> vector<512x64xf32>
    %6 = vector.broadcast %0 : vector<1x64xf32> to vector<512x64xf32>
    %7 = arith.addf %5, %6 : vector<512x64xf32>
    %c0_7 = arith.constant 0 : index
    %c0_8 = arith.constant 0 : index
    %8 = vector.load %arg4[%c0_7, %c0_8] : memref<512x64xf32, #tpu.memory_space<vmem>>, vector<512x64xf32>
    tpu.vector_store %arg4[%c0_7, %c0_8], %7 {strides = array<i32>} : memref<512x64xf32, #tpu.memory_space<vmem>>, vector<512x64xf32>,
    %c0_9 = arith.constant 0 : index
    %c0_10 = arith.constant 0 : index
    %9 = vector.load %arg4[%c0_9, %c0_10] : memref<512x64xf32, #tpu.memory_space<vmem>>, vector<512x64xf32>
    %cst_11 = arith.constant dense<0.000000e+00> : vector<64xf32>
    %10 = vector.multi_reduction <add>, %9, %cst_11 [0] : vector<512x64xf32> to vector<64xf32>
    %11 = vector.shape_cast %10 : vector<64xf32> to vector<1x64xf32>
    %cst_12 = arith.constant 0.001953125 : f32
    %12 = vector.broadcast %cst_12 : f32 to vector<1x64xf32>
    %13 = arith.mulf %11, %12 : vector<1x64xf32>
    %14 = arith.mulf %9, %9 : vector<512x64xf32>
    %cst_13 = arith.constant dense<0.000000e+00> : vector<64xf32>
    %15 = vector.multi_reduction <add>, %14, %cst_13 [0] : vector<512x64xf32> to vector<64xf32>
    %16 = vector.shape_cast %15 : vector<64xf32> to vector<1x64xf32>
    %cst_14 = arith.constant 0.001953125 : f32
    %17 = vector.broadcast %cst_14 : f32 to vector<1x64xf32>
    %18 = arith.mulf %16, %17 : vector<1x64xf32>
    %19 = arith.mulf %13, %13 : vector<1x64xf32>
    %20 = arith.subf %18, %19 : vector<1x64xf32>
    %cst_15 = arith.constant 0.000000e+00 : f32
    %21 = vector.broadcast %cst_15 : f32 to vector<1x64xf32>
    %22 = arith.maximumf %20, %21 : vector<1x64xf32>
    %cst_16 = arith.constant 9.99999974E-6 : f32
    %23 = vector.broadcast %cst_16 : f32 to vector<1x64xf32>
    %24 = arith.addf %22, %23 : vector<1x64xf32>
    %25 = math.rsqrt %24 : vector<1x64xf32>
    %26 = arith.mulf %1, %25 : vector<1x64xf32>
    %27 = arith.mulf %13, %26 : vector<1x64xf32>
    %28 = arith.subf %2, %27 : vector<1x64xf32>
    %c0_17 = arith.constant 0 : index
    %c0_18 = arith.constant 0 : index
    %29 = vector.load %arg4[%c0_17, %c0_18] : memref<512x64xf32, #tpu.memory_space<vmem>>, vector<128x64xf32>
    %30 = vector.broadcast %26 : vector<1x64xf32> to vector<128x64xf32>
    %31 = arith.mulf %29, %30 : vector<128x64xf32>
    %32 = vector.broadcast %28 : vector<1x64xf32> to vector<128x64xf32>
    %33 = arith.addf %31, %32 : vector<128x64xf32>
    %cst_19 = arith.constant 0.000000e+00 : f32
    %34 = vector.broadcast %cst_19 : f32 to vector<128x64xf32>
    %35 = arith.maximumf %33, %34 : vector<128x64xf32>
    %c128 = arith.constant 128 : index
    %c0_20 = arith.constant 0 : index
    %36 = vector.load %arg4[%c128, %c0_20] : memref<512x64xf32, #tpu.memory_space<vmem>>, vector<128x64xf32>
    %37 = vector.broadcast %26 : vector<1x64xf32> to vector<128x64xf32>
    %38 = arith.mulf %36, %37 : vector<128x64xf32>
    %39 = vector.broadcast %28 : vector<1x64xf32> to vector<128x64xf32>
    %40 = arith.addf %38, %39 : vector<128x64xf32>
    %cst_21 = arith.constant 0.000000e+00 : f32
    %41 = vector.broadcast %cst_21 : f32 to vector<128x64xf32>
    %42 = arith.maximumf %40, %41 : vector<128x64xf32>
    %43 = arith.maximumf %35, %42 : vector<128x64xf32>
    %c256 = arith.constant 256 : index
    %c0_22 = arith.constant 0 : index
    %44 = vector.load %arg4[%c256, %c0_22] : memref<512x64xf32, #tpu.memory_space<vmem>>, vector<128x64xf32>
    %45 = vector.broadcast %26 : vector<1x64xf32> to vector<128x64xf32>
    %46 = arith.mulf %44, %45 : vector<128x64xf32>
    %47 = vector.broadcast %28 : vector<1x64xf32> to vector<128x64xf32>
    %48 = arith.addf %46, %47 : vector<128x64xf32>
    %cst_23 = arith.constant 0.000000e+00 : f32
    %49 = vector.broadcast %cst_23 : f32 to vector<128x64xf32>
    %50 = arith.maximumf %48, %49 : vector<128x64xf32>
    %c384 = arith.constant 384 : index
    %c0_24 = arith.constant 0 : index
    %51 = vector.load %arg4[%c384, %c0_24] : memref<512x64xf32, #tpu.memory_space<vmem>>, vector<128x64xf32>
    %52 = vector.broadcast %26 : vector<1x64xf32> to vector<128x64xf32>
    %53 = arith.mulf %51, %52 : vector<128x64xf32>
    %54 = vector.broadcast %28 : vector<1x64xf32> to vector<128x64xf32>
    %55 = arith.addf %53, %54 : vector<128x64xf32>
    %cst_25 = arith.constant 0.000000e+00 : f32
    %56 = vector.broadcast %cst_25 : f32 to vector<128x64xf32>
    %57 = arith.maximumf %55, %56 : vector<128x64xf32>
    %58 = arith.maximumf %50, %57 : vector<128x64xf32>
    %59 = arith.maximumf %43, %58 : vector<128x64xf32>
    %c0_26 = arith.constant 0 : index
    %c0_27 = arith.constant 0 : index
    %60 = vector.load %arg3[%c0_26, %c0_27] : memref<128x64xf32, #tpu.memory_space<vmem>>, vector<128x64xf32>
    tpu.vector_store %arg3[%c0_26, %c0_27], %59 {strides = array<i32>} : memref<128x64xf32, #tpu.memory_space<vmem>>, vector<128x64xf32>,
    return
  }
}

module attributes {stable_mosaic.version = 11 : i64} {
  func.func @fused_stage_kernel(%arg0: memref<128x576xbf16, #tpu.memory_space<vmem>>, %arg1: memref<576x128xbf16, #tpu.memory_space<vmem>>, %arg2: memref<3x128xf32, #tpu.memory_space<vmem>>, %arg3: memref<32x128xf32, #tpu.memory_space<vmem>>, %arg4: memref<128x128xf32, #tpu.memory_space<vmem>>) attributes {dimension_semantics = [], scalar_prefetch = 0 : i64, scratch_operands = 1 : i64, tpu.core_type = #tpu.core_type<tc>} {
    %c0 = arith.constant 0 : index
    %c0_0 = arith.constant 0 : index
    %0 = vector.load %arg2[%c0, %c0_0] : memref<3x128xf32, #tpu.memory_space<vmem>>, vector<1x128xf32>
    %c1 = arith.constant 1 : index
    %c0_1 = arith.constant 0 : index
    %1 = vector.load %arg2[%c1, %c0_1] : memref<3x128xf32, #tpu.memory_space<vmem>>, vector<1x128xf32>
    %c2 = arith.constant 2 : index
    %c0_2 = arith.constant 0 : index
    %2 = vector.load %arg2[%c2, %c0_2] : memref<3x128xf32, #tpu.memory_space<vmem>>, vector<1x128xf32>
    %c0_3 = arith.constant 0 : index
    %c0_4 = arith.constant 0 : index
    %3 = vector.load %arg0[%c0_3, %c0_4] : memref<128x576xbf16, #tpu.memory_space<vmem>>, vector<128x576xbf16>
    %c0_5 = arith.constant 0 : index
    %c0_6 = arith.constant 0 : index
    %4 = vector.load %arg1[%c0_5, %c0_6] : memref<576x128xbf16, #tpu.memory_space<vmem>>, vector<576x128xbf16>
    %cst = arith.constant dense<0.000000e+00> : vector<128x128xf32>
    %5 = tpu.matmul %3, %4, %cst {dimension_numbers = #tpu.dot_dimension_numbers<[1], [0], [0], [1], [0, 0, 1, 1], [], []>} : vector<128x576xbf16>, vector<576x128xbf16>, vector<128x128xf32> -> vector<128x128xf32>
    %6 = vector.broadcast %0 : vector<1x128xf32> to vector<128x128xf32>
    %7 = arith.addf %5, %6 : vector<128x128xf32>
    %c0_7 = arith.constant 0 : index
    %c0_8 = arith.constant 0 : index
    %8 = vector.load %arg4[%c0_7, %c0_8] : memref<128x128xf32, #tpu.memory_space<vmem>>, vector<128x128xf32>
    tpu.vector_store %arg4[%c0_7, %c0_8], %7 {strides = array<i32>} : memref<128x128xf32, #tpu.memory_space<vmem>>, vector<128x128xf32>,
    %c0_9 = arith.constant 0 : index
    %c0_10 = arith.constant 0 : index
    %9 = vector.load %arg4[%c0_9, %c0_10] : memref<128x128xf32, #tpu.memory_space<vmem>>, vector<128x128xf32>
    %cst_11 = arith.constant dense<0.000000e+00> : vector<128xf32>
    %10 = vector.multi_reduction <add>, %9, %cst_11 [0] : vector<128x128xf32> to vector<128xf32>
    %11 = vector.shape_cast %10 : vector<128xf32> to vector<1x128xf32>
    %cst_12 = arith.constant 7.812500e-03 : f32
    %12 = vector.broadcast %cst_12 : f32 to vector<1x128xf32>
    %13 = arith.mulf %11, %12 : vector<1x128xf32>
    %14 = arith.mulf %9, %9 : vector<128x128xf32>
    %cst_13 = arith.constant dense<0.000000e+00> : vector<128xf32>
    %15 = vector.multi_reduction <add>, %14, %cst_13 [0] : vector<128x128xf32> to vector<128xf32>
    %16 = vector.shape_cast %15 : vector<128xf32> to vector<1x128xf32>
    %cst_14 = arith.constant 7.812500e-03 : f32
    %17 = vector.broadcast %cst_14 : f32 to vector<1x128xf32>
    %18 = arith.mulf %16, %17 : vector<1x128xf32>
    %19 = arith.mulf %13, %13 : vector<1x128xf32>
    %20 = arith.subf %18, %19 : vector<1x128xf32>
    %cst_15 = arith.constant 0.000000e+00 : f32
    %21 = vector.broadcast %cst_15 : f32 to vector<1x128xf32>
    %22 = arith.maximumf %20, %21 : vector<1x128xf32>
    %cst_16 = arith.constant 9.99999974E-6 : f32
    %23 = vector.broadcast %cst_16 : f32 to vector<1x128xf32>
    %24 = arith.addf %22, %23 : vector<1x128xf32>
    %25 = math.rsqrt %24 : vector<1x128xf32>
    %26 = arith.mulf %1, %25 : vector<1x128xf32>
    %27 = arith.mulf %13, %26 : vector<1x128xf32>
    %28 = arith.subf %2, %27 : vector<1x128xf32>
    %c0_17 = arith.constant 0 : index
    %c0_18 = arith.constant 0 : index
    %29 = vector.load %arg4[%c0_17, %c0_18] : memref<128x128xf32, #tpu.memory_space<vmem>>, vector<32x128xf32>
    %30 = vector.broadcast %26 : vector<1x128xf32> to vector<32x128xf32>
    %31 = arith.mulf %29, %30 : vector<32x128xf32>
    %32 = vector.broadcast %28 : vector<1x128xf32> to vector<32x128xf32>
    %33 = arith.addf %31, %32 : vector<32x128xf32>
    %cst_19 = arith.constant 0.000000e+00 : f32
    %34 = vector.broadcast %cst_19 : f32 to vector<32x128xf32>
    %35 = arith.maximumf %33, %34 : vector<32x128xf32>
    %c32 = arith.constant 32 : index
    %c0_20 = arith.constant 0 : index
    %36 = vector.load %arg4[%c32, %c0_20] : memref<128x128xf32, #tpu.memory_space<vmem>>, vector<32x128xf32>
    %37 = vector.broadcast %26 : vector<1x128xf32> to vector<32x128xf32>
    %38 = arith.mulf %36, %37 : vector<32x128xf32>
    %39 = vector.broadcast %28 : vector<1x128xf32> to vector<32x128xf32>
    %40 = arith.addf %38, %39 : vector<32x128xf32>
    %cst_21 = arith.constant 0.000000e+00 : f32
    %41 = vector.broadcast %cst_21 : f32 to vector<32x128xf32>
    %42 = arith.maximumf %40, %41 : vector<32x128xf32>
    %43 = arith.maximumf %35, %42 : vector<32x128xf32>
    %c64 = arith.constant 64 : index
    %c0_22 = arith.constant 0 : index
    %44 = vector.load %arg4[%c64, %c0_22] : memref<128x128xf32, #tpu.memory_space<vmem>>, vector<32x128xf32>
    %45 = vector.broadcast %26 : vector<1x128xf32> to vector<32x128xf32>
    %46 = arith.mulf %44, %45 : vector<32x128xf32>
    %47 = vector.broadcast %28 : vector<1x128xf32> to vector<32x128xf32>
    %48 = arith.addf %46, %47 : vector<32x128xf32>
    %cst_23 = arith.constant 0.000000e+00 : f32
    %49 = vector.broadcast %cst_23 : f32 to vector<32x128xf32>
    %50 = arith.maximumf %48, %49 : vector<32x128xf32>
    %c96 = arith.constant 96 : index
    %c0_24 = arith.constant 0 : index
    %51 = vector.load %arg4[%c96, %c0_24] : memref<128x128xf32, #tpu.memory_space<vmem>>, vector<32x128xf32>
    %52 = vector.broadcast %26 : vector<1x128xf32> to vector<32x128xf32>
    %53 = arith.mulf %51, %52 : vector<32x128xf32>
    %54 = vector.broadcast %28 : vector<1x128xf32> to vector<32x128xf32>
    %55 = arith.addf %53, %54 : vector<32x128xf32>
    %cst_25 = arith.constant 0.000000e+00 : f32
    %56 = vector.broadcast %cst_25 : f32 to vector<32x128xf32>
    %57 = arith.maximumf %55, %56 : vector<32x128xf32>
    %58 = arith.maximumf %50, %57 : vector<32x128xf32>
    %59 = arith.maximumf %43, %58 : vector<32x128xf32>
    %c0_26 = arith.constant 0 : index
    %c0_27 = arith.constant 0 : index
    %60 = vector.load %arg3[%c0_26, %c0_27] : memref<32x128xf32, #tpu.memory_space<vmem>>, vector<32x128xf32>
    tpu.vector_store %arg3[%c0_26, %c0_27], %59 {strides = array<i32>} : memref<32x128xf32, #tpu.memory_space<vmem>>, vector<32x128xf32>,
    return
  }
}

module attributes {stable_mosaic.version = 11 : i64} {
  func.func @fused_stage_kernel(%arg0: memref<32x1152xbf16, #tpu.memory_space<vmem>>, %arg1: memref<1152x256xbf16, #tpu.memory_space<vmem>>, %arg2: memref<3x256xf32, #tpu.memory_space<vmem>>, %arg3: memref<8x256xf32, #tpu.memory_space<vmem>>, %arg4: memref<32x256xf32, #tpu.memory_space<vmem>>) attributes {dimension_semantics = [], scalar_prefetch = 0 : i64, scratch_operands = 1 : i64, tpu.core_type = #tpu.core_type<tc>} {
    %c0 = arith.constant 0 : index
    %c0_0 = arith.constant 0 : index
    %0 = vector.load %arg2[%c0, %c0_0] : memref<3x256xf32, #tpu.memory_space<vmem>>, vector<1x256xf32>
    %c1 = arith.constant 1 : index
    %c0_1 = arith.constant 0 : index
    %1 = vector.load %arg2[%c1, %c0_1] : memref<3x256xf32, #tpu.memory_space<vmem>>, vector<1x256xf32>
    %c2 = arith.constant 2 : index
    %c0_2 = arith.constant 0 : index
    %2 = vector.load %arg2[%c2, %c0_2] : memref<3x256xf32, #tpu.memory_space<vmem>>, vector<1x256xf32>
    %c0_3 = arith.constant 0 : index
    %c0_4 = arith.constant 0 : index
    %3 = vector.load %arg0[%c0_3, %c0_4] : memref<32x1152xbf16, #tpu.memory_space<vmem>>, vector<32x1152xbf16>
    %c0_5 = arith.constant 0 : index
    %c0_6 = arith.constant 0 : index
    %4 = vector.load %arg1[%c0_5, %c0_6] : memref<1152x256xbf16, #tpu.memory_space<vmem>>, vector<1152x256xbf16>
    %cst = arith.constant dense<0.000000e+00> : vector<32x256xf32>
    %5 = tpu.matmul %3, %4, %cst {dimension_numbers = #tpu.dot_dimension_numbers<[1], [0], [0], [1], [0, 0, 1, 1], [], []>} : vector<32x1152xbf16>, vector<1152x256xbf16>, vector<32x256xf32> -> vector<32x256xf32>
    %6 = vector.broadcast %0 : vector<1x256xf32> to vector<32x256xf32>
    %7 = arith.addf %5, %6 : vector<32x256xf32>
    %c0_7 = arith.constant 0 : index
    %c0_8 = arith.constant 0 : index
    %8 = vector.load %arg4[%c0_7, %c0_8] : memref<32x256xf32, #tpu.memory_space<vmem>>, vector<32x256xf32>
    tpu.vector_store %arg4[%c0_7, %c0_8], %7 {strides = array<i32>} : memref<32x256xf32, #tpu.memory_space<vmem>>, vector<32x256xf32>,
    %c0_9 = arith.constant 0 : index
    %c0_10 = arith.constant 0 : index
    %9 = vector.load %arg4[%c0_9, %c0_10] : memref<32x256xf32, #tpu.memory_space<vmem>>, vector<32x256xf32>
    %cst_11 = arith.constant dense<0.000000e+00> : vector<256xf32>
    %10 = vector.multi_reduction <add>, %9, %cst_11 [0] : vector<32x256xf32> to vector<256xf32>
    %11 = vector.shape_cast %10 : vector<256xf32> to vector<1x256xf32>
    %cst_12 = arith.constant 3.125000e-02 : f32
    %12 = vector.broadcast %cst_12 : f32 to vector<1x256xf32>
    %13 = arith.mulf %11, %12 : vector<1x256xf32>
    %14 = arith.mulf %9, %9 : vector<32x256xf32>
    %cst_13 = arith.constant dense<0.000000e+00> : vector<256xf32>
    %15 = vector.multi_reduction <add>, %14, %cst_13 [0] : vector<32x256xf32> to vector<256xf32>
    %16 = vector.shape_cast %15 : vector<256xf32> to vector<1x256xf32>
    %cst_14 = arith.constant 3.125000e-02 : f32
    %17 = vector.broadcast %cst_14 : f32 to vector<1x256xf32>
    %18 = arith.mulf %16, %17 : vector<1x256xf32>
    %19 = arith.mulf %13, %13 : vector<1x256xf32>
    %20 = arith.subf %18, %19 : vector<1x256xf32>
    %cst_15 = arith.constant 0.000000e+00 : f32
    %21 = vector.broadcast %cst_15 : f32 to vector<1x256xf32>
    %22 = arith.maximumf %20, %21 : vector<1x256xf32>
    %cst_16 = arith.constant 9.99999974E-6 : f32
    %23 = vector.broadcast %cst_16 : f32 to vector<1x256xf32>
    %24 = arith.addf %22, %23 : vector<1x256xf32>
    %25 = math.rsqrt %24 : vector<1x256xf32>
    %26 = arith.mulf %1, %25 : vector<1x256xf32>
    %27 = arith.mulf %13, %26 : vector<1x256xf32>
    %28 = arith.subf %2, %27 : vector<1x256xf32>
    %c0_17 = arith.constant 0 : index
    %c0_18 = arith.constant 0 : index
    %29 = vector.load %arg4[%c0_17, %c0_18] : memref<32x256xf32, #tpu.memory_space<vmem>>, vector<8x256xf32>
    %30 = vector.broadcast %26 : vector<1x256xf32> to vector<8x256xf32>
    %31 = arith.mulf %29, %30 : vector<8x256xf32>
    %32 = vector.broadcast %28 : vector<1x256xf32> to vector<8x256xf32>
    %33 = arith.addf %31, %32 : vector<8x256xf32>
    %cst_19 = arith.constant 0.000000e+00 : f32
    %34 = vector.broadcast %cst_19 : f32 to vector<8x256xf32>
    %35 = arith.maximumf %33, %34 : vector<8x256xf32>
    %c8 = arith.constant 8 : index
    %c0_20 = arith.constant 0 : index
    %36 = vector.load %arg4[%c8, %c0_20] : memref<32x256xf32, #tpu.memory_space<vmem>>, vector<8x256xf32>
    %37 = vector.broadcast %26 : vector<1x256xf32> to vector<8x256xf32>
    %38 = arith.mulf %36, %37 : vector<8x256xf32>
    %39 = vector.broadcast %28 : vector<1x256xf32> to vector<8x256xf32>
    %40 = arith.addf %38, %39 : vector<8x256xf32>
    %cst_21 = arith.constant 0.000000e+00 : f32
    %41 = vector.broadcast %cst_21 : f32 to vector<8x256xf32>
    %42 = arith.maximumf %40, %41 : vector<8x256xf32>
    %43 = arith.maximumf %35, %42 : vector<8x256xf32>
    %c16 = arith.constant 16 : index
    %c0_22 = arith.constant 0 : index
    %44 = vector.load %arg4[%c16, %c0_22] : memref<32x256xf32, #tpu.memory_space<vmem>>, vector<8x256xf32>
    %45 = vector.broadcast %26 : vector<1x256xf32> to vector<8x256xf32>
    %46 = arith.mulf %44, %45 : vector<8x256xf32>
    %47 = vector.broadcast %28 : vector<1x256xf32> to vector<8x256xf32>
    %48 = arith.addf %46, %47 : vector<8x256xf32>
    %cst_23 = arith.constant 0.000000e+00 : f32
    %49 = vector.broadcast %cst_23 : f32 to vector<8x256xf32>
    %50 = arith.maximumf %48, %49 : vector<8x256xf32>
    %c24 = arith.constant 24 : index
    %c0_24 = arith.constant 0 : index
    %51 = vector.load %arg4[%c24, %c0_24] : memref<32x256xf32, #tpu.memory_space<vmem>>, vector<8x256xf32>
    %52 = vector.broadcast %26 : vector<1x256xf32> to vector<8x256xf32>
    %53 = arith.mulf %51, %52 : vector<8x256xf32>
    %54 = vector.broadcast %28 : vector<1x256xf32> to vector<8x256xf32>
    %55 = arith.addf %53, %54 : vector<8x256xf32>
    %cst_25 = arith.constant 0.000000e+00 : f32
    %56 = vector.broadcast %cst_25 : f32 to vector<8x256xf32>
    %57 = arith.maximumf %55, %56 : vector<8x256xf32>
    %58 = arith.maximumf %50, %57 : vector<8x256xf32>
    %59 = arith.maximumf %43, %58 : vector<8x256xf32>
    %c0_26 = arith.constant 0 : index
    %c0_27 = arith.constant 0 : index
    %60 = vector.load %arg3[%c0_26, %c0_27] : memref<8x256xf32, #tpu.memory_space<vmem>>, vector<8x256xf32>
    tpu.vector_store %arg3[%c0_26, %c0_27], %59 {strides = array<i32>} : memref<8x256xf32, #tpu.memory_space<vmem>>, vector<8x256xf32>,
    return
  }
}

module attributes {stable_mosaic.version = 11 : i64} {
  func.func @fused_stage_kernel(%arg0: memref<8x2304xbf16, #tpu.memory_space<vmem>>, %arg1: memref<2304x512xbf16, #tpu.memory_space<vmem>>, %arg2: memref<3x512xf32, #tpu.memory_space<vmem>>, %arg3: memref<2x512xf32, #tpu.memory_space<vmem>>, %arg4: memref<8x512xf32, #tpu.memory_space<vmem>>) attributes {dimension_semantics = [], scalar_prefetch = 0 : i64, scratch_operands = 1 : i64, tpu.core_type = #tpu.core_type<tc>} {
    %c0 = arith.constant 0 : index
    %c0_0 = arith.constant 0 : index
    %0 = vector.load %arg2[%c0, %c0_0] : memref<3x512xf32, #tpu.memory_space<vmem>>, vector<1x512xf32>
    %c1 = arith.constant 1 : index
    %c0_1 = arith.constant 0 : index
    %1 = vector.load %arg2[%c1, %c0_1] : memref<3x512xf32, #tpu.memory_space<vmem>>, vector<1x512xf32>
    %c2 = arith.constant 2 : index
    %c0_2 = arith.constant 0 : index
    %2 = vector.load %arg2[%c2, %c0_2] : memref<3x512xf32, #tpu.memory_space<vmem>>, vector<1x512xf32>
    %c0_3 = arith.constant 0 : index
    %c0_4 = arith.constant 0 : index
    %3 = vector.load %arg0[%c0_3, %c0_4] : memref<8x2304xbf16, #tpu.memory_space<vmem>>, vector<8x2304xbf16>
    %c0_5 = arith.constant 0 : index
    %c0_6 = arith.constant 0 : index
    %4 = vector.load %arg1[%c0_5, %c0_6] : memref<2304x512xbf16, #tpu.memory_space<vmem>>, vector<2304x512xbf16>
    %cst = arith.constant dense<0.000000e+00> : vector<8x512xf32>
    %5 = tpu.matmul %3, %4, %cst {dimension_numbers = #tpu.dot_dimension_numbers<[1], [0], [0], [1], [0, 0, 1, 1], [], []>} : vector<8x2304xbf16>, vector<2304x512xbf16>, vector<8x512xf32> -> vector<8x512xf32>
    %6 = vector.broadcast %0 : vector<1x512xf32> to vector<8x512xf32>
    %7 = arith.addf %5, %6 : vector<8x512xf32>
    %c0_7 = arith.constant 0 : index
    %c0_8 = arith.constant 0 : index
    %8 = vector.load %arg4[%c0_7, %c0_8] : memref<8x512xf32, #tpu.memory_space<vmem>>, vector<8x512xf32>
    tpu.vector_store %arg4[%c0_7, %c0_8], %7 {strides = array<i32>} : memref<8x512xf32, #tpu.memory_space<vmem>>, vector<8x512xf32>,
    %c0_9 = arith.constant 0 : index
    %c0_10 = arith.constant 0 : index
    %9 = vector.load %arg4[%c0_9, %c0_10] : memref<8x512xf32, #tpu.memory_space<vmem>>, vector<8x512xf32>
    %cst_11 = arith.constant dense<0.000000e+00> : vector<512xf32>
    %10 = vector.multi_reduction <add>, %9, %cst_11 [0] : vector<8x512xf32> to vector<512xf32>
    %11 = vector.shape_cast %10 : vector<512xf32> to vector<1x512xf32>
    %cst_12 = arith.constant 1.250000e-01 : f32
    %12 = vector.broadcast %cst_12 : f32 to vector<1x512xf32>
    %13 = arith.mulf %11, %12 : vector<1x512xf32>
    %14 = arith.mulf %9, %9 : vector<8x512xf32>
    %cst_13 = arith.constant dense<0.000000e+00> : vector<512xf32>
    %15 = vector.multi_reduction <add>, %14, %cst_13 [0] : vector<8x512xf32> to vector<512xf32>
    %16 = vector.shape_cast %15 : vector<512xf32> to vector<1x512xf32>
    %cst_14 = arith.constant 1.250000e-01 : f32
    %17 = vector.broadcast %cst_14 : f32 to vector<1x512xf32>
    %18 = arith.mulf %16, %17 : vector<1x512xf32>
    %19 = arith.mulf %13, %13 : vector<1x512xf32>
    %20 = arith.subf %18, %19 : vector<1x512xf32>
    %cst_15 = arith.constant 0.000000e+00 : f32
    %21 = vector.broadcast %cst_15 : f32 to vector<1x512xf32>
    %22 = arith.maximumf %20, %21 : vector<1x512xf32>
    %cst_16 = arith.constant 9.99999974E-6 : f32
    %23 = vector.broadcast %cst_16 : f32 to vector<1x512xf32>
    %24 = arith.addf %22, %23 : vector<1x512xf32>
    %25 = math.rsqrt %24 : vector<1x512xf32>
    %26 = arith.mulf %1, %25 : vector<1x512xf32>
    %27 = arith.mulf %13, %26 : vector<1x512xf32>
    %28 = arith.subf %2, %27 : vector<1x512xf32>
    %c0_17 = arith.constant 0 : index
    %c0_18 = arith.constant 0 : index
    %29 = vector.load %arg4[%c0_17, %c0_18] : memref<8x512xf32, #tpu.memory_space<vmem>>, vector<2x512xf32>
    %30 = vector.broadcast %26 : vector<1x512xf32> to vector<2x512xf32>
    %31 = arith.mulf %29, %30 : vector<2x512xf32>
    %32 = vector.broadcast %28 : vector<1x512xf32> to vector<2x512xf32>
    %33 = arith.addf %31, %32 : vector<2x512xf32>
    %cst_19 = arith.constant 0.000000e+00 : f32
    %34 = vector.broadcast %cst_19 : f32 to vector<2x512xf32>
    %35 = arith.maximumf %33, %34 : vector<2x512xf32>
    %c2_20 = arith.constant 2 : index
    %c0_21 = arith.constant 0 : index
    %36 = vector.load %arg4[%c2_20, %c0_21] : memref<8x512xf32, #tpu.memory_space<vmem>>, vector<2x512xf32>
    %37 = vector.broadcast %26 : vector<1x512xf32> to vector<2x512xf32>
    %38 = arith.mulf %36, %37 : vector<2x512xf32>
    %39 = vector.broadcast %28 : vector<1x512xf32> to vector<2x512xf32>
    %40 = arith.addf %38, %39 : vector<2x512xf32>
    %cst_22 = arith.constant 0.000000e+00 : f32
    %41 = vector.broadcast %cst_22 : f32 to vector<2x512xf32>
    %42 = arith.maximumf %40, %41 : vector<2x512xf32>
    %43 = arith.maximumf %35, %42 : vector<2x512xf32>
    %c4 = arith.constant 4 : index
    %c0_23 = arith.constant 0 : index
    %44 = vector.load %arg4[%c4, %c0_23] : memref<8x512xf32, #tpu.memory_space<vmem>>, vector<2x512xf32>
    %45 = vector.broadcast %26 : vector<1x512xf32> to vector<2x512xf32>
    %46 = arith.mulf %44, %45 : vector<2x512xf32>
    %47 = vector.broadcast %28 : vector<1x512xf32> to vector<2x512xf32>
    %48 = arith.addf %46, %47 : vector<2x512xf32>
    %cst_24 = arith.constant 0.000000e+00 : f32
    %49 = vector.broadcast %cst_24 : f32 to vector<2x512xf32>
    %50 = arith.maximumf %48, %49 : vector<2x512xf32>
    %c6 = arith.constant 6 : index
    %c0_25 = arith.constant 0 : index
    %51 = vector.load %arg4[%c6, %c0_25] : memref<8x512xf32, #tpu.memory_space<vmem>>, vector<2x512xf32>
    %52 = vector.broadcast %26 : vector<1x512xf32> to vector<2x512xf32>
    %53 = arith.mulf %51, %52 : vector<2x512xf32>
    %54 = vector.broadcast %28 : vector<1x512xf32> to vector<2x512xf32>
    %55 = arith.addf %53, %54 : vector<2x512xf32>
    %cst_26 = arith.constant 0.000000e+00 : f32
    %56 = vector.broadcast %cst_26 : f32 to vector<2x512xf32>
    %57 = arith.maximumf %55, %56 : vector<2x512xf32>
    %58 = arith.maximumf %50, %57 : vector<2x512xf32>
    %59 = arith.maximumf %43, %58 : vector<2x512xf32>
    %c0_27 = arith.constant 0 : index
    %c0_28 = arith.constant 0 : index
    %60 = vector.load %arg3[%c0_27, %c0_28] : memref<2x512xf32, #tpu.memory_space<vmem>>, vector<2x512xf32>
    tpu.vector_store %arg3[%c0_27, %c0_28], %59 {strides = array<i32>} : memref<2x512xf32, #tpu.memory_space<vmem>>, vector<2x512xf32>,
    return
  }
}

</mosaic_0001>

<bundles_post_ra>
// kernel: normnet_forward.4
= control target key start
LH: loop header
LB: loop body
LE: loop exit
PB: predicated region body
PF: predicated region fallthrough
CT: control target
= control target key end

     0   :  { %8 = vsyncpa [#allocation4], 0  ;;  %s2714_s0 = inlined_call_operand.vmem [shape: bf16[512,9], index: 0, kind: input, shape index: {}]   ;;  %s2715_s1 = inlined_call_operand.hbm [shape: bf16[9,64], index: 1, kind: input, shape index: {}]   ;;  %s2716_s2 = inlined_call_operand.hbm [shape: f32[3,64], index: 2, kind: input, shape index: {}]   ;;  %s2717_s3 = inlined_call_operand.vmem [shape: f32[128,64], index: 3, kind: output, shape index: {}]  }
   0x1   :  { %s16_s14 = sshll.u32 %s2715_s1, 4  ;;  %s17_s14 = int_to_ptr.hbm [resolvable:$true] %s16_s14 }
   0x2   :  { %9 = vsyncpa [#allocation6], 0  ;;  %s1555_s15 = smov [#allocation3]   ;;  %s30_s19 = sshll.u32 %s2716_s2, 4  ;;  %s31_s19 = int_to_ptr.hbm [resolvable:$true] %s30_s19 }
   0x3   :  { %s18_s16 = sshll.u32 %s1555_s15, 4  ;;  %s1556_s20 = smov 64   ;;  %s19_s16 = int_to_ptr.vmem [resolvable:$true] %s18_s16 }
   0x4   :  { %s1557_s21 = smov 4   ;;  %s1558_s22 = smov [#allocation5]  }
   0x5   :  { %24 = dma.hbm_to_vmem [thread:$0]  %s17_s14, 128, %s19_s16, [#allocation4], %s1556_s20, %s1556_s20, %s1557_s21  }
   0x6   :  { %s32_s23 = sshll.u32 %s1558_s22, 4  ;;  %s33_s23 = int_to_ptr.vmem [resolvable:$true] %s32_s23 }
   0x7   :  { %35 = dma.hbm_to_vmem [thread:$0]  %s31_s19, 64, %s33_s23, [#allocation6]  }
   0x8   :  { %1551 = dma.done.wait [#allocation4], 128  }
   0x9   :  { %1552 = vsyncadd [#allocation4], 4294967168 }
   0xa   :  { %1553 = dma.done.wait [#allocation6], 64  }
   0xb   :  { %1554 = vsyncadd [#allocation6], 4294967232  ;;  %vm377_vm0 = vcmask 1043456   ;;  %vm378_vm1 = vcmask 1044480   ;;  %v1559_v0 = vmov 65535   ;;  %v1459_v7 = vld [vmem:[%s2714_s0] sm:$0xff] }
   0xc   :  { %v379_v1 = vsel %vm377_vm0, 4294967295, %v1559_v0  ;;  %v1425_v2 = vld [vmem:[#allocation3] sm:$0xf]  ;;  %v1491_v3 = vld [vmem:[#allocation3] sm:$0x10]  ;;  %vm280_vm2 = vcmask 72704  }
   0xd   :  { %v380_v4 = vsel %vm378_vm1, %v379_v1, 0  ;;  %v1426_v5 = vor.u32 %v1491_v3, %v1425_v2  ;;  %v1467_v8 = vld [vmem:[%s2714_s0 + $0x40] sm:$0xff]  ;;  %v1460_v9 = vld [vmem:[%s2714_s0 + $0x8] sm:$0xff]  ;;  %v1461_v12 = vld [vmem:[%s2714_s0 + $0x10] sm:$0xff]  ;;  %vm553_vm3 = vcmask 523264  }
   0xe   :  { %v1468_v10 = vld [vmem:[%s2714_s0 + $0x48] sm:$0xff]  ;;  %v1475_v11 = vld [vmem:[%s2714_s0 + $0x80] sm:$0xff]  ;;  %v1469_v13 = vld [vmem:[%s2714_s0 + $0x50] sm:$0xff] }
   0xf   :  { %v382_v6 = vand.u32 %v1426_v5, %v380_v4  ;;  %v1476_v14 = vld [vmem:[%s2714_s0 + $0x88] sm:$0xff]  ;;  %v1462_v15 = vld [vmem:[%s2714_s0 + $0x18] sm:$0xff]  ;;  %v1477_v17 = vld [vmem:[%s2714_s0 + $0x90] sm:$0xff] }
  0x10   :  { %v1470_v16 = vld [vmem:[%s2714_s0 + $0x58] sm:$0xff]  ;;  %v1483_v18 = vld [vmem:[%s2714_s0 + $0xc0] sm:$0xff]  ;;  %v1484_v22 = vld [vmem:[%s2714_s0 + $0xc8] sm:$0xff] }
  0x11   :  { %391 = vmatpush.bf16.msra.mxu0 %v382_v6  ;;  %1492 = vmatpush.bf16.msra.mxu1 %v382_v6  ;;  %v1463_v19 = vld [vmem:[%s2714_s0 + $0x20] sm:$0xff]  ;;  %v1478_v21 = vld [vmem:[%s2714_s0 + $0x98] sm:$0xff]  ;;  %v1464_v23 = vld [vmem:[%s2714_s0 + $0x28] sm:$0xff] }
  0x12   :  { %1493 = vmatpush.bf16.msra.mxu2 %v382_v6  ;;  %1494 = vmatpush.bf16.msra.mxu3 %v382_v6  ;;  %v1471_v20 = vld [vmem:[%s2714_s0 + $0x60] sm:$0xff]  ;;  %v1472_v24 = vld [vmem:[%s2714_s0 + $0x68] sm:$0xff]  ;;  %v1485_v26 = vld [vmem:[%s2714_s0 + $0xd0] sm:$0xff] }
  0x13   :  { %v1479_v25 = vld [vmem:[%s2714_s0 + $0xa0] sm:$0xff]  ;;  %v1465_v27 = vld [vmem:[%s2714_s0 + $0x30] sm:$0xff]  ;;  %v1480_v29 = vld [vmem:[%s2714_s0 + $0xa8] sm:$0xff] }
  0x14   :  { %1427 = vmatmul.msk.bf16.vlgmr.msra.gmra.mxu0 %vm280_vm2, %v1459_v7  ;;  %1435 = vmatmul.msk.bf16.vlgmr.msra.gmra.mxu1 %vm280_vm2, %v1467_v8  ;;  %v1473_v28 = vld [vmem:[%s2714_s0 + $0x70] sm:$0xff]  ;;  %v1486_v30 = vld [vmem:[%s2714_s0 + $0xd8] sm:$0xff]  ;;  %v1487_v34 = vld [vmem:[%s2714_s0 + $0xe0] sm:$0xff] }
  0x15   :  { %1443 = vmatmul.msk.bf16.vlgmr.msra.gmra.mxu2 %vm280_vm2, %v1475_v11  ;;  %1451 = vmatmul.msk.bf16.vlgmr.msra.gmra.mxu3 %vm280_vm2, %v1483_v18  ;;  %v1466_v31 = vld [vmem:[%s2714_s0 + $0x38] sm:$0xff]  ;;  %v1481_v33 = vld [vmem:[%s2714_s0 + $0xb0] sm:$0xff]  ;;  %v1698_v35 = vld [vmem:[#allocation5] ss:$0 sm:$0xff] }
  0x16   :  { %v1474_v32 = vld [vmem:[%s2714_s0 + $0x78] sm:$0xff]  ;;  %v1488_v41 = vld [vmem:[%s2714_s0 + $0xe8] sm:$0xff]  ;;  %v1489_v50 = vld [vmem:[%s2714_s0 + $0xf0] sm:$0xff] }
  0x17   :  { %v1482_v40 = vld [vmem:[%s2714_s0 + $0xb8] sm:$0xff] }
  0x18   :  { %v1490_v63 = vld [vmem:[%s2714_s0 + $0xf8] sm:$0xff] }
  0x24   :  { %1428 = vmatmul.msk.bf16.gmra.mxu0 %vm280_vm2, %v1460_v9  ;;  %1436 = vmatmul.msk.bf16.gmra.mxu1 %vm280_vm2, %v1468_v10 }
  0x25   :  { %1444 = vmatmul.msk.bf16.gmra.mxu2 %vm280_vm2, %v1476_v14  ;;  %1452 = vmatmul.msk.bf16.gmra.mxu3 %vm280_vm2, %v1484_v22 }
  0x34   :  { %1429 = vmatmul.msk.bf16.gmra.mxu0 %vm280_vm2, %v1461_v12  ;;  %1437 = vmatmul.msk.bf16.gmra.mxu1 %vm280_vm2, %v1469_v13 }
  0x35   :  { %1445 = vmatmul.msk.bf16.gmra.mxu2 %vm280_vm2, %v1477_v17  ;;  %1453 = vmatmul.msk.bf16.gmra.mxu3 %vm280_vm2, %v1485_v26 }
  0x44   :  { %1430 = vmatmul.msk.bf16.gmra.mxu0 %vm280_vm2, %v1462_v15  ;;  %1438 = vmatmul.msk.bf16.gmra.mxu1 %vm280_vm2, %v1470_v16 }
  0x45   :  { %1446 = vmatmul.msk.bf16.gmra.mxu2 %vm280_vm2, %v1478_v21  ;;  %1454 = vmatmul.msk.bf16.gmra.mxu3 %vm280_vm2, %v1486_v30 }
  0x54   :  { %1431 = vmatmul.msk.bf16.gmra.mxu0 %vm280_vm2, %v1463_v19  ;;  %1439 = vmatmul.msk.bf16.gmra.mxu1 %vm280_vm2, %v1471_v20 }
  0x55   :  { %1447 = vmatmul.msk.bf16.gmra.mxu2 %vm280_vm2, %v1479_v25  ;;  %1455 = vmatmul.msk.bf16.gmra.mxu3 %vm280_vm2, %v1487_v34 }
  0x64   :  { %1432 = vmatmul.msk.bf16.gmra.mxu0 %vm280_vm2, %v1464_v23  ;;  %1440 = vmatmul.msk.bf16.gmra.mxu1 %vm280_vm2, %v1472_v24 }
  0x65   :  { %1448 = vmatmul.msk.bf16.gmra.mxu2 %vm280_vm2, %v1480_v29  ;;  %1456 = vmatmul.msk.bf16.gmra.mxu3 %vm280_vm2, %v1488_v41 }
  0x74   :  { %1433 = vmatmul.msk.bf16.gmra.mxu0 %vm280_vm2, %v1465_v27  ;;  %1441 = vmatmul.msk.bf16.gmra.mxu1 %vm280_vm2, %v1473_v28 }
  0x75   :  { %1449 = vmatmul.msk.bf16.gmra.mxu2 %vm280_vm2, %v1481_v33  ;;  %1457 = vmatmul.msk.bf16.gmra.mxu3 %vm280_vm2, %v1489_v50 }
  0x84   :  { %1434 = vmatmul.msk.bf16.gmra.mxu0 %vm280_vm2, %v1466_v31  ;;  %1442 = vmatmul.msk.bf16.gmra.mxu1 %vm280_vm2, %v1474_v32 }
  0x85   :  { %1450 = vmatmul.msk.bf16.gmra.mxu2 %vm280_vm2, %v1482_v40  ;;  %1458 = vmatmul.msk.bf16.gmra.mxu3 %vm280_vm2, %v1490_v63 }
  0x91   :  { %v393_v36 = vpop.f32.mrf.mxu0  ;;  %v433_v37 = vpop.f32.mrf.mxu1 }
  0x92   :  { %v394_v38 = vadd.f32 %v1698_v35, %v393_v36  ;;  %v434_v39 = vadd.f32 %v1698_v35, %v433_v37 }
  0x94   :  { %554 = vst.msk [vmem:[#allocation2] sm:$0xff] %vm553_vm3, %v394_v38 }
  0x95   :  { %570 = vst.msk [vmem:[#allocation2 + $0x80] sm:$0xff] %vm553_vm3, %v434_v39 }
  0x98   :  { %v473_v55 = vpop.f32.mrf.mxu2  ;;  %v513_v17 = vpop.f32.mrf.mxu3 }
  0x99   :  { %v395_v42 = vpop.f32.mrf.mxu0  ;;  %v435_v43 = vpop.f32.mrf.mxu1  ;;  %v474_v60 = vadd.f32 %v1698_v35, %v473_v55  ;;  %v514_v25 = vadd.f32 %v1698_v35, %v513_v17 }
  0x9a   :  { %v396_v44 = vadd.f32 %v1698_v35, %v395_v42  ;;  %v436_v45 = vadd.f32 %v1698_v35, %v435_v43 }
  0x9b   :  { %586 = vst.msk [vmem:[#allocation2 + $0x100] sm:$0xff] %vm553_vm3, %v474_v60 }
  0x9c   :  { %555 = vst.msk [vmem:[#allocation2 + $0x8] sm:$0xff] %vm553_vm3, %v396_v44 }
  0x9d   :  { %571 = vst.msk [vmem:[#allocation2 + $0x88] sm:$0xff] %vm553_vm3, %v436_v45 }
  0x9e   :  { %602 = vst.msk [vmem:[#allocation2 + $0x180] sm:$0xff] %vm553_vm3, %v514_v25 }
  0xa0   :  { %v475_v61 = vpop.f32.mrf.mxu2  ;;  %v515_v24 = vpop.f32.mrf.mxu3 }
  0xa1   :  { %v398_v46 = vpop.f32.mrf.mxu0  ;;  %v438_v47 = vpop.f32.mrf.mxu1  ;;  %v476_v62 = vadd.f32 %v1698_v35, %v475_v61  ;;  %v516_v27 = vadd.f32 %v1698_v35, %v515_v24 }
  0xa2   :  { %v399_v48 = vadd.f32 %v1698_v35, %v398_v46  ;;  %v439_v49 = vadd.f32 %v1698_v35, %v438_v47 }
  0xa3   :  { %587 = vst.msk [vmem:[#allocation2 + $0x108] sm:$0xff] %vm553_vm3, %v476_v62 }
  0xa4   :  { %556 = vst.msk [vmem:[#allocation2 + $0x10] sm:$0xff] %vm553_vm3, %v399_v48 }
  0xa5   :  { %572 = vst.msk [vmem:[#allocation2 + $0x90] sm:$0xff] %vm553_vm3, %v439_v49 }
  0xa6   :  { %603 = vst.msk [vmem:[#allocation2 + $0x188] sm:$0xff] %vm553_vm3, %v516_v27 }
  0xa8   :  { %v478_v4 = vpop.f32.mrf.mxu2  ;;  %v518_v33 = vpop.f32.mrf.mxu3 }
  0xa9   :  { %v400_v51 = vpop.f32.mrf.mxu0  ;;  %v440_v52 = vpop.f32.mrf.mxu1  ;;  %v479_v9 = vadd.f32 %v1698_v35, %v478_v4  ;;  %v519_v42 = vadd.f32 %v1698_v35, %v518_v33 }
  0xaa   :  { %v401_v53 = vadd.f32 %v1698_v35, %v400_v51  ;;  %v441_v54 = vadd.f32 %v1698_v35, %v440_v52  ;;  %v1788_v51 = vld [vmem:[#allocation2 + $0x8] sm:$0xff] }
  0xab   :  { %588 = vst.msk [vmem:[#allocation2 + $0x110] sm:$0xff] %vm553_vm3, %v479_v9  ;;  %v1792_v55 = vld [vmem:[#allocation2 + $0x10] sm:$0xff]  ;;  %v817_v62 = vmul.f32 %v1788_v51, %v1788_v51  ;;  %v683_v4 = vsel %vm553_vm3, %v1788_v51, 0.0 }
  0xac   :  { %557 = vst.msk [vmem:[#allocation2 + $0x18] sm:$0xff] %vm553_vm3, %v401_v53 }
  0xad   :  { %573 = vst.msk [vmem:[#allocation2 + $0x98] sm:$0xff] %vm553_vm3, %v441_v54  ;;  %v1790_v54 = vld [vmem:[#allocation2] sm:$0xff] }
  0xae   :  { %604 = vst.msk [vmem:[#allocation2 + $0x190] sm:$0xff] %vm553_vm3, %v519_v42 }
  0xb0   :  { %v480_v10 = vpop.f32.mrf.mxu2  ;;  %v520_v41 = vpop.f32.mrf.mxu3 }
  0xb1   :  { %v403_v56 = vpop.f32.mrf.mxu0  ;;  %v443_v57 = vpop.f32.mrf.mxu1  ;;  %v481_v11 = vadd.f32 %v1698_v35, %v480_v10  ;;  %v521_v44 = vadd.f32 %v1698_v35, %v520_v41 }
  0xb2   :  { %v404_v58 = vadd.f32 %v1698_v35, %v403_v56  ;;  %v444_v59 = vadd.f32 %v1698_v35, %v443_v57 }
  0xb3   :  { %589 = vst.msk [vmem:[#allocation2 + $0x118] sm:$0xff] %vm553_vm3, %v481_v11 }
  0xb4   :  { %558 = vst.msk [vmem:[#allocation2 + $0x20] sm:$0xff] %vm553_vm3, %v404_v58 }
  0xb5   :  { %574 = vst.msk [vmem:[#allocation2 + $0xa0] sm:$0xff] %vm553_vm3, %v444_v59 }
  0xb6   :  { %605 = vst.msk [vmem:[#allocation2 + $0x198] sm:$0xff] %vm553_vm3, %v521_v44 }
  0xb8   :  { %v483_v16 = vpop.f32.mrf.mxu2  ;;  %v523_v50 = vpop.f32.mrf.mxu3 }
  0xb9   :  { %v405_v0 = vpop.f32.mrf.mxu0  ;;  %v445_v1 = vpop.f32.mrf.mxu1  ;;  %v484_v22 = vadd.f32 %v1698_v35, %v483_v16  ;;  %v524_v61 = vadd.f32 %v1698_v35, %v523_v50 }
  0xba   :  { %v406_v2 = vadd.f32 %v1698_v35, %v405_v0  ;;  %v446_v3 = vadd.f32 %v1698_v35, %v445_v1  ;;  %v816_v0 = vmul.f32 %v1790_v54, %v1790_v54  ;;  %v818_v1 = vmul.f32 %v1792_v55, %v1792_v55 }
  0xbb   :  { %590 = vst.msk [vmem:[#allocation2 + $0x120] sm:$0xff] %vm553_vm3, %v484_v22 }
  0xbc   :  { %559 = vst.msk [vmem:[#allocation2 + $0x28] sm:$0xff] %vm553_vm3, %v406_v2  ;;  %v1806_v2 = vld [vmem:[#allocation2 + $0x18] sm:$0xff]  ;;  %v880_v10 = vsel %vm553_vm3, %v816_v0, 0.0 }
  0xbd   :  { %575 = vst.msk [vmem:[#allocation2 + $0xa8] sm:$0xff] %vm553_vm3, %v446_v3  ;;  %v819_v9 = vmul.f32 %v1806_v2, %v1806_v2  ;;  %v687_v16 = vsel %vm553_vm3, %v1806_v2, 0.0 }
  0xbe   :  { %606 = vst.msk [vmem:[#allocation2 + $0x1a0] sm:$0xff] %vm553_vm3, %v524_v61 }
  0xbf   :  { %v885_v25 = vsel %vm553_vm3, %v819_v9, 0.0 }
  0xc0   :  { %v485_v23 = vpop.f32.mrf.mxu2  ;;  %v525_v60 = vpop.f32.mrf.mxu3 }
  0xc1   :  { %v408_v5 = vpop.f32.mrf.mxu0  ;;  %v448_v6 = vpop.f32.mrf.mxu1  ;;  %v486_v26 = vadd.f32 %v1698_v35, %v485_v23  ;;  %v526_v3 = vadd.f32 %v1698_v35, %v525_v60 }
  0xc2   :  { %v409_v7 = vadd.f32 %v1698_v35, %v408_v5  ;;  %v449_v8 = vadd.f32 %v1698_v35, %v448_v6  ;;  %v1813_v5 = vld [vmem:[#allocation2 + $0x20] sm:$0xff]  ;;  %v682_v6 = vsel %vm553_vm3, %v1790_v54, 0.0 }
  0xc3   :  { %591 = vst.msk [vmem:[#allocation2 + $0x128] sm:$0xff] %vm553_vm3, %v486_v26  ;;  %v684_v11 = vadd.f32 %v683_v4, %v682_v6  ;;  %v820_v17 = vmul.f32 %v1813_v5, %v1813_v5  ;;  %v689_v26 = vsel %vm553_vm3, %v1813_v5, 0.0 }
  0xc4   :  { %560 = vst.msk [vmem:[#allocation2 + $0x30] sm:$0xff] %vm553_vm3, %v409_v7  ;;  %v881_v7 = vsel %vm553_vm3, %v817_v62, 0.0 }
  0xc5   :  { %576 = vst.msk [vmem:[#allocation2 + $0xb0] sm:$0xff] %vm553_vm3, %v449_v8  ;;  %v685_v8 = vsel %vm553_vm3, %v1792_v55, 0.0  ;;  %v882_v23 = vadd.f32 %v881_v7, %v880_v10 }
  0xc6   :  { %607 = vst.msk [vmem:[#allocation2 + $0x1a8] sm:$0xff] %vm553_vm3, %v526_v3  ;;  %v686_v24 = vadd.f32 %v685_v8, %v684_v11 }
  0xc8   :  { %v488_v32 = vpop.f32.mrf.mxu2  ;;  %v528_v22 = vpop.f32.mrf.mxu3 }
  0xc9   :  { %v410_v12 = vpop.f32.mrf.mxu0  ;;  %v450_v13 = vpop.f32.mrf.mxu1  ;;  %v489_v39 = vadd.f32 %v1698_v35, %v488_v32  ;;  %v887_v32 = vsel %vm553_vm3, %v820_v17, 0.0  ;;  %v529_v60 = vadd.f32 %v1698_v35, %v528_v22 }
  0xca   :  { %v411_v14 = vadd.f32 %v1698_v35, %v410_v12  ;;  %v451_v15 = vadd.f32 %v1698_v35, %v450_v13  ;;  %v883_v12 = vsel %vm553_vm3, %v818_v1, 0.0  ;;  %v1826_v13 = vld [vmem:[#allocation2 + $0x28] sm:$0xff] }
  0xcb   :  { %592 = vst.msk [vmem:[#allocation2 + $0x130] sm:$0xff] %vm553_vm3, %v489_v39  ;;  %v821_v27 = vmul.f32 %v1826_v13, %v1826_v13  ;;  %v691_v33 = vsel %vm553_vm3, %v1826_v13, 0.0 }
  0xcc   :  { %561 = vst.msk [vmem:[#allocation2 + $0x38] sm:$0xff] %vm553_vm3, %v411_v14 }
  0xcd   :  { %577 = vst.msk [vmem:[#allocation2 + $0xb8] sm:$0xff] %vm553_vm3, %v451_v15 }
  0xce   :  { %608 = vst.msk [vmem:[#allocation2 + $0x1b0] sm:$0xff] %vm553_vm3, %v529_v60 }
  0xd0   :  { %v490_v40 = vpop.f32.mrf.mxu2 }
  0xd1   :  { %v413_v18 = vpop.f32.mrf.mxu0  ;;  %v453_v19 = vpop.f32.mrf.mxu1  ;;  %v491_v43 = vadd.f32 %v1698_v35, %v490_v40 }
  0xd2   :  { %v414_v20 = vadd.f32 %v1698_v35, %v413_v18  ;;  %v454_v21 = vadd.f32 %v1698_v35, %v453_v19  ;;  %v1833_v18 = vld [vmem:[#allocation2 + $0x30] sm:$0xff] }
  0xd3   :  { %593 = vst.msk [vmem:[#allocation2 + $0x138] sm:$0xff] %vm553_vm3, %v491_v43  ;;  %v693_v39 = vsel %vm553_vm3, %v1833_v18, 0.0 }
  0xd4   :  { %562 = vst.msk [vmem:[#allocation2 + $0x40] sm:$0xff] %vm553_vm3, %v414_v20 }
  0xd5   :  { %578 = vst.msk [vmem:[#allocation2 + $0xc0] sm:$0xff] %vm553_vm3, %v454_v21 }
  0xd8   :  { %v493_v49 = vpop.f32.mrf.mxu2 }
  0xd9   :  { %v415_v28 = vpop.f32.mrf.mxu0  ;;  %v455_v29 = vpop.f32.mrf.mxu1  ;;  %v494_v58 = vadd.f32 %v1698_v35, %v493_v49 }
  0xda   :  { %v416_v30 = vadd.f32 %v1698_v35, %v415_v28  ;;  %v456_v31 = vadd.f32 %v1698_v35, %v455_v29  ;;  %v884_v28 = vadd.f32 %v883_v12, %v882_v23  ;;  %v688_v29 = vadd.f32 %v687_v16, %v686_v24 }
  0xdb   :  { %594 = vst.msk [vmem:[#allocation2 + $0x140] sm:$0xff] %vm553_vm3, %v494_v58 }
  0xdc   :  { %563 = vst.msk [vmem:[#allocation2 + $0x48] sm:$0xff] %vm553_vm3, %v416_v30  ;;  %v822_v30 = vmul.f32 %v1833_v18, %v1833_v18 }
  0xdd   :  { %579 = vst.msk [vmem:[#allocation2 + $0xc8] sm:$0xff] %vm553_vm3, %v456_v31  ;;  %v1845_v31 = vld [vmem:[#allocation2 + $0x38] sm:$0xff] }
  0xde   :  { %v823_v40 = vmul.f32 %v1845_v31, %v1845_v31  ;;  %v891_v43 = vsel %vm553_vm3, %v822_v30, 0.0  ;;  %v695_v44 = vsel %vm553_vm3, %v1845_v31, 0.0 }
  0xe0   :  { %v495_v59 = vpop.f32.mrf.mxu2  ;;  %v893_v61 = vsel %vm553_vm3, %v823_v40, 0.0 }
  0xe1   :  { %v418_v34 = vpop.f32.mrf.mxu0  ;;  %v458_v36 = vpop.f32.mrf.mxu1  ;;  %v496_v63 = vadd.f32 %v1698_v35, %v495_v59 }
  0xe2   :  { %v419_v37 = vadd.f32 %v1698_v35, %v418_v34  ;;  %v459_v38 = vadd.f32 %v1698_v35, %v458_v36  ;;  %v886_v34 = vadd.f32 %v885_v25, %v884_v28  ;;  %v690_v36 = vadd.f32 %v689_v26, %v688_v29 }
  0xe3   :  { %595 = vst.msk [vmem:[#allocation2 + $0x148] sm:$0xff] %vm553_vm3, %v496_v63 }
  0xe4   :  { %564 = vst.msk [vmem:[#allocation2 + $0x50] sm:$0xff] %vm553_vm3, %v419_v37  ;;  %v1851_v37 = vld [vmem:[#allocation2 + $0x40] sm:$0xff]  ;;  %v888_v41 = vadd.f32 %v887_v32, %v886_v34  ;;  %v692_v42 = vadd.f32 %v691_v33, %v690_v36 }
  0xe5   :  { %580 = vst.msk [vmem:[#allocation2 + $0xd0] sm:$0xff] %vm553_vm3, %v459_v38  ;;  %v889_v38 = vsel %vm553_vm3, %v821_v27, 0.0  ;;  %v697_v62 = vsel %vm553_vm3, %v1851_v37, 0.0 }
  0xe6   :  { %v890_v58 = vadd.f32 %v889_v38, %v888_v41  ;;  %v694_v59 = vadd.f32 %v693_v39, %v692_v42 }
  0xe8   :  { %v498_v21 = vpop.f32.mrf.mxu2  ;;  %v892_v1 = vadd.f32 %v891_v43, %v890_v58  ;;  %v696_v3 = vadd.f32 %v695_v44, %v694_v59 }
  0xe9   :  { %v420_v45 = vpop.f32.mrf.mxu0  ;;  %v460_v46 = vpop.f32.mrf.mxu1 }
  0xea   :  { %v421_v47 = vadd.f32 %v1698_v35, %v420_v45  ;;  %v461_v48 = vadd.f32 %v1698_v35, %v460_v46  ;;  %v1861_v45 = vld [vmem:[#allocation2 + $0x48] sm:$0xff]  ;;  %v894_v10 = vadd.f32 %v893_v61, %v892_v1  ;;  %v698_v11 = vadd.f32 %v697_v62, %v696_v3 }
  0xeb   :  { %v1865_v49 = vld [vmem:[#allocation2 + $0x50] sm:$0xff]  ;;  %v825_v63 = vmul.f32 %v1861_v45, %v1861_v45  ;;  %v699_v9 = vsel %vm553_vm3, %v1861_v45, 0.0  ;;  %v1929_v61 = vld [vmem:[#allocation2 + $0x88] sm:$0xff] }
  0xec   :  { %565 = vst.msk [vmem:[#allocation2 + $0x58] sm:$0xff] %vm553_vm3, %v421_v47  ;;  %v826_v4 = vmul.f32 %v1865_v49, %v1865_v49 }
  0xed   :  { %581 = vst.msk [vmem:[#allocation2 + $0xd8] sm:$0xff] %vm553_vm3, %v461_v48  ;;  %v824_v48 = vmul.f32 %v1851_v37, %v1851_v37 }
  0xef   :  { %v895_v8 = vsel %vm553_vm3, %v824_v48, 0.0 }
  0xf0   :  { %v896_v17 = vadd.f32 %v895_v8, %v894_v10 }
  0xf1   :  { %v423_v52 = vpop.f32.mrf.mxu0  ;;  %v463_v53 = vpop.f32.mrf.mxu1 }
  0xf2   :  { %v424_v56 = vadd.f32 %v1698_v35, %v423_v52  ;;  %v464_v57 = vadd.f32 %v1698_v35, %v463_v53  ;;  %v499_v53 = vadd.f32 %v1698_v35, %v498_v21 }
  0xf3   :  { %v1880_v6 = vld [vmem:[#allocation2 + $0x58] sm:$0xff] }
  0xf4   :  { %566 = vst.msk [vmem:[#allocation2 + $0x60] sm:$0xff] %vm553_vm3, %v424_v56  ;;  %v500_v56 = vpop.f32.mrf.mxu2  ;;  %v827_v16 = vmul.f32 %v1880_v6, %v1880_v6  ;;  %v703_v24 = vsel %vm553_vm3, %v1880_v6, 0.0 }
  0xf5   :  { %582 = vst.msk [vmem:[#allocation2 + $0xe0] sm:$0xff] %vm553_vm3, %v464_v57  ;;  %v530_v57 = vpop.f32.mrf.mxu3  ;;  %v501_v0 = vadd.f32 %v1698_v35, %v500_v56 }
  0xf6   :  { %v531_v7 = vadd.f32 %v1698_v35, %v530_v57  ;;  %596 = vst.msk [vmem:[#allocation2 + $0x150] sm:$0xff] %vm553_vm3, %v499_v53  ;;  %v901_v34 = vsel %vm553_vm3, %v827_v16, 0.0 }
  0xf7   :  { %597 = vst.msk [vmem:[#allocation2 + $0x158] sm:$0xff] %vm553_vm3, %v501_v0 }
  0xf8   :  { %609 = vst.msk [vmem:[#allocation2 + $0x1b8] sm:$0xff] %vm553_vm3, %v531_v7 }
  0xf9   :  { %v425_v14 = vpop.f32.mrf.mxu0  ;;  %v465_v15 = vpop.f32.mrf.mxu1 }
  0xfa   :  { %v426_v19 = vadd.f32 %v1698_v35, %v425_v14  ;;  %v466_v20 = vadd.f32 %v1698_v35, %v465_v15  ;;  %v897_v14 = vsel %vm553_vm3, %v825_v63, 0.0  ;;  %v701_v15 = vsel %vm553_vm3, %v1865_v49, 0.0 }
  0xfb   :  { %v1888_v12 = vld [vmem:[#allocation2 + $0x60] sm:$0xff]  ;;  %v898_v30 = vadd.f32 %v897_v14, %v896_v17  ;;  %v1951_v17 = vld [vmem:[#allocation2 + $0x98] sm:$0xff] }
  0xfc   :  { %567 = vst.msk [vmem:[#allocation2 + $0x68] sm:$0xff] %vm553_vm3, %v426_v19  ;;  %v700_v19 = vadd.f32 %v699_v9, %v698_v11  ;;  %v828_v25 = vmul.f32 %v1888_v12, %v1888_v12  ;;  %v503_v28 = vpop.f32.mrf.mxu2  ;;  %v705_v36 = vsel %vm553_vm3, %v1888_v12, 0.0  ;;  %v1942_v9 = vld [vmem:[#allocation2 + $0x90] sm:$0xff] }
  0xfd   :  { %583 = vst.msk [vmem:[#allocation2 + $0xe8] sm:$0xff] %vm553_vm3, %v466_v20  ;;  %v899_v20 = vsel %vm553_vm3, %v826_v4, 0.0  ;;  %v533_v29 = vpop.f32.mrf.mxu3  ;;  %v504_v57 = vadd.f32 %v1698_v35, %v503_v28 }
  0xfe   :  { %v702_v32 = vadd.f32 %v701_v15, %v700_v19  ;;  %v900_v39 = vadd.f32 %v899_v20, %v898_v30  ;;  %v903_v41 = vsel %vm553_vm3, %v828_v25, 0.0  ;;  %v534_v58 = vadd.f32 %v1698_v35, %v533_v29  ;;  %v1959_v25 = vld [vmem:[#allocation2 + $0xa0] sm:$0xff] }
  0xff   :  { %598 = vst.msk [vmem:[#allocation2 + $0x160] sm:$0xff] %vm553_vm3, %v504_v57  ;;  %v833_v15 = vmul.f32 %v1929_v61, %v1929_v61  ;;  %v717_v29 = vsel %vm553_vm3, %v1942_v9, 0.0  ;;  %v835_v30 = vmul.f32 %v1951_v17, %v1951_v17 }
 0x100   :  { %v704_v40 = vadd.f32 %v703_v24, %v702_v32  ;;  %v902_v44 = vadd.f32 %v901_v34, %v900_v39  ;;  %610 = vst.msk [vmem:[#allocation2 + $0x1c0] sm:$0xff] %vm553_vm3, %v534_v58  ;;  %v834_v24 = vmul.f32 %v1942_v9, %v1942_v9  ;;  %v1966_v32 = vld [vmem:[#allocation2 + $0xa8] sm:$0xff] }
 0x101   :  { %v428_v46 = vpop.f32.mrf.mxu0  ;;  %v468_v47 = vpop.f32.mrf.mxu1  ;;  %v913_v28 = vsel %vm553_vm3, %v833_v15, 0.0  ;;  %v1996_v15 = vld [vmem:[#allocation2 + $0xc8] sm:$0xff] }
 0x102   :  { %v429_v50 = vadd.f32 %v1698_v35, %v428_v46  ;;  %v469_v52 = vadd.f32 %v1698_v35, %v468_v47  ;;  %v706_v46 = vadd.f32 %v705_v36, %v704_v40  ;;  %v915_v40 = vsel %vm553_vm3, %v834_v24, 0.0 }
 0x103   :  { %v1898_v21 = vld [vmem:[#allocation2 + $0x68] sm:$0xff] }
 0x104   :  { %568 = vst.msk [vmem:[#allocation2 + $0x70] sm:$0xff] %vm553_vm3, %v429_v50  ;;  %v829_v38 = vmul.f32 %v1898_v21, %v1898_v21  ;;  %v707_v42 = vsel %vm553_vm3, %v1898_v21, 0.0  ;;  %v1924_v50 = vld [vmem:[#allocation2 + $0x80] sm:$0xff]  ;;  %v505_v59 = vpop.f32.mrf.mxu2 }
 0x105   :  { %584 = vst.msk [vmem:[#allocation2 + $0xf0] sm:$0xff] %vm553_vm3, %v469_v52  ;;  %v904_v52 = vadd.f32 %v903_v41, %v902_v44  ;;  %v708_v53 = vadd.f32 %v707_v42, %v706_v46  ;;  %v535_v60 = vpop.f32.mrf.mxu3  ;;  %v506_v1 = vadd.f32 %v1698_v35, %v505_v59  ;;  %v832_v4 = vmul.f32 %v1924_v50, %v1924_v50  ;;  %v1975_v44 = vld [vmem:[#allocation2 + $0xb0] sm:$0xff] }
 0x106   :  { %v905_v47 = vsel %vm553_vm3, %v829_v38, 0.0  ;;  %v536_v3 = vadd.f32 %v1698_v35, %v535_v60  ;;  %v713_v14 = vsel %vm553_vm3, %v1924_v50, 0.0  ;;  %v719_v41 = vsel %vm553_vm3, %v1951_v17, 0.0 }
 0x107   :  { %v906_v62 = vadd.f32 %v905_v47, %v904_v52  ;;  %599 = vst.msk [vmem:[#allocation2 + $0x168] sm:$0xff] %vm553_vm3, %v506_v1  ;;  %v836_v42 = vmul.f32 %v1959_v25, %v1959_v25  ;;  %v721_v52 = vsel %vm553_vm3, %v1959_v25, 0.0  ;;  %v723_v59 = vsel %vm553_vm3, %v1966_v32, 0.0 }
 0x108   :  { %611 = vst.msk [vmem:[#allocation2 + $0x1c8] sm:$0xff] %vm553_vm3, %v536_v3  ;;  %v838_v60 = vmul.f32 %v1975_v44, %v1975_v44 }
 0x109   :  { %v430_v22 = vpop.f32.mrf.mxu0  ;;  %v470_v23 = vpop.f32.mrf.mxu1  ;;  %v919_v58 = vsel %vm553_vm3, %v836_v42, 0.0  ;;  %v731_v42 = vsel %vm553_vm3, %v1996_v15, 0.0 }
 0x10a   :  { %v431_v26 = vadd.f32 %v1698_v35, %v430_v22  ;;  %v471_v27 = vadd.f32 %v1698_v35, %v470_v23  ;;  %v911_v22 = vsel %vm553_vm3, %v832_v4, 0.0  ;;  %v715_v23 = vsel %vm553_vm3, %v1929_v61, 0.0 }
 0x10b   :  { %v1907_v33 = vld [vmem:[#allocation2 + $0x70] sm:$0xff]  ;;  %v725_v4 = vsel %vm553_vm3, %v1975_v44, 0.0 }
 0x10c   :  { %569 = vst.msk [vmem:[#allocation2 + $0x78] sm:$0xff] %vm553_vm3, %v431_v26  ;;  %v830_v43 = vmul.f32 %v1907_v33, %v1907_v33  ;;  %v709_v48 = vsel %vm553_vm3, %v1907_v33, 0.0  ;;  %v508_v34 = vpop.f32.mrf.mxu2 }
 0x10d   :  { %585 = vst.msk [vmem:[#allocation2 + $0xf8] sm:$0xff] %vm553_vm3, %v471_v27  ;;  %v710_v63 = vadd.f32 %v709_v48, %v708_v53  ;;  %v538_v36 = vpop.f32.mrf.mxu3  ;;  %v917_v48 = vsel %vm553_vm3, %v835_v30, 0.0  ;;  %v1980_v53 = vld [vmem:[#allocation2 + $0xb8] sm:$0xff] }
 0x10e   :  { %v907_v56 = vsel %vm553_vm3, %v830_v43, 0.0  ;;  %v837_v43 = vmul.f32 %v1966_v32, %v1966_v32  ;;  %v727_v24 = vsel %vm553_vm3, %v1980_v53, 0.0 }
 0x10f   :  { %v908_v10 = vadd.f32 %v907_v56, %v906_v62 }
 0x110   :  { %v921_v62 = vsel %vm553_vm3, %v837_v43, 0.0 }
 0x113   :  { %v1931_v0 = vld [vmem:[#allocation2 + $0x78] sm:$0xff] }
 0x114   :  { %v711_v7 = vsel %vm553_vm3, %v1931_v0, 0.0  ;;  %v831_v8 = vmul.f32 %v1931_v0, %v1931_v0 }
 0x115   :  { %v712_v11 = vadd.f32 %v711_v7, %v710_v63  ;;  %v1988_v63 = vld [vmem:[#allocation2 + $0xc0] sm:$0xff]  ;;  %v839_v7 = vmul.f32 %v1980_v53, %v1980_v53 }
 0x116   :  { %v909_v16 = vsel %vm553_vm3, %v831_v8, 0.0  ;;  %v509_v8 = vadd.f32 %v1698_v35, %v508_v34  ;;  %v729_v34 = vsel %vm553_vm3, %v1988_v63, 0.0 }
 0x117   :  { %v714_v19 = vadd.f32 %v713_v14, %v712_v11  ;;  %v910_v20 = vadd.f32 %v909_v16, %v908_v10  ;;  %v539_v10 = vadd.f32 %v1698_v35, %v538_v36  ;;  %v510_v11 = vpop.f32.mrf.mxu2  ;;  %v540_v14 = vpop.f32.mrf.mxu3  ;;  %v925_v30 = vsel %vm553_vm3, %v839_v7, 0.0 }
 0x118   :  { %600 = vst.msk [vmem:[#allocation2 + $0x170] sm:$0xff] %vm553_vm3, %v509_v8  ;;  %v841_v36 = vmul.f32 %v1996_v15, %v1996_v15 }
 0x119   :  { %v716_v26 = vadd.f32 %v715_v23, %v714_v19  ;;  %v912_v27 = vadd.f32 %v911_v22, %v910_v20  ;;  %v511_v20 = vadd.f32 %v1698_v35, %v510_v11  ;;  %v541_v22 = vadd.f32 %v1698_v35, %v540_v14  ;;  %612 = vst.msk [vmem:[#allocation2 + $0x1d0] sm:$0xff] %vm553_vm3, %v539_v10  ;;  %v2037_v10 = vld [vmem:[#allocation2 + $0xf0] sm:$0xff] }
 0x11a   :  { %v923_v23 = vsel %vm553_vm3, %v838_v60, 0.0 }
 0x11b   :  { %v718_v38 = vadd.f32 %v717_v29, %v716_v26  ;;  %v914_v39 = vadd.f32 %v913_v28, %v912_v27  ;;  %v840_v26 = vmul.f32 %v1988_v63, %v1988_v63  ;;  %v2006_v27 = vld [vmem:[#allocation2 + $0xd0] sm:$0xff]  ;;  %601 = vst.msk [vmem:[#allocation2 + $0x178] sm:$0xff] %vm553_vm3, %v511_v20 }
 0x11c   :  { %613 = vst.msk [vmem:[#allocation2 + $0x1d8] sm:$0xff] %vm553_vm3, %v541_v22  ;;  %v842_v43 = vmul.f32 %v2006_v27, %v2006_v27  ;;  %v2044_v22 = vld [vmem:[#allocation2 + $0xf8] sm:$0xff] }
 0x11d   :  { %v720_v46 = vadd.f32 %v719_v41, %v718_v38  ;;  %v916_v47 = vadd.f32 %v915_v40, %v914_v39  ;;  %v2015_v38 = vld [vmem:[#allocation2 + $0xd8] sm:$0xff]  ;;  %v927_v41 = vsel %vm553_vm3, %v840_v26, 0.0  ;;  %v846_v26 = vmul.f32 %v2037_v10, %v2037_v10 }
 0x11f   :  { %v722_v56 = vadd.f32 %v721_v52, %v720_v46  ;;  %v918_v57 = vadd.f32 %v917_v48, %v916_v47  ;;  %v2023_v46 = vld [vmem:[#allocation2 + $0xe0] sm:$0xff]  ;;  %v929_v52 = vsel %vm553_vm3, %v841_v36, 0.0  ;;  %v741_v36 = vsel %vm553_vm3, %v2037_v10, 0.0 }
 0x120   :  { %v737_v14 = vsel %vm553_vm3, %v2023_v46, 0.0 }
 0x121   :  { %v724_v1 = vadd.f32 %v723_v59, %v722_v56  ;;  %v920_v3 = vadd.f32 %v919_v58, %v918_v57  ;;  %v733_v56 = vsel %vm553_vm3, %v2006_v27, 0.0  ;;  %v843_v57 = vmul.f32 %v2015_v38, %v2015_v38  ;;  %v543_v58 = vpop.f32.mrf.mxu3 }
 0x123   :  { %v922_v16 = vadd.f32 %v921_v62, %v920_v3  ;;  %v726_v19 = vadd.f32 %v725_v4, %v724_v1  ;;  %v2030_v62 = vld [vmem:[#allocation2 + $0xe8] sm:$0xff]  ;;  %v931_v1 = vsel %vm553_vm3, %v842_v43, 0.0  ;;  %v735_v3 = vsel %vm553_vm3, %v2015_v38, 0.0 }
 0x124   :  { %v844_v4 = vmul.f32 %v2023_v46, %v2023_v46  ;;  %v933_v11 = vsel %vm553_vm3, %v843_v57, 0.0  ;;  %v743_v57 = vsel %vm553_vm3, %v2044_v22, 0.0 }
 0x125   :  { %v728_v28 = vadd.f32 %v727_v24, %v726_v19  ;;  %v924_v29 = vadd.f32 %v923_v23, %v922_v16  ;;  %v845_v16 = vmul.f32 %v2030_v62, %v2030_v62  ;;  %v739_v24 = vsel %vm553_vm3, %v2030_v62, 0.0 }
 0x126   :  { %v935_v23 = vsel %vm553_vm3, %v844_v4, 0.0 }
 0x127   :  { %v730_v39 = vadd.f32 %v729_v34, %v728_v28  ;;  %v926_v40 = vadd.f32 %v925_v30, %v924_v29  ;;  %v2051_v28 = vld [vmem:[#allocation2 + $0x100] sm:$0xff]  ;;  %v937_v34 = vsel %vm553_vm3, %v845_v16, 0.0 }
 0x129   :  { %v732_v47 = vadd.f32 %v731_v42, %v730_v39  ;;  %v928_v48 = vadd.f32 %v927_v41, %v926_v40  ;;  %v847_v39 = vmul.f32 %v2044_v22, %v2044_v22  ;;  %v544_v40 = vadd.f32 %v1698_v35, %v543_v58  ;;  %v545_v41 = vpop.f32.mrf.mxu3  ;;  %v2059_v42 = vld [vmem:[#allocation2 + $0x108] sm:$0xff] }
 0x12a   :  { %v747_v16 = vsel %vm553_vm3, %v2059_v42, 0.0 }
 0x12b   :  { %v734_v59 = vadd.f32 %v733_v56, %v732_v47  ;;  %v930_v60 = vadd.f32 %v929_v52, %v928_v48  ;;  %v546_v48 = vadd.f32 %v1698_v35, %v545_v41  ;;  %v848_v52 = vmul.f32 %v2051_v28, %v2051_v28  ;;  %614 = vst.msk [vmem:[#allocation2 + $0x1e0] sm:$0xff] %vm553_vm3, %v544_v40 }
 0x12c   :  { %v939_v56 = vsel %vm553_vm3, %v846_v26, 0.0  ;;  %v941_v4 = vsel %vm553_vm3, %v847_v39, 0.0 }
 0x12d   :  { %v736_v7 = vadd.f32 %v735_v3, %v734_v59  ;;  %v932_v8 = vadd.f32 %v931_v1, %v930_v60  ;;  %v2068_v59 = vld [vmem:[#allocation2 + $0x110] sm:$0xff]  ;;  %615 = vst.msk [vmem:[#allocation2 + $0x1e8] sm:$0xff] %vm553_vm3, %v546_v48  ;;  %v745_v1 = vsel %vm553_vm3, %v2051_v28, 0.0  ;;  %v849_v3 = vmul.f32 %v2059_v42, %v2059_v42 }
 0x12e   :  { %v2097_v48 = vld [vmem:[#allocation2 + $0x130] sm:$0xff] }
 0x12f   :  { %v738_v19 = vadd.f32 %v737_v14, %v736_v7  ;;  %v934_v20 = vadd.f32 %v933_v11, %v932_v8  ;;  %v2076_v7 = vld [vmem:[#allocation2 + $0x118] sm:$0xff]  ;;  %v943_v14 = vsel %vm553_vm3, %v848_v52, 0.0  ;;  %v945_v26 = vsel %vm553_vm3, %v849_v3, 0.0 }
 0x131   :  { %v936_v29 = vadd.f32 %v935_v23, %v934_v20  ;;  %v740_v30 = vadd.f32 %v739_v24, %v738_v19  ;;  %v850_v19 = vmul.f32 %v2068_v59, %v2068_v59  ;;  %v2083_v20 = vld [vmem:[#allocation2 + $0x120] sm:$0xff] }
 0x133   :  { %v938_v43 = vadd.f32 %v937_v34, %v936_v29  ;;  %v742_v47 = vadd.f32 %v741_v36, %v740_v30  ;;  %v749_v29 = vsel %vm553_vm3, %v2068_v59, 0.0  ;;  %v851_v30 = vmul.f32 %v2076_v7, %v2076_v7  ;;  %v548_v34 = vpop.f32.mrf.mxu3  ;;  %v2090_v36 = vld [vmem:[#allocation2 + $0x128] sm:$0xff] }
 0x134   :  { %v947_v41 = vsel %vm553_vm3, %v850_v19, 0.0 }
 0x135   :  { %v940_v58 = vadd.f32 %v939_v56, %v938_v43  ;;  %v744_v60 = vadd.f32 %v743_v57, %v742_v47  ;;  %v751_v43 = vsel %vm553_vm3, %v2076_v7, 0.0  ;;  %v852_v47 = vmul.f32 %v2083_v20, %v2083_v20 }
 0x136   :  { %v949_v57 = vsel %vm553_vm3, %v851_v30, 0.0  ;;  %v549_v30 = vadd.f32 %v1698_v35, %v548_v34 }
 0x137   :  { %v746_v8 = vadd.f32 %v745_v1, %v744_v60  ;;  %v942_v11 = vadd.f32 %v941_v4, %v940_v58  ;;  %v753_v58 = vsel %vm553_vm3, %v2083_v20, 0.0  ;;  %v853_v60 = vmul.f32 %v2090_v36, %v2090_v36  ;;  %v2104_v1 = vld [vmem:[#allocation2 + $0x138] sm:$0xff] }
 0x138   :  { %616 = vst.msk [vmem:[#allocation2 + $0x1f0] sm:$0xff] %vm553_vm3, %v549_v30  ;;  %v2143_v30 = vld [vmem:[#allocation2 + $0x160] sm:$0xff] }
 0x139   :  { %v748_v23 = vadd.f32 %v747_v16, %v746_v8  ;;  %v944_v24 = vadd.f32 %v943_v14, %v942_v11  ;;  %v951_v8 = vsel %vm553_vm3, %v852_v47, 0.0  ;;  %v755_v11 = vsel %vm553_vm3, %v2090_v36, 0.0  ;;  %v2111_v16 = vld [vmem:[#allocation2 + $0x140] sm:$0xff]  ;;  %2749 = vst [vmem:[#allocation13_spill] sm:$0xff] %v2143_v30 }
 0x13a   :  { %v854_v14 = vmul.f32 %v2097_v48, %v2097_v48  ;;  %2745 = vst [vmem:[#allocation9_spill] sm:$0xff] %v2111_v16 }
 0x13b   :  { %v750_v39 = vadd.f32 %v749_v29, %v748_v23  ;;  %v946_v40 = vadd.f32 %v945_v26, %v944_v24  ;;  %v953_v24 = vsel %vm553_vm3, %v853_v60, 0.0  ;;  %v757_v26 = vsel %vm553_vm3, %v2097_v48, 0.0 }
 0x13c   :  { %v855_v29 = vmul.f32 %v2104_v1, %v2104_v1 }
 0x13d   :  { %v752_v52 = vadd.f32 %v751_v43, %v750_v39  ;;  %v948_v56 = vadd.f32 %v947_v41, %v946_v40  ;;  %v550_v39 = vpop.f32.mrf.mxu3  ;;  %v2119_v40 = vld [vmem:[#allocation2 + $0x148] sm:$0xff] }
 0x13e   :  { %2746 = vst [vmem:[#allocation10_spill] sm:$0xff] %v2119_v40  ;;  %v551_v47 = vadd.f32 %v1698_v35, %v550_v39  ;;  %v761_v35 = vsel %vm553_vm3, %v2111_v16, 0.0 }
 0x13f   :  { %v754_v3 = vadd.f32 %v753_v58, %v752_v52  ;;  %v950_v4 = vadd.f32 %v949_v57, %v948_v56  ;;  %v955_v52 = vsel %vm553_vm3, %v854_v14, 0.0  ;;  %v759_v56 = vsel %vm553_vm3, %v2104_v1, 0.0  ;;  %v2128_v58 = vld [vmem:[#allocation2 + $0x150] sm:$0xff] }
 0x140   :  { %v856_v57 = vmul.f32 %v2111_v16, %v2111_v16  ;;  %2747 = vst [vmem:[#allocation11_spill] sm:$0xff] %v2128_v58 }
 0x141   :  { %v952_v19 = vadd.f32 %v951_v8, %v950_v4  ;;  %v756_v23 = vadd.f32 %v755_v11, %v754_v3  ;;  %617 = vst.msk [vmem:[#allocation2 + $0x1f8] sm:$0xff] %vm553_vm3, %v551_v47  ;;  %v957_v3 = vsel %vm553_vm3, %v855_v29, 0.0  ;;  %v857_v4 = vmul.f32 %v2119_v40, %v2119_v40  ;;  %v2136_v8 = vld [vmem:[#allocation2 + $0x158] sm:$0xff] }
 0x142   :  { %2748 = vst [vmem:[#allocation12_spill] sm:$0xff] %v2136_v8 }
 0x143   :  { %v758_v41 = vadd.f32 %v757_v26, %v756_v23  ;;  %v954_v43 = vadd.f32 %v953_v24, %v952_v19  ;;  %v959_v19 = vsel %vm553_vm3, %v856_v57, 0.0  ;;  %v763_v23 = vsel %vm553_vm3, %v2119_v40, 0.0 }
 0x144   :  { %v858_v24 = vmul.f32 %v2128_v58, %v2128_v58  ;;  %v961_v39 = vsel %vm553_vm3, %v857_v4, 0.0  ;;  %v2157_v4 = vld [vmem:[#allocation2 + $0x170] sm:$0xff] }
 0x145   :  { %v760_v34 = vadd.f32 %v759_v56, %v758_v41  ;;  %v956_v60 = vadd.f32 %v955_v52, %v954_v43  ;;  %v765_v41 = vsel %vm553_vm3, %v2128_v58, 0.0  ;;  %v859_v43 = vmul.f32 %v2136_v8, %v2136_v8  ;;  %v2150_v56 = vld [vmem:[#allocation2 + $0x168] sm:$0xff]  ;;  %2751 = vst [vmem:[#allocation15_spill] sm:$0xff] %v2157_v4 }
 0x146   :  { %2750 = vst [vmem:[#allocation14_spill] sm:$0xff] %v2150_v56  ;;  %v963_v57 = vsel %vm553_vm3, %v858_v24, 0.0 }
 0x147   :  { %v762_v11 = vadd.f32 %v761_v35, %v760_v34  ;;  %v958_v14 = vadd.f32 %v957_v3, %v956_v60  ;;  %v767_v34 = vsel %vm553_vm3, %v2136_v8, 0.0  ;;  %v860_v60 = vmul.f32 %v2143_v30, %v2143_v30 }
 0x149   :  { %v764_v26 = vadd.f32 %v763_v23, %v762_v11  ;;  %v960_v29 = vadd.f32 %v959_v19, %v958_v14  ;;  %v965_v11 = vsel %vm553_vm3, %v859_v43, 0.0  ;;  %v769_v14 = vsel %vm553_vm3, %v2143_v30, 0.0 }
 0x14a   :  { %v861_v19 = vmul.f32 %v2150_v56, %v2150_v56 }
 0x14b   :  { %v766_v47 = vadd.f32 %v765_v41, %v764_v26  ;;  %v962_v52 = vadd.f32 %v961_v39, %v960_v29  ;;  %v2164_v26 = vld [vmem:[#allocation2 + $0x178] sm:$0xff]  ;;  %v967_v29 = vsel %vm553_vm3, %v860_v60, 0.0  ;;  %v771_v39 = vsel %vm553_vm3, %v2150_v56, 0.0 }
 0x14c   :  { %2752 = vst [vmem:[#allocation16_spill] sm:$0xff] %v2164_v26  ;;  %v862_v41 = vmul.f32 %v2157_v4, %v2157_v4 }
 0x14d   :  { %v768_v3 = vadd.f32 %v767_v34, %v766_v47  ;;  %v964_v35 = vadd.f32 %v963_v57, %v962_v52  ;;  %v2171_v47 = vld [vmem:[#allocation2 + $0x180] sm:$0xff]  ;;  %v969_v57 = vsel %vm553_vm3, %v861_v19, 0.0  ;;  %v773_v34 = vsel %vm553_vm3, %v2157_v4, 0.0 }
 0x14e   :  { %2753 = vst [vmem:[#allocation17_spill] sm:$0xff] %v2171_v47  ;;  %v971_v56 = vsel %vm553_vm3, %v862_v41, 0.0 }
 0x14f   :  { %v966_v23 = vadd.f32 %v965_v11, %v964_v35  ;;  %v770_v24 = vadd.f32 %v769_v14, %v768_v3  ;;  %v863_v3 = vmul.f32 %v2164_v26, %v2164_v26  ;;  %v2178_v35 = vld [vmem:[#allocation2 + $0x188] sm:$0xff]  ;;  %v864_v14 = vmul.f32 %v2171_v47, %v2171_v47 }
 0x150   :  { %2754 = vst [vmem:[#allocation18_spill] sm:$0xff] %v2178_v35  ;;  %v865_v4 = vmul.f32 %v2178_v35, %v2178_v35 }
 0x151   :  { %v968_v43 = vadd.f32 %v967_v29, %v966_v23  ;;  %v772_v52 = vadd.f32 %v771_v39, %v770_v24  ;;  %v775_v23 = vsel %vm553_vm3, %v2164_v26, 0.0  ;;  %v2185_v24 = vld [vmem:[#allocation2 + $0x190] sm:$0xff]  ;;  %v777_v39 = vsel %vm553_vm3, %v2171_v47, 0.0 }
 0x152   :  { %2755 = vst [vmem:[#allocation19_spill] sm:$0xff] %v2185_v24  ;;  %v975_v41 = vsel %vm553_vm3, %v864_v14, 0.0  ;;  %v779_v26 = vsel %vm553_vm3, %v2178_v35, 0.0  ;;  %v977_v47 = vsel %vm553_vm3, %v865_v4, 0.0 }
 0x153   :  { %v970_v60 = vadd.f32 %v969_v57, %v968_v43  ;;  %v774_v11 = vadd.f32 %v773_v34, %v772_v52  ;;  %v973_v43 = vsel %vm553_vm3, %v863_v3, 0.0  ;;  %v2192_v52 = vld [vmem:[#allocation2 + $0x198] sm:$0xff]  ;;  %v781_v3 = vsel %vm553_vm3, %v2185_v24, 0.0 }
 0x154   :  { %2756 = vst [vmem:[#allocation20_spill] sm:$0xff] %v2192_v52  ;;  %v783_v35 = vsel %vm553_vm3, %v2192_v52, 0.0 }
 0x155   :  { %v972_v19 = vadd.f32 %v971_v56, %v970_v60  ;;  %v776_v29 = vadd.f32 %v775_v23, %v774_v11  ;;  %v866_v56 = vmul.f32 %v2185_v24, %v2185_v24  ;;  %v2199_v60 = vld [vmem:[#allocation2 + $0x1a0] sm:$0xff] }
 0x156   :  { %2757 = vst [vmem:[#allocation21_spill] sm:$0xff] %v2199_v60  ;;  %v785_v24 = vsel %vm553_vm3, %v2199_v60, 0.0 }
 0x157   :  { %v778_v57 = vadd.f32 %v777_v39, %v776_v29  ;;  %v974_v34 = vadd.f32 %v973_v43, %v972_v19  ;;  %v867_v19 = vmul.f32 %v2192_v52, %v2192_v52  ;;  %v2206_v29 = vld [vmem:[#allocation2 + $0x1a8] sm:$0xff]  ;;  %v979_v43 = vsel %vm553_vm3, %v866_v56, 0.0 }
 0x158   :  { %2758 = vst [vmem:[#allocation22_spill] sm:$0xff] %v2206_v29  ;;  %v787_v52 = vsel %vm553_vm3, %v2206_v29, 0.0 }
 0x159   :  { %v780_v11 = vadd.f32 %v779_v26, %v778_v57  ;;  %v976_v23 = vadd.f32 %v975_v41, %v974_v34  ;;  %v868_v26 = vmul.f32 %v2199_v60, %v2199_v60  ;;  %v2213_v57 = vld [vmem:[#allocation2 + $0x1b0] sm:$0xff]  ;;  %v981_v41 = vsel %vm553_vm3, %v867_v19, 0.0 }
 0x15a   :  { %2759 = vst [vmem:[#allocation23_spill] sm:$0xff] %v2213_v57  ;;  %v789_v60 = vsel %vm553_vm3, %v2213_v57, 0.0 }
 0x15b   :  { %v782_v14 = vadd.f32 %v781_v3, %v780_v11  ;;  %v978_v39 = vadd.f32 %v977_v47, %v976_v23  ;;  %v869_v47 = vmul.f32 %v2206_v29, %v2206_v29  ;;  %v2220_v11 = vld [vmem:[#allocation2 + $0x1b8] sm:$0xff]  ;;  %v983_v3 = vsel %vm553_vm3, %v868_v26, 0.0 }
 0x15c   :  { %2760 = vst [vmem:[#allocation24_spill] sm:$0xff] %v2220_v11  ;;  %v791_v29 = vsel %vm553_vm3, %v2220_v11, 0.0 }
 0x15d   :  { %v784_v4 = vadd.f32 %v783_v35, %v782_v14  ;;  %v980_v34 = vadd.f32 %v979_v43, %v978_v39  ;;  %v870_v35 = vmul.f32 %v2213_v57, %v2213_v57  ;;  %v2227_v14 = vld [vmem:[#allocation2 + $0x1c0] sm:$0xff]  ;;  %v985_v43 = vsel %vm553_vm3, %v869_v47, 0.0 }
 0x15e   :  { %2761 = vst [vmem:[#allocation25_spill] sm:$0xff] %v2227_v14  ;;  %v793_v57 = vsel %vm553_vm3, %v2227_v14, 0.0 }
 0x15f   :  { %v786_v56 = vadd.f32 %v785_v24, %v784_v4  ;;  %v982_v23 = vadd.f32 %v981_v41, %v980_v34  ;;  %v871_v24 = vmul.f32 %v2220_v11, %v2220_v11  ;;  %v2234_v4 = vld [vmem:[#allocation2 + $0x1c8] sm:$0xff]  ;;  %v987_v41 = vsel %vm553_vm3, %v870_v35, 0.0 }
 0x160   :  { %2762 = vst [vmem:[#allocation26_spill] sm:$0xff] %v2234_v4  ;;  %v795_v11 = vsel %vm553_vm3, %v2234_v4, 0.0 }
 0x161   :  { %v984_v19 = vadd.f32 %v983_v3, %v982_v23  ;;  %v788_v39 = vadd.f32 %v787_v52, %v786_v56  ;;  %v872_v52 = vmul.f32 %v2227_v14, %v2227_v14  ;;  %v2241_v56 = vld [vmem:[#allocation2 + $0x1d0] sm:$0xff]  ;;  %v989_v3 = vsel %vm553_vm3, %v871_v24, 0.0 }
 0x162   :  { %2763 = vst [vmem:[#allocation27_spill] sm:$0xff] %v2241_v56  ;;  %v797_v14 = vsel %vm553_vm3, %v2241_v56, 0.0 }
 0x163   :  { %v790_v26 = vadd.f32 %v789_v60, %v788_v39  ;;  %v986_v34 = vadd.f32 %v985_v43, %v984_v19  ;;  %v873_v60 = vmul.f32 %v2234_v4, %v2234_v4  ;;  %v2248_v19 = vld [vmem:[#allocation2 + $0x1d8] sm:$0xff]  ;;  %v991_v43 = vsel %vm553_vm3, %v872_v52, 0.0 }
 0x164   :  { %2764 = vst [vmem:[#allocation28_spill] sm:$0xff] %v2248_v19 }
 0x165   :  { %v792_v47 = vadd.f32 %v791_v29, %v790_v26  ;;  %v988_v23 = vadd.f32 %v987_v41, %v986_v34  ;;  %v874_v29 = vmul.f32 %v2241_v56, %v2241_v56  ;;  %v2255_v34 = vld [vmem:[#allocation2 + $0x1e0] sm:$0xff]  ;;  %v993_v41 = vsel %vm553_vm3, %v873_v60, 0.0 }
 0x166   :  { %2765 = vst [vmem:[#allocation29_spill] sm:$0xff] %v2255_v34 }
 0x167   :  { %v794_v35 = vadd.f32 %v793_v57, %v792_v47  ;;  %v990_v39 = vadd.f32 %v989_v3, %v988_v23  ;;  %v875_v57 = vmul.f32 %v2248_v19, %v2248_v19  ;;  %v2262_v23 = vld [vmem:[#allocation2 + $0x1e8] sm:$0xff]  ;;  %v995_v3 = vsel %vm553_vm3, %v874_v29, 0.0 }
 0x168   :  { %2766 = vst [vmem:[#allocation30_spill] sm:$0xff] %v2262_v23 }
 0x169   :  { %v796_v26 = vadd.f32 %v795_v11, %v794_v35  ;;  %v992_v24 = vadd.f32 %v991_v43, %v990_v39  ;;  %v799_v11 = vsel %vm553_vm3, %v2248_v19, 0.0  ;;  %v876_v35 = vmul.f32 %v2255_v34, %v2255_v34  ;;  %v2269_v43 = vld [vmem:[#allocation2 + $0x1f0] sm:$0xff] }
 0x16a   :  { %2767 = vst [vmem:[#allocation31_spill] sm:$0xff] %v2269_v43  ;;  %v997_v56 = vsel %vm553_vm3, %v875_v57, 0.0 }
 0x16b   :  { %v798_v47 = vadd.f32 %v797_v14, %v796_v26  ;;  %v994_v52 = vadd.f32 %v993_v41, %v992_v24  ;;  %v801_v14 = vsel %vm553_vm3, %v2255_v34, 0.0  ;;  %v877_v26 = vmul.f32 %v2262_v23, %v2262_v23  ;;  %v2276_v41 = vld [vmem:[#allocation2 + $0x1f8] sm:$0xff] }
 0x16c   :  { %2768 = vst [vmem:[#allocation32_spill] sm:$0xff] %v2276_v41  ;;  %v999_v19 = vsel %vm553_vm3, %v876_v35, 0.0  ;;  %v805_v34 = vsel %vm553_vm3, %v2269_v43, 0.0 }
 0x16d   :  { %v800_v39 = vadd.f32 %v799_v11, %v798_v47  ;;  %v996_v60 = vadd.f32 %v995_v3, %v994_v52  ;;  %v803_v47 = vsel %vm553_vm3, %v2262_v23, 0.0  ;;  %v878_v52 = vmul.f32 %v2269_v43, %v2269_v43 }
 0x16e   :  { %v1001_v11 = vsel %vm553_vm3, %v877_v26, 0.0 }
 0x16f   :  { %v998_v24 = vadd.f32 %v997_v56, %v996_v60  ;;  %v802_v29 = vadd.f32 %v801_v14, %v800_v39  ;;  %v879_v56 = vmul.f32 %v2276_v41, %v2276_v41  ;;  %v1003_v35 = vsel %vm553_vm3, %v878_v52, 0.0 }
 0x170   :  { %v807_v14 = vsel %vm553_vm3, %v2276_v41, 0.0 }
 0x171   :  { %v1000_v3 = vadd.f32 %v999_v19, %v998_v24  ;;  %v804_v57 = vadd.f32 %v803_v47, %v802_v29  ;;  %v1005_v19 = vsel %vm553_vm3, %v879_v56, 0.0 }
 0x173   :  { %v1002_v39 = vadd.f32 %v1001_v11, %v1000_v3  ;;  %v806_v60 = vadd.f32 %v805_v34, %v804_v57 }
 0x175   :  { %v1004_v23 = vadd.f32 %v1003_v35, %v1002_v39  ;;  %v808_v4 = vadd.f32 %v807_v14, %v806_v60 }
 0x177   :  { %v809_v24 = vrot.slane %v808_v4, 4  ;;  %v1006_v29 = vadd.f32 %v1005_v19, %v1004_v23 }
 0x179   :  { %v810_v26 = vadd.f32 %v809_v24, %v808_v4  ;;  %v1007_v47 = vrot.slane %v1006_v29, 4 }
 0x17b   :  { %v811_v30 = vrot.slane %v810_v26, 2  ;;  %v1008_v43 = vadd.f32 %v1007_v47, %v1006_v29 }
 0x17d   :  { %v812_v8 = vadd.f32 %v811_v30, %v810_v26  ;;  %v1009_v58 = vrot.slane %v1008_v43, 2  ;;  %v46_v30 = vld [vmem:[#allocation5 + $0x1] sm:$0x1] }
 0x17f   :  { %v813_v40 = vrot.slane %v812_v8, 1  ;;  %v1010_v3 = vadd.f32 %v1009_v58, %v1008_v43  ;;  %v47_v43 = vld [vmem:[#allocation5 + $0x2] sm:$0x1] }
 0x181   :  { %v814_v34 = vadd.f32 %v813_v40, %v812_v8  ;;  %v1011_v57 = vrot.slane %v1010_v3, 1 }
 0x183   :  { %v815_v52 = vmul.f32 0.001953125, %v814_v34  ;;  %v1012_v11 = vadd.f32 %v1011_v57, %v1010_v3 }
 0x185   :  { %v1013_v16 = vmul.f32 0.001953125, %v1012_v11  ;;  %v1014_v41 = vmul.f32 %v815_v52, %v815_v52 }
 0x187   :  { %v1015_v39 = vsub.f32 %v1013_v16, %v1014_v41 }
 0x189   :  { %v1016_v60 = vmax.f32 %v1015_v39, 0.0 }
 0x18b   :  { %v1017_v35 = vadd.f32 1e-05, %v1016_v60 }
 0x18d   :  { %1501 = vrsqrt.f32 %v1017_v35  ;;  %vm1024_vm5 = vweird.f32 %v1017_v35 }
 0x193   :  { %v1502_v56 = vpop.eup %1501 }
 0x194   :  { %v1019_v23 = vmul.f32 %v1502_v56, %v1017_v35  ;;  %vm1025_vm4 = vweird.f32 %v1502_v56 }
 0x195   :  { %vm1026_vm6 = vmor %vm1024_vm5, %vm1025_vm4 }
 0x196   :  { %v1020_v4 = vmul.f32 %v1502_v56, %v1019_v23 }
 0x198   :  { %v1021_v14 = vmul.f32 0.5, %v1020_v4 }
 0x19a   :  { %v1022_v19 = vsub.f32 1.5, %v1021_v14 }
 0x19c   :  { %v1023_v24 = vmul.f32 %v1502_v56, %v1022_v19 }
 0x19e   :  { %v1027_v40 = vsel %vm1026_vm6, %v1502_v56, %v1023_v24 }
 0x19f   :  { %v1028_v58 = vmul.f32 %v1027_v40, %v46_v30 }
 0x1a1   :  { %v1029_v8 = vmul.f32 %v1028_v58, %v815_v52  ;;  %v2292_v29 = vperm.slane %v1028_v58, 0 }
 0x1a3   :  { %v1030_v16 = vsub.f32 %v47_v43, %v1029_v8  ;;  %v1032_v41 = vmul.f32 %v2292_v29, %v1790_v54  ;;  %v1033_v26 = vmul.f32 %v2292_v29, %v1788_v51  ;;  %v1034_v47 = vmul.f32 %v2292_v29, %v1792_v55 }
 0x1a4   :  { %v1035_v3 = vmul.f32 %v2292_v29, %v1806_v2  ;;  %v1036_v34 = vmul.f32 %v2292_v29, %v1813_v5  ;;  %v1037_v57 = vmul.f32 %v2292_v29, %v1826_v13  ;;  %v1038_v52 = vmul.f32 %v2292_v29, %v1833_v18 }
 0x1a5   :  { %v1039_v54 = vmul.f32 %v2292_v29, %v1845_v31  ;;  %v2310_v11 = vperm.slane %v1030_v16, 0  ;;  %v1040_v51 = vmul.f32 %v2292_v29, %v1851_v37  ;;  %v1041_v55 = vmul.f32 %v2292_v29, %v1861_v45 }
 0x1a6   :  { %v1042_v2 = vmul.f32 %v2292_v29, %v1865_v49  ;;  %v1043_v5 = vmul.f32 %v2292_v29, %v1880_v6  ;;  %v1044_v13 = vmul.f32 %v2292_v29, %v1888_v12  ;;  %v1045_v18 = vmul.f32 %v2292_v29, %v1898_v21 }
 0x1a7   :  { %v1046_v31 = vmul.f32 %v2292_v29, %v1907_v33  ;;  %v1047_v37 = vmul.f32 %v2292_v29, %v1931_v0  ;;  %v1081_v45 = vmul.f32 %v2292_v29, %v1924_v50  ;;  %v1082_v49 = vmul.f32 %v2292_v29, %v1929_v61 }
 0x1a8   :  { %v1083_v6 = vmul.f32 %v2292_v29, %v1942_v9  ;;  %v1084_v12 = vmul.f32 %v2292_v29, %v1951_v17  ;;  %v2337_v21 = vadd.f32 %v2310_v11, %v1032_v41  ;;  %v2340_v33 = vadd.f32 %v2310_v11, %v1033_v26 }
 0x1a9   :  { %v1085_v0 = vmul.f32 %v2292_v29, %v1959_v25  ;;  %v1086_v50 = vmul.f32 %v2292_v29, %v1966_v32  ;;  %v2347_v61 = vadd.f32 %v2310_v11, %v1034_v47  ;;  %v2350_v9 = vadd.f32 %v2310_v11, %v1035_v3 }
 0x1aa   :  { %v2353_v17 = vadd.f32 %v2310_v11, %v1036_v34  ;;  %v2356_v39 = vadd.f32 %v2310_v11, %v1037_v57  ;;  %v2359_v60 = vadd.f32 %v2310_v11, %v1038_v52  ;;  %v2362_v25 = vadd.f32 %v2310_v11, %v1039_v54 }
 0x1ab   :  { %v2365_v32 = vadd.f32 %v2310_v11, %v1040_v51  ;;  %v2368_v35 = vadd.f32 %v2310_v11, %v1041_v55  ;;  %v2371_v56 = vadd.f32 %v2310_v11, %v1042_v2  ;;  %v2374_v23 = vadd.f32 %v2310_v11, %v1043_v5  ;;  %v2792_v55 = vld [vmem:[#allocation27_spill] sm:$0xff] }
 0x1ac   :  { %v2377_v4 = vadd.f32 %v2310_v11, %v1044_v13  ;;  %v2380_v14 = vadd.f32 %v2310_v11, %v1045_v18  ;;  %v2383_v19 = vadd.f32 %v2310_v11, %v1046_v31  ;;  %v2386_v30 = vadd.f32 %v2310_v11, %v1047_v37 }
 0x1ad   :  { %v1065_v24 = vmax.f32 %v2337_v21, 0.0  ;;  %v1066_v40 = vmax.f32 %v2340_v33, 0.0  ;;  %v1067_v58 = vmax.f32 %v2347_v61, 0.0  ;;  %v1068_v8 = vmax.f32 %v2350_v9, 0.0 }
 0x1ae   :  { %2769 = vst [vmem:[#allocation33_spill] sm:$0xff] %v2383_v19  ;;  %v1069_v43 = vmax.f32 %v2353_v17, 0.0  ;;  %v1070_v16 = vmax.f32 %v2356_v39, 0.0  ;;  %v1071_v41 = vmax.f32 %v2359_v60, 0.0  ;;  %v1072_v26 = vmax.f32 %v2362_v25, 0.0 }
 0x1af   :  { %2770 = vst [vmem:[#allocation34_spill] sm:$0xff] %v2386_v30  ;;  %v1073_v47 = vmax.f32 %v2365_v32, 0.0  ;;  %v1074_v3 = vmax.f32 %v2368_v35, 0.0  ;;  %v1075_v34 = vmax.f32 %v2371_v56, 0.0  ;;  %v1076_v57 = vmax.f32 %v2374_v23, 0.0 }
 0x1b0   :  { %v1087_v2 = vmul.f32 %v2292_v29, %v1975_v44  ;;  %v1088_v5 = vmul.f32 %v2292_v29, %v1980_v53  ;;  %v1089_v13 = vmul.f32 %v2292_v29, %v1988_v63  ;;  %v1090_v18 = vmul.f32 %v2292_v29, %v1996_v15 }
 0x1b1   :  { %v1091_v31 = vmul.f32 %v2292_v29, %v2006_v27  ;;  %v1092_v37 = vmul.f32 %v2292_v29, %v2015_v38  ;;  %v1093_v21 = vmul.f32 %v2292_v29, %v2023_v46  ;;  %v1094_v44 = vmul.f32 %v2292_v29, %v2030_v62 }
 0x1b2   :  { %v1095_v53 = vmul.f32 %v2292_v29, %v2037_v10  ;;  %v1096_v63 = vmul.f32 %v2292_v29, %v2044_v22  ;;  %v1097_v15 = vadd.f32 %v1081_v45, %v2310_v11  ;;  %v1098_v33 = vadd.f32 %v1082_v49, %v2310_v11 }
 0x1b3   :  { %v1099_v27 = vadd.f32 %v1083_v6, %v2310_v11  ;;  %v1100_v38 = vadd.f32 %v1084_v12, %v2310_v11  ;;  %v1101_v61 = vadd.f32 %v1085_v0, %v2310_v11  ;;  %v1102_v46 = vadd.f32 %v1086_v50, %v2310_v11 }
 0x1b4   :  { %v1103_v62 = vadd.f32 %v1087_v2, %v2310_v11  ;;  %v1104_v9 = vadd.f32 %v1088_v5, %v2310_v11  ;;  %v1105_v10 = vadd.f32 %v1089_v13, %v2310_v11  ;;  %v1106_v22 = vadd.f32 %v1090_v18, %v2310_v11 }
 0x1b5   :  { %v1107_v45 = vadd.f32 %v1091_v31, %v2310_v11  ;;  %v1108_v49 = vadd.f32 %v1092_v37, %v2310_v11  ;;  %v2437_v6 = vadd.f32 %v1093_v21, %v2310_v11  ;;  %v2440_v12 = vadd.f32 %v1094_v44, %v2310_v11  ;;  %v2793_v21 = vld [vmem:[#allocation28_spill] sm:$0xff] }
 0x1b6   :  { %v2443_v0 = vadd.f32 %v1095_v53, %v2310_v11  ;;  %v2446_v50 = vadd.f32 %v1096_v63, %v2310_v11  ;;  %v1113_v17 = vmax.f32 %v1097_v15, 0.0  ;;  %v1114_v39 = vmax.f32 %v1098_v33, 0.0 }
 0x1b7   :  { %v1115_v60 = vmax.f32 %v1099_v27, 0.0  ;;  %v1116_v25 = vmax.f32 %v1100_v38, 0.0  ;;  %v1117_v32 = vmax.f32 %v1101_v61, 0.0  ;;  %v1118_v35 = vmax.f32 %v1102_v46, 0.0 }
 0x1b8   :  { %2771 = vst [vmem:[#allocation35_spill] sm:$0xff] %v2446_v50  ;;  %v1119_v56 = vmax.f32 %v1103_v62, 0.0  ;;  %v1120_v23 = vmax.f32 %v1104_v9, 0.0  ;;  %v1121_v2 = vmax.f32 %v1105_v10, 0.0  ;;  %v1122_v5 = vmax.f32 %v1106_v22, 0.0  ;;  %v2777_v10 = vld [vmem:[#allocation12_spill] sm:$0xff] }
 0x1b9   :  { %v1123_v13 = vmax.f32 %v1107_v45, 0.0  ;;  %v1124_v18 = vmax.f32 %v1108_v49, 0.0  ;;  %v2452_v53 = vmax.f32 %v1065_v24, %v1113_v17  ;;  %v2454_v63 = vmax.f32 %v1066_v40, %v1114_v39  ;;  %v2778_v22 = vld [vmem:[#allocation13_spill] sm:$0xff]  ;;  %v2779_v45 = vld [vmem:[#allocation14_spill] sm:$0xff]  ;;  %v2780_v49 = vld [vmem:[#allocation15_spill] sm:$0xff] }
 0x1ba   :  { %v2456_v15 = vmax.f32 %v1067_v58, %v1115_v60  ;;  %v2458_v33 = vmax.f32 %v1068_v8, %v1116_v25  ;;  %v2460_v27 = vmax.f32 %v1069_v43, %v1117_v32  ;;  %v2462_v38 = vmax.f32 %v1070_v16, %v1118_v35  ;;  %v2781_v17 = vld [vmem:[#allocation16_spill] sm:$0xff] }
 0x1bb   :  { %v2464_v61 = vmax.f32 %v1071_v41, %v1119_v56  ;;  %v2466_v46 = vmax.f32 %v1072_v26, %v1120_v23  ;;  %v2468_v62 = vmax.f32 %v1073_v47, %v1121_v2  ;;  %v2470_v9 = vmax.f32 %v1074_v3, %v1122_v5  ;;  %v2774_v3 = vld [vmem:[#allocation9_spill] sm:$0xff] }
 0x1bc   :  { %v2472_v24 = vmax.f32 %v1075_v34, %v1123_v13  ;;  %v2474_v40 = vmax.f32 %v1076_v57, %v1124_v18  ;;  %v1145_v58 = vmul.f32 %v2292_v29, %v2051_v28  ;;  %v1146_v8 = vmul.f32 %v2292_v29, %v2059_v42  ;;  %v2775_v34 = vld [vmem:[#allocation10_spill] sm:$0xff]  ;;  %v2776_v57 = vld [vmem:[#allocation11_spill] sm:$0xff] }
 0x1bd   :  { %v1147_v43 = vmul.f32 %v2292_v29, %v2068_v59  ;;  %v1148_v16 = vmul.f32 %v2292_v29, %v2076_v7  ;;  %v1149_v41 = vmul.f32 %v2292_v29, %v2083_v20  ;;  %v1150_v26 = vmul.f32 %v2292_v29, %v2090_v36 }
 0x1be   :  { %2772 = vst [vmem:[#allocation36_spill] sm:$0xff] %v2472_v24  ;;  %v1151_v47 = vmul.f32 %v2292_v29, %v2097_v48  ;;  %v1152_v28 = vmul.f32 %v2292_v29, %v2104_v1  ;;  %v1153_v42 = vmul.f32 %v2292_v29, %v2774_v3  ;;  %v1154_v59 = vmul.f32 %v2292_v29, %v2775_v34 }
 0x1bf   :  { %2773 = vst [vmem:[#allocation37_spill] sm:$0xff] %v2474_v40  ;;  %v1155_v7 = vmul.f32 %v2292_v29, %v2776_v57  ;;  %v1156_v20 = vmul.f32 %v2292_v29, %v2777_v10  ;;  %v1157_v36 = vmul.f32 %v2292_v29, %v2778_v22  ;;  %v1158_v48 = vmul.f32 %v2292_v29, %v2779_v45  ;;  %v2782_v57 = vld [vmem:[#allocation17_spill] sm:$0xff]  ;;  %v2783_v10 = vld [vmem:[#allocation18_spill] sm:$0xff]  ;;  %v2784_v45 = vld [vmem:[#allocation19_spill] sm:$0xff] }
 0x1c0   :  { %v1159_v1 = vmul.f32 %v2292_v29, %v2780_v49  ;;  %v1160_v39 = vmul.f32 %v2292_v29, %v2781_v17  ;;  %v2509_v60 = vadd.f32 %v1145_v58, %v2310_v11  ;;  %v2512_v25 = vadd.f32 %v1146_v8, %v2310_v11  ;;  %v2785_v49 = vld [vmem:[#allocation20_spill] sm:$0xff] }
 0x1c1   :  { %v2515_v32 = vadd.f32 %v1147_v43, %v2310_v11  ;;  %v2518_v35 = vadd.f32 %v1148_v16, %v2310_v11  ;;  %v2521_v56 = vadd.f32 %v1149_v41, %v2310_v11  ;;  %v2524_v23 = vadd.f32 %v1150_v26, %v2310_v11 }
 0x1c2   :  { %v2527_v2 = vadd.f32 %v1151_v47, %v2310_v11  ;;  %v2530_v5 = vadd.f32 %v1152_v28, %v2310_v11  ;;  %v2533_v13 = vadd.f32 %v1153_v42, %v2310_v11  ;;  %v2536_v18 = vadd.f32 %v1154_v59, %v2310_v11 }
 0x1c3   :  { %v2539_v58 = vadd.f32 %v1155_v7, %v2310_v11  ;;  %v2542_v8 = vadd.f32 %v1156_v20, %v2310_v11  ;;  %v2545_v43 = vadd.f32 %v1157_v36, %v2310_v11  ;;  %v2548_v16 = vadd.f32 %v1158_v48, %v2310_v11 }
 0x1c4   :  { %v2551_v41 = vadd.f32 %v1159_v1, %v2310_v11  ;;  %v2554_v26 = vadd.f32 %v1160_v39, %v2310_v11  ;;  %v1177_v47 = vmax.f32 %v2509_v60, 0.0  ;;  %v1178_v28 = vmax.f32 %v2512_v25, 0.0  ;;  %v2786_v39 = vld [vmem:[#allocation21_spill] sm:$0xff] }
 0x1c5   :  { %v1179_v3 = vmax.f32 %v2515_v32, 0.0  ;;  %v1180_v42 = vmax.f32 %v2518_v35, 0.0  ;;  %v1181_v34 = vmax.f32 %v2521_v56, 0.0  ;;  %v1182_v59 = vmax.f32 %v2524_v23, 0.0  ;;  %v2787_v56 = vld [vmem:[#allocation22_spill] sm:$0xff] }
 0x1c6   :  { %v1193_v7 = vmul.f32 %v2292_v29, %v2782_v57  ;;  %v1194_v20 = vmul.f32 %v2292_v29, %v2783_v10  ;;  %v1183_v22 = vmax.f32 %v2527_v2, 0.0  ;;  %v1184_v36 = vmax.f32 %v2530_v5, 0.0  ;;  %v2788_v10 = vld [vmem:[#allocation23_spill] sm:$0xff] }
 0x1c7   :  { %v1195_v48 = vmul.f32 %v2292_v29, %v2784_v45  ;;  %v1196_v1 = vmul.f32 %v2292_v29, %v2785_v49  ;;  %v1185_v17 = vmax.f32 %v2533_v13, 0.0  ;;  %v1197_v60 = vmul.f32 %v2292_v29, %v2786_v39  ;;  %v2789_v49 = vld [vmem:[#allocation24_spill] sm:$0xff]  ;;  %v2796_v13 = vld [vmem:[#allocation31_spill] sm:$0xff] }
 0x1c8   :  { %v1209_v25 = vadd.f32 %v1193_v7, %v2310_v11  ;;  %v1210_v32 = vadd.f32 %v1194_v20, %v2310_v11  ;;  %v1186_v35 = vmax.f32 %v2536_v18, 0.0  ;;  %v1198_v23 = vmul.f32 %v2292_v29, %v2787_v56  ;;  %v2790_v18 = vld [vmem:[#allocation25_spill] sm:$0xff]  ;;  %v2791_v56 = vld [vmem:[#allocation26_spill] sm:$0xff] }
 0x1c9   :  { %v1211_v2 = vadd.f32 %v1195_v48, %v2310_v11  ;;  %v1212_v5 = vadd.f32 %v1196_v1, %v2310_v11  ;;  %v1187_v57 = vmax.f32 %v2539_v58, 0.0  ;;  %v1199_v45 = vmul.f32 %v2292_v29, %v2788_v10 }
 0x1ca   :  { %v1213_v7 = vadd.f32 %v1197_v60, %v2310_v11  ;;  %v1200_v20 = vmul.f32 %v2292_v29, %v2789_v49  ;;  %v1201_v39 = vmul.f32 %v2292_v29, %v2790_v18  ;;  %v1202_v48 = vmul.f32 %v2292_v29, %v2791_v56  ;;  %v2794_v18 = vld [vmem:[#allocation29_spill] sm:$0xff]  ;;  %v2795_v56 = vld [vmem:[#allocation30_spill] sm:$0xff] }
 0x1cb   :  { %v1214_v1 = vadd.f32 %v1198_v23, %v2310_v11  ;;  %v1203_v58 = vmul.f32 %v2292_v29, %v2792_v55  ;;  %v1215_v44 = vadd.f32 %v1199_v45, %v2310_v11  ;;  %v1225_v51 = vmax.f32 %v1209_v25, 0.0 }
 0x1cc   :  { %v1226_v10 = vmax.f32 %v1210_v32, 0.0  ;;  %v1204_v60 = vmul.f32 %v2292_v29, %v2793_v21  ;;  %v1216_v49 = vadd.f32 %v1200_v20, %v2310_v11  ;;  %v1227_v54 = vmax.f32 %v1211_v2, 0.0  ;;  %v2797_v32 = vld [vmem:[#allocation32_spill] sm:$0xff] }
 0x1cd   :  { %v1228_v37 = vmax.f32 %v1212_v5, 0.0  ;;  %v1205_v52 = vmul.f32 %v2292_v29, %v2794_v18  ;;  %v1206_v23 = vmul.f32 %v2292_v29, %v2795_v56  ;;  %v1217_v31 = vadd.f32 %v1201_v39, %v2310_v11 }
 0x1ce   :  { %v1229_v55 = vmax.f32 %v1213_v7, 0.0  ;;  %v1207_v25 = vmul.f32 %v2292_v29, %v2796_v13  ;;  %v1208_v45 = vmul.f32 %v2292_v29, %v2797_v32  ;;  %v1218_v21 = vadd.f32 %v1202_v48, %v2310_v11  ;;  %v2811_v32 = vld [vmem:[#allocation37_spill] sm:$0xff] }
 0x1cf   :  { %v1230_v20 = vmax.f32 %v1214_v1, 0.0  ;;  %v1219_v2 = vadd.f32 %v1203_v58, %v2310_v11  ;;  %v1231_v5 = vmax.f32 %v1215_v44, 0.0  ;;  %v1241_v40 = vmax.f32 %v1177_v47, %v1225_v51 }
 0x1d0   :  { %v1242_v18 = vmax.f32 %v1178_v28, %v1226_v10  ;;  %v1220_v30 = vadd.f32 %v1204_v60, %v2310_v11  ;;  %v1232_v56 = vmax.f32 %v1216_v49, 0.0  ;;  %v1243_v50 = vmax.f32 %v1179_v3, %v1227_v54  ;;  %v2806_v60 = vld [vmem:[#allocation36_spill] sm:$0xff] }
 0x1d1   :  { %v1244_v39 = vmax.f32 %v1180_v42, %v1228_v37  ;;  %v1221_v7 = vadd.f32 %v1205_v52, %v2310_v11  ;;  %v1222_v13 = vadd.f32 %v1206_v23, %v2310_v11  ;;  %v1233_v24 = vmax.f32 %v1217_v31, 0.0 }
 0x1d2   :  { %v1245_v19 = vmax.f32 %v1181_v34, %v1229_v55  ;;  %v1223_v29 = vadd.f32 %v1207_v25, %v2310_v11  ;;  %v1224_v48 = vadd.f32 %v1208_v45, %v2310_v11  ;;  %v1234_v1 = vmax.f32 %v1218_v21, 0.0 }
 0x1d3   :  { %v1246_v58 = vmax.f32 %v1182_v59, %v1230_v20  ;;  %v1235_v44 = vmax.f32 %v1219_v2, 0.0  ;;  %v1247_v51 = vmax.f32 %v1183_v22, %v1231_v5  ;;  %v1257_v47 = vmax.f32 %v2452_v53, %v1241_v40 }
 0x1d4   :  { %v1258_v28 = vmax.f32 %v2454_v63, %v1242_v18  ;;  %v1236_v54 = vmax.f32 %v1220_v30, 0.0  ;;  %v1248_v37 = vmax.f32 %v1184_v36, %v1232_v56  ;;  %v1259_v52 = vmax.f32 %v2456_v15, %v1243_v50 }
 0x1d5   :  { %v1260_v3 = vmax.f32 %v2458_v33, %v1244_v39  ;;  %v1189_v31 = vmax.f32 %v2545_v43, 0.0  ;;  %v1237_v42 = vmax.f32 %v1221_v7, 0.0  ;;  %v1249_v34 = vmax.f32 %v1185_v17, %v1233_v24  ;;  %1273 = vst.msk [vmem:[%s2717_s3] sm:$0xff] %vm553_vm3, %v1257_v47 }
 0x1d6   :  { %v1261_v11 = vmax.f32 %v2460_v27, %v1245_v19  ;;  %v1190_v53 = vmax.f32 %v2548_v16, 0.0  ;;  %v1238_v63 = vmax.f32 %v1222_v13, 0.0  ;;  %v1250_v30 = vmax.f32 %v1186_v35, %v1234_v1  ;;  %1274 = vst.msk [vmem:[%s2717_s3 + $0x8] sm:$0xff] %vm553_vm3, %v1258_v28 }
 0x1d7   :  { %v1262_v40 = vmax.f32 %v2462_v38, %v1246_v58  ;;  %v1191_v50 = vmax.f32 %v2551_v41, 0.0  ;;  %v1239_v15 = vmax.f32 %v1223_v29, 0.0  ;;  %v1251_v19 = vmax.f32 %v1187_v57, %v1235_v44  ;;  %1275 = vst.msk [vmem:[%s2717_s3 + $0x10] sm:$0xff] %vm553_vm3, %v1259_v52 }
 0x1d8   :  { %v1263_v33 = vmax.f32 %v2464_v61, %v1247_v51  ;;  %v1192_v27 = vmax.f32 %v2554_v26, 0.0  ;;  %v1240_v24 = vmax.f32 %v1224_v48, 0.0  ;;  %v2798_v38 = vmax.f32 %v2542_v8, 0.0  ;;  %1276 = vst.msk [vmem:[%s2717_s3 + $0x18] sm:$0xff] %vm553_vm3, %v1260_v3 }
 0x1d9   :  { %v1264_v16 = vmax.f32 %v2466_v46, %v1248_v37  ;;  %v2799_v61 = vmax.f32 %v2437_v6, 0.0  ;;  %v2800_v41 = vmax.f32 %v2377_v4, 0.0  ;;  %v1253_v22 = vmax.f32 %v1189_v31, %v1237_v42  ;;  %1277 = vst.msk [vmem:[%s2717_s3 + $0x20] sm:$0xff] %vm553_vm3, %v1261_v11  ;;  %v2804_v6 = vld [vmem:[#allocation33_spill] sm:$0xff] }
 0x1da   :  { %v1252_v43 = vmax.f32 %v2798_v38, %v1236_v54  ;;  %v1265_v36 = vmax.f32 %v2468_v62, %v1249_v34  ;;  %v2801_v46 = vmax.f32 %v2440_v12, 0.0  ;;  %v2802_v8 = vmax.f32 %v2380_v14, 0.0  ;;  %1278 = vst.msk [vmem:[%s2717_s3 + $0x28] sm:$0xff] %vm553_vm3, %v1262_v40  ;;  %v2807_v14 = vld [vmem:[#allocation35_spill] sm:$0xff] }
 0x1db   :  { %v1141_v59 = vmax.f32 %v2800_v41, %v2799_v61  ;;  %v1254_v17 = vmax.f32 %v1190_v53, %v1238_v63  ;;  %v1266_v35 = vmax.f32 %v2470_v9, %v1250_v30  ;;  %v2803_v4 = vmax.f32 %v2443_v0, 0.0  ;;  %1279 = vst.msk [vmem:[%s2717_s3 + $0x30] sm:$0xff] %vm553_vm3, %v1263_v33  ;;  %v2809_v9 = vld [vmem:[#allocation34_spill] sm:$0xff] }
 0x1dc   :  { %v1142_v26 = vmax.f32 %v2802_v8, %v2801_v46  ;;  %v2805_v62 = vmax.f32 %v2804_v6, 0.0  ;;  %v1255_v10 = vmax.f32 %v1191_v50, %v1239_v15  ;;  %v1267_v49 = vmax.f32 %v2806_v60, %v1251_v19  ;;  %1280 = vst.msk [vmem:[%s2717_s3 + $0x38] sm:$0xff] %vm553_vm3, %v1264_v16 }
 0x1dd   :  { %v2808_v12 = vmax.f32 %v2807_v14, 0.0  ;;  %v2810_v23 = vmax.f32 %v2809_v9, 0.0  ;;  %v1256_v25 = vmax.f32 %v1192_v27, %v1240_v24  ;;  %v1268_v45 = vmax.f32 %v2811_v32, %v1252_v43  ;;  %1281 = vst.msk [vmem:[%s2717_s3 + $0x40] sm:$0xff] %vm553_vm3, %v1265_v36 }
 0x1de   :  { %v1143_v57 = vmax.f32 %v2805_v62, %v2803_v4  ;;  %v1269_v0 = vmax.f32 %v1141_v59, %v1253_v22  ;;  %v1270_v21 = vmax.f32 %v1142_v26, %v1254_v17  ;;  %1282 = vst.msk [vmem:[%s2717_s3 + $0x48] sm:$0xff] %vm553_vm3, %v1266_v35 }
 0x1df   :  { %v1144_v55 = vmax.f32 %v2810_v23, %v2808_v12  ;;  %1283 = vst.msk [vmem:[%s2717_s3 + $0x50] sm:$0xff] %vm553_vm3, %v1267_v49 }
 0x1e0   :  { %v1271_v20 = vmax.f32 %v1143_v57, %v1255_v10  ;;  %1284 = vst.msk [vmem:[%s2717_s3 + $0x58] sm:$0xff] %vm553_vm3, %v1268_v45 }
 0x1e1   :  { %v1272_v2 = vmax.f32 %v1144_v55, %v1256_v25  ;;  %1285 = vst.msk [vmem:[%s2717_s3 + $0x60] sm:$0xff] %vm553_vm3, %v1269_v0 }
 0x1e2   :  { %1286 = vst.msk [vmem:[%s2717_s3 + $0x68] sm:$0xff] %vm553_vm3, %v1270_v21 }
 0x1e3   :  { %1287 = vst.msk [vmem:[%s2717_s3 + $0x70] sm:$0xff] %vm553_vm3, %v1271_v20 }
 0x1e4   :  { %1288 = vst.msk [vmem:[%s2717_s3 + $0x78] sm:$0xff] %vm553_vm3, %v1272_v2 }
 0x1e5   :  { %1293 = vsyncpa [#allocation4], 1 }
 0x1e6   :  { %1294 = vsyncpa [#allocation6], 1 }

// kernel: normnet_forward.5
= control target key start
LH: loop header
LB: loop body
LE: loop exit
PB: predicated region body
PF: predicated region fallthrough
CT: control target
= control target key end

     0   :  { %8 = vsyncpa [#allocation4], 0  ;;  %s1959_s0 = inlined_call_operand.vmem [shape: bf16[128,576], index: 0, kind: input, shape index: {}]   ;;  %s1960_s1 = inlined_call_operand.hbm [shape: bf16[576,128], index: 1, kind: input, shape index: {}]   ;;  %s1961_s2 = inlined_call_operand.hbm [shape: f32[3,128], index: 2, kind: input, shape index: {}]   ;;  %s1962_s3 = inlined_call_operand.vmem [shape: f32[32,128], index: 3, kind: output, shape index: {}]  }
   0x1   :  { %s16_s14 = sshll.u32 %s1960_s1, 4  ;;  %s17_s14 = int_to_ptr.hbm [resolvable:$true] %s16_s14 }
   0x2   :  { %9 = vsyncpa [#allocation6], 0  ;;  %s1519_s15 = smov [#allocation3]   ;;  %s30_s19 = sshll.u32 %s1961_s2, 4  ;;  %s31_s19 = int_to_ptr.hbm [resolvable:$true] %s30_s19 }
   0x3   :  { %s18_s16 = sshll.u32 %s1519_s15, 4  ;;  %s1520_s20 = smov 64   ;;  %s19_s16 = int_to_ptr.vmem [resolvable:$true] %s18_s16 }
   0x4   :  { %s1521_s21 = smov 4   ;;  %s1522_s22 = smov [#allocation5]  }
   0x5   :  { %24 = dma.hbm_to_vmem [thread:$0]  %s17_s14, 4608, %s19_s16, [#allocation4], %s1520_s20, %s1520_s20, %s1521_s21  }
   0x6   :  { %s32_s23 = sshll.u32 %s1522_s22, 4  ;;  %s33_s23 = int_to_ptr.vmem [resolvable:$true] %s32_s23 }
   0x7   :  { %35 = dma.hbm_to_vmem [thread:$0]  %s31_s19, 64, %s33_s23, [#allocation6]  }
   0x8   :  { %1515 = dma.done.wait [#allocation4], 4608  }
   0x9   :  { %1516 = vsyncadd [#allocation4], 4294962688 }
   0xa   :  { %1517 = dma.done.wait [#allocation6], 64  }
   0xb   :  { %1518 = vsyncadd [#allocation6], 4294967232  ;;  %v1407_v0 = vld [vmem:[#allocation3 + $0x38] sm:$0xff]  ;;  %v1406_v1 = vld [vmem:[#allocation3 + $0x30] sm:$0xff]  ;;  %vm585_vm0 = vcmask 523264  }
   0xc   :  { %1436 = vmatpush.bf16.msra.mxu1 %v1407_v0  ;;  %1437 = vmatpush.bf16.msra.mxu2 %v1407_v0  ;;  %v1405_v2 = vld [vmem:[#allocation3 + $0x28] sm:$0xff]  ;;  %v1404_v3 = vld [vmem:[#allocation3 + $0x20] sm:$0xff]  ;;  %v1403_v4 = vld [vmem:[#allocation3 + $0x18] sm:$0xff] }
   0xd   :  { %1438 = vmatpush.bf16.msra.mxu3 %v1407_v0  ;;  %610 = vmatpush.bf16.msra.mxu0 %v1407_v0  ;;  %v1402_v5 = vld [vmem:[#allocation3 + $0x10] sm:$0xff]  ;;  %v1401_v6 = vld [vmem:[#allocation3 + $0x8] sm:$0xff]  ;;  %v1400_v7 = vld [vmem:[#allocation3] sm:$0xff] }
   0xe   :  { %v1090_v8 = vld [vmem:[%s1959_s0 + $0x50] sm:$0xf]  ;;  %v1372_v9 = vld [vmem:[%s1959_s0 + $0x60] sm:$0xf0]  ;;  %v1130_v10 = vld [vmem:[%s1959_s0 + $0xa0] sm:$0xf] }
   0xf   :  { %v1382_v11 = vld [vmem:[%s1959_s0 + $0xb0] sm:$0xf0]  ;;  %v1170_v12 = vld [vmem:[%s1959_s0 + $0xf0] sm:$0xf]  ;;  %v1392_v13 = vld [vmem:[%s1959_s0 + $0x100] sm:$0xf0]  ;;  %v1091_v18 = vor.u32 %v1372_v9, %v1090_v8 }
  0x10   :  { %1439 = vmatpush.bf16.msra.mxu1 %v1406_v1  ;;  %1440 = vmatpush.bf16.msra.mxu2 %v1406_v1  ;;  %v1050_v14 = vld [vmem:[%s1959_s0] sm:$0xf]  ;;  %v1362_v15 = vld [vmem:[%s1959_s0 + $0x10] sm:$0xf0]  ;;  %v1423_v16 = vld [vmem:[#allocation3 + $0xb8] sm:$0xff]  ;;  %v1131_v19 = vor.u32 %v1382_v11, %v1130_v10  ;;  %v1171_v20 = vor.u32 %v1392_v13, %v1170_v12 }
  0x11   :  { %1441 = vmatpush.bf16.msra.mxu3 %v1406_v1  ;;  %611 = vmatpush.bf16.msra.mxu0 %v1406_v1  ;;  %v1415_v17 = vld [vmem:[#allocation3 + $0x78] sm:$0xff]  ;;  %v1051_v21 = vor.u32 %v1362_v15, %v1050_v14  ;;  %v1422_v24 = vld [vmem:[#allocation3 + $0xb0] sm:$0xff]  ;;  %v1421_v28 = vld [vmem:[#allocation3 + $0xa8] sm:$0xff] }
  0x12   :  { %v1431_v22 = vld [vmem:[#allocation3 + $0xf8] sm:$0xff]  ;;  %v1414_v25 = vld [vmem:[#allocation3 + $0x70] sm:$0xff]  ;;  %v1413_v29 = vld [vmem:[#allocation3 + $0x68] sm:$0xff] }
  0x13   :  { %v1435_v23 = vld [vmem:[#allocation3 + $0x118] sm:$0xff]  ;;  %v1430_v26 = vld [vmem:[#allocation3 + $0xf0] sm:$0xff]  ;;  %v1429_v30 = vld [vmem:[#allocation3 + $0xe8] sm:$0xff] }
  0x14   :  { %1442 = vmatpush.bf16.msra.mxu1 %v1405_v2  ;;  %1443 = vmatpush.bf16.msra.mxu2 %v1405_v2  ;;  %v1434_v27 = vld [vmem:[#allocation3 + $0x110] sm:$0xff]  ;;  %v1433_v31 = vld [vmem:[#allocation3 + $0x108] sm:$0xff]  ;;  %v1420_v32 = vld [vmem:[#allocation3 + $0xa0] sm:$0xff] }
  0x15   :  { %1444 = vmatpush.bf16.msra.mxu3 %v1405_v2  ;;  %612 = vmatpush.bf16.msra.mxu0 %v1405_v2  ;;  %v1412_v33 = vld [vmem:[#allocation3 + $0x60] sm:$0xff]  ;;  %v1110_v35 = vld [vmem:[%s1959_s0 + $0x78] sm:$0xf]  ;;  %v1377_v36 = vld [vmem:[%s1959_s0 + $0x88] sm:$0xf0] }
  0x16   :  { %v1428_v34 = vld [vmem:[#allocation3 + $0xe0] sm:$0xff]  ;;  %v1150_v37 = vld [vmem:[%s1959_s0 + $0xc8] sm:$0xf]  ;;  %v1387_v38 = vld [vmem:[%s1959_s0 + $0xd8] sm:$0xf0]  ;;  %v1111_v46 = vor.u32 %v1377_v36, %v1110_v35 }
  0x17   :  { %v1190_v39 = vld [vmem:[%s1959_s0 + $0x118] sm:$0xf]  ;;  %v1397_v40 = vld [vmem:[%s1959_s0 + $0x128] sm:$0xf0]  ;;  %v1070_v41 = vld [vmem:[%s1959_s0 + $0x28] sm:$0xf]  ;;  %v1151_v47 = vor.u32 %v1387_v38, %v1150_v37 }
  0x18   :  { %1445 = vmatpush.bf16.msra.mxu1 %v1404_v3  ;;  %1446 = vmatpush.bf16.msra.mxu2 %v1404_v3  ;;  %v1367_v42 = vld [vmem:[%s1959_s0 + $0x38] sm:$0xf0]  ;;  %v1432_v43 = vld [vmem:[#allocation3 + $0x100] sm:$0xff]  ;;  %v1191_v48 = vor.u32 %v1397_v40, %v1190_v39  ;;  %v1418_v51 = vld [vmem:[#allocation3 + $0x90] sm:$0xff] }
  0x19   :  { %1447 = vmatpush.bf16.msra.mxu3 %v1404_v3  ;;  %613 = vmatpush.bf16.msra.mxu0 %v1404_v3  ;;  %v1419_v44 = vld [vmem:[#allocation3 + $0x98] sm:$0xff]  ;;  %v1071_v49 = vor.u32 %v1367_v42, %v1070_v41  ;;  %v1410_v52 = vld [vmem:[#allocation3 + $0x50] sm:$0xff]  ;;  %v1417_v54 = vld [vmem:[#allocation3 + $0x88] sm:$0xff] }
  0x1a   :  { %v1411_v45 = vld [vmem:[#allocation3 + $0x58] sm:$0xff]  ;;  %v1426_v53 = vld [vmem:[#allocation3 + $0xd0] sm:$0xff]  ;;  %v1409_v55 = vld [vmem:[#allocation3 + $0x48] sm:$0xff] }
  0x1b   :  { %v1427_v50 = vld [vmem:[#allocation3 + $0xd8] sm:$0xff]  ;;  %v1425_v56 = vld [vmem:[#allocation3 + $0xc8] sm:$0xff]  ;;  %v1416_v57 = vld [vmem:[#allocation3 + $0x80] sm:$0xff] }
  0x1c   :  { %1448 = vmatpush.bf16.msra.mxu1 %v1403_v4  ;;  %1449 = vmatpush.bf16.msra.mxu2 %v1403_v4  ;;  %v1408_v58 = vld [vmem:[#allocation3 + $0x40] sm:$0xff]  ;;  %v1052_v61 = vld [vmem:[%s1959_s0 + $0x14] sm:$0xf0]  ;;  %v1058_v62 = vld [vmem:[%s1959_s0 + $0x8] sm:$0xf] }
  0x1d   :  { %1450 = vmatpush.bf16.msra.mxu3 %v1403_v4  ;;  %614 = vmatpush.bf16.msra.mxu0 %v1403_v4  ;;  %v1424_v59 = vld [vmem:[#allocation3 + $0xc0] sm:$0xff]  ;;  %v1363_v63 = vld [vmem:[%s1959_s0 + $0x18] sm:$0xf0]  ;;  %v1361_v0 = vld [vmem:[%s1959_s0 + $0xc] sm:$0xf] }
  0x1e   :  { %v1360_v60 = vld [vmem:[%s1959_s0 + $0x4] sm:$0xf]  ;;  %v1060_v1 = vld [vmem:[%s1959_s0 + $0x1c] sm:$0xf0]  ;;  %v1066_v2 = vld [vmem:[%s1959_s0 + $0x10] sm:$0xf] }
  0x1f   :  { %v1364_v3 = vld [vmem:[%s1959_s0 + $0x20] sm:$0xf0]  ;;  %v1055_v4 = vor.u32 %v1360_v60, %v1052_v61  ;;  %v1365_v8 = vld [vmem:[%s1959_s0 + $0x2c] sm:$0xf]  ;;  %v1072_v9 = vld [vmem:[%s1959_s0 + $0x3c] sm:$0xf0] }
  0x20   :  { %1451 = vmatpush.bf16.msra.mxu1 %v1402_v5  ;;  %1452 = vmatpush.bf16.msra.mxu2 %v1402_v5  ;;  %v1078_v10 = vld [vmem:[%s1959_s0 + $0x30] sm:$0xf]  ;;  %v1368_v11 = vld [vmem:[%s1959_s0 + $0x40] sm:$0xf0]  ;;  %v1366_v12 = vld [vmem:[%s1959_s0 + $0x34] sm:$0xf] }
  0x21   :  { %1453 = vmatpush.bf16.msra.mxu3 %v1402_v5  ;;  %615 = vmatpush.bf16.msra.mxu0 %v1402_v5  ;;  %v1059_v5 = vor.u32 %v1363_v63, %v1058_v62  ;;  %v1080_v13 = vld [vmem:[%s1959_s0 + $0x44] sm:$0xf0]  ;;  %v1086_v14 = vld [vmem:[%s1959_s0 + $0x38] sm:$0xf]  ;;  %v1369_v15 = vld [vmem:[%s1959_s0 + $0x48] sm:$0xf0] }
  0x22   :  { %v1378_v35 = vld [vmem:[%s1959_s0 + $0x90] sm:$0xf0]  ;;  %v1376_v36 = vld [vmem:[%s1959_s0 + $0x84] sm:$0xf]  ;;  %v1120_v37 = vld [vmem:[%s1959_s0 + $0x94] sm:$0xf0] }
  0x23   :  { %v1126_v38 = vld [vmem:[%s1959_s0 + $0x88] sm:$0xf]  ;;  %v1379_v39 = vld [vmem:[%s1959_s0 + $0x98] sm:$0xf0]  ;;  %v1123_v42 = vor.u32 %v1376_v36, %v1120_v37  ;;  %v1386_v60 = vld [vmem:[%s1959_s0 + $0xd4] sm:$0xf] }
  0x24   :  { %1454 = vmatpush.bf16.msra.mxu1 %v1401_v6  ;;  %1455 = vmatpush.bf16.msra.mxu2 %v1401_v6  ;;  %v1160_v61 = vld [vmem:[%s1959_s0 + $0xe4] sm:$0xf0]  ;;  %v1166_v62 = vld [vmem:[%s1959_s0 + $0xd8] sm:$0xf]  ;;  %v1389_v63 = vld [vmem:[%s1959_s0 + $0xe8] sm:$0xf0] }
  0x25   :  { %1456 = vmatpush.bf16.msra.mxu3 %v1401_v6  ;;  %616 = vmatpush.bf16.msra.mxu0 %v1401_v6  ;;  %v1063_v6 = vor.u32 %v1361_v0, %v1060_v1 }
  0x28   :  { %1457 = vmatpush.bf16.msra.mxu1 %v1400_v7  ;;  %1458 = vmatpush.bf16.msra.mxu2 %v1400_v7 }
  0x29   :  { %1459 = vmatpush.bf16.msra.mxu3 %v1400_v7  ;;  %617 = vmatpush.bf16.msra.mxu0 %v1400_v7  ;;  %v1067_v7 = vor.u32 %v1364_v3, %v1066_v2  ;;  %v1163_v2 = vor.u32 %v1386_v60, %v1160_v61  ;;  %v1167_v3 = vor.u32 %v1389_v63, %v1166_v62 }
  0x2b   :  { %628 = vmatmul.bf16.vlgmr.msra.gmra.mxu1 %v1091_v18  ;;  %638 = vmatmul.bf16.vlgmr.msra.gmra.mxu2 %v1131_v19  ;;  %v1083_v18 = vor.u32 %v1366_v12, %v1080_v13  ;;  %v1087_v19 = vor.u32 %v1369_v15, %v1086_v14 }
  0x2c   :  { %708 = vmatpush.bf16.msrb.mxu2 %v1423_v16  ;;  %659 = vmatpush.bf16.msrb.mxu1 %v1415_v17  ;;  %v1075_v16 = vor.u32 %v1365_v8, %v1072_v9  ;;  %v1079_v17 = vor.u32 %v1368_v11, %v1078_v10  ;;  %v1391_v8 = vld [vmem:[%s1959_s0 + $0xfc] sm:$0xf]  ;;  %v1180_v9 = vld [vmem:[%s1959_s0 + $0x10c] sm:$0xf0]  ;;  %v1186_v10 = vld [vmem:[%s1959_s0 + $0x100] sm:$0xf] }
  0x2d   :  { %648 = vmatmul.bf16.vlgmr.msra.gmra.mxu3 %v1171_v20  ;;  %618 = vmatmul.bf16.vlgmr.msra.gmra.mxu0 %v1051_v21  ;;  %v1370_v20 = vld [vmem:[%s1959_s0 + $0x54] sm:$0xf]  ;;  %v1092_v21 = vld [vmem:[%s1959_s0 + $0x64] sm:$0xf0]  ;;  %v1183_v15 = vor.u32 %v1391_v8, %v1180_v9 }
  0x2e   :  { %757 = vmatpush.bf16.msrb.mxu3 %v1431_v22  ;;  %810 = vmatpush.bf16.msrb.mxu0 %v1435_v23  ;;  %v1098_v22 = vld [vmem:[%s1959_s0 + $0x58] sm:$0xf]  ;;  %v1373_v23 = vld [vmem:[%s1959_s0 + $0x68] sm:$0xf0]  ;;  %v1394_v11 = vld [vmem:[%s1959_s0 + $0x110] sm:$0xf0] }
  0x30   :  { %709 = vmatpush.bf16.msrb.mxu2 %v1422_v24  ;;  %660 = vmatpush.bf16.msrb.mxu1 %v1414_v25  ;;  %v1371_v24 = vld [vmem:[%s1959_s0 + $0x5c] sm:$0xf]  ;;  %v1100_v25 = vld [vmem:[%s1959_s0 + $0x6c] sm:$0xf0] }
  0x32   :  { %758 = vmatpush.bf16.msrb.mxu3 %v1430_v26  ;;  %811 = vmatpush.bf16.msrb.mxu0 %v1434_v27  ;;  %v1106_v26 = vld [vmem:[%s1959_s0 + $0x60] sm:$0xf]  ;;  %v1374_v27 = vld [vmem:[%s1959_s0 + $0x70] sm:$0xf0] }
  0x34   :  { %710 = vmatpush.bf16.msrb.mxu2 %v1421_v28  ;;  %661 = vmatpush.bf16.msrb.mxu1 %v1413_v29  ;;  %v1095_v28 = vor.u32 %v1370_v20, %v1092_v21  ;;  %v1099_v29 = vor.u32 %v1373_v23, %v1098_v22  ;;  %v1395_v22 = vld [vmem:[%s1959_s0 + $0x11c] sm:$0xf]  ;;  %v1192_v23 = vld [vmem:[%s1959_s0 + $0x12c] sm:$0xf0] }
  0x36   :  { %759 = vmatpush.bf16.msrb.mxu3 %v1429_v30  ;;  %812 = vmatpush.bf16.msrb.mxu0 %v1433_v31  ;;  %v1103_v30 = vor.u32 %v1371_v24, %v1100_v25  ;;  %v1107_v31 = vor.u32 %v1374_v27, %v1106_v26  ;;  %v1198_v24 = vld [vmem:[%s1959_s0 + $0x120] sm:$0xf]  ;;  %v1398_v25 = vld [vmem:[%s1959_s0 + $0x130] sm:$0xf0]  ;;  %v1396_v26 = vld [vmem:[%s1959_s0 + $0x124] sm:$0xf] }
  0x37   :  { %v1200_v27 = vld [vmem:[%s1959_s0 + $0x134] sm:$0xf0] }
  0x38   :  { %711 = vmatpush.bf16.msrb.mxu2 %v1420_v32  ;;  %662 = vmatpush.bf16.msrb.mxu1 %v1412_v33  ;;  %v1375_v32 = vld [vmem:[%s1959_s0 + $0x7c] sm:$0xf]  ;;  %v1112_v33 = vld [vmem:[%s1959_s0 + $0x8c] sm:$0xf0] }
  0x39   :  { %v1115_v40 = vor.u32 %v1375_v32, %v1112_v33  ;;  %v1195_v32 = vor.u32 %v1395_v22, %v1192_v23  ;;  %v1199_v33 = vor.u32 %v1398_v25, %v1198_v24 }
  0x3a   :  { %760 = vmatpush.bf16.msrb.mxu3 %v1428_v34  ;;  %813 = vmatpush.bf16.msrb.mxu0 %v1432_v43  ;;  %v1118_v34 = vld [vmem:[%s1959_s0 + $0x80] sm:$0xf]  ;;  %v1127_v43 = vor.u32 %v1379_v39, %v1126_v38 }
  0x3b   :  { %633 = vmatmul.bf16.gmra.mxu1 %v1111_v46  ;;  %643 = vmatmul.bf16.gmra.mxu2 %v1151_v47  ;;  %v1119_v41 = vor.u32 %v1378_v35, %v1118_v34  ;;  %v1138_v46 = vld [vmem:[%s1959_s0 + $0xa8] sm:$0xf]  ;;  %v1383_v47 = vld [vmem:[%s1959_s0 + $0xb8] sm:$0xf0]  ;;  %v1203_v35 = vor.u32 %v1396_v26, %v1200_v27 }
  0x3c   :  { %712 = vmatpush.bf16.msrb.mxu2 %v1419_v44  ;;  %663 = vmatpush.bf16.msrb.mxu1 %v1411_v45  ;;  %v1380_v44 = vld [vmem:[%s1959_s0 + $0xa4] sm:$0xf]  ;;  %v1132_v45 = vld [vmem:[%s1959_s0 + $0xb4] sm:$0xf0] }
  0x3d   :  { %653 = vmatmul.bf16.gmra.mxu3 %v1191_v48  ;;  %623 = vmatmul.bf16.gmra.mxu0 %v1071_v49  ;;  %v1381_v48 = vld [vmem:[%s1959_s0 + $0xac] sm:$0xf]  ;;  %v1140_v49 = vld [vmem:[%s1959_s0 + $0xbc] sm:$0xf0] }
  0x3e   :  { %761 = vmatpush.bf16.msrb.mxu3 %v1427_v50  ;;  %v1146_v50 = vld [vmem:[%s1959_s0 + $0xb0] sm:$0xf] }
  0x40   :  { %713 = vmatpush.bf16.msrb.mxu2 %v1418_v51  ;;  %664 = vmatpush.bf16.msrb.mxu1 %v1410_v52  ;;  %v1384_v51 = vld [vmem:[%s1959_s0 + $0xc0] sm:$0xf0]  ;;  %v1135_v52 = vor.u32 %v1380_v44, %v1132_v45 }
  0x42   :  { %762 = vmatpush.bf16.msrb.mxu3 %v1426_v53  ;;  %v1139_v53 = vor.u32 %v1383_v47, %v1138_v46 }
  0x44   :  { %714 = vmatpush.bf16.msrb.mxu2 %v1417_v54  ;;  %665 = vmatpush.bf16.msrb.mxu1 %v1409_v55  ;;  %v1143_v54 = vor.u32 %v1381_v48, %v1140_v49  ;;  %v1147_v55 = vor.u32 %v1384_v51, %v1146_v50 }
  0x46   :  { %763 = vmatpush.bf16.msrb.mxu3 %v1425_v56  ;;  %v1385_v56 = vld [vmem:[%s1959_s0 + $0xcc] sm:$0xf] }
  0x48   :  { %715 = vmatpush.bf16.msrb.mxu2 %v1416_v57  ;;  %666 = vmatpush.bf16.msrb.mxu1 %v1408_v58  ;;  %v1152_v57 = vld [vmem:[%s1959_s0 + $0xdc] sm:$0xf0]  ;;  %v1158_v58 = vld [vmem:[%s1959_s0 + $0xd0] sm:$0xf] }
  0x49   :  { %v1155_v0 = vor.u32 %v1385_v56, %v1152_v57 }
  0x4a   :  { %764 = vmatpush.bf16.msrb.mxu3 %v1424_v59  ;;  %v1388_v59 = vld [vmem:[%s1959_s0 + $0xe0] sm:$0xf0] }
  0x4b   :  { %667 = vmatmul.bf16.vlgmr.msrb.gmra.mxu1 %v1055_v4  ;;  %716 = vmatmul.bf16.vlgmr.msrb.gmra.mxu2 %v1059_v5  ;;  %v1159_v1 = vor.u32 %v1388_v59, %v1158_v58  ;;  %v1390_v4 = vld [vmem:[%s1959_s0 + $0xf4] sm:$0xf]  ;;  %v1172_v5 = vld [vmem:[%s1959_s0 + $0x104] sm:$0xf0] }
  0x4c   :  { %v1175_v12 = vor.u32 %v1390_v4, %v1172_v5 }
  0x4d   :  { %765 = vmatmul.bf16.vlgmr.msrb.gmra.mxu3 %v1063_v6  ;;  %1352 = vmatmul.msk.bf16.vlgmr.msrb.gmra.mxu0 %vm585_vm0, %v1067_v7  ;;  %v1178_v6 = vld [vmem:[%s1959_s0 + $0xf8] sm:$0xf]  ;;  %v1393_v7 = vld [vmem:[%s1959_s0 + $0x108] sm:$0xf0] }
  0x4e   :  { %v1179_v13 = vor.u32 %v1393_v7, %v1178_v6 }
  0x5b   :  { %672 = vmatmul.bf16.gmra.mxu1 %v1075_v16  ;;  %721 = vmatmul.bf16.gmra.mxu2 %v1079_v17  ;;  %v1187_v16 = vor.u32 %v1394_v11, %v1186_v10 }
  0x5d   :  { %770 = vmatmul.bf16.gmra.mxu3 %v1083_v18  ;;  %1353 = vmatmul.msk.bf16.gmra.mxu0 %vm585_vm0, %v1087_v19 }
  0x6b   :  { %677 = vmatmul.bf16.gmra.mxu1 %v1095_v28  ;;  %726 = vmatmul.bf16.gmra.mxu2 %v1099_v29  ;;  %v1206_v28 = vld [vmem:[%s1959_s0 + $0x128] sm:$0xf]  ;;  %v1399_v29 = vld [vmem:[%s1959_s0 + $0x138] sm:$0xf0] }
  0x6c   :  { %v1207_v36 = vor.u32 %v1399_v29, %v1206_v28 }
  0x6d   :  { %775 = vmatmul.bf16.gmra.mxu3 %v1103_v30  ;;  %1354 = vmatmul.msk.bf16.gmra.mxu0 %vm585_vm0, %v1107_v31 }
  0x7b   :  { %682 = vmatmul.bf16.gmra.mxu1 %v1115_v40  ;;  %731 = vmatmul.bf16.gmra.mxu2 %v1119_v41 }
  0x7d   :  { %780 = vmatmul.bf16.gmra.mxu3 %v1123_v42  ;;  %1355 = vmatmul.msk.bf16.gmra.mxu0 %vm585_vm0, %v1127_v43  ;;  %v1817_v42 = vld [vmem:[#allocation5] ss:$0 sm:$0xff] }
  0x8b   :  { %687 = vmatmul.bf16.gmra.mxu1 %v1135_v52  ;;  %736 = vmatmul.bf16.gmra.mxu2 %v1139_v53 }
  0x8d   :  { %785 = vmatmul.bf16.gmra.mxu3 %v1143_v54  ;;  %1356 = vmatmul.msk.bf16.gmra.mxu0 %vm585_vm0, %v1147_v55 }
  0x9b   :  { %692 = vmatmul.bf16.gmra.mxu1 %v1155_v0  ;;  %741 = vmatmul.bf16.gmra.mxu2 %v1159_v1 }
  0x9d   :  { %790 = vmatmul.bf16.gmra.mxu3 %v1163_v2  ;;  %1357 = vmatmul.msk.bf16.gmra.mxu0 %vm585_vm0, %v1167_v3 }
  0xa8   :  { %v1771_v14 = vpop.f32.mrf.mxu1 }
  0xaa   :  { %v619_v17 = vpop.f32.mrf.mxu0 }
  0xab   :  { %697 = vmatmul.bf16.gmra.mxu1 %v1175_v12  ;;  %746 = vmatmul.bf16.gmra.mxu2 %v1179_v13  ;;  %v620_v44 = vadd.f32 %v1817_v42, %v619_v17  ;;  %v630_v13 = vadd.f32 %v1817_v42, %v1771_v14 }
  0xad   :  { %795 = vmatmul.bf16.gmra.mxu3 %v1183_v15  ;;  %1358 = vmatmul.msk.bf16.gmra.mxu0 %vm585_vm0, %v1187_v16 }
  0xae   :  { %v1774_v18 = vpop.f32.mrf.mxu2 }
  0xb0   :  { %v1776_v19 = vpop.f32.mrf.mxu3  ;;  %v1778_v20 = vpop.f32.mrf.mxu1 }
  0xb2   :  { %v621_v21 = vpop.f32.mrf.mxu0 }
  0xb3   :  { %v622_v50 = vadd.f32 %v1817_v42, %v621_v21 }
  0xb6   :  { %v1804_v30 = vpop.f32.mrf.mxu2 }
  0xb8   :  { %v1806_v31 = vpop.f32.mrf.mxu3  ;;  %v1808_v34 = vpop.f32.mrf.mxu1 }
  0xba   :  { %v624_v37 = vpop.f32.mrf.mxu0 }
  0xbb   :  { %702 = vmatmul.bf16.gmra.mxu1 %v1195_v32  ;;  %751 = vmatmul.bf16.gmra.mxu2 %v1199_v33  ;;  %v625_v59 = vadd.f32 %v1817_v42, %v624_v37 }
  0xbd   :  { %800 = vmatmul.bf16.gmra.mxu3 %v1203_v35  ;;  %1359 = vmatmul.msk.bf16.gmra.mxu0 %vm585_vm0, %v1207_v36 }
  0xbe   :  { %v1811_v38 = vpop.f32.mrf.mxu2 }
  0xc0   :  { %v1813_v39 = vpop.f32.mrf.mxu3  ;;  %v1815_v40 = vpop.f32.mrf.mxu1 }
  0xc2   :  { %v626_v41 = vpop.f32.mrf.mxu0 }
  0xc3   :  { %v627_v4 = vadd.f32 %v1817_v42, %v626_v41 }
  0xc6   :  { %v1819_v43 = vpop.f32.mrf.mxu2 }
  0xc8   :  { %v1822_v45 = vpop.f32.mrf.mxu3  ;;  %v668_v46 = vpop.f32.mrf.mxu1 }
  0xc9   :  { %v669_v47 = vadd.f32 %v668_v46, %v620_v44 }
  0xca   :  { %v815_v48 = vpop.f32.mrf.mxu0 }
  0xce   :  { %v717_v49 = vpop.f32.mrf.mxu2 }
  0xcf   :  { %v718_v51 = vadd.f32 %v717_v49, %v669_v47  ;;  %v635_v49 = vadd.f32 %v1817_v42, %v1808_v34 }
  0xd0   :  { %v766_v52 = vpop.f32.mrf.mxu3  ;;  %v670_v53 = vpop.f32.mrf.mxu1 }
  0xd1   :  { %v767_v54 = vadd.f32 %v766_v52, %v718_v51  ;;  %v671_v55 = vadd.f32 %v670_v53, %v622_v50  ;;  %v637_v52 = vadd.f32 %v1817_v42, %v1815_v40 }
  0xd2   :  { %v817_v56 = vpop.f32.mrf.mxu0 }
  0xd3   :  { %v1825_v57 = vadd.f32 %v815_v48, %v767_v54  ;;  %v632_v48 = vadd.f32 %v1817_v42, %v1778_v20  ;;  %v640_v20 = vadd.f32 %v1817_v42, %v1774_v18 }
  0xd6   :  { %v719_v58 = vpop.f32.mrf.mxu2 }
  0xd7   :  { %v720_v60 = vadd.f32 %v719_v58, %v671_v55 }
  0xd8   :  { %v768_v61 = vpop.f32.mrf.mxu3  ;;  %v673_v62 = vpop.f32.mrf.mxu1 }
  0xd9   :  { %v769_v63 = vadd.f32 %v768_v61, %v720_v60  ;;  %v674_v0 = vadd.f32 %v673_v62, %v625_v59 }
  0xda   :  { %v820_v1 = vpop.f32.mrf.mxu0 }
  0xdb   :  { %v1828_v2 = vadd.f32 %v817_v56, %v769_v63  ;;  %v909_v63 = vmul.f32 %v1825_v57, %v1825_v57 }
  0xdd   :  { %v910_v61 = vmul.f32 %v1828_v2, %v1828_v2 }
  0xde   :  { %v722_v3 = vpop.f32.mrf.mxu2 }
  0xdf   :  { %v723_v5 = vadd.f32 %v722_v3, %v674_v0  ;;  %v887_v0 = vadd.f32 %v1828_v2, %v1825_v57 }
  0xe0   :  { %v771_v6 = vpop.f32.mrf.mxu3  ;;  %v675_v7 = vpop.f32.mrf.mxu1 }
  0xe1   :  { %v772_v8 = vadd.f32 %v771_v6, %v723_v5  ;;  %v676_v9 = vadd.f32 %v675_v7, %v627_v4  ;;  %v925_v4 = vadd.f32 %v910_v61, %v909_v63 }
  0xe2   :  { %v822_v10 = vpop.f32.mrf.mxu0 }
  0xe3   :  { %v1831_v11 = vadd.f32 %v820_v1, %v772_v8 }
  0xe5   :  { %v911_v40 = vmul.f32 %v1831_v11, %v1831_v11  ;;  %v888_v18 = vadd.f32 %v887_v0, %v1831_v11 }
  0xe6   :  { %v724_v12 = vpop.f32.mrf.mxu2 }
  0xe7   :  { %v725_v15 = vadd.f32 %v724_v12, %v676_v9  ;;  %v926_v12 = vadd.f32 %v925_v4, %v911_v40 }
  0xe8   :  { %v773_v16 = vpop.f32.mrf.mxu3  ;;  %v678_v17 = vpop.f32.mrf.mxu1 }
  0xe9   :  { %v774_v21 = vadd.f32 %v773_v16, %v725_v15  ;;  %v679_v22 = vadd.f32 %v678_v17, %v630_v13 }
  0xea   :  { %v825_v23 = vpop.f32.mrf.mxu0 }
  0xeb   :  { %v1835_v24 = vadd.f32 %v822_v10, %v774_v21 }
  0xed   :  { %v912_v5 = vmul.f32 %v1835_v24, %v1835_v24  ;;  %v889_v16 = vadd.f32 %v888_v18, %v1835_v24 }
  0xee   :  { %v727_v25 = vpop.f32.mrf.mxu2 }
  0xef   :  { %v728_v26 = vadd.f32 %v727_v25, %v679_v22  ;;  %v642_v25 = vadd.f32 %v1817_v42, %v1804_v30 }
  0xf0   :  { %v776_v27 = vpop.f32.mrf.mxu3  ;;  %v680_v28 = vpop.f32.mrf.mxu1 }
  0xf1   :  { %v777_v29 = vadd.f32 %v776_v27, %v728_v26  ;;  %v681_v50 = vadd.f32 %v680_v28, %v632_v48 }
  0xf2   :  { %v827_v32 = vpop.f32.mrf.mxu0 }
  0xf3   :  { %v1837_v33 = vadd.f32 %v825_v23, %v777_v29  ;;  %v927_v23 = vadd.f32 %v926_v12, %v912_v5 }
  0xf5   :  { %v913_v13 = vmul.f32 %v1837_v33, %v1837_v33  ;;  %v890_v26 = vadd.f32 %v889_v16, %v1837_v33  ;;  %v650_v16 = vadd.f32 %v1817_v42, %v1776_v19 }
  0xf6   :  { %v729_v35 = vpop.f32.mrf.mxu2 }
  0xf7   :  { %v730_v53 = vadd.f32 %v729_v35, %v681_v50  ;;  %v928_v29 = vadd.f32 %v927_v23, %v913_v13 }
  0xf8   :  { %v778_v36 = vpop.f32.mrf.mxu3  ;;  %v683_v37 = vpop.f32.mrf.mxu1 }
  0xf9   :  { %v684_v54 = vadd.f32 %v683_v37, %v635_v49  ;;  %v779_v62 = vadd.f32 %v778_v36, %v730_v53 }
  0xfa   :  { %v830_v14 = vpop.f32.mrf.mxu0 }
  0xfb   :  { %v1858_v7 = vadd.f32 %v827_v32, %v779_v62 }
  0xfd   :  { %v914_v27 = vmul.f32 %v1858_v7, %v1858_v7  ;;  %v891_v32 = vadd.f32 %v890_v26, %v1858_v7 }
  0xfe   :  { %v732_v41 = vpop.f32.mrf.mxu2 }
  0xff   :  { %v733_v58 = vadd.f32 %v732_v41, %v684_v54  ;;  %v929_v41 = vadd.f32 %v928_v29, %v914_v27  ;;  %v645_v54 = vadd.f32 %v1817_v42, %v1811_v38  ;;  %v647_v38 = vadd.f32 %v1817_v42, %v1819_v43 }
 0x100   :  { %v781_v44 = vpop.f32.mrf.mxu3  ;;  %v685_v46 = vpop.f32.mrf.mxu1 }
 0x101   :  { %v686_v59 = vadd.f32 %v685_v46, %v637_v52  ;;  %v782_v1 = vadd.f32 %v781_v44, %v733_v58 }
 0x102   :  { %v832_v47 = vpop.f32.mrf.mxu0 }
 0x103   :  { %v1863_v17 = vadd.f32 %v830_v14, %v782_v1 }
 0x105   :  { %v915_v35 = vmul.f32 %v1863_v17, %v1863_v17  ;;  %v892_v30 = vadd.f32 %v891_v32, %v1863_v17 }
 0x106   :  { %v734_v51 = vpop.f32.mrf.mxu2 }
 0x107   :  { %v735_v34 = vadd.f32 %v734_v51, %v686_v59  ;;  %v930_v49 = vadd.f32 %v929_v41, %v915_v35 }
 0x108   :  { %v783_v55 = vpop.f32.mrf.mxu3  ;;  %v688_v56 = vpop.f32.mrf.mxu1 }
 0x109   :  { %v689_v3 = vadd.f32 %v688_v56, %v640_v20  ;;  %v784_v8 = vadd.f32 %v783_v55, %v735_v34 }
 0x10a   :  { %v835_v60 = vpop.f32.mrf.mxu0 }
 0x10b   :  { %v1870_v28 = vadd.f32 %v832_v47, %v784_v8 }
 0x10d   :  { %v916_v44 = vmul.f32 %v1870_v28, %v1870_v28  ;;  %v893_v50 = vadd.f32 %v892_v30, %v1870_v28 }
 0x10e   :  { %v737_v6 = vpop.f32.mrf.mxu2 }
 0x10f   :  { %v738_v9 = vadd.f32 %v737_v6, %v689_v3  ;;  %v931_v55 = vadd.f32 %v930_v49, %v916_v44 }
 0x110   :  { %v786_v10 = vpop.f32.mrf.mxu3  ;;  %v690_v15 = vpop.f32.mrf.mxu1 }
 0x111   :  { %v787_v21 = vadd.f32 %v786_v10, %v738_v9  ;;  %v691_v37 = vadd.f32 %v690_v15, %v642_v25 }
 0x112   :  { %v837_v22 = vpop.f32.mrf.mxu0 }
 0x113   :  { %v1875_v36 = vadd.f32 %v835_v60, %v787_v21 }
 0x115   :  { %v917_v51 = vmul.f32 %v1875_v36, %v1875_v36  ;;  %v894_v56 = vadd.f32 %v893_v50, %v1875_v36 }
 0x116   :  { %v739_v14 = vpop.f32.mrf.mxu2 }
 0x117   :  { %v740_v46 = vadd.f32 %v739_v14, %v691_v37  ;;  %v932_v59 = vadd.f32 %v931_v55, %v917_v51  ;;  %v652_v14 = vadd.f32 %v1817_v42, %v1806_v31 }
 0x118   :  { %v788_v48 = vpop.f32.mrf.mxu3  ;;  %v693_v47 = vpop.f32.mrf.mxu1 }
 0x119   :  { %v789_v52 = vadd.f32 %v788_v48, %v740_v46  ;;  %v694_v20 = vadd.f32 %v693_v47, %v645_v54 }
 0x11a   :  { %v840_v53 = vpop.f32.mrf.mxu0 }
 0x11b   :  { %v1886_v58 = vadd.f32 %v837_v22, %v789_v52 }
 0x11d   :  { %v895_v60 = vadd.f32 %v894_v56, %v1886_v58  ;;  %v918_v61 = vmul.f32 %v1886_v58, %v1886_v58 }
 0x11e   :  { %v742_v62 = vpop.f32.mrf.mxu2 }
 0x11f   :  { %v933_v34 = vadd.f32 %v932_v59, %v918_v61  ;;  %v743_v63 = vadd.f32 %v742_v62, %v694_v20 }
 0x120   :  { %v791_v40 = vpop.f32.mrf.mxu3  ;;  %v695_v0 = vpop.f32.mrf.mxu1 }
 0x121   :  { %v792_v1 = vadd.f32 %v791_v40, %v743_v63  ;;  %v696_v18 = vadd.f32 %v695_v0, %v647_v38  ;;  %v657_v40 = vadd.f32 %v1817_v42, %v1822_v45 }
 0x122   :  { %v842_v3 = vpop.f32.mrf.mxu0 }
 0x123   :  { %v1893_v4 = vadd.f32 %v840_v53, %v792_v1  ;;  %v655_v53 = vadd.f32 %v1817_v42, %v1813_v39 }
 0x125   :  { %v896_v5 = vadd.f32 %v895_v60, %v1893_v4  ;;  %v919_v6 = vmul.f32 %v1893_v4, %v1893_v4 }
 0x126   :  { %v744_v8 = vpop.f32.mrf.mxu2 }
 0x127   :  { %v934_v9 = vadd.f32 %v933_v34, %v919_v6  ;;  %v745_v10 = vadd.f32 %v744_v8, %v696_v18 }
 0x128   :  { %v793_v12 = vpop.f32.mrf.mxu3  ;;  %v698_v13 = vpop.f32.mrf.mxu1 }
 0x129   :  { %v794_v15 = vadd.f32 %v793_v12, %v745_v10  ;;  %v699_v25 = vadd.f32 %v698_v13, %v650_v16 }
 0x12a   :  { %v845_v43 = vpop.f32.mrf.mxu0 }
 0x12b   :  { %v1900_v21 = vadd.f32 %v842_v3, %v794_v15 }
 0x12d   :  { %v897_v22 = vadd.f32 %v896_v5, %v1900_v21  ;;  %v920_v23 = vmul.f32 %v1900_v21, %v1900_v21 }
 0x12e   :  { %v747_v26 = vpop.f32.mrf.mxu2 }
 0x12f   :  { %v935_v27 = vadd.f32 %v934_v9, %v920_v23  ;;  %v748_v29 = vadd.f32 %v747_v26, %v699_v25 }
 0x130   :  { %v796_v32 = vpop.f32.mrf.mxu3  ;;  %v700_v35 = vpop.f32.mrf.mxu1 }
 0x131   :  { %v797_v37 = vadd.f32 %v796_v32, %v748_v29  ;;  %v701_v44 = vadd.f32 %v700_v35, %v652_v14 }
 0x132   :  { %v847_v46 = vpop.f32.mrf.mxu0 }
 0x133   :  { %v1907_v41 = vadd.f32 %v845_v43, %v797_v37 }
 0x135   :  { %v898_v19 = vadd.f32 %v897_v22, %v1907_v41  ;;  %v921_v30 = vmul.f32 %v1907_v41, %v1907_v41 }
 0x136   :  { %v749_v48 = vpop.f32.mrf.mxu2 }
 0x137   :  { %v936_v47 = vadd.f32 %v935_v27, %v921_v30  ;;  %v750_v49 = vadd.f32 %v749_v48, %v701_v44 }
 0x138   :  { %v798_v50 = vpop.f32.mrf.mxu3  ;;  %v703_v51 = vpop.f32.mrf.mxu1 }
 0x139   :  { %v799_v52 = vadd.f32 %v798_v50, %v750_v49  ;;  %v704_v56 = vadd.f32 %v703_v51, %v655_v53 }
 0x13a   :  { %v850_v62 = vpop.f32.mrf.mxu0 }
 0x13b   :  { %v1914_v54 = vadd.f32 %v847_v46, %v799_v52  ;;  %v46_v52 = vld [vmem:[#allocation5 + $0x1] sm:$0x1] }
 0x13d   :  { %v899_v31 = vadd.f32 %v898_v19, %v1914_v54  ;;  %v922_v55 = vmul.f32 %v1914_v54, %v1914_v54 }
 0x13e   :  { %v752_v59 = vpop.f32.mrf.mxu2 }
 0x13f   :  { %v937_v60 = vadd.f32 %v936_v47, %v922_v55  ;;  %v753_v61 = vadd.f32 %v752_v59, %v704_v56  ;;  %v47_v56 = vld [vmem:[#allocation5 + $0x2] sm:$0x1] }
 0x140   :  { %v801_v20 = vpop.f32.mrf.mxu3  ;;  %v705_v63 = vpop.f32.mrf.mxu1 }
 0x141   :  { %v802_v34 = vadd.f32 %v801_v20, %v753_v61  ;;  %v706_v3 = vadd.f32 %v705_v63, %v657_v40 }
 0x142   :  { %v852_v9 = vpop.f32.mrf.mxu0 }
 0x143   :  { %v1921_v0 = vadd.f32 %v850_v62, %v802_v34 }
 0x145   :  { %v900_v39 = vadd.f32 %v899_v31, %v1921_v0  ;;  %v923_v1 = vmul.f32 %v1921_v0, %v1921_v0 }
 0x146   :  { %v754_v38 = vpop.f32.mrf.mxu2 }
 0x147   :  { %v938_v5 = vadd.f32 %v937_v60, %v923_v1  ;;  %v755_v6 = vadd.f32 %v754_v38, %v706_v3 }
 0x148   :  { %v803_v18 = vpop.f32.mrf.mxu3 }
 0x149   :  { %v804_v8 = vadd.f32 %v803_v18, %v755_v6 }
 0x14b   :  { %v1926_v10 = vadd.f32 %v852_v9, %v804_v8 }
 0x14d   :  { %v901_v12 = vadd.f32 %v900_v39, %v1926_v10  ;;  %v924_v42 = vmul.f32 %v1926_v10, %v1926_v10 }
 0x14f   :  { %v902_v45 = vrot.slane %v901_v12, 4  ;;  %v939_v13 = vadd.f32 %v938_v5, %v924_v42 }
 0x151   :  { %v903_v15 = vadd.f32 %v902_v45, %v901_v12  ;;  %v940_v16 = vrot.slane %v939_v13, 4 }
 0x153   :  { %v904_v43 = vrot.slane %v903_v15, 2  ;;  %v941_v22 = vadd.f32 %v940_v16, %v939_v13 }
 0x155   :  { %v905_v23 = vadd.f32 %v904_v43, %v903_v15  ;;  %v942_v25 = vrot.slane %v941_v22, 2 }
 0x157   :  { %v906_v26 = vrot.slane %v905_v23, 1  ;;  %v943_v27 = vadd.f32 %v942_v25, %v941_v22 }
 0x159   :  { %v907_v29 = vadd.f32 %v906_v26, %v905_v23  ;;  %v944_v32 = vrot.slane %v943_v27, 1 }
 0x15b   :  { %v908_v35 = vmul.f32 0.0078125, %v907_v29  ;;  %v945_v37 = vadd.f32 %v944_v32, %v943_v27 }
 0x15d   :  { %v946_v14 = vmul.f32 0.0078125, %v945_v37  ;;  %v947_v19 = vmul.f32 %v908_v35, %v908_v35 }
 0x15f   :  { %v948_v30 = vsub.f32 %v946_v14, %v947_v19 }
 0x161   :  { %v949_v44 = vmax.f32 %v948_v30, 0.0 }
 0x163   :  { %v950_v46 = vadd.f32 1e-05, %v949_v44 }
 0x165   :  { %1465 = vrsqrt.f32 %v950_v46  ;;  %vm957_vm2 = vweird.f32 %v950_v46 }
 0x16b   :  { %v1466_v48 = vpop.eup %1465 }
 0x16c   :  { %v952_v47 = vmul.f32 %v1466_v48, %v950_v46  ;;  %vm958_vm1 = vweird.f32 %v1466_v48 }
 0x16d   :  { %vm959_vm3 = vmor %vm957_vm2, %vm958_vm1 }
 0x16e   :  { %v953_v49 = vmul.f32 %v1466_v48, %v952_v47 }
 0x170   :  { %v954_v50 = vmul.f32 0.5, %v953_v49 }
 0x172   :  { %v955_v51 = vsub.f32 1.5, %v954_v50 }
 0x174   :  { %v956_v53 = vmul.f32 %v1466_v48, %v955_v51 }
 0x176   :  { %v960_v31 = vsel %vm959_vm3, %v1466_v48, %v956_v53 }
 0x177   :  { %v961_v55 = vmul.f32 %v960_v31, %v46_v52 }
 0x179   :  { %v962_v59 = vmul.f32 %v961_v55, %v908_v35  ;;  %v968_v60 = vperm.slane %v961_v55, 0 }
 0x17b   :  { %v963_v61 = vsub.f32 %v47_v56, %v962_v59  ;;  %v969_v20 = vmul.f32 %v968_v60, %v1825_v57  ;;  %v970_v62 = vmul.f32 %v968_v60, %v1828_v2  ;;  %v971_v34 = vmul.f32 %v968_v60, %v1831_v11 }
 0x17c   :  { %v972_v63 = vmul.f32 %v968_v60, %v1835_v24  ;;  %v986_v40 = vmul.f32 %v968_v60, %v1837_v33  ;;  %v987_v39 = vmul.f32 %v968_v60, %v1858_v7  ;;  %v988_v1 = vmul.f32 %v968_v60, %v1863_v17 }
 0x17d   :  { %v973_v3 = vperm.slane %v963_v61, 0  ;;  %v989_v38 = vmul.f32 %v968_v60, %v1870_v28  ;;  %v1006_v5 = vmul.f32 %v968_v60, %v1875_v36  ;;  %v1007_v6 = vmul.f32 %v968_v60, %v1886_v58 }
 0x17e   :  { %v1008_v57 = vmul.f32 %v968_v60, %v1893_v4  ;;  %v1009_v2 = vmul.f32 %v968_v60, %v1900_v21  ;;  %v1018_v11 = vmul.f32 %v968_v60, %v1907_v41  ;;  %v1019_v24 = vmul.f32 %v968_v60, %v1914_v54 }
 0x17f   :  { %v974_v33 = vadd.f32 %v973_v3, %v969_v20  ;;  %v975_v18 = vadd.f32 %v973_v3, %v970_v62  ;;  %v976_v7 = vadd.f32 %v973_v3, %v971_v34  ;;  %v977_v8 = vadd.f32 %v973_v3, %v972_v63 }
 0x180   :  { %v990_v17 = vadd.f32 %v986_v40, %v973_v3  ;;  %v991_v9 = vadd.f32 %v987_v39, %v973_v3  ;;  %v992_v12 = vadd.f32 %v988_v1, %v973_v3  ;;  %v993_v28 = vadd.f32 %v989_v38, %v973_v3 }
 0x181   :  { %v978_v42 = vmax.f32 %v974_v33, 0.0  ;;  %v979_v36 = vmax.f32 %v975_v18, 0.0  ;;  %v980_v45 = vmax.f32 %v976_v7, 0.0  ;;  %v981_v58 = vmax.f32 %v977_v8, 0.0 }
 0x182   :  { %v994_v13 = vmax.f32 %v990_v17, 0.0  ;;  %v995_v4 = vmax.f32 %v991_v9, 0.0  ;;  %v996_v15 = vmax.f32 %v992_v12, 0.0  ;;  %v997_v21 = vmax.f32 %v993_v28, 0.0 }
 0x183   :  { %v1010_v16 = vadd.f32 %v1006_v5, %v973_v3  ;;  %v1011_v41 = vadd.f32 %v1007_v6, %v973_v3  ;;  %v1012_v43 = vadd.f32 %v1008_v57, %v973_v3  ;;  %v1013_v54 = vadd.f32 %v1009_v2, %v973_v3 }
 0x184   :  { %v998_v22 = vmax.f32 %v978_v42, %v994_v13  ;;  %v999_v23 = vmax.f32 %v979_v36, %v995_v4  ;;  %v1000_v25 = vmax.f32 %v980_v45, %v996_v15  ;;  %v1001_v26 = vmax.f32 %v981_v58, %v997_v21 }
 0x185   :  { %v1014_v27 = vmax.f32 %v1010_v16, 0.0  ;;  %v1015_v29 = vmax.f32 %v1011_v41, 0.0  ;;  %v1020_v32 = vmul.f32 %v968_v60, %v1921_v0  ;;  %v1021_v35 = vmul.f32 %v968_v60, %v1926_v10 }
 0x186   :  { %v1022_v37 = vadd.f32 %v1018_v11, %v973_v3  ;;  %v1023_v14 = vadd.f32 %v1019_v24, %v973_v3  ;;  %v1016_v19 = vmax.f32 %v1012_v43, 0.0  ;;  %v1017_v30 = vmax.f32 %v1013_v54, 0.0 }
 0x187   :  { %v1024_v44 = vadd.f32 %v1020_v32, %v973_v3  ;;  %v1025_v46 = vadd.f32 %v1021_v35, %v973_v3 }
 0x188   :  { %v1026_v48 = vmax.f32 %v1022_v37, 0.0  ;;  %v1027_v47 = vmax.f32 %v1023_v14, 0.0 }
 0x189   :  { %v1028_v49 = vmax.f32 %v1024_v44, 0.0  ;;  %v1029_v50 = vmax.f32 %v1025_v46, 0.0 }
 0x18a   :  { %v1030_v51 = vmax.f32 %v1014_v27, %v1026_v48  ;;  %v1031_v52 = vmax.f32 %v1015_v29, %v1027_v47 }
 0x18b   :  { %v1032_v53 = vmax.f32 %v1016_v19, %v1028_v49  ;;  %v1033_v31 = vmax.f32 %v1017_v30, %v1029_v50 }
 0x18c   :  { %v1034_v55 = vmax.f32 %v998_v22, %v1030_v51  ;;  %v1035_v56 = vmax.f32 %v999_v23, %v1031_v52 }
 0x18d   :  { %v1036_v59 = vmax.f32 %v1000_v25, %v1032_v53  ;;  %v1037_v0 = vmax.f32 %v1001_v26, %v1033_v31 }
 0x18e   :  { %1038 = vst [vmem:[%s1962_s3] sm:$0xff] %v1034_v55 }
 0x18f   :  { %1039 = vst [vmem:[%s1962_s3 + $0x8] sm:$0xff] %v1035_v56 }
 0x190   :  { %1040 = vst [vmem:[%s1962_s3 + $0x10] sm:$0xff] %v1036_v59 }
 0x191   :  { %1041 = vst [vmem:[%s1962_s3 + $0x18] sm:$0xff] %v1037_v0 }
 0x192   :  { %1046 = vsyncpa [#allocation4], 1 }
 0x193   :  { %1047 = vsyncpa [#allocation6], 1 }

// kernel: normnet_forward.6
= control target key start
LH: loop header
LB: loop body
LE: loop exit
PB: predicated region body
PF: predicated region fallthrough
CT: control target
= control target key end

     0   :  { %vm1437_vm5 = vcmask 1040384   ;;  %s3480_s1 = inlined_call_operand.vmem [shape: bf16[1152,256], index: 1, kind: input, shape index: {}]   ;;  %s3481_s0 = inlined_call_operand.vmem [shape: bf16[32,1152], index: 0, kind: input, shape index: {}]   ;;  %s3482_s2 = inlined_call_operand.vmem [shape: f32[3,256], index: 2, kind: input, shape index: {}]   ;;  %s3483_s3 = inlined_call_operand.vmem [shape: f32[8,256], index: 3, kind: output, shape index: {}]  }
   0x1   :  { %v1633_v0 = vld [vmem:[%s3480_s1 + $0x70] sm:$0xf]  ;;  %v2184_v1 = vld [vmem:[%s3480_s1 + $0x74] sm:$0xf0]  ;;  %v1625_v11 = vld [vmem:[%s3480_s1 + $0x60] sm:$0xf] }
   0x2   :  { %v1697_v2 = vld [vmem:[%s3480_s1 + $0xf0] sm:$0xf]  ;;  %v1634_v3 = vor.u32 %v2184_v1, %v1633_v0  ;;  %v2200_v4 = vld [vmem:[%s3480_s1 + $0xf4] sm:$0xf0]  ;;  %v2182_v13 = vld [vmem:[%s3480_s1 + $0x64] sm:$0xf0] }
   0x3   :  { %v1761_v5 = vld [vmem:[%s3480_s1 + $0x170] sm:$0xf]  ;;  %v2216_v6 = vld [vmem:[%s3480_s1 + $0x174] sm:$0xf0]  ;;  %v1698_v7 = vor.u32 %v2200_v4, %v1697_v2  ;;  %v1689_v14 = vld [vmem:[%s3480_s1 + $0xe0] sm:$0xf]  ;;  %v1626_v16 = vor.u32 %v2182_v13, %v1625_v11 }
   0x4   :  { %v1762_v8 = vor.u32 %v2216_v6, %v1761_v5  ;;  %v1825_v9 = vld [vmem:[%s3480_s1 + $0x1f0] sm:$0xf]  ;;  %v2232_v10 = vld [vmem:[%s3480_s1 + $0x1f4] sm:$0xf0]  ;;  %1000 = vmatpush.bf16.msra.mxu0 %v1634_v3  ;;  %v2198_v15 = vld [vmem:[%s3480_s1 + $0xe4] sm:$0xf0] }
   0x5   :  { %v1826_v12 = vor.u32 %v2232_v10, %v1825_v9  ;;  %1019 = vmatpush.bf16.msra.mxu1 %v1698_v7  ;;  %v1690_v17 = vor.u32 %v2198_v15, %v1689_v14  ;;  %v1753_v18 = vld [vmem:[%s3480_s1 + $0x160] sm:$0xf]  ;;  %v2214_v19 = vld [vmem:[%s3480_s1 + $0x164] sm:$0xf0]  ;;  %v1617_v23 = vld [vmem:[%s3480_s1 + $0x50] sm:$0xf] }
   0x6   :  { %1038 = vmatpush.bf16.msra.mxu2 %v1762_v8  ;;  %v1817_v20 = vld [vmem:[%s3480_s1 + $0x1e0] sm:$0xf]  ;;  %v1754_v21 = vor.u32 %v2214_v19, %v1753_v18  ;;  %v2230_v22 = vld [vmem:[%s3480_s1 + $0x1e4] sm:$0xf0]  ;;  %v2180_v24 = vld [vmem:[%s3480_s1 + $0x54] sm:$0xf0] }
   0x7   :  { %1057 = vmatpush.bf16.msra.mxu3 %v1826_v12  ;;  %v1818_v25 = vor.u32 %v2230_v22, %v1817_v20  ;;  %v1681_v26 = vld [vmem:[%s3480_s1 + $0xd0] sm:$0xf]  ;;  %v2196_v27 = vld [vmem:[%s3480_s1 + $0xd4] sm:$0xf0]  ;;  %v1618_v29 = vor.u32 %v2180_v24, %v1617_v23  ;;  %v1609_v35 = vld [vmem:[%s3480_s1 + $0x40] sm:$0xf] }
   0x8   :  { %v1745_v28 = vld [vmem:[%s3480_s1 + $0x150] sm:$0xf]  ;;  %1001 = vmatpush.bf16.msra.mxu0 %v1626_v16  ;;  %v2212_v30 = vld [vmem:[%s3480_s1 + $0x154] sm:$0xf0]  ;;  %v1682_v33 = vor.u32 %v2196_v27, %v1681_v26  ;;  %v2178_v36 = vld [vmem:[%s3480_s1 + $0x44] sm:$0xf0] }
   0x9   :  { %v1809_v31 = vld [vmem:[%s3480_s1 + $0x1d0] sm:$0xf]  ;;  %v2228_v32 = vld [vmem:[%s3480_s1 + $0x1d4] sm:$0xf0]  ;;  %1020 = vmatpush.bf16.msra.mxu1 %v1690_v17  ;;  %v1746_v34 = vor.u32 %v2212_v30, %v1745_v28  ;;  %v1673_v37 = vld [vmem:[%s3480_s1 + $0xc0] sm:$0xf]  ;;  %v1610_v44 = vor.u32 %v2178_v36, %v1609_v35 }
   0xa   :  { %1039 = vmatpush.bf16.msra.mxu2 %v1754_v21  ;;  %v1810_v38 = vor.u32 %v2228_v32, %v1809_v31  ;;  %v2194_v39 = vld [vmem:[%s3480_s1 + $0xc4] sm:$0xf0]  ;;  %v1737_v40 = vld [vmem:[%s3480_s1 + $0x140] sm:$0xf]  ;;  %v1601_v47 = vld [vmem:[%s3480_s1 + $0x30] sm:$0xf] }
   0xb   :  { %1058 = vmatpush.bf16.msra.mxu3 %v1818_v25  ;;  %v2210_v41 = vld [vmem:[%s3480_s1 + $0x144] sm:$0xf0]  ;;  %v1801_v42 = vld [vmem:[%s3480_s1 + $0x1c0] sm:$0xf]  ;;  %v1674_v45 = vor.u32 %v2194_v39, %v1673_v37  ;;  %v2176_v48 = vld [vmem:[%s3480_s1 + $0x34] sm:$0xf0] }
   0xc   :  { %v2226_v43 = vld [vmem:[%s3480_s1 + $0x1c4] sm:$0xf0]  ;;  %1002 = vmatpush.bf16.msra.mxu0 %v1618_v29  ;;  %v1738_v46 = vor.u32 %v2210_v41, %v1737_v40  ;;  %v1665_v49 = vld [vmem:[%s3480_s1 + $0xb0] sm:$0xf]  ;;  %v2192_v51 = vld [vmem:[%s3480_s1 + $0xb4] sm:$0xf0]  ;;  %v1602_v56 = vor.u32 %v2176_v48, %v1601_v47 }
   0xd   :  { %1021 = vmatpush.bf16.msra.mxu1 %v1682_v33  ;;  %v1802_v50 = vor.u32 %v2226_v43, %v1801_v42  ;;  %v1729_v52 = vld [vmem:[%s3480_s1 + $0x130] sm:$0xf]  ;;  %v2208_v53 = vld [vmem:[%s3480_s1 + $0x134] sm:$0xf0]  ;;  %v1666_v57 = vor.u32 %v2192_v51, %v1665_v49  ;;  %v1593_v59 = vld [vmem:[%s3480_s1 + $0x20] sm:$0xf] }
   0xe   :  { %1040 = vmatpush.bf16.msra.mxu2 %v1746_v34  ;;  %v1793_v54 = vld [vmem:[%s3480_s1 + $0x1b0] sm:$0xf]  ;;  %v2224_v55 = vld [vmem:[%s3480_s1 + $0x1b4] sm:$0xf0]  ;;  %v1730_v58 = vor.u32 %v2208_v53, %v1729_v52  ;;  %v2174_v60 = vld [vmem:[%s3480_s1 + $0x24] sm:$0xf0] }
   0xf   :  { %1059 = vmatpush.bf16.msra.mxu3 %v1810_v38  ;;  %v1657_v61 = vld [vmem:[%s3480_s1 + $0xa0] sm:$0xf]  ;;  %v1794_v62 = vor.u32 %v2224_v55, %v1793_v54  ;;  %v2190_v63 = vld [vmem:[%s3480_s1 + $0xa4] sm:$0xf0]  ;;  %v1594_v4 = vor.u32 %v2174_v60, %v1593_v59  ;;  %v1585_v7 = vld [vmem:[%s3480_s1 + $0x10] sm:$0xf] }
  0x10   :  { %1003 = vmatpush.bf16.msra.mxu0 %v1610_v44  ;;  %v1721_v0 = vld [vmem:[%s3480_s1 + $0x120] sm:$0xf]  ;;  %v2206_v1 = vld [vmem:[%s3480_s1 + $0x124] sm:$0xf0]  ;;  %v1658_v5 = vor.u32 %v2190_v63, %v1657_v61  ;;  %v2172_v8 = vld [vmem:[%s3480_s1 + $0x14] sm:$0xf0] }
  0x11   :  { %1022 = vmatpush.bf16.msra.mxu1 %v1674_v45  ;;  %v1785_v2 = vld [vmem:[%s3480_s1 + $0x1a0] sm:$0xf]  ;;  %v2222_v3 = vld [vmem:[%s3480_s1 + $0x1a4] sm:$0xf0]  ;;  %v1722_v6 = vor.u32 %v2206_v1, %v1721_v0  ;;  %v1649_v9 = vld [vmem:[%s3480_s1 + $0x90] sm:$0xf]  ;;  %v1586_v17 = vor.u32 %v2172_v8, %v1585_v7 }
  0x12   :  { %1041 = vmatpush.bf16.msra.mxu2 %v1738_v46  ;;  %v1786_v10 = vor.u32 %v2222_v3, %v1785_v2  ;;  %v2188_v11 = vld [vmem:[%s3480_s1 + $0x94] sm:$0xf0]  ;;  %v1713_v12 = vld [vmem:[%s3480_s1 + $0x110] sm:$0xf]  ;;  %v1577_v16 = vld [vmem:[%s3480_s1] sm:$0xf] }
  0x13   :  { %1060 = vmatpush.bf16.msra.mxu3 %v1802_v50  ;;  %v2204_v13 = vld [vmem:[%s3480_s1 + $0x114] sm:$0xf0]  ;;  %v1777_v14 = vld [vmem:[%s3480_s1 + $0x190] sm:$0xf]  ;;  %v2170_v18 = vld [vmem:[%s3480_s1 + $0x4] sm:$0xf0]  ;;  %v1650_v21 = vor.u32 %v2188_v11, %v1649_v9 }
  0x14   :  { %1004 = vmatpush.bf16.msra.mxu0 %v1602_v56  ;;  %v2220_v15 = vld [vmem:[%s3480_s1 + $0x194] sm:$0xf0]  ;;  %v1641_v19 = vld [vmem:[%s3480_s1 + $0x80] sm:$0xf]  ;;  %v2186_v20 = vld [vmem:[%s3480_s1 + $0x84] sm:$0xf0]  ;;  %v1714_v22 = vor.u32 %v2204_v13, %v1713_v12  ;;  %v1578_v34 = vor.u32 %v2170_v18, %v1577_v16 }
  0x15   :  { %1023 = vmatpush.bf16.msra.mxu1 %v1666_v57  ;;  %v1705_v23 = vld [vmem:[%s3480_s1 + $0x100] sm:$0xf]  ;;  %v2202_v24 = vld [vmem:[%s3480_s1 + $0x104] sm:$0xf0]  ;;  %v1778_v26 = vor.u32 %v2220_v15, %v1777_v14  ;;  %v2155_v29 = vld [vmem:[%s3481_s0 + $0x20] sm:$0xf0]  ;;  %v1642_v38 = vor.u32 %v2186_v20, %v1641_v19 }
  0x16   :  { %1042 = vmatpush.bf16.msra.mxu2 %v1730_v58  ;;  %v1769_v25 = vld [vmem:[%s3480_s1 + $0x180] sm:$0xf]  ;;  %v2218_v27 = vld [vmem:[%s3480_s1 + $0x184] sm:$0xf0]  ;;  %v2151_v30 = vld [vmem:[%s3481_s0 + $0x4] sm:$0xf]  ;;  %v1706_v39 = vor.u32 %v2202_v24, %v1705_v23 }
  0x17   :  { %1061 = vmatpush.bf16.msra.mxu3 %v1794_v62  ;;  %v1505_v28 = vld [vmem:[%s3481_s0] sm:$0xf]  ;;  %v1507_v31 = vld [vmem:[%s3481_s0 + $0x24] sm:$0xf0]  ;;  %v2017_v32 = vld [vmem:[%s3480_s1 + $0x370] sm:$0xf]  ;;  %v1770_v43 = vor.u32 %v2218_v27, %v1769_v25 }
  0x18   :  { %1005 = vmatpush.bf16.msra.mxu0 %v1594_v4  ;;  %v2280_v33 = vld [vmem:[%s3480_s1 + $0x374] sm:$0xf0]  ;;  %v1513_v35 = vld [vmem:[%s3481_s0 + $0x8] sm:$0xf]  ;;  %v1953_v36 = vld [vmem:[%s3480_s1 + $0x2f0] sm:$0xf]  ;;  %v2590_v48 = vor.u32 %v2155_v29, %v1505_v28  ;;  %v2601_v53 = vor.u32 %v2151_v30, %v1507_v31 }
  0x19   :  { %1024 = vmatpush.bf16.msra.mxu1 %v1658_v5  ;;  %v2264_v37 = vld [vmem:[%s3480_s1 + $0x2f4] sm:$0xf0]  ;;  %v2156_v40 = vld [vmem:[%s3481_s0 + $0x28] sm:$0xf0]  ;;  %v1515_v42 = vld [vmem:[%s3481_s0 + $0x2c] sm:$0xf0]  ;;  %v2018_v44 = vor.u32 %v2280_v33, %v2017_v32 }
  0x1a   :  { %1043 = vmatpush.bf16.msra.mxu2 %v1722_v6  ;;  %v2152_v41 = vld [vmem:[%s3481_s0 + $0xc] sm:$0xf]  ;;  %v1889_v45 = vld [vmem:[%s3480_s1 + $0x270] sm:$0xf]  ;;  %v2248_v46 = vld [vmem:[%s3480_s1 + $0x274] sm:$0xf0]  ;;  %v1954_v49 = vor.u32 %v2264_v37, %v1953_v36  ;;  %v2603_v54 = vor.u32 %v2156_v40, %v1513_v35 }
  0x1b   :  { %1062 = vmatpush.bf16.msra.mxu3 %v1786_v10  ;;  %v2081_v47 = vld [vmem:[%s3480_s1 + $0x3f0] sm:$0xf]  ;;  %v2296_v50 = vld [vmem:[%s3480_s1 + $0x3f4] sm:$0xf0]  ;;  %v2009_v51 = vld [vmem:[%s3480_s1 + $0x360] sm:$0xf]  ;;  %v2611_v57 = vor.u32 %v2152_v41, %v1515_v42  ;;  %v1890_v58 = vor.u32 %v2248_v46, %v1889_v45 }
  0x1c   :  { %1006 = vmatpush.bf16.msra.mxu0 %v1586_v17  ;;  %v2278_v52 = vld [vmem:[%s3480_s1 + $0x364] sm:$0xf0]  ;;  %v1945_v55 = vld [vmem:[%s3480_s1 + $0x2e0] sm:$0xf]  ;;  %v2082_v59 = vor.u32 %v2296_v50, %v2081_v47  ;;  %v2001_v2 = vld [vmem:[%s3480_s1 + $0x350] sm:$0xf] }
  0x1d   :  { %1025 = vmatpush.bf16.msra.mxu1 %v1650_v21  ;;  %v2262_v56 = vld [vmem:[%s3480_s1 + $0x2e4] sm:$0xf0]  ;;  %v2010_v60 = vor.u32 %v2278_v52, %v2009_v51  ;;  %v1881_v61 = vld [vmem:[%s3480_s1 + $0x260] sm:$0xf]  ;;  %v2276_v3 = vld [vmem:[%s3480_s1 + $0x354] sm:$0xf0] }
  0x1e   :  { %1044 = vmatpush.bf16.msra.mxu2 %v1714_v22  ;;  %v2246_v62 = vld [vmem:[%s3480_s1 + $0x264] sm:$0xf0]  ;;  %v2073_v63 = vld [vmem:[%s3480_s1 + $0x3e0] sm:$0xf]  ;;  %v1946_v0 = vor.u32 %v2262_v56, %v1945_v55  ;;  %v1937_v4 = vld [vmem:[%s3480_s1 + $0x2d0] sm:$0xf]  ;;  %v2002_v8 = vor.u32 %v2276_v3, %v2001_v2 }
  0x1f   :  { %1063 = vmatpush.bf16.msra.mxu3 %v1778_v26  ;;  %v2294_v1 = vld [vmem:[%s3480_s1 + $0x3e4] sm:$0xf0]  ;;  %v2260_v5 = vld [vmem:[%s3480_s1 + $0x2d4] sm:$0xf0]  ;;  %v1882_v6 = vor.u32 %v2246_v62, %v1881_v61  ;;  %v1873_v9 = vld [vmem:[%s3480_s1 + $0x250] sm:$0xf] }
  0x20   :  { %1007 = vmatpush.bf16.msra.mxu0 %v1578_v34  ;;  %v2074_v7 = vor.u32 %v2294_v1, %v2073_v63  ;;  %v2244_v10 = vld [vmem:[%s3480_s1 + $0x254] sm:$0xf0]  ;;  %v2065_v11 = vld [vmem:[%s3480_s1 + $0x3d0] sm:$0xf]  ;;  %v1938_v12 = vor.u32 %v2260_v5, %v1937_v4  ;;  %v1993_v14 = vld [vmem:[%s3480_s1 + $0x340] sm:$0xf] }
  0x21   :  { %1026 = vmatpush.bf16.msra.mxu1 %v1642_v38  ;;  %v2292_v13 = vld [vmem:[%s3480_s1 + $0x3d4] sm:$0xf0]  ;;  %v2274_v15 = vld [vmem:[%s3480_s1 + $0x344] sm:$0xf0]  ;;  %v1929_v16 = vld [vmem:[%s3480_s1 + $0x2c0] sm:$0xf]  ;;  %v1874_v18 = vor.u32 %v2244_v10, %v1873_v9 }
  0x22   :  { %1045 = vmatpush.bf16.msra.mxu2 %v1706_v39  ;;  %v2258_v17 = vld [vmem:[%s3480_s1 + $0x2c4] sm:$0xf0]  ;;  %v1865_v19 = vld [vmem:[%s3480_s1 + $0x240] sm:$0xf]  ;;  %v2066_v22 = vor.u32 %v2292_v13, %v2065_v11  ;;  %v1994_v23 = vor.u32 %v2274_v15, %v1993_v14  ;;  %v2164_v26 = vld [vmem:[%s3481_s0 + $0x68] sm:$0xf0] }
  0x23   :  { %1064 = vmatpush.bf16.msra.mxu3 %v1770_v43  ;;  %1008 = vmatmul.bf16.vlgmr.msra.gmra.mxu0 %v2590_v48  ;;  %v2242_v20 = vld [vmem:[%s3480_s1 + $0x244] sm:$0xf0]  ;;  %v2057_v21 = vld [vmem:[%s3480_s1 + $0x3c0] sm:$0xf]  ;;  %v1930_v27 = vor.u32 %v2258_v17, %v1929_v16  ;;  %v2160_v28 = vld [vmem:[%s3481_s0 + $0x4c] sm:$0xf] }
  0x24   :  { %1027 = vmatmul.bf16.vlgmr.msra.gmra.mxu1 %v2601_v53  ;;  %1076 = vmatpush.bf16.msrb.mxu0 %v1890_v58  ;;  %v2290_v24 = vld [vmem:[%s3480_s1 + $0x3c4] sm:$0xf0]  ;;  %v1543_v29 = vld [vmem:[%s3481_s0 + $0x6c] sm:$0xf0]  ;;  %v2272_v31 = vld [vmem:[%s3480_s1 + $0x334] sm:$0xf0]  ;;  %v1866_v35 = vor.u32 %v2242_v20, %v1865_v19 }
  0x25   :  { %1095 = vmatpush.bf16.msrb.mxu1 %v1954_v49  ;;  %1046 = vmatmul.bf16.vlgmr.msra.gmra.mxu2 %v2603_v54  ;;  %v1541_v25 = vld [vmem:[%s3481_s0 + $0x48] sm:$0xf]  ;;  %v1985_v30 = vld [vmem:[%s3480_s1 + $0x330] sm:$0xf]  ;;  %v2256_v34 = vld [vmem:[%s3480_s1 + $0x2b4] sm:$0xf0]  ;;  %v2058_v39 = vor.u32 %v2290_v24, %v2057_v21  ;;  %v2733_v50 = vor.u32 %v2160_v28, %v1543_v29 }
  0x26   :  { %1114 = vmatpush.bf16.msrb.mxu2 %v2018_v44  ;;  %1065 = vmatmul.bf16.vlgmr.msra.gmra.mxu3 %v2611_v57  ;;  %v1549_v32 = vld [vmem:[%s3481_s0 + $0x50] sm:$0xf]  ;;  %v2165_v36 = vld [vmem:[%s3481_s0 + $0x70] sm:$0xf0]  ;;  %v1551_v38 = vld [vmem:[%s3481_s0 + $0x74] sm:$0xf0]  ;;  %v1986_v40 = vor.u32 %v2272_v31, %v1985_v30  ;;  %v2722_v44 = vor.u32 %v2164_v26, %v1541_v25 }
  0x27   :  { %1133 = vmatpush.bf16.msrb.mxu3 %v2082_v59  ;;  %v1921_v33 = vld [vmem:[%s3480_s1 + $0x2b0] sm:$0xf]  ;;  %v2161_v37 = vld [vmem:[%s3481_s0 + $0x54] sm:$0xf]  ;;  %v2240_v42 = vld [vmem:[%s3480_s1 + $0x234] sm:$0xf0]  ;;  %v2735_v51 = vor.u32 %v2165_v36, %v1549_v32 }
  0x28   :  { %1077 = vmatpush.bf16.msrb.mxu0 %v1882_v6  ;;  %v1857_v41 = vld [vmem:[%s3480_s1 + $0x230] sm:$0xf]  ;;  %v1922_v45 = vor.u32 %v2256_v34, %v1921_v33  ;;  %v2288_v46 = vld [vmem:[%s3480_s1 + $0x3b4] sm:$0xf0]  ;;  %v1977_v47 = vld [vmem:[%s3480_s1 + $0x320] sm:$0xf]  ;;  %v2743_v56 = vor.u32 %v2161_v37, %v1551_v38 }
  0x29   :  { %1096 = vmatpush.bf16.msrb.mxu1 %v1946_v0  ;;  %v2049_v43 = vld [vmem:[%s3480_s1 + $0x3b0] sm:$0xf]  ;;  %v2270_v49 = vld [vmem:[%s3480_s1 + $0x324] sm:$0xf0]  ;;  %v1913_v52 = vld [vmem:[%s3480_s1 + $0x2a0] sm:$0xf]  ;;  %v1858_v58 = vor.u32 %v2240_v42, %v1857_v41 }
  0x2a   :  { %1115 = vmatpush.bf16.msrb.mxu2 %v2010_v60  ;;  %v2254_v55 = vld [vmem:[%s3480_s1 + $0x2a4] sm:$0xf0]  ;;  %v2050_v59 = vor.u32 %v2288_v46, %v2049_v43  ;;  %v1978_v60 = vor.u32 %v2270_v49, %v1977_v47  ;;  %v1849_v61 = vld [vmem:[%s3480_s1 + $0x220] sm:$0xf]  ;;  %v1969_v2 = vld [vmem:[%s3480_s1 + $0x310] sm:$0xf] }
  0x2b   :  { %1134 = vmatpush.bf16.msrb.mxu3 %v2074_v7  ;;  %v2238_v62 = vld [vmem:[%s3480_s1 + $0x224] sm:$0xf0]  ;;  %v2041_v63 = vld [vmem:[%s3480_s1 + $0x3a0] sm:$0xf]  ;;  %v1914_v0 = vor.u32 %v2254_v55, %v1913_v52  ;;  %v2268_v3 = vld [vmem:[%s3480_s1 + $0x314] sm:$0xf0] }
  0x2c   :  { %1078 = vmatpush.bf16.msrb.mxu0 %v1874_v18  ;;  %v2286_v1 = vld [vmem:[%s3480_s1 + $0x3a4] sm:$0xf0]  ;;  %v1905_v4 = vld [vmem:[%s3480_s1 + $0x290] sm:$0xf]  ;;  %v2252_v5 = vld [vmem:[%s3480_s1 + $0x294] sm:$0xf0]  ;;  %v1850_v6 = vor.u32 %v2238_v62, %v1849_v61  ;;  %v1970_v9 = vor.u32 %v2268_v3, %v1969_v2 }
  0x2d   :  { %1097 = vmatpush.bf16.msrb.mxu1 %v1938_v12  ;;  %v1841_v7 = vld [vmem:[%s3480_s1 + $0x210] sm:$0xf]  ;;  %v2236_v10 = vld [vmem:[%s3480_s1 + $0x214] sm:$0xf0]  ;;  %v1906_v13 = vor.u32 %v2252_v5, %v1905_v4  ;;  %v1961_v14 = vld [vmem:[%s3480_s1 + $0x300] sm:$0xf] }
  0x2e   :  { %1116 = vmatpush.bf16.msrb.mxu2 %v2002_v8  ;;  %v2042_v8 = vor.u32 %v2286_v1, %v2041_v63  ;;  %v2033_v11 = vld [vmem:[%s3480_s1 + $0x390] sm:$0xf]  ;;  %v2284_v12 = vld [vmem:[%s3480_s1 + $0x394] sm:$0xf0]  ;;  %v2266_v15 = vld [vmem:[%s3480_s1 + $0x304] sm:$0xf0]  ;;  %v1842_v20 = vor.u32 %v2236_v10, %v1841_v7 }
  0x2f   :  { %1135 = vmatpush.bf16.msrb.mxu3 %v2066_v22  ;;  %v1897_v16 = vld [vmem:[%s3480_s1 + $0x280] sm:$0xf]  ;;  %v2250_v17 = vld [vmem:[%s3480_s1 + $0x284] sm:$0xf0]  ;;  %v2199_v18 = vld [vmem:[%s3480_s1 + $0xf4] sm:$0xf]  ;;  %v2034_v24 = vor.u32 %v2284_v12, %v2033_v11  ;;  %v1962_v25 = vor.u32 %v2266_v15, %v1961_v14 }
  0x30   :  { %1079 = vmatpush.bf16.msrb.mxu0 %v1866_v35  ;;  %v1699_v19 = vld [vmem:[%s3480_s1 + $0xf8] sm:$0xf0]  ;;  %v1833_v21 = vld [vmem:[%s3480_s1 + $0x200] sm:$0xf]  ;;  %v2183_v22 = vld [vmem:[%s3480_s1 + $0x74] sm:$0xf]  ;;  %v1898_v29 = vor.u32 %v2250_v17, %v1897_v16 }
  0x31   :  { %1098 = vmatpush.bf16.msrb.mxu1 %v1930_v27  ;;  %v2234_v26 = vld [vmem:[%s3480_s1 + $0x204] sm:$0xf0]  ;;  %v2025_v27 = vld [vmem:[%s3480_s1 + $0x380] sm:$0xf]  ;;  %v1521_v30 = vld [vmem:[%s3481_s0 + $0x10] sm:$0xf]  ;;  %v1702_v34 = vor.u32 %v2199_v18, %v1699_v19 }
  0x32   :  { %1117 = vmatpush.bf16.msrb.mxu2 %v1994_v23  ;;  %v1635_v23 = vld [vmem:[%s3480_s1 + $0x78] sm:$0xf0]  ;;  %v2282_v28 = vld [vmem:[%s3480_s1 + $0x384] sm:$0xf0]  ;;  %v2157_v31 = vld [vmem:[%s3481_s0 + $0x30] sm:$0xf0]  ;;  %v1834_v42 = vor.u32 %v2234_v26, %v1833_v21 }
  0x33   :  { %1136 = vmatpush.bf16.msrb.mxu3 %v2058_v39  ;;  %1013 = vmatmul.bf16.gmra.mxu0 %v2722_v44  ;;  %v2153_v32 = vld [vmem:[%s3481_s0 + $0x14] sm:$0xf]  ;;  %v1523_v33 = vld [vmem:[%s3481_s0 + $0x34] sm:$0xf0]  ;;  %v2145_v35 = vld [vmem:[%s3480_s1 + $0x470] sm:$0xf]  ;;  %v1638_v38 = vor.u32 %v2183_v22, %v1635_v23  ;;  %v2026_v47 = vor.u32 %v2282_v28, %v2025_v27 }
  0x34   :  { %1032 = vmatmul.bf16.gmra.mxu1 %v2733_v50  ;;  %1080 = vmatpush.bf16.msrb.mxu0 %v1858_v58  ;;  %v2312_v36 = vld [vmem:[%s3480_s1 + $0x474] sm:$0xf0]  ;;  %v2215_v37 = vld [vmem:[%s3480_s1 + $0x174] sm:$0xf]  ;;  %v1763_v39 = vld [vmem:[%s3480_s1 + $0x178] sm:$0xf0]  ;;  %v2880_v1 = vor.u32 %v2153_v32, %v1523_v33 }
  0x35   :  { %1099 = vmatpush.bf16.msrb.mxu1 %v1922_v45  ;;  %1051 = vmatmul.bf16.gmra.mxu2 %v2735_v51  ;;  %v1691_v41 = vld [vmem:[%s3480_s1 + $0xe8] sm:$0xf0]  ;;  %v1529_v43 = vld [vmem:[%s3481_s0 + $0x18] sm:$0xf]  ;;  %v2158_v45 = vld [vmem:[%s3481_s0 + $0x38] sm:$0xf0]  ;;  %v2146_v52 = vor.u32 %v2312_v36, %v2145_v35 }
  0x36   :  { %1118 = vmatpush.bf16.msrb.mxu2 %v1986_v40  ;;  %1070 = vmatmul.bf16.gmra.mxu3 %v2743_v56  ;;  %v2197_v40 = vld [vmem:[%s3480_s1 + $0xe4] sm:$0xf]  ;;  %v2154_v46 = vld [vmem:[%s3481_s0 + $0x1c] sm:$0xf]  ;;  %v1531_v49 = vld [vmem:[%s3481_s0 + $0x3c] sm:$0xf0]  ;;  %v2891_v5 = vor.u32 %v2158_v45, %v1529_v43 }
  0x37   :  { %1137 = vmatpush.bf16.msrb.mxu3 %v2050_v59  ;;  %v2137_v55 = vld [vmem:[%s3480_s1 + $0x460] sm:$0xf]  ;;  %v2310_v58 = vld [vmem:[%s3480_s1 + $0x464] sm:$0xf0]  ;;  %v1766_v59 = vor.u32 %v2215_v37, %v1763_v39  ;;  %v2181_v61 = vld [vmem:[%s3480_s1 + $0x64] sm:$0xf] }
  0x38   :  { %1081 = vmatpush.bf16.msrb.mxu0 %v1850_v6  ;;  %v1627_v62 = vld [vmem:[%s3480_s1 + $0x68] sm:$0xf0]  ;;  %v2213_v63 = vld [vmem:[%s3480_s1 + $0x164] sm:$0xf]  ;;  %v2195_v3 = vld [vmem:[%s3480_s1 + $0xd4] sm:$0xf]  ;;  %v2893_v6 = vor.u32 %v2154_v46, %v1531_v49  ;;  %v2138_v7 = vor.u32 %v2310_v58, %v2137_v55 }
  0x39   :  { %1100 = vmatpush.bf16.msrb.mxu1 %v1914_v0  ;;  %v2878_v0 = vor.u32 %v2157_v31, %v1521_v30  ;;  %v1755_v2 = vld [vmem:[%s3480_s1 + $0x168] sm:$0xf0]  ;;  %v1683_v4 = vld [vmem:[%s3480_s1 + $0xd8] sm:$0xf0]  ;;  %v2308_v10 = vld [vmem:[%s3480_s1 + $0x454] sm:$0xf0] }
  0x3a   :  { %1119 = vmatpush.bf16.msrb.mxu2 %v1978_v60  ;;  %v1694_v60 = vor.u32 %v2197_v40, %v1691_v41  ;;  %v1758_v11 = vor.u32 %v2213_v63, %v1755_v2  ;;  %v1686_v12 = vor.u32 %v2195_v3, %v1683_v4  ;;  %v1619_v14 = vld [vmem:[%s3480_s1 + $0x58] sm:$0xf0]  ;;  %v2211_v15 = vld [vmem:[%s3480_s1 + $0x154] sm:$0xf]  ;;  %v2193_v17 = vld [vmem:[%s3480_s1 + $0xc4] sm:$0xf] }
  0x3b   :  { %1138 = vmatpush.bf16.msrb.mxu3 %v2042_v8  ;;  %v1630_v8 = vor.u32 %v2181_v61, %v1627_v62  ;;  %v1747_v16 = vld [vmem:[%s3480_s1 + $0x158] sm:$0xf0]  ;;  %v1675_v18 = vld [vmem:[%s3480_s1 + $0xc8] sm:$0xf0]  ;;  %v2121_v21 = vld [vmem:[%s3480_s1 + $0x440] sm:$0xf] }
  0x3c   :  { %1082 = vmatpush.bf16.msrb.mxu0 %v1842_v20  ;;  %v2306_v22 = vld [vmem:[%s3480_s1 + $0x444] sm:$0xf0]  ;;  %v1750_v23 = vor.u32 %v2211_v15, %v1747_v16  ;;  %v1611_v26 = vld [vmem:[%s3480_s1 + $0x48] sm:$0xf0]  ;;  %v2209_v27 = vld [vmem:[%s3480_s1 + $0x144] sm:$0xf] }
  0x3d   :  { %1101 = vmatpush.bf16.msrb.mxu1 %v1906_v13  ;;  %v2179_v13 = vld [vmem:[%s3480_s1 + $0x54] sm:$0xf]  ;;  %v1739_v28 = vld [vmem:[%s3480_s1 + $0x148] sm:$0xf0]  ;;  %v1667_v30 = vld [vmem:[%s3480_s1 + $0xb8] sm:$0xf0]  ;;  %v2122_v31 = vor.u32 %v2306_v22, %v2121_v21 }
  0x3e   :  { %1120 = vmatpush.bf16.msrb.mxu2 %v1970_v9  ;;  %v2129_v9 = vld [vmem:[%s3480_s1 + $0x450] sm:$0xf]  ;;  %v1622_v20 = vor.u32 %v2179_v13, %v1619_v14  ;;  %v1742_v35 = vor.u32 %v2209_v27, %v1739_v28  ;;  %v1557_v36 = vld [vmem:[%s3481_s0 + $0x58] sm:$0xf]  ;;  %v2166_v37 = vld [vmem:[%s3481_s0 + $0x78] sm:$0xf0] }
  0x3f   :  { %1139 = vmatpush.bf16.msrb.mxu3 %v2034_v24  ;;  %v2130_v19 = vor.u32 %v2308_v10, %v2129_v9  ;;  %v1678_v24 = vor.u32 %v2193_v17, %v1675_v18  ;;  %v2113_v33 = vld [vmem:[%s3480_s1 + $0x430] sm:$0xf]  ;;  %v1559_v39 = vld [vmem:[%s3481_s0 + $0x7c] sm:$0xf0]  ;;  %v2175_v41 = vld [vmem:[%s3480_s1 + $0x34] sm:$0xf] }
  0x40   :  { %1083 = vmatpush.bf16.msrb.mxu0 %v1834_v42  ;;  %v1603_v42 = vld [vmem:[%s3480_s1 + $0x38] sm:$0xf0]  ;;  %v2207_v43 = vld [vmem:[%s3480_s1 + $0x134] sm:$0xf]  ;;  %v2189_v46 = vld [vmem:[%s3480_s1 + $0xa4] sm:$0xf] }
  0x41   :  { %1102 = vmatpush.bf16.msrb.mxu1 %v1898_v29  ;;  %v2191_v29 = vld [vmem:[%s3480_s1 + $0xb4] sm:$0xf]  ;;  %v1731_v45 = vld [vmem:[%s3480_s1 + $0x138] sm:$0xf0]  ;;  %v1565_v49 = vld [vmem:[%s3481_s0 + $0x60] sm:$0xf] }
  0x42   :  { %1121 = vmatpush.bf16.msrb.mxu2 %v1962_v25  ;;  %v2177_v25 = vld [vmem:[%s3480_s1 + $0x44] sm:$0xf]  ;;  %v1670_v40 = vor.u32 %v2191_v29, %v1667_v30  ;;  %v1567_v58 = vld [vmem:[%s3481_s0 + $0x84] sm:$0xf0]  ;;  %v2105_v61 = vld [vmem:[%s3480_s1 + $0x420] sm:$0xf]  ;;  %v1734_v63 = vor.u32 %v2207_v43, %v1731_v45 }
  0x43   :  { %1140 = vmatpush.bf16.msrb.mxu3 %v2026_v47  ;;  %1084 = vmatmul.bf16.vlgmr.msrb.gmra.mxu0 %v2878_v0  ;;  %v1614_v32 = vor.u32 %v2177_v25, %v1611_v26  ;;  %v1659_v47 = vld [vmem:[%s3480_s1 + $0xa8] sm:$0xf0]  ;;  %v2163_v55 = vld [vmem:[%s3481_s0 + $0x64] sm:$0xf]  ;;  %v2302_v62 = vld [vmem:[%s3480_s1 + $0x424] sm:$0xf0] }
  0x44   :  { %1152 = vmatpush.bf16.msra.mxu0 %v2146_v52  ;;  %1103 = vmatmul.bf16.vlgmr.msrb.gmra.mxu1 %v2880_v1  ;;  %v2167_v52 = vld [vmem:[%s3481_s0 + $0x80] sm:$0xf0]  ;;  %v1662_v2 = vor.u32 %v2189_v46, %v1659_v47  ;;  %v1595_v4 = vld [vmem:[%s3480_s1 + $0x28] sm:$0xf0]  ;;  %v3025_v14 = vor.u32 %v2163_v55, %v1567_v58  ;;  %v2106_v15 = vor.u32 %v2302_v62, %v2105_v61  ;;  %v2097_v17 = vld [vmem:[%s3480_s1 + $0x410] sm:$0xf] }
  0x45   :  { %1171 = vmatpush.bf16.msra.mxu1 %v1638_v38  ;;  %1122 = vmatmul.bf16.vlgmr.msrb.gmra.mxu2 %v2891_v5  ;;  %v2162_v38 = vld [vmem:[%s3481_s0 + $0x5c] sm:$0xf]  ;;  %v2173_v3 = vld [vmem:[%s3480_s1 + $0x24] sm:$0xf]  ;;  %v1723_v10 = vld [vmem:[%s3480_s1 + $0x128] sm:$0xf0]  ;;  %v3023_v13 = vor.u32 %v2167_v52, %v1565_v49 }
  0x46   :  { %1190 = vmatpush.bf16.msra.mxu2 %v1702_v34  ;;  %1141 = vmatmul.bf16.vlgmr.msrb.gmra.mxu3 %v2893_v6  ;;  %v2304_v34 = vld [vmem:[%s3480_s1 + $0x434] sm:$0xf0]  ;;  %v3012_v9 = vor.u32 %v2162_v38, %v1559_v39  ;;  %v1598_v16 = vor.u32 %v2173_v3, %v1595_v4  ;;  %v2171_v21 = vld [vmem:[%s3480_s1 + $0x14] sm:$0xf]  ;;  %v1587_v22 = vld [vmem:[%s3480_s1 + $0x18] sm:$0xf0] }
  0x47   :  { %1209 = vmatpush.bf16.msra.mxu3 %v1766_v59  ;;  %v2114_v59 = vor.u32 %v2304_v34, %v2113_v33  ;;  %v2300_v18 = vld [vmem:[%s3480_s1 + $0x414] sm:$0xf0]  ;;  %v2185_v25 = vld [vmem:[%s3480_s1 + $0x84] sm:$0xf]  ;;  %v1643_v26 = vld [vmem:[%s3480_s1 + $0x88] sm:$0xf0]  ;;  %v1590_v30 = vor.u32 %v2171_v21, %v1587_v22 }
  0x48   :  { %1153 = vmatpush.bf16.msra.mxu0 %v2138_v7  ;;  %v2205_v7 = vld [vmem:[%s3480_s1 + $0x124] sm:$0xf]  ;;  %v2263_v27 = vld [vmem:[%s3480_s1 + $0x2f4] sm:$0xf]  ;;  %v1955_v28 = vld [vmem:[%s3480_s1 + $0x2f8] sm:$0xf0]  ;;  %v2098_v29 = vor.u32 %v2300_v18, %v2097_v17 }
  0x49   :  { %1172 = vmatpush.bf16.msra.mxu1 %v1630_v8  ;;  %v3010_v8 = vor.u32 %v2166_v37, %v1557_v36  ;;  %v2169_v33 = vld [vmem:[%s3480_s1 + $0x4] sm:$0xf]  ;;  %v1579_v36 = vld [vmem:[%s3480_s1 + $0x8] sm:$0xf0]  ;;  %v1958_v39 = vor.u32 %v2263_v27, %v1955_v28  ;;  %v1891_v43 = vld [vmem:[%s3480_s1 + $0x278] sm:$0xf0] }
  0x4a   :  { %1191 = vmatpush.bf16.msra.mxu2 %v1694_v60  ;;  %v1606_v60 = vor.u32 %v2175_v41, %v1603_v42  ;;  %v2201_v37 = vld [vmem:[%s3480_s1 + $0x104] sm:$0xf]  ;;  %v1707_v38 = vld [vmem:[%s3480_s1 + $0x108] sm:$0xf0]  ;;  %v1827_v41 = vld [vmem:[%s3480_s1 + $0x1f8] sm:$0xf0]  ;;  %v1582_v49 = vor.u32 %v2169_v33, %v1579_v36 }
  0x4b   :  { %1210 = vmatpush.bf16.msra.mxu3 %v1758_v11  ;;  %v2187_v11 = vld [vmem:[%s3480_s1 + $0x94] sm:$0xf]  ;;  %v2019_v46 = vld [vmem:[%s3480_s1 + $0x378] sm:$0xf0]  ;;  %v2261_v52 = vld [vmem:[%s3480_s1 + $0x2e4] sm:$0xf]  ;;  %v1710_v58 = vor.u32 %v2201_v37, %v1707_v38 }
  0x4c   :  { %1154 = vmatpush.bf16.msra.mxu0 %v2130_v19  ;;  %v1726_v19 = vor.u32 %v2205_v7, %v1723_v10  ;;  %v2247_v42 = vld [vmem:[%s3480_s1 + $0x274] sm:$0xf]  ;;  %v1947_v55 = vld [vmem:[%s3480_s1 + $0x2e8] sm:$0xf0]  ;;  %v2229_v62 = vld [vmem:[%s3480_s1 + $0x1e4] sm:$0xf] }
  0x4d   :  { %1173 = vmatpush.bf16.msra.mxu1 %v1622_v20  ;;  %v2279_v45 = vld [vmem:[%s3480_s1 + $0x374] sm:$0xf]  ;;  %v2159_v3 = vld [vmem:[%s3481_s0 + $0x40] sm:$0xf0]  ;;  %v1950_v4 = vor.u32 %v2261_v52, %v1947_v55  ;;  %v1883_v10 = vld [vmem:[%s3480_s1 + $0x268] sm:$0xf0] }
  0x4e   :  { %1192 = vmatpush.bf16.msra.mxu2 %v1686_v12  ;;  %v1651_v12 = vld [vmem:[%s3480_s1 + $0x98] sm:$0xf0]  ;;  %v2022_v61 = vor.u32 %v2279_v45, %v2019_v46  ;;  %v2245_v7 = vld [vmem:[%s3480_s1 + $0x264] sm:$0xf]  ;;  %v2275_v27 = vld [vmem:[%s3480_s1 + $0x354] sm:$0xf] }
  0x4f   :  { %1211 = vmatpush.bf16.msra.mxu3 %v1750_v23  ;;  %v1654_v20 = vor.u32 %v2187_v11, %v1651_v12  ;;  %v2203_v23 = vld [vmem:[%s3480_s1 + $0x114] sm:$0xf]  ;;  %v2277_v12 = vld [vmem:[%s3480_s1 + $0x364] sm:$0xf]  ;;  %v1939_v18 = vld [vmem:[%s3480_s1 + $0x2d8] sm:$0xf0]  ;;  %v1886_v21 = vor.u32 %v2245_v7, %v1883_v10 }
  0x50   :  { %1155 = vmatpush.bf16.msra.mxu0 %v2122_v31  ;;  %v2089_v31 = vld [vmem:[%s3480_s1 + $0x400] sm:$0xf]  ;;  %v2003_v28 = vld [vmem:[%s3480_s1 + $0x358] sm:$0xf0]  ;;  %v2255_v38 = vld [vmem:[%s3480_s1 + $0x2b4] sm:$0xf] }
  0x51   :  { %1174 = vmatpush.bf16.msra.mxu1 %v1614_v32  ;;  %v2298_v32 = vld [vmem:[%s3480_s1 + $0x404] sm:$0xf0]  ;;  %v2239_v45 = vld [vmem:[%s3480_s1 + $0x234] sm:$0xf]  ;;  %v1859_v46 = vld [vmem:[%s3480_s1 + $0x238] sm:$0xf0] }
  0x52   :  { %1193 = vmatpush.bf16.msra.mxu2 %v1678_v24  ;;  %v1715_v24 = vld [vmem:[%s3480_s1 + $0x118] sm:$0xf0]  ;;  %v2090_v47 = vor.u32 %v2298_v32, %v2089_v31  ;;  %v2225_v31 = vld [vmem:[%s3480_s1 + $0x1c4] sm:$0xf]  ;;  %v1803_v32 = vld [vmem:[%s3480_s1 + $0x1c8] sm:$0xf0] }
  0x53   :  { %1212 = vmatpush.bf16.msra.mxu3 %v1742_v35  ;;  %1089 = vmatmul.bf16.gmra.mxu0 %v3010_v8  ;;  %v1718_v34 = vor.u32 %v2203_v23, %v1715_v24  ;;  %v1646_v35 = vor.u32 %v2185_v25, %v1643_v26  ;;  %v2243_v23 = vld [vmem:[%s3480_s1 + $0x254] sm:$0xf]  ;;  %v1875_v24 = vld [vmem:[%s3480_s1 + $0x258] sm:$0xf0]  ;;  %v1806_v37 = vor.u32 %v2225_v31, %v1803_v32  ;;  %v1851_v7 = vld [vmem:[%s3480_s1 + $0x228] sm:$0xf0] }
  0x54   :  { %1156 = vmatpush.bf16.msra.mxu0 %v2114_v59  ;;  %1108 = vmatmul.bf16.gmra.mxu1 %v3012_v9  ;;  %v1878_v33 = vor.u32 %v2243_v23, %v1875_v24  ;;  %v2271_v52 = vld [vmem:[%s3480_s1 + $0x334] sm:$0xf]  ;;  %v1987_v55 = vld [vmem:[%s3480_s1 + $0x338] sm:$0xf0]  ;;  %v1899_v31 = vld [vmem:[%s3480_s1 + $0x288] sm:$0xf0] }
  0x55   :  { %1175 = vmatpush.bf16.msra.mxu1 %v1606_v60  ;;  %1127 = vmatmul.bf16.gmra.mxu2 %v3023_v13  ;;  %v1894_v60 = vor.u32 %v2247_v42, %v1891_v43  ;;  %v2235_v24 = vld [vmem:[%s3480_s1 + $0x214] sm:$0xf]  ;;  %v2217_v32 = vld [vmem:[%s3480_s1 + $0x184] sm:$0xf] }
  0x56   :  { %1194 = vmatpush.bf16.msra.mxu2 %v1670_v40  ;;  %1146 = vmatmul.bf16.gmra.mxu3 %v3025_v14  ;;  %v2231_v40 = vld [vmem:[%s3480_s1 + $0x1f4] sm:$0xf] }
  0x57   :  { %1213 = vmatpush.bf16.msra.mxu3 %v1734_v63  ;;  %v1830_v59 = vor.u32 %v2231_v40, %v1827_v41  ;;  %v1819_v63 = vld [vmem:[%s3480_s1 + $0x1e8] sm:$0xf0]  ;;  %v2223_v40 = vld [vmem:[%s3480_s1 + $0x1b4] sm:$0xf]  ;;  %v1795_v41 = vld [vmem:[%s3480_s1 + $0x1b8] sm:$0xf0] }
  0x58   :  { %1157 = vmatpush.bf16.msra.mxu0 %v2106_v15  ;;  %v1822_v11 = vor.u32 %v2229_v62, %v1819_v63  ;;  %v2011_v15 = vld [vmem:[%s3480_s1 + $0x368] sm:$0xf0]  ;;  %v1573_v62 = vld [vmem:[%s3481_s0 + $0x68] sm:$0xf] }
  0x59   :  { %1176 = vmatpush.bf16.msra.mxu1 %v1598_v16  ;;  %v2259_v16 = vld [vmem:[%s3480_s1 + $0x2d4] sm:$0xf]  ;;  %v2014_v22 = vor.u32 %v2277_v12, %v2011_v15  ;;  %v2168_v63 = vld [vmem:[%s3481_s0 + $0x88] sm:$0xf0]  ;;  %v2269_v12 = vld [vmem:[%s3480_s1 + $0x324] sm:$0xf] }
  0x5a   :  { %1195 = vmatpush.bf16.msra.mxu2 %v1662_v2  ;;  %v1537_v2 = vld [vmem:[%s3481_s0 + $0x20] sm:$0xf]  ;;  %v1942_v25 = vor.u32 %v2259_v16, %v1939_v18  ;;  %v1979_v15 = vld [vmem:[%s3480_s1 + $0x328] sm:$0xf0]  ;;  %v2251_v16 = vld [vmem:[%s3480_s1 + $0x294] sm:$0xf]  ;;  %v3238_v18 = vor.u32 %v2168_v63, %v1573_v62 }
  0x5b   :  { %1214 = vmatpush.bf16.msra.mxu3 %v1726_v19  ;;  %v3130_v17 = vor.u32 %v2159_v3, %v1537_v2  ;;  %v2227_v19 = vld [vmem:[%s3480_s1 + $0x1d4] sm:$0xf]  ;;  %v1862_v2 = vor.u32 %v2239_v45, %v1859_v46  ;;  %v1990_v3 = vor.u32 %v2271_v52, %v1987_v55  ;;  %v1982_v23 = vor.u32 %v2269_v12, %v1979_v15  ;;  %v2139_v52 = vld [vmem:[%s3480_s1 + $0x468] sm:$0xf0] }
  0x5c   :  { %1158 = vmatpush.bf16.msra.mxu0 %v2098_v29  ;;  %v2257_v29 = vld [vmem:[%s3480_s1 + $0x2c4] sm:$0xf] }
  0x5d   :  { %1177 = vmatpush.bf16.msra.mxu1 %v1590_v30  ;;  %v1931_v30 = vld [vmem:[%s3480_s1 + $0x2c8] sm:$0xf0] }
  0x5e   :  { %1196 = vmatpush.bf16.msra.mxu2 %v1654_v20  ;;  %v1811_v20 = vld [vmem:[%s3480_s1 + $0x1d8] sm:$0xf0]  ;;  %v1934_v36 = vor.u32 %v2257_v29, %v1931_v30  ;;  %v2249_v30 = vld [vmem:[%s3480_s1 + $0x284] sm:$0xf] }
  0x5f   :  { %1215 = vmatpush.bf16.msra.mxu3 %v1718_v34  ;;  %v1814_v26 = vor.u32 %v2227_v19, %v1811_v20  ;;  %v2241_v34 = vld [vmem:[%s3480_s1 + $0x244] sm:$0xf]  ;;  %v1907_v19 = vld [vmem:[%s3480_s1 + $0x298] sm:$0xf0]  ;;  %v2219_v20 = vld [vmem:[%s3480_s1 + $0x194] sm:$0xf] }
  0x60   :  { %1159 = vmatpush.bf16.msra.mxu0 %v2090_v47  ;;  %v1971_v29 = vld [vmem:[%s3480_s1 + $0x318] sm:$0xf0] }
  0x61   :  { %1178 = vmatpush.bf16.msra.mxu1 %v1582_v49  ;;  %v1798_v49 = vor.u32 %v2223_v40, %v1795_v41  ;;  %v2147_v40 = vld [vmem:[%s3480_s1 + $0x478] sm:$0xf0]  ;;  %v2293_v41 = vld [vmem:[%s3480_s1 + $0x3e4] sm:$0xf] }
  0x62   :  { %1197 = vmatpush.bf16.msra.mxu2 %v1646_v35  ;;  %v1867_v35 = vld [vmem:[%s3480_s1 + $0x248] sm:$0xf0] }
  0x63   :  { %1216 = vmatpush.bf16.msra.mxu3 %v1710_v58  ;;  %1160 = vmatmul.bf16.vlgmr.msra.gmra.mxu0 %v3130_v17  ;;  %v1870_v42 = vor.u32 %v2241_v34, %v1867_v35  ;;  %v2253_v58 = vld [vmem:[%s3480_s1 + $0x2a4] sm:$0xf] }
  0x64   :  { %1228 = vmatpush.bf16.msrb.mxu0 %v1830_v59  ;;  %1179 = vmatmul.bf16.vlgmr.msra.gmra.mxu1 %v2590_v48  ;;  %v2006_v48 = vor.u32 %v2275_v27, %v2003_v28  ;;  %v1915_v59 = vld [vmem:[%s3480_s1 + $0x2a8] sm:$0xf0]  ;;  %v2267_v28 = vld [vmem:[%s3480_s1 + $0x314] sm:$0xf] }
  0x65   :  { %1247 = vmatpush.bf16.msrb.mxu1 %v1894_v60  ;;  %1198 = vmatmul.bf16.vlgmr.msra.gmra.mxu2 %v2601_v53  ;;  %v2273_v53 = vld [vmem:[%s3480_s1 + $0x344] sm:$0xf]  ;;  %v1918_v10 = vor.u32 %v2253_v58, %v1915_v59  ;;  %v1974_v35 = vor.u32 %v2267_v28, %v1971_v29  ;;  %v2291_v58 = vld [vmem:[%s3480_s1 + $0x3d4] sm:$0xf]  ;;  %v2067_v59 = vld [vmem:[%s3480_s1 + $0x3d8] sm:$0xf0] }
  0x66   :  { %1266 = vmatpush.bf16.msrb.mxu2 %v1958_v39  ;;  %1217 = vmatmul.bf16.vlgmr.msra.gmra.mxu3 %v2603_v54  ;;  %v1995_v54 = vld [vmem:[%s3480_s1 + $0x348] sm:$0xf0]  ;;  %v1923_v39 = vld [vmem:[%s3480_s1 + $0x2b8] sm:$0xf0]  ;;  %v2221_v60 = vld [vmem:[%s3480_s1 + $0x1a4] sm:$0xf]  ;;  %v2070_v62 = vor.u32 %v2291_v58, %v2067_v59 }
  0x67   :  { %1285 = vmatpush.bf16.msrb.mxu3 %v2022_v61  ;;  %v1998_v43 = vor.u32 %v2273_v53, %v1995_v54  ;;  %v1926_v47 = vor.u32 %v2255_v38, %v1923_v39  ;;  %v1787_v61 = vld [vmem:[%s3480_s1 + $0x1a8] sm:$0xf0]  ;;  %v2265_v53 = vld [vmem:[%s3480_s1 + $0x304] sm:$0xf]  ;;  %v2311_v39 = vld [vmem:[%s3480_s1 + $0x474] sm:$0xf] }
  0x68   :  { %1229 = vmatpush.bf16.msrb.mxu0 %v1822_v11  ;;  %v1790_v11 = vor.u32 %v2221_v60, %v1787_v61  ;;  %v1963_v54 = vld [vmem:[%s3480_s1 + $0x308] sm:$0xf0]  ;;  %v2150_v46 = vor.u32 %v2311_v39, %v2147_v40  ;;  %v2307_v60 = vld [vmem:[%s3480_s1 + $0x454] sm:$0xf]  ;;  %v2131_v61 = vld [vmem:[%s3480_s1 + $0x458] sm:$0xf0] }
  0x69   :  { %1248 = vmatpush.bf16.msrb.mxu1 %v1886_v21  ;;  %v1779_v21 = vld [vmem:[%s3480_s1 + $0x198] sm:$0xf0]  ;;  %v1966_v45 = vor.u32 %v2265_v53, %v1963_v54  ;;  %v2134_v63 = vor.u32 %v2307_v60, %v2131_v61 }
  0x6a   :  { %1267 = vmatpush.bf16.msrb.mxu2 %v1950_v4  ;;  %v2237_v4 = vld [vmem:[%s3480_s1 + $0x224] sm:$0xf]  ;;  %v1782_v27 = vor.u32 %v2219_v20, %v1779_v21  ;;  %v2107_v21 = vld [vmem:[%s3480_s1 + $0x428] sm:$0xf0] }
  0x6b   :  { %1286 = vmatpush.bf16.msrb.mxu3 %v2014_v22  ;;  %v1854_v22 = vor.u32 %v2237_v4, %v1851_v7  ;;  %v2305_v4 = vld [vmem:[%s3480_s1 + $0x444] sm:$0xf]  ;;  %v2123_v7 = vld [vmem:[%s3480_s1 + $0x448] sm:$0xf0] }
  0x6c   :  { %1230 = vmatpush.bf16.msrb.mxu0 %v1814_v26  ;;  %v1910_v26 = vor.u32 %v2251_v16, %v1907_v19  ;;  %v2285_v16 = vld [vmem:[%s3480_s1 + $0x3a4] sm:$0xf]  ;;  %v2043_v19 = vld [vmem:[%s3480_s1 + $0x3a8] sm:$0xf0] }
  0x6d   :  { %1249 = vmatpush.bf16.msrb.mxu1 %v1878_v33  ;;  %v1771_v33 = vld [vmem:[%s3480_s1 + $0x188] sm:$0xf0]  ;;  %v2301_v20 = vld [vmem:[%s3480_s1 + $0x424] sm:$0xf] }
  0x6e   :  { %1268 = vmatpush.bf16.msrb.mxu2 %v1942_v25  ;;  %v1843_v25 = vld [vmem:[%s3480_s1 + $0x218] sm:$0xf0] }
  0x6f   :  { %1287 = vmatpush.bf16.msrb.mxu3 %v2006_v48  ;;  %v2083_v48 = vld [vmem:[%s3480_s1 + $0x3f8] sm:$0xf0]  ;;  %v1846_v34 = vor.u32 %v2235_v24, %v1843_v25  ;;  %v2283_v24 = vld [vmem:[%s3480_s1 + $0x394] sm:$0xf] }
  0x70   :  { %1231 = vmatpush.bf16.msrb.mxu0 %v1806_v37  ;;  %v1835_v37 = vld [vmem:[%s3480_s1 + $0x208] sm:$0xf0]  ;;  %v2035_v25 = vld [vmem:[%s3480_s1 + $0x398] sm:$0xf0] }
  0x71   :  { %1250 = vmatpush.bf16.msrb.mxu1 %v1870_v42  ;;  %v2075_v42 = vld [vmem:[%s3480_s1 + $0x3e8] sm:$0xf0]  ;;  %v2038_v28 = vor.u32 %v2283_v24, %v2035_v25 }
  0x72   :  { %1269 = vmatpush.bf16.msrb.mxu2 %v1934_v36  ;;  %v2233_v36 = vld [vmem:[%s3480_s1 + $0x204] sm:$0xf] }
  0x73   :  { %1288 = vmatpush.bf16.msrb.mxu3 %v1998_v43  ;;  %1165 = vmatmul.bf16.gmra.mxu0 %v3238_v18  ;;  %v1838_v43 = vor.u32 %v2233_v36, %v1835_v37 }
  0x74   :  { %1232 = vmatpush.bf16.msrb.mxu0 %v1798_v49  ;;  %1184 = vmatmul.bf16.gmra.mxu1 %v2722_v44  ;;  %v2295_v44 = vld [vmem:[%s3480_s1 + $0x3f4] sm:$0xf]  ;;  %v2309_v49 = vld [vmem:[%s3480_s1 + $0x464] sm:$0xf] }
  0x75   :  { %1251 = vmatpush.bf16.msrb.mxu1 %v1862_v2  ;;  %1203 = vmatmul.bf16.gmra.mxu2 %v2733_v50  ;;  %v1902_v50 = vor.u32 %v2249_v30, %v1899_v31  ;;  %v2086_v38 = vor.u32 %v2295_v44, %v2083_v48  ;;  %v2142_v55 = vor.u32 %v2309_v49, %v2139_v52  ;;  %v2289_v2 = vld [vmem:[%s3480_s1 + $0x3c4] sm:$0xf]  ;;  %v2027_v31 = vld [vmem:[%s3480_s1 + $0x388] sm:$0xf0] }
  0x76   :  { %1270 = vmatpush.bf16.msrb.mxu2 %v1926_v47  ;;  %1222 = vmatmul.bf16.gmra.mxu3 %v2735_v51  ;;  %v1774_v51 = vor.u32 %v2217_v32, %v1771_v33  ;;  %v2078_v47 = vor.u32 %v2293_v41, %v2075_v42  ;;  %v2281_v30 = vld [vmem:[%s3480_s1 + $0x384] sm:$0xf]  ;;  %v2091_v33 = vld [vmem:[%s3480_s1 + $0x408] sm:$0xf0] }
  0x77   :  { %1289 = vmatpush.bf16.msrb.mxu3 %v1990_v3  ;;  %v2059_v3 = vld [vmem:[%s3480_s1 + $0x3c8] sm:$0xf0]  ;;  %v2297_v32 = vld [vmem:[%s3480_s1 + $0x404] sm:$0xf]  ;;  %v2030_v44 = vor.u32 %v2281_v30, %v2027_v31 }
  0x78   :  { %1233 = vmatpush.bf16.msrb.mxu0 %v1790_v11  ;;  %v2051_v11 = vld [vmem:[%s3480_s1 + $0x3b8] sm:$0xf0] }
  0x79   :  { %1252 = vmatpush.bf16.msrb.mxu1 %v1854_v22  ;;  %v2046_v22 = vor.u32 %v2285_v16, %v2043_v19 }
  0x7a   :  { %1271 = vmatpush.bf16.msrb.mxu2 %v1918_v10  ;;  %v2062_v10 = vor.u32 %v2289_v2, %v2059_v3 }
  0x7b   :  { %1290 = vmatpush.bf16.msrb.mxu3 %v1982_v23  ;;  %v2110_v23 = vor.u32 %v2301_v20, %v2107_v21 }
  0x7c   :  { %1234 = vmatpush.bf16.msrb.mxu0 %v1782_v27  ;;  %v2099_v27 = vld [vmem:[%s3480_s1 + $0x418] sm:$0xf0] }
  0x7d   :  { %1253 = vmatpush.bf16.msrb.mxu1 %v1846_v34 }
  0x7e   :  { %1272 = vmatpush.bf16.msrb.mxu2 %v1910_v26  ;;  %v2299_v26 = vld [vmem:[%s3480_s1 + $0x414] sm:$0xf] }
  0x7f   :  { %1291 = vmatpush.bf16.msrb.mxu3 %v1974_v35  ;;  %v2102_v29 = vor.u32 %v2299_v26, %v2099_v27 }
  0x80   :  { %1235 = vmatpush.bf16.msrb.mxu0 %v1774_v51 }
  0x81   :  { %1254 = vmatpush.bf16.msrb.mxu1 %v1838_v43 }
  0x82   :  { %1273 = vmatpush.bf16.msrb.mxu2 %v1902_v50 }
  0x83   :  { %1292 = vmatpush.bf16.msrb.mxu3 %v1966_v45  ;;  %1236 = vmatmul.bf16.vlgmr.msrb.gmra.mxu0 %v2611_v57  ;;  %v2126_v57 = vor.u32 %v2305_v4, %v2123_v7 }
  0x84   :  { %1304 = vmatpush.bf16.msra.mxu0 %v2086_v38  ;;  %1255 = vmatmul.bf16.vlgmr.msrb.gmra.mxu1 %v2878_v0  ;;  %v2287_v0 = vld [vmem:[%s3480_s1 + $0x3b4] sm:$0xf] }
  0x85   :  { %1323 = vmatpush.bf16.msra.mxu1 %v2150_v46  ;;  %1274 = vmatmul.bf16.vlgmr.msrb.gmra.mxu2 %v2880_v1  ;;  %v2303_v1 = vld [vmem:[%s3480_s1 + $0x434] sm:$0xf]  ;;  %v2054_v12 = vor.u32 %v2287_v0, %v2051_v11 }
  0x86   :  { %2313 = vmatpush.bf16.msra.mxu2 %v2086_v38  ;;  %1293 = vmatmul.bf16.vlgmr.msrb.gmra.mxu3 %v2891_v5  ;;  %v2115_v5 = vld [vmem:[%s3480_s1 + $0x438] sm:$0xf0] }
  0x87   :  { %2321 = vmatpush.bf16.msra.mxu3 %v2150_v46  ;;  %v2118_v15 = vor.u32 %v2303_v1, %v2115_v5 }
  0x88   :  { %1305 = vmatpush.bf16.msra.mxu0 %v2078_v47 }
  0x89   :  { %1324 = vmatpush.bf16.msra.mxu1 %v2142_v55 }
  0x8a   :  { %2314 = vmatpush.bf16.msra.mxu2 %v2078_v47 }
  0x8b   :  { %2322 = vmatpush.bf16.msra.mxu3 %v2142_v55 }
  0x8c   :  { %1306 = vmatpush.bf16.msra.mxu0 %v2070_v62 }
  0x8d   :  { %1325 = vmatpush.bf16.msra.mxu1 %v2134_v63 }
  0x8e   :  { %2315 = vmatpush.bf16.msra.mxu2 %v2070_v62 }
  0x8f   :  { %2323 = vmatpush.bf16.msra.mxu3 %v2134_v63 }
  0x90   :  { %1307 = vmatpush.bf16.msra.mxu0 %v2062_v10 }
  0x91   :  { %1326 = vmatpush.bf16.msra.mxu1 %v2126_v57 }
  0x92   :  { %2316 = vmatpush.bf16.msra.mxu2 %v2062_v10 }
  0x93   :  { %2324 = vmatpush.bf16.msra.mxu3 %v2126_v57  ;;  %1241 = vmatmul.bf16.gmra.mxu0 %v2743_v56  ;;  %v2094_v56 = vor.u32 %v2297_v32, %v2091_v33 }
  0x94   :  { %1308 = vmatpush.bf16.msra.mxu0 %v2054_v12  ;;  %1260 = vmatmul.bf16.gmra.mxu1 %v3010_v8  ;;  %v3396_v8 = vld [vmem:[%s3482_s2] ss:$4 sm:$0x3] }
  0x95   :  { %1327 = vmatpush.bf16.msra.mxu1 %v2118_v15  ;;  %1279 = vmatmul.bf16.gmra.mxu2 %v3012_v9  ;;  %v184_v48 = vperm.slane %v3396_v8, 0 }
  0x96   :  { %2317 = vmatpush.bf16.msra.mxu2 %v2054_v12  ;;  %1298 = vmatmul.bf16.gmra.mxu3 %v3023_v13 }
  0x97   :  { %2325 = vmatpush.bf16.msra.mxu3 %v2118_v15 }
  0x98   :  { %1309 = vmatpush.bf16.msra.mxu0 %v2046_v22 }
  0x99   :  { %1328 = vmatpush.bf16.msra.mxu1 %v2110_v23 }
  0x9a   :  { %2318 = vmatpush.bf16.msra.mxu2 %v2046_v22 }
  0x9b   :  { %2326 = vmatpush.bf16.msra.mxu3 %v2110_v23 }
  0x9c   :  { %1310 = vmatpush.bf16.msra.mxu0 %v2038_v28 }
  0x9d   :  { %1329 = vmatpush.bf16.msra.mxu1 %v2102_v29 }
  0x9e   :  { %2319 = vmatpush.bf16.msra.mxu2 %v2038_v28 }
  0x9f   :  { %2327 = vmatpush.bf16.msra.mxu3 %v2102_v29 }
  0xa0   :  { %1311 = vmatpush.bf16.msra.mxu0 %v2030_v44  ;;  %v1009_v9 = vpop.f32.mrf.mxu0 }
  0xa1   :  { %1330 = vmatpush.bf16.msra.mxu1 %v2094_v56  ;;  %v1010_v34 = vadd.f32 %v1009_v9, %v184_v48  ;;  %v1028_v13 = vpop.f32.mrf.mxu1 }
  0xa2   :  { %2320 = vmatpush.bf16.msra.mxu2 %v2030_v44 }
  0xa3   :  { %2328 = vmatpush.bf16.msra.mxu3 %v2094_v56  ;;  %v1029_v35 = vadd.f32 %v1028_v13, %v1010_v34  ;;  %1312 = vmatmul.bf16.vlgmr.msra.gmra.mxu0 %v2893_v6 }
  0xa4   :  { %1331 = vmatmul.bf16.vlgmr.msra.gmra.mxu1 %v3130_v17 }
  0xa5   :  { %1317 = vmatmul.bf16.vlgmr.msra.gmra.mxu2 %v3025_v14 }
  0xa6   :  { %1336 = vmatmul.bf16.vlgmr.msra.gmra.mxu3 %v3238_v18 }
  0xa8   :  { %v1047_v36 = vpop.f32.mrf.mxu2  ;;  %v1011_v37 = vpop.f32.mrf.mxu0 }
  0xa9   :  { %v1048_v50 = vadd.f32 %v1047_v36, %v1029_v35  ;;  %v1066_v51 = vpop.f32.mrf.mxu3  ;;  %v1012_v53 = vadd.f32 %v1011_v37, %v184_v48  ;;  %v1030_v54 = vpop.f32.mrf.mxu1 }
  0xab   :  { %v1067_v38 = vadd.f32 %v1066_v51, %v1048_v50  ;;  %v1031_v39 = vadd.f32 %v1030_v54, %v1012_v53 }
  0xb0   :  { %v1049_v40 = vpop.f32.mrf.mxu2  ;;  %v1014_v43 = vpop.f32.mrf.mxu0 }
  0xb1   :  { %v1050_v41 = vadd.f32 %v1049_v40, %v1031_v39  ;;  %v1068_v42 = vpop.f32.mrf.mxu3  ;;  %v1015_v45 = vadd.f32 %v1014_v43, %v184_v48  ;;  %v1033_v6 = vpop.f32.mrf.mxu1 }
  0xb3   :  { %v1069_v46 = vadd.f32 %v1068_v42, %v1050_v41  ;;  %v1034_v17 = vadd.f32 %v1033_v6, %v1015_v45 }
  0xb8   :  { %v1052_v47 = vpop.f32.mrf.mxu2  ;;  %v1016_v18 = vpop.f32.mrf.mxu0 }
  0xb9   :  { %v1053_v14 = vadd.f32 %v1052_v47, %v1034_v17  ;;  %v1071_v49 = vpop.f32.mrf.mxu3  ;;  %v1017_v52 = vadd.f32 %v1016_v18, %v184_v48  ;;  %v1035_v55 = vpop.f32.mrf.mxu1 }
  0xbb   :  { %v1072_v58 = vadd.f32 %v1071_v49, %v1053_v14  ;;  %v1036_v59 = vadd.f32 %v1035_v55, %v1017_v52 }
  0xc0   :  { %v1054_v60 = vpop.f32.mrf.mxu2  ;;  %v1085_v63 = vpop.f32.mrf.mxu0 }
  0xc1   :  { %v1055_v61 = vadd.f32 %v1054_v60, %v1036_v59  ;;  %v1073_v62 = vpop.f32.mrf.mxu3  ;;  %v1104_v2 = vpop.f32.mrf.mxu1  ;;  %v1086_v4 = vadd.f32 %v1085_v63, %v1067_v38 }
  0xc3   :  { %v1074_v3 = vadd.f32 %v1073_v62, %v1055_v61  ;;  %v1105_v7 = vadd.f32 %v1104_v2, %v1086_v4 }
  0xc8   :  { %v1123_v10 = vpop.f32.mrf.mxu2  ;;  %v1087_v11 = vpop.f32.mrf.mxu0 }
  0xc9   :  { %v1142_v57 = vpop.f32.mrf.mxu3  ;;  %v1124_v0 = vadd.f32 %v1123_v10, %v1105_v7  ;;  %v1106_v1 = vpop.f32.mrf.mxu1  ;;  %v1088_v5 = vadd.f32 %v1087_v11, %v1069_v46 }
  0xcb   :  { %v1143_v12 = vadd.f32 %v1142_v57, %v1124_v0  ;;  %v1107_v15 = vadd.f32 %v1106_v1, %v1088_v5 }
  0xd0   :  { %v1125_v16 = vpop.f32.mrf.mxu2  ;;  %v1090_v21 = vpop.f32.mrf.mxu0 }
  0xd1   :  { %v1144_v19 = vpop.f32.mrf.mxu3  ;;  %v1126_v20 = vadd.f32 %v1125_v16, %v1107_v15  ;;  %v1109_v22 = vpop.f32.mrf.mxu1  ;;  %v1091_v23 = vadd.f32 %v1090_v21, %v1072_v58 }
  0xd3   :  { %v1145_v24 = vadd.f32 %v1144_v19, %v1126_v20  ;;  %v1110_v25 = vadd.f32 %v1109_v22, %v1091_v23 }
  0xd8   :  { %v1128_v26 = vpop.f32.mrf.mxu2  ;;  %v1092_v29 = vpop.f32.mrf.mxu0 }
  0xd9   :  { %v1147_v27 = vpop.f32.mrf.mxu3  ;;  %v1129_v28 = vadd.f32 %v1128_v26, %v1110_v25  ;;  %v1111_v30 = vpop.f32.mrf.mxu1  ;;  %v1093_v31 = vadd.f32 %v1092_v29, %v1074_v3  ;;  %v185_v26 = vperm.slane %v3396_v8, 1 }
  0xdb   :  { %v1148_v32 = vadd.f32 %v1147_v27, %v1129_v28  ;;  %v1112_v33 = vadd.f32 %v1111_v30, %v1093_v31 }
  0xe0   :  { %v1130_v44 = vpop.f32.mrf.mxu2  ;;  %v1161_v9 = vpop.f32.mrf.mxu0 }
  0xe1   :  { %v1149_v56 = vpop.f32.mrf.mxu3  ;;  %v1131_v48 = vadd.f32 %v1130_v44, %v1112_v33  ;;  %v1180_v34 = vpop.f32.mrf.mxu1  ;;  %v3403_v13 = vadd.f32 %v1161_v9, %v1143_v12 }
  0xe2   :  { %v1181_v30 = vadd.f32 %v1180_v34, %v185_v26 }
  0xe3   :  { %v1150_v35 = vadd.f32 %v1149_v56, %v1131_v48  ;;  %v1378_v54 = vmul.f32 %v3403_v13, %v3403_v13 }
  0xe8   :  { %v1199_v36 = vpop.f32.mrf.mxu2  ;;  %v1163_v51 = vpop.f32.mrf.mxu0 }
  0xe9   :  { %v1218_v50 = vpop.f32.mrf.mxu3  ;;  %v1182_v37 = vpop.f32.mrf.mxu1  ;;  %v3405_v53 = vadd.f32 %v1163_v51, %v1145_v24  ;;  %v1200_v33 = vadd.f32 %v1199_v36, %v1181_v30 }
  0xea   :  { %v1183_v56 = vadd.f32 %v1182_v37, %v185_v26 }
  0xeb   :  { %v1358_v38 = vadd.f32 %v3405_v53, %v3403_v13  ;;  %v1380_v39 = vmul.f32 %v3405_v53, %v3405_v53  ;;  %v1219_v51 = vadd.f32 %v1218_v50, %v1200_v33 }
  0xed   :  { %v1386_v40 = vadd.f32 %v1380_v39, %v1378_v54 }
  0xf0   :  { %v1201_v41 = vpop.f32.mrf.mxu2  ;;  %v1166_v43 = vpop.f32.mrf.mxu0 }
  0xf1   :  { %v1220_v42 = vpop.f32.mrf.mxu3  ;;  %v1185_v45 = vpop.f32.mrf.mxu1  ;;  %v3413_v6 = vadd.f32 %v1166_v43, %v1148_v32  ;;  %v1202_v48 = vadd.f32 %v1201_v41, %v1183_v56 }
  0xf2   :  { %v1186_v44 = vadd.f32 %v1185_v45, %v185_v26 }
  0xf3   :  { %v1359_v46 = vadd.f32 %v1358_v38, %v3413_v6  ;;  %v1382_v17 = vmul.f32 %v3413_v6, %v3413_v6  ;;  %v1221_v8 = vadd.f32 %v1220_v42, %v1202_v48 }
  0xf5   :  { %v1387_v47 = vadd.f32 %v1386_v40, %v1382_v17 }
  0xf8   :  { %v1204_v14 = vpop.f32.mrf.mxu2  ;;  %v1168_v18 = vpop.f32.mrf.mxu0 }
  0xf9   :  { %v1223_v49 = vpop.f32.mrf.mxu3  ;;  %v1187_v52 = vpop.f32.mrf.mxu1  ;;  %v3418_v55 = vadd.f32 %v1168_v18, %v1150_v35  ;;  %v1205_v54 = vadd.f32 %v1204_v14, %v1186_v44 }
  0xfb   :  { %v1360_v58 = vadd.f32 %v1359_v46, %v3418_v55  ;;  %v1384_v59 = vmul.f32 %v3418_v55, %v3418_v55  ;;  %v1224_v43 = vadd.f32 %v1223_v49, %v1205_v54  ;;  %v1188_v46 = vadd.f32 %v1187_v52, %v185_v26 }
  0xfd   :  { %v1361_v60 = vrot.slane %v1360_v58, 4  ;;  %v1388_v61 = vadd.f32 %v1387_v47, %v1384_v59 }
  0xff   :  { %v1362_v62 = vadd.f32 %v1361_v60, %v1360_v58  ;;  %v1389_v63 = vrot.slane %v1388_v61, 4 }
 0x100   :  { %v1206_v2 = vpop.f32.mrf.mxu2  ;;  %v1237_v4 = vpop.f32.mrf.mxu0 }
 0x101   :  { %v1225_v3 = vpop.f32.mrf.mxu3  ;;  %v1256_v7 = vpop.f32.mrf.mxu1  ;;  %v1363_v10 = vrot.slane %v1362_v62, 2  ;;  %v1390_v57 = vadd.f32 %v1389_v63, %v1388_v61  ;;  %v1238_v40 = vadd.f32 %v1237_v4, %v1219_v51  ;;  %v1207_v47 = vadd.f32 %v1206_v2, %v1188_v46 }
 0x103   :  { %v1364_v0 = vadd.f32 %v1363_v10, %v1362_v62  ;;  %v1391_v11 = vrot.slane %v1390_v57, 2  ;;  %v1257_v18 = vadd.f32 %v1256_v7, %v1238_v40  ;;  %v1226_v60 = vadd.f32 %v1225_v3, %v1207_v47 }
 0x105   :  { %v1365_v1 = vrot.slane %v1364_v0, 1  ;;  %v1392_v5 = vadd.f32 %v1391_v11, %v1390_v57 }
 0x107   :  { %v1366_v12 = vadd.f32 %v1365_v1, %v1364_v0  ;;  %v1393_v15 = vrot.slane %v1392_v5, 1 }
 0x108   :  { %v1275_v16 = vpop.f32.mrf.mxu2  ;;  %v1239_v20 = vpop.f32.mrf.mxu0 }
 0x109   :  { %v1294_v19 = vpop.f32.mrf.mxu3  ;;  %v1258_v21 = vpop.f32.mrf.mxu1  ;;  %v3423_v22 = vmul.f32 0.03125, %v1366_v12  ;;  %v1394_v23 = vadd.f32 %v1393_v15, %v1392_v5  ;;  %v1240_v17 = vadd.f32 %v1239_v20, %v1221_v8  ;;  %v1276_v36 = vadd.f32 %v1275_v16, %v1257_v18 }
 0x10b   :  { %v3425_v24 = vmul.f32 0.03125, %v1394_v23  ;;  %v3429_v25 = vmul.f32 %v3423_v22, %v3423_v22  ;;  %v1259_v41 = vadd.f32 %v1258_v21, %v1240_v17  ;;  %v1295_v14 = vadd.f32 %v1294_v19, %v1276_v36 }
 0x10d   :  { %v1408_v27 = vsub.f32 %v3425_v24, %v3429_v25 }
 0x10f   :  { %v1410_v51 = vmax.f32 %v1408_v27, 0.0 }
 0x110   :  { %v1277_v28 = vpop.f32.mrf.mxu2  ;;  %v1242_v31 = vpop.f32.mrf.mxu0 }
 0x111   :  { %v1296_v29 = vpop.f32.mrf.mxu3  ;;  %v1261_v32 = vpop.f32.mrf.mxu1  ;;  %v1243_v34 = vadd.f32 %v1242_v31, %v1224_v43  ;;  %v1278_v50 = vadd.f32 %v1277_v28, %v1259_v41  ;;  %v1412_v8 = vadd.f32 1e-05, %v1410_v51 }
 0x113   :  { %v1262_v61 = vadd.f32 %v1261_v32, %v1243_v34  ;;  %v1297_v42 = vadd.f32 %v1296_v29, %v1278_v50  ;;  %2329 = vrsqrt.f32 %v1412_v8  ;;  %vm1420_vm4 = vweird.f32 %v1412_v8 }
 0x118   :  { %v1280_v9 = vpop.f32.mrf.mxu2  ;;  %v1244_v38 = vpop.f32.mrf.mxu0 }
 0x119   :  { %v1299_v35 = vpop.f32.mrf.mxu3  ;;  %v1263_v39 = vpop.f32.mrf.mxu1  ;;  %v1281_v62 = vadd.f32 %v1280_v9, %v1262_v61  ;;  %v1245_v63 = vadd.f32 %v1244_v38, %v1226_v60 }
 0x11b   :  { %v1300_v10 = vadd.f32 %v1299_v35, %v1281_v62  ;;  %v1264_v2 = vadd.f32 %v1263_v39, %v1245_v63 }
 0x120   :  { %v1282_v58 = vpop.f32.mrf.mxu2  ;;  %v1313_v45 = vpop.f32.mrf.mxu0 }
 0x121   :  { %v1301_v59 = vpop.f32.mrf.mxu3  ;;  %v1332_v37 = vpop.f32.mrf.mxu1  ;;  %v1314_v4 = vadd.f32 %v1313_v45, %v1295_v14  ;;  %v1283_v0 = vadd.f32 %v1282_v58, %v1264_v2 }
 0x122   :  { %v2330_v45 = vpop.eup %2329 }
 0x123   :  { %v3434_v11 = vadd.f32 %v1332_v37, %v1314_v4  ;;  %v1302_v15 = vadd.f32 %v1301_v59, %v1283_v0  ;;  %v1415_v24 = vmul.f32 %v2330_v45, %v1412_v8  ;;  %vm1421_vm1 = vweird.f32 %v2330_v45 }
 0x124   :  { %vm1422_vm6 = vmor %vm1420_vm4, %vm1421_vm1 }
 0x125   :  { %v1379_v16 = vmul.f32 %v3434_v11, %v3434_v11  ;;  %v1416_v25 = vmul.f32 %v2330_v45, %v1415_v24 }
 0x127   :  { %v1417_v60 = vmul.f32 0.5, %v1416_v25 }
 0x128   :  { %v1318_v49 = vpop.f32.mrf.mxu2  ;;  %v1315_v7 = vpop.f32.mrf.mxu0 }
 0x129   :  { %v1337_v52 = vpop.f32.mrf.mxu3  ;;  %v1316_v57 = vadd.f32 %v1315_v7, %v1297_v42  ;;  %v1319_v1 = vadd.f32 %v1318_v49, %v1300_v10  ;;  %v1334_v5 = vpop.f32.mrf.mxu1  ;;  %v1418_v14 = vsub.f32 1.5, %v1417_v60 }
 0x12b   :  { %v3436_v12 = vadd.f32 %v1334_v5, %v1316_v57  ;;  %v3442_v19 = vadd.f32 %v1337_v52, %v1319_v1  ;;  %v1419_v4 = vmul.f32 %v2330_v45, %v1418_v14  ;;  %v1501_v52 = vld [vmem:[%s3482_s2 + $0x1] ss:$4 sm:$0x3] }
 0x12d   :  { %v1381_v3 = vmul.f32 %v3436_v12, %v3436_v12  ;;  %v1367_v20 = vadd.f32 %v3436_v12, %v3434_v11  ;;  %v1383_v29 = vmul.f32 %v3442_v19, %v3442_v19  ;;  %v1423_v2 = vsel %vm1422_vm6, %v2330_v45, %v1419_v4 }
 0x12f   :  { %v1395_v23 = vadd.f32 %v1381_v3, %v1379_v16  ;;  %v1368_v31 = vadd.f32 %v1367_v20, %v3442_v19 }
 0x130   :  { %v1320_v21 = vpop.f32.mrf.mxu2 }
 0x131   :  { %v1321_v26 = vadd.f32 %v1320_v21, %v1302_v15  ;;  %v1339_v28 = vpop.f32.mrf.mxu3  ;;  %v1396_v44 = vadd.f32 %v1395_v23, %v1383_v29  ;;  %v1502_v21 = vld [vmem:[%s3482_s2 + $0x2] ss:$4 sm:$0x3] }
 0x133   :  { %v3448_v30 = vadd.f32 %v1339_v28, %v1321_v26 }
 0x135   :  { %v1369_v32 = vadd.f32 %v1368_v31, %v3448_v30  ;;  %v1385_v33 = vmul.f32 %v3448_v30, %v3448_v30 }
 0x137   :  { %v1370_v56 = vrot.slane %v1369_v32, 4  ;;  %v1397_v48 = vadd.f32 %v1396_v44, %v1385_v33 }
 0x139   :  { %v1371_v9 = vadd.f32 %v1370_v56, %v1369_v32  ;;  %v1398_v35 = vrot.slane %v1397_v48, 4 }
 0x13b   :  { %v1372_v54 = vrot.slane %v1371_v9, 2  ;;  %v1399_v38 = vadd.f32 %v1398_v35, %v1397_v48 }
 0x13d   :  { %v1373_v39 = vadd.f32 %v1372_v54, %v1371_v9  ;;  %v1400_v40 = vrot.slane %v1399_v38, 2 }
 0x13f   :  { %v1374_v43 = vrot.slane %v1373_v39, 1  ;;  %v1401_v46 = vadd.f32 %v1400_v40, %v1399_v38 }
 0x141   :  { %v1375_v17 = vadd.f32 %v1374_v43, %v1373_v39  ;;  %v1402_v47 = vrot.slane %v1401_v46, 1 }
 0x143   :  { %v1377_v18 = vmul.f32 0.03125, %v1375_v17  ;;  %v1403_v34 = vadd.f32 %v1402_v47, %v1401_v46 }
 0x145   :  { %v1405_v58 = vmul.f32 0.03125, %v1403_v34  ;;  %v1407_v59 = vmul.f32 %v1377_v18, %v1377_v18 }
 0x147   :  { %v1409_v36 = vsub.f32 %v1405_v58, %v1407_v59 }
 0x149   :  { %v1411_v37 = vmax.f32 %v1409_v36, 0.0 }
 0x14b   :  { %v1413_v41 = vadd.f32 1e-05, %v1411_v37 }
 0x14d   :  { %2331 = vrsqrt.f32 %v1413_v41  ;;  %vm1430_vm2 = vweird.f32 %v1413_v41 }
 0x153   :  { %v2332_v27 = vpop.eup %2331 }
 0x154   :  { %v1425_v61 = vmul.f32 %v2332_v27, %v1413_v41  ;;  %vm1431_vm0 = vweird.f32 %v2332_v27 }
 0x155   :  { %vm1432_vm3 = vmor %vm1430_vm2, %vm1431_vm0 }
 0x156   :  { %v1426_v50 = vmul.f32 %v2332_v27, %v1425_v61 }
 0x158   :  { %v1427_v62 = vmul.f32 0.5, %v1426_v50 }
 0x15a   :  { %v1428_v63 = vsub.f32 1.5, %v1427_v62 }
 0x15c   :  { %v1429_v42 = vmul.f32 %v2332_v27, %v1428_v63 }
 0x15e   :  { %v1433_v49 = vsel %vm1432_vm3, %v2332_v27, %v1429_v42 }
 0x15f   :  { %v1436_v10 = vrot.slane %v1433_v49, 7 }
 0x161   :  { %v1438_v7 = vsel %vm1437_vm5, %v1423_v2, %v1436_v10 }
 0x162   :  { %v1440_v57 = vmul.f32 %v1501_v52, %v1438_v7 }
 0x164   :  { %v1442_v0 = vperm.slane %v1440_v57, 0  ;;  %v1443_v1 = vperm.slane %v1440_v57, 1 }
 0x166   :  { %v1446_v5 = vmul.f32 %v1442_v0, %v3423_v22  ;;  %v1447_v3 = vmul.f32 %v1443_v1, %v1377_v18  ;;  %v1456_v15 = vmul.f32 %v1442_v0, %v3403_v13  ;;  %v1469_v16 = vmul.f32 %v1442_v0, %v3405_v53 }
 0x167   :  { %v1479_v20 = vmul.f32 %v1442_v0, %v3413_v6  ;;  %v1485_v26 = vmul.f32 %v1442_v0, %v3418_v55  ;;  %v1457_v31 = vmul.f32 %v1443_v1, %v3434_v11  ;;  %v1470_v13 = vmul.f32 %v1443_v1, %v3436_v12 }
 0x168   :  { %v1450_v23 = vrot.slane %v1447_v3, 7  ;;  %v1480_v53 = vmul.f32 %v1443_v1, %v3442_v19  ;;  %v1486_v6 = vmul.f32 %v1443_v1, %v3448_v30 }
 0x16a   :  { %v1451_v28 = vsel %vm1437_vm5, %v1446_v5, %v1450_v23 }
 0x16b   :  { %v1453_v29 = vsub.f32 %v1502_v21, %v1451_v28 }
 0x16d   :  { %v1459_v22 = vperm.slane %v1453_v29, 0  ;;  %v1460_v32 = vperm.slane %v1453_v29, 1 }
 0x16f   :  { %v1463_v33 = vadd.f32 %v1459_v22, %v1456_v15  ;;  %v1464_v44 = vadd.f32 %v1460_v32, %v1457_v31  ;;  %v1471_v56 = vadd.f32 %v1469_v16, %v1459_v22  ;;  %v1472_v48 = vadd.f32 %v1470_v13, %v1460_v32 }
 0x170   :  { %v1481_v9 = vadd.f32 %v1479_v20, %v1459_v22  ;;  %v1482_v35 = vadd.f32 %v1480_v53, %v1460_v32  ;;  %v1487_v55 = vadd.f32 %v1485_v26, %v1459_v22  ;;  %v1488_v51 = vadd.f32 %v1486_v6, %v1460_v32 }
 0x171   :  { %v1465_v54 = vmax.f32 %v1463_v33, 0.0  ;;  %v1466_v38 = vmax.f32 %v1464_v44, 0.0  ;;  %v1473_v39 = vmax.f32 %v1471_v56, 0.0  ;;  %v1474_v11 = vmax.f32 %v1472_v48, 0.0 }
 0x172   :  { %v1483_v40 = vmax.f32 %v1481_v9, 0.0  ;;  %v1484_v8 = vmax.f32 %v1482_v35, 0.0  ;;  %v1489_v43 = vmax.f32 %v1487_v55, 0.0  ;;  %v1490_v12 = vmax.f32 %v1488_v51, 0.0 }
 0x173   :  { %v1475_v46 = vmax.f32 %v1465_v54, %v1473_v39  ;;  %v1476_v19 = vmax.f32 %v1466_v38, %v1474_v11 }
 0x174   :  { %v1491_v17 = vmax.f32 %v1483_v40, %v1489_v43  ;;  %v1492_v30 = vmax.f32 %v1484_v8, %v1490_v12 }
 0x176   :  { %v1493_v47 = vmax.f32 %v1475_v46, %v1491_v17  ;;  %v1494_v18 = vmax.f32 %v1476_v19, %v1492_v30 }
 0x178   :  { %1495 = vst [vmem:[%s3483_s3] sm:$0xff] %v1493_v47 }
 0x179   :  { %1496 = vst [vmem:[%s3483_s3 + $0x8] sm:$0xff] %v1494_v18 }

// kernel: normnet_forward.7
= control target key start
LH: loop header
LB: loop body
LE: loop exit
PB: predicated region body
PF: predicated region fallthrough
CT: control target
= control target key end

     0   :  { %vm4623_vm5 = vcmask 1040384   ;;  %vm4625_vm13 = vcmask 1042434   ;;  %vm4627_vm14 = vcmask 1041408   ;;  %vm4785_vm15 = vcmask 1045508   ;;  %s11501_s1 = inlined_call_operand.vmem [shape: bf16[2304,512], index: 1, kind: input, shape index: {}]   ;;  %s11502_s0 = inlined_call_operand.vmem [shape: bf16[8,2304], index: 0, kind: input, shape index: {}]   ;;  %s11503_s2 = inlined_call_operand.vmem [shape: f32[3,512], index: 2, kind: input, shape index: {}]   ;;  %s11504_s3 = inlined_call_operand.vmem [shape: f32[2,512], index: 3, kind: output, shape index: {}]  }
   0x1   :  { %v4911_v0 = vld [vmem:[%s11501_s1 + $0xe0] sm:$0xf]  ;;  %v7131_v1 = vld [vmem:[%s11501_s1 + $0xec] sm:$0xf0] }
   0x2   :  { %v5039_v2 = vld [vmem:[%s11501_s1 + $0x1e0] sm:$0xf]  ;;  %v4912_v3 = vor.u32 %v7131_v1, %v4911_v0  ;;  %v7163_v4 = vld [vmem:[%s11501_s1 + $0x1ec] sm:$0xf0] }
   0x3   :  { %v5167_v5 = vld [vmem:[%s11501_s1 + $0x2e0] sm:$0xf]  ;;  %v7195_v6 = vld [vmem:[%s11501_s1 + $0x2ec] sm:$0xf0]  ;;  %v5040_v7 = vor.u32 %v7163_v4, %v5039_v2 }
   0x4   :  { %v5168_v8 = vor.u32 %v7195_v6, %v5167_v5  ;;  %v5295_v9 = vld [vmem:[%s11501_s1 + $0x3e0] sm:$0xf]  ;;  %v7227_v10 = vld [vmem:[%s11501_s1 + $0x3ec] sm:$0xf0]  ;;  %3556 = vmatpush.bf16.msra.mxu0 %v4912_v3 }
   0x5   :  { %v4895_v11 = vld [vmem:[%s11501_s1 + $0xc0] sm:$0xf]  ;;  %v5296_v12 = vor.u32 %v7227_v10, %v5295_v9  ;;  %v7127_v13 = vld [vmem:[%s11501_s1 + $0xcc] sm:$0xf0]  ;;  %3569 = vmatpush.bf16.msra.mxu1 %v5040_v7 }
   0x6   :  { %v5023_v14 = vld [vmem:[%s11501_s1 + $0x1c0] sm:$0xf]  ;;  %v7159_v15 = vld [vmem:[%s11501_s1 + $0x1cc] sm:$0xf0]  ;;  %3582 = vmatpush.bf16.msra.mxu2 %v5168_v8  ;;  %v4896_v16 = vor.u32 %v7127_v13, %v4895_v11 }
   0x7   :  { %v5024_v17 = vor.u32 %v7159_v15, %v5023_v14  ;;  %v5151_v18 = vld [vmem:[%s11501_s1 + $0x2c0] sm:$0xf]  ;;  %v7191_v19 = vld [vmem:[%s11501_s1 + $0x2cc] sm:$0xf0]  ;;  %3595 = vmatpush.bf16.msra.mxu3 %v5296_v12 }
   0x8   :  { %v5279_v20 = vld [vmem:[%s11501_s1 + $0x3c0] sm:$0xf]  ;;  %v5152_v21 = vor.u32 %v7191_v19, %v5151_v18  ;;  %v7223_v22 = vld [vmem:[%s11501_s1 + $0x3cc] sm:$0xf0]  ;;  %3557 = vmatpush.bf16.msra.mxu0 %v4896_v16 }
   0x9   :  { %v4879_v23 = vld [vmem:[%s11501_s1 + $0xa0] sm:$0xf]  ;;  %v7123_v24 = vld [vmem:[%s11501_s1 + $0xac] sm:$0xf0]  ;;  %v5280_v25 = vor.u32 %v7223_v22, %v5279_v20  ;;  %3570 = vmatpush.bf16.msra.mxu1 %v5024_v17 }
   0xa   :  { %v5007_v26 = vld [vmem:[%s11501_s1 + $0x1a0] sm:$0xf]  ;;  %v7155_v27 = vld [vmem:[%s11501_s1 + $0x1ac] sm:$0xf0]  ;;  %v4880_v29 = vor.u32 %v7123_v24, %v4879_v23  ;;  %3583 = vmatpush.bf16.msra.mxu2 %v5152_v21 }
   0xb   :  { %v5135_v28 = vld [vmem:[%s11501_s1 + $0x2a0] sm:$0xf]  ;;  %v7187_v30 = vld [vmem:[%s11501_s1 + $0x2ac] sm:$0xf0]  ;;  %v5008_v33 = vor.u32 %v7155_v27, %v5007_v26  ;;  %3596 = vmatpush.bf16.msra.mxu3 %v5280_v25 }
   0xc   :  { %v5263_v31 = vld [vmem:[%s11501_s1 + $0x3a0] sm:$0xf]  ;;  %v7219_v32 = vld [vmem:[%s11501_s1 + $0x3ac] sm:$0xf0]  ;;  %v5136_v34 = vor.u32 %v7187_v30, %v5135_v28  ;;  %3558 = vmatpush.bf16.msra.mxu0 %v4880_v29 }
   0xd   :  { %v4863_v35 = vld [vmem:[%s11501_s1 + $0x80] sm:$0xf]  ;;  %v7119_v36 = vld [vmem:[%s11501_s1 + $0x8c] sm:$0xf0]  ;;  %v5264_v38 = vor.u32 %v7219_v32, %v5263_v31  ;;  %3571 = vmatpush.bf16.msra.mxu1 %v5008_v33 }
   0xe   :  { %v4991_v37 = vld [vmem:[%s11501_s1 + $0x180] sm:$0xf]  ;;  %v7151_v39 = vld [vmem:[%s11501_s1 + $0x18c] sm:$0xf0]  ;;  %v4864_v44 = vor.u32 %v7119_v36, %v4863_v35  ;;  %3584 = vmatpush.bf16.msra.mxu2 %v5136_v34 }
   0xf   :  { %v5119_v40 = vld [vmem:[%s11501_s1 + $0x280] sm:$0xf]  ;;  %v7183_v41 = vld [vmem:[%s11501_s1 + $0x28c] sm:$0xf0]  ;;  %v4992_v45 = vor.u32 %v7151_v39, %v4991_v37  ;;  %3597 = vmatpush.bf16.msra.mxu3 %v5264_v38 }
  0x10   :  { %v5247_v42 = vld [vmem:[%s11501_s1 + $0x380] sm:$0xf]  ;;  %v7215_v43 = vld [vmem:[%s11501_s1 + $0x38c] sm:$0xf0]  ;;  %v5120_v46 = vor.u32 %v7183_v41, %v5119_v40  ;;  %3559 = vmatpush.bf16.msra.mxu0 %v4864_v44 }
  0x11   :  { %v4847_v47 = vld [vmem:[%s11501_s1 + $0x60] sm:$0xf]  ;;  %v7115_v48 = vld [vmem:[%s11501_s1 + $0x6c] sm:$0xf0]  ;;  %v5248_v50 = vor.u32 %v7215_v43, %v5247_v42  ;;  %3572 = vmatpush.bf16.msra.mxu1 %v4992_v45 }
  0x12   :  { %v4975_v49 = vld [vmem:[%s11501_s1 + $0x160] sm:$0xf]  ;;  %v7147_v51 = vld [vmem:[%s11501_s1 + $0x16c] sm:$0xf0]  ;;  %v4848_v56 = vor.u32 %v7115_v48, %v4847_v47  ;;  %3585 = vmatpush.bf16.msra.mxu2 %v5120_v46 }
  0x13   :  { %v5103_v52 = vld [vmem:[%s11501_s1 + $0x260] sm:$0xf]  ;;  %v7179_v53 = vld [vmem:[%s11501_s1 + $0x26c] sm:$0xf0]  ;;  %v4976_v57 = vor.u32 %v7147_v51, %v4975_v49  ;;  %3598 = vmatpush.bf16.msra.mxu3 %v5248_v50 }
  0x14   :  { %v5231_v54 = vld [vmem:[%s11501_s1 + $0x360] sm:$0xf]  ;;  %v7211_v55 = vld [vmem:[%s11501_s1 + $0x36c] sm:$0xf0]  ;;  %v5104_v58 = vor.u32 %v7179_v53, %v5103_v52  ;;  %3560 = vmatpush.bf16.msra.mxu0 %v4848_v56 }
  0x15   :  { %v4831_v59 = vld [vmem:[%s11501_s1 + $0x40] sm:$0xf]  ;;  %v7111_v60 = vld [vmem:[%s11501_s1 + $0x4c] sm:$0xf0]  ;;  %v5232_v62 = vor.u32 %v7211_v55, %v5231_v54  ;;  %3573 = vmatpush.bf16.msra.mxu1 %v4976_v57 }
  0x16   :  { %v4959_v61 = vld [vmem:[%s11501_s1 + $0x140] sm:$0xf]  ;;  %v7143_v63 = vld [vmem:[%s11501_s1 + $0x14c] sm:$0xf0]  ;;  %v4832_v4 = vor.u32 %v7111_v60, %v4831_v59  ;;  %3586 = vmatpush.bf16.msra.mxu2 %v5104_v58 }
  0x17   :  { %v5087_v0 = vld [vmem:[%s11501_s1 + $0x240] sm:$0xf]  ;;  %v7175_v1 = vld [vmem:[%s11501_s1 + $0x24c] sm:$0xf0]  ;;  %v4960_v5 = vor.u32 %v7143_v63, %v4959_v61  ;;  %3599 = vmatpush.bf16.msra.mxu3 %v5232_v62 }
  0x18   :  { %v5215_v2 = vld [vmem:[%s11501_s1 + $0x340] sm:$0xf]  ;;  %v7207_v3 = vld [vmem:[%s11501_s1 + $0x34c] sm:$0xf0]  ;;  %v5088_v6 = vor.u32 %v7175_v1, %v5087_v0  ;;  %3561 = vmatpush.bf16.msra.mxu0 %v4832_v4 }
  0x19   :  { %v4815_v7 = vld [vmem:[%s11501_s1 + $0x20] sm:$0xf]  ;;  %v7107_v8 = vld [vmem:[%s11501_s1 + $0x2c] sm:$0xf0]  ;;  %v5216_v10 = vor.u32 %v7207_v3, %v5215_v2  ;;  %3574 = vmatpush.bf16.msra.mxu1 %v4960_v5  ;;  %v20_v2 = vld [vmem:[%s11502_s0 + $0x8] sm:$0xff] }
  0x1a   :  { %v4943_v9 = vld [vmem:[%s11501_s1 + $0x120] sm:$0xf]  ;;  %v7139_v11 = vld [vmem:[%s11501_s1 + $0x12c] sm:$0xf0]  ;;  %v4816_v16 = vor.u32 %v7107_v8, %v4815_v7  ;;  %3587 = vmatpush.bf16.msra.mxu2 %v5088_v6  ;;  %v624_v8 = vunpack.c.l.b16 %v20_v2 }
  0x1b   :  { %v5071_v12 = vld [vmem:[%s11501_s1 + $0x220] sm:$0xf]  ;;  %v7171_v13 = vld [vmem:[%s11501_s1 + $0x22c] sm:$0xf0]  ;;  %v4944_v19 = vor.u32 %v7139_v11, %v4943_v9  ;;  %3600 = vmatpush.bf16.msra.mxu3 %v5216_v10  ;;  %v625_v10 = vunpack.c.h.b16 %v20_v2 }
  0x1c   :  { %v5199_v14 = vld [vmem:[%s11501_s1 + $0x320] sm:$0xf]  ;;  %v7203_v15 = vld [vmem:[%s11501_s1 + $0x32c] sm:$0xf0]  ;;  %v5072_v20 = vor.u32 %v7171_v13, %v5071_v12  ;;  %3562 = vmatpush.bf16.msra.mxu0 %v4816_v16 }
  0x1d   :  { %v4799_v17 = vld [vmem:[%s11501_s1] sm:$0xf]  ;;  %v7103_v18 = vld [vmem:[%s11501_s1 + $0xc] sm:$0xf0]  ;;  %v5200_v24 = vor.u32 %v7203_v15, %v5199_v14  ;;  %3575 = vmatpush.bf16.msra.mxu1 %v4944_v19 }
  0x1e   :  { %v4927_v21 = vld [vmem:[%s11501_s1 + $0x100] sm:$0xf]  ;;  %v7135_v22 = vld [vmem:[%s11501_s1 + $0x10c] sm:$0xf0]  ;;  %v4800_v31 = vor.u32 %v7103_v18, %v4799_v17  ;;  %3588 = vmatpush.bf16.msra.mxu2 %v5072_v20  ;;  %v8002_v18 = vpack.c.b16 %v624_v8, %v624_v8  ;;  %v8006_v20 = vpack.c.b16 %v625_v10, %v625_v10 }
  0x1f   :  { %v5055_v23 = vld [vmem:[%s11501_s1 + $0x200] sm:$0xf]  ;;  %v7167_v25 = vld [vmem:[%s11501_s1 + $0x20c] sm:$0xf0]  ;;  %v4928_v35 = vor.u32 %v7135_v22, %v4927_v21  ;;  %3601 = vmatpush.bf16.msra.mxu3 %v5200_v24 }
  0x20   :  { %v5183_v26 = vld [vmem:[%s11501_s1 + $0x300] sm:$0xf]  ;;  %v7199_v27 = vld [vmem:[%s11501_s1 + $0x30c] sm:$0xf0]  ;;  %v5056_v36 = vor.u32 %v7167_v25, %v5055_v23  ;;  %3563 = vmatpush.bf16.msra.mxu0 %v4800_v31 }
  0x21   :  { %v5423_v28 = vld [vmem:[%s11501_s1 + $0x4e0] sm:$0xf]  ;;  %v7259_v29 = vld [vmem:[%s11501_s1 + $0x4ec] sm:$0xf0]  ;;  %v5184_v39 = vor.u32 %v7199_v27, %v5183_v26  ;;  %3576 = vmatpush.bf16.msra.mxu1 %v4928_v35 }
  0x22   :  { %v5551_v30 = vld [vmem:[%s11501_s1 + $0x5e0] sm:$0xf]  ;;  %v7291_v32 = vld [vmem:[%s11501_s1 + $0x5ec] sm:$0xf0]  ;;  %v5424_v40 = vor.u32 %v7259_v29, %v5423_v28  ;;  %3589 = vmatpush.bf16.msra.mxu2 %v5056_v36 }
  0x23   :  { %v5679_v33 = vld [vmem:[%s11501_s1 + $0x6e0] sm:$0xf]  ;;  %v7323_v34 = vld [vmem:[%s11501_s1 + $0x6ec] sm:$0xf0]  ;;  %v5552_v41 = vor.u32 %v7291_v32, %v5551_v30  ;;  %3602 = vmatpush.bf16.msra.mxu3 %v5184_v39 }
  0x24   :  { %v5807_v37 = vld [vmem:[%s11501_s1 + $0x7e0] sm:$0xf]  ;;  %v7355_v38 = vld [vmem:[%s11501_s1 + $0x7ec] sm:$0xf0]  ;;  %v5680_v42 = vor.u32 %v7323_v34, %v5679_v33  ;;  %3608 = vmatpush.bf16.msrb.mxu0 %v5424_v40 }
  0x25   :  { %v5407_v43 = vld [vmem:[%s11501_s1 + $0x4c0] sm:$0xf]  ;;  %v7255_v44 = vld [vmem:[%s11501_s1 + $0x4cc] sm:$0xf0]  ;;  %v5808_v46 = vor.u32 %v7355_v38, %v5807_v37  ;;  %3621 = vmatpush.bf16.msrb.mxu1 %v5552_v41  ;;  %3590 = vmatmul.bf16.vlgmr.msra.gmra.mxu2 %v8002_v18 }
  0x26   :  { %v5535_v45 = vld [vmem:[%s11501_s1 + $0x5c0] sm:$0xf]  ;;  %v7287_v47 = vld [vmem:[%s11501_s1 + $0x5cc] sm:$0xf0]  ;;  %v5408_v52 = vor.u32 %v7255_v44, %v5407_v43  ;;  %3634 = vmatpush.bf16.msrb.mxu2 %v5680_v42  ;;  %3603 = vmatmul.bf16.vlgmr.msra.gmra.mxu3 %v8006_v20 }
  0x27   :  { %v5663_v48 = vld [vmem:[%s11501_s1 + $0x6c0] sm:$0xf]  ;;  %v7319_v49 = vld [vmem:[%s11501_s1 + $0x6cc] sm:$0xf0]  ;;  %v5536_v54 = vor.u32 %v7287_v47, %v5535_v45  ;;  %3647 = vmatpush.bf16.msrb.mxu3 %v5808_v46 }
  0x28   :  { %v5791_v50 = vld [vmem:[%s11501_s1 + $0x7c0] sm:$0xf]  ;;  %v7351_v51 = vld [vmem:[%s11501_s1 + $0x7cc] sm:$0xf0]  ;;  %v5664_v55 = vor.u32 %v7319_v49, %v5663_v48  ;;  %3609 = vmatpush.bf16.msrb.mxu0 %v5408_v52 }
  0x29   :  { %v5391_v53 = vld [vmem:[%s11501_s1 + $0x4a0] sm:$0xf]  ;;  %v7251_v56 = vld [vmem:[%s11501_s1 + $0x4ac] sm:$0xf0]  ;;  %v5792_v59 = vor.u32 %v7351_v51, %v5791_v50  ;;  %3622 = vmatpush.bf16.msrb.mxu1 %v5536_v54 }
  0x2a   :  { %v5519_v57 = vld [vmem:[%s11501_s1 + $0x5a0] sm:$0xf]  ;;  %v7283_v58 = vld [vmem:[%s11501_s1 + $0x5ac] sm:$0xf0]  ;;  %v5392_v0 = vor.u32 %v7251_v56, %v5391_v53  ;;  %3635 = vmatpush.bf16.msrb.mxu2 %v5664_v55 }
  0x2b   :  { %v5647_v60 = vld [vmem:[%s11501_s1 + $0x6a0] sm:$0xf]  ;;  %v7315_v61 = vld [vmem:[%s11501_s1 + $0x6ac] sm:$0xf0]  ;;  %v5520_v1 = vor.u32 %v7283_v58, %v5519_v57  ;;  %3648 = vmatpush.bf16.msrb.mxu3 %v5792_v59 }
  0x2c   :  { %v5775_v62 = vld [vmem:[%s11501_s1 + $0x7a0] sm:$0xf]  ;;  %v7347_v63 = vld [vmem:[%s11501_s1 + $0x7ac] sm:$0xf0]  ;;  %v5648_v4 = vor.u32 %v7315_v61, %v5647_v60  ;;  %3610 = vmatpush.bf16.msrb.mxu0 %v5392_v0 }
  0x2d   :  { %v19_v3 = vld [vmem:[%s11502_s0] sm:$0xff]  ;;  %v7247_v6 = vld [vmem:[%s11501_s1 + $0x48c] sm:$0xf0]  ;;  %v5776_v11 = vor.u32 %v7347_v63, %v5775_v62  ;;  %3623 = vmatpush.bf16.msrb.mxu1 %v5520_v1 }
  0x2e   :  { %v5375_v5 = vld [vmem:[%s11501_s1 + $0x480] sm:$0xf]  ;;  %v622_v9 = vunpack.c.l.b16 %v19_v3  ;;  %v7279_v12 = vld [vmem:[%s11501_s1 + $0x58c] sm:$0xf0]  ;;  %v623_v15 = vunpack.c.h.b16 %v19_v3  ;;  %3636 = vmatpush.bf16.msrb.mxu2 %v5648_v4  ;;  %v22_v3 = vld [vmem:[%s11502_s0 + $0x18] sm:$0xff] }
  0x2f   :  { %v5503_v7 = vld [vmem:[%s11501_s1 + $0x580] sm:$0xf]  ;;  %v7311_v14 = vld [vmem:[%s11501_s1 + $0x68c] sm:$0xf0]  ;;  %v5376_v21 = vor.u32 %v7247_v6, %v5375_v5  ;;  %3649 = vmatpush.bf16.msrb.mxu3 %v5776_v11 }
  0x30   :  { %v5631_v13 = vld [vmem:[%s11501_s1 + $0x680] sm:$0xf]  ;;  %v7343_v17 = vld [vmem:[%s11501_s1 + $0x78c] sm:$0xf0]  ;;  %v8004_v19 = vpack.c.b16 %v622_v9, %v622_v9  ;;  %v8008_v22 = vpack.c.b16 %v623_v15, %v623_v15  ;;  %v5504_v23 = vor.u32 %v7279_v12, %v5503_v7  ;;  %v628_v15 = vunpack.c.l.b16 %v22_v3 }
  0x31   :  { %v5759_v16 = vld [vmem:[%s11501_s1 + $0x780] sm:$0xf]  ;;  %v5632_v24 = vor.u32 %v7311_v14, %v5631_v13  ;;  %v7243_v26 = vld [vmem:[%s11501_s1 + $0x46c] sm:$0xf0]  ;;  %3611 = vmatpush.bf16.msrb.mxu0 %v5376_v21 }
  0x32   :  { %v5359_v25 = vld [vmem:[%s11501_s1 + $0x460] sm:$0xf]  ;;  %v5760_v28 = vor.u32 %v7343_v17, %v5759_v16  ;;  %v7275_v29 = vld [vmem:[%s11501_s1 + $0x56c] sm:$0xf0]  ;;  %3564 = vmatmul.bf16.vlgmr.msra.gmra.mxu0 %v8004_v19  ;;  %3577 = vmatmul.bf16.vlgmr.msra.gmra.mxu1 %v8008_v22 }
  0x33   :  { %v5487_v27 = vld [vmem:[%s11501_s1 + $0x560] sm:$0xf]  ;;  %v7307_v31 = vld [vmem:[%s11501_s1 + $0x66c] sm:$0xf0]  ;;  %v5360_v34 = vor.u32 %v7243_v26, %v5359_v25  ;;  %3624 = vmatpush.bf16.msrb.mxu1 %v5504_v23  ;;  %3637 = vmatpush.bf16.msrb.mxu2 %v5632_v24  ;;  %v629_v25 = vunpack.c.h.b16 %v22_v3 }
  0x34   :  { %v5615_v30 = vld [vmem:[%s11501_s1 + $0x660] sm:$0xf]  ;;  %v7339_v33 = vld [vmem:[%s11501_s1 + $0x76c] sm:$0xf0]  ;;  %v5488_v35 = vor.u32 %v7275_v29, %v5487_v27  ;;  %3650 = vmatpush.bf16.msrb.mxu3 %v5760_v28 }
  0x35   :  { %v5743_v32 = vld [vmem:[%s11501_s1 + $0x760] sm:$0xf]  ;;  %v5616_v36 = vor.u32 %v7307_v31, %v5615_v30  ;;  %v7239_v38 = vld [vmem:[%s11501_s1 + $0x44c] sm:$0xf0]  ;;  %3612 = vmatpush.bf16.msrb.mxu0 %v5360_v34 }
  0x36   :  { %v5343_v37 = vld [vmem:[%s11501_s1 + $0x440] sm:$0xf]  ;;  %v5744_v40 = vor.u32 %v7339_v33, %v5743_v32  ;;  %v7271_v41 = vld [vmem:[%s11501_s1 + $0x54c] sm:$0xf0] }
  0x37   :  { %v5471_v39 = vld [vmem:[%s11501_s1 + $0x540] sm:$0xf]  ;;  %v7303_v43 = vld [vmem:[%s11501_s1 + $0x64c] sm:$0xf0]  ;;  %v5344_v46 = vor.u32 %v7239_v38, %v5343_v37  ;;  %3625 = vmatpush.bf16.msrb.mxu1 %v5488_v35  ;;  %3638 = vmatpush.bf16.msrb.mxu2 %v5616_v36  ;;  %v8158_v38 = vpack.c.b16 %v628_v15, %v628_v15 }
  0x38   :  { %v5599_v42 = vld [vmem:[%s11501_s1 + $0x640] sm:$0xf]  ;;  %v7335_v45 = vld [vmem:[%s11501_s1 + $0x74c] sm:$0xf0]  ;;  %v5472_v47 = vor.u32 %v7271_v41, %v5471_v39  ;;  %3651 = vmatpush.bf16.msrb.mxu3 %v5744_v40 }
  0x39   :  { %v5727_v44 = vld [vmem:[%s11501_s1 + $0x740] sm:$0xf]  ;;  %v5600_v48 = vor.u32 %v7303_v43, %v5599_v42  ;;  %v7235_v50 = vld [vmem:[%s11501_s1 + $0x42c] sm:$0xf0]  ;;  %3613 = vmatpush.bf16.msrb.mxu0 %v5344_v46  ;;  %v8168_v42 = vpack.c.b16 %v629_v25, %v629_v25 }
  0x3a   :  { %v5327_v49 = vld [vmem:[%s11501_s1 + $0x420] sm:$0xf]  ;;  %v5728_v52 = vor.u32 %v7335_v45, %v5727_v44  ;;  %v7267_v53 = vld [vmem:[%s11501_s1 + $0x52c] sm:$0xf0] }
  0x3b   :  { %v5455_v51 = vld [vmem:[%s11501_s1 + $0x520] sm:$0xf]  ;;  %v7299_v55 = vld [vmem:[%s11501_s1 + $0x62c] sm:$0xf0]  ;;  %v5328_v59 = vor.u32 %v7235_v50, %v5327_v49  ;;  %3626 = vmatpush.bf16.msrb.mxu1 %v5472_v47  ;;  %3639 = vmatpush.bf16.msrb.mxu2 %v5600_v48 }
  0x3c   :  { %v5583_v54 = vld [vmem:[%s11501_s1 + $0x620] sm:$0xf]  ;;  %v7331_v57 = vld [vmem:[%s11501_s1 + $0x72c] sm:$0xf0]  ;;  %v5456_v63 = vor.u32 %v7267_v53, %v5455_v51  ;;  %3652 = vmatpush.bf16.msrb.mxu3 %v5728_v52 }
  0x3d   :  { %v5711_v56 = vld [vmem:[%s11501_s1 + $0x720] sm:$0xf]  ;;  %v7231_v60 = vld [vmem:[%s11501_s1 + $0x40c] sm:$0xf0]  ;;  %v5584_v0 = vor.u32 %v7299_v55, %v5583_v54  ;;  %3614 = vmatpush.bf16.msrb.mxu0 %v5328_v59 }
  0x3e   :  { %v5311_v58 = vld [vmem:[%s11501_s1 + $0x400] sm:$0xf]  ;;  %v7263_v62 = vld [vmem:[%s11501_s1 + $0x50c] sm:$0xf0]  ;;  %v5712_v4 = vor.u32 %v7331_v57, %v5711_v56 }
  0x3f   :  { %v5439_v61 = vld [vmem:[%s11501_s1 + $0x500] sm:$0xf]  ;;  %v7295_v2 = vld [vmem:[%s11501_s1 + $0x60c] sm:$0xf0]  ;;  %v5312_v11 = vor.u32 %v7231_v60, %v5311_v58  ;;  %3627 = vmatpush.bf16.msrb.mxu1 %v5456_v63  ;;  %3640 = vmatpush.bf16.msrb.mxu2 %v5584_v0 }
  0x40   :  { %v5567_v1 = vld [vmem:[%s11501_s1 + $0x600] sm:$0xf]  ;;  %v7327_v6 = vld [vmem:[%s11501_s1 + $0x70c] sm:$0xf0]  ;;  %v5440_v16 = vor.u32 %v7263_v62, %v5439_v61  ;;  %3653 = vmatpush.bf16.msrb.mxu3 %v5712_v4 }
  0x41   :  { %v5695_v5 = vld [vmem:[%s11501_s1 + $0x700] sm:$0xf]  ;;  %v21_v7 = vld [vmem:[%s11502_s0 + $0x10] sm:$0xff]  ;;  %v5568_v17 = vor.u32 %v7295_v2, %v5567_v1  ;;  %3615 = vmatpush.bf16.msrb.mxu0 %v5312_v11 }
  0x42   :  { %v5935_v8 = vld [vmem:[%s11501_s1 + $0x8e0] sm:$0xf]  ;;  %v7387_v9 = vld [vmem:[%s11501_s1 + $0x8ec] sm:$0xf0]  ;;  %v626_v24 = vunpack.c.l.b16 %v21_v7  ;;  %v5696_v26 = vor.u32 %v7327_v6, %v5695_v5  ;;  %v627_v28 = vunpack.c.h.b16 %v21_v7 }
  0x43   :  { %v6063_v10 = vld [vmem:[%s11501_s1 + $0x9e0] sm:$0xf]  ;;  %v7419_v12 = vld [vmem:[%s11501_s1 + $0x9ec] sm:$0xf0]  ;;  %v5936_v27 = vor.u32 %v7387_v9, %v5935_v8  ;;  %3628 = vmatpush.bf16.msrb.mxu1 %v5440_v16  ;;  %3641 = vmatpush.bf16.msrb.mxu2 %v5568_v17 }
  0x44   :  { %v6191_v13 = vld [vmem:[%s11501_s1 + $0xae0] sm:$0xf]  ;;  %v7451_v14 = vld [vmem:[%s11501_s1 + $0xaec] sm:$0xf0]  ;;  %v6064_v29 = vor.u32 %v7419_v12, %v6063_v10  ;;  %v8166_v41 = vpack.c.b16 %v626_v24, %v626_v24  ;;  %3654 = vmatpush.bf16.msrb.mxu3 %v5696_v26  ;;  %v8170_v44 = vpack.c.b16 %v627_v28, %v627_v28 }
  0x45   :  { %v6319_v21 = vld [vmem:[%s11501_s1 + $0xbe0] sm:$0xf]  ;;  %v7483_v23 = vld [vmem:[%s11501_s1 + $0xbec] sm:$0xf0]  ;;  %v6192_v30 = vor.u32 %v7451_v14, %v6191_v13  ;;  %3660 = vmatpush.bf16.msra.mxu0 %v5936_v27 }
  0x46   :  { %v5919_v31 = vld [vmem:[%s11501_s1 + $0x8c0] sm:$0xf]  ;;  %v7383_v32 = vld [vmem:[%s11501_s1 + $0x8cc] sm:$0xf0]  ;;  %v6320_v34 = vor.u32 %v7483_v23, %v6319_v21  ;;  %3642 = vmatmul.bf16.vlgmr.msrb.gmra.mxu2 %v8158_v38  ;;  %3616 = vmatmul.bf16.vlgmr.msrb.gmra.mxu0 %v8166_v41 }
  0x47   :  { %v6047_v33 = vld [vmem:[%s11501_s1 + $0x9c0] sm:$0xf]  ;;  %v7415_v35 = vld [vmem:[%s11501_s1 + $0x9cc] sm:$0xf0]  ;;  %v5920_v43 = vor.u32 %v7383_v32, %v5919_v31  ;;  %3673 = vmatpush.bf16.msra.mxu1 %v6064_v29  ;;  %3686 = vmatpush.bf16.msra.mxu2 %v6192_v30 }
  0x48   :  { %v6175_v36 = vld [vmem:[%s11501_s1 + $0xac0] sm:$0xf]  ;;  %v7447_v37 = vld [vmem:[%s11501_s1 + $0xacc] sm:$0xf0]  ;;  %v6048_v45 = vor.u32 %v7415_v35, %v6047_v33  ;;  %3699 = vmatpush.bf16.msra.mxu3 %v6320_v34  ;;  %3629 = vmatmul.bf16.vlgmr.msrb.gmra.mxu1 %v8170_v44 }
  0x49   :  { %v6303_v39 = vld [vmem:[%s11501_s1 + $0xbc0] sm:$0xf]  ;;  %v7479_v40 = vld [vmem:[%s11501_s1 + $0xbcc] sm:$0xf0]  ;;  %v6176_v46 = vor.u32 %v7447_v37, %v6175_v36  ;;  %3655 = vmatmul.bf16.vlgmr.msrb.gmra.mxu3 %v8168_v42  ;;  %3661 = vmatpush.bf16.msra.mxu0 %v5920_v43 }
  0x4a   :  { %v5903_v47 = vld [vmem:[%s11501_s1 + $0x8a0] sm:$0xf]  ;;  %v7379_v48 = vld [vmem:[%s11501_s1 + $0x8ac] sm:$0xf0]  ;;  %v6304_v50 = vor.u32 %v7479_v40, %v6303_v39 }
  0x4b   :  { %v6031_v49 = vld [vmem:[%s11501_s1 + $0x9a0] sm:$0xf]  ;;  %v7411_v51 = vld [vmem:[%s11501_s1 + $0x9ac] sm:$0xf0]  ;;  %v5904_v56 = vor.u32 %v7379_v48, %v5903_v47  ;;  %3674 = vmatpush.bf16.msra.mxu1 %v6048_v45  ;;  %3687 = vmatpush.bf16.msra.mxu2 %v6176_v46 }
  0x4c   :  { %v6159_v52 = vld [vmem:[%s11501_s1 + $0xaa0] sm:$0xf]  ;;  %v7443_v53 = vld [vmem:[%s11501_s1 + $0xaac] sm:$0xf0]  ;;  %v6032_v57 = vor.u32 %v7411_v51, %v6031_v49  ;;  %3700 = vmatpush.bf16.msra.mxu3 %v6304_v50 }
  0x4d   :  { %v6287_v54 = vld [vmem:[%s11501_s1 + $0xba0] sm:$0xf]  ;;  %v7475_v55 = vld [vmem:[%s11501_s1 + $0xbac] sm:$0xf0]  ;;  %v6160_v58 = vor.u32 %v7443_v53, %v6159_v52  ;;  %3662 = vmatpush.bf16.msra.mxu0 %v5904_v56 }
  0x4e   :  { %v5887_v59 = vld [vmem:[%s11501_s1 + $0x880] sm:$0xf]  ;;  %v7375_v60 = vld [vmem:[%s11501_s1 + $0x88c] sm:$0xf0]  ;;  %v6288_v62 = vor.u32 %v7475_v55, %v6287_v54 }
  0x4f   :  { %v6015_v61 = vld [vmem:[%s11501_s1 + $0x980] sm:$0xf]  ;;  %v7407_v63 = vld [vmem:[%s11501_s1 + $0x98c] sm:$0xf0]  ;;  %v5888_v4 = vor.u32 %v7375_v60, %v5887_v59  ;;  %3675 = vmatpush.bf16.msra.mxu1 %v6032_v57  ;;  %3688 = vmatpush.bf16.msra.mxu2 %v6160_v58 }
  0x50   :  { %v6143_v0 = vld [vmem:[%s11501_s1 + $0xa80] sm:$0xf]  ;;  %v7439_v1 = vld [vmem:[%s11501_s1 + $0xa8c] sm:$0xf0]  ;;  %v6016_v5 = vor.u32 %v7407_v63, %v6015_v61  ;;  %3701 = vmatpush.bf16.msra.mxu3 %v6288_v62  ;;  %v24_v61 = vld [vmem:[%s11502_s0 + $0x28] sm:$0xff] }
  0x51   :  { %v6271_v2 = vld [vmem:[%s11501_s1 + $0xb80] sm:$0xf]  ;;  %v7471_v3 = vld [vmem:[%s11501_s1 + $0xb8c] sm:$0xf0]  ;;  %v6144_v6 = vor.u32 %v7439_v1, %v6143_v0  ;;  %3663 = vmatpush.bf16.msra.mxu0 %v5888_v4 }
  0x52   :  { %v5871_v7 = vld [vmem:[%s11501_s1 + $0x860] sm:$0xf]  ;;  %v7371_v8 = vld [vmem:[%s11501_s1 + $0x86c] sm:$0xf0]  ;;  %v6272_v10 = vor.u32 %v7471_v3, %v6271_v2 }
  0x53   :  { %v5999_v9 = vld [vmem:[%s11501_s1 + $0x960] sm:$0xf]  ;;  %v7403_v11 = vld [vmem:[%s11501_s1 + $0x96c] sm:$0xf0]  ;;  %v5872_v16 = vor.u32 %v7371_v8, %v5871_v7  ;;  %3676 = vmatpush.bf16.msra.mxu1 %v6016_v5  ;;  %3689 = vmatpush.bf16.msra.mxu2 %v6144_v6 }
  0x54   :  { %v6127_v12 = vld [vmem:[%s11501_s1 + $0xa60] sm:$0xf]  ;;  %v7435_v13 = vld [vmem:[%s11501_s1 + $0xa6c] sm:$0xf0]  ;;  %v6000_v17 = vor.u32 %v7403_v11, %v5999_v9  ;;  %3702 = vmatpush.bf16.msra.mxu3 %v6272_v10  ;;  %v632_v10 = vunpack.c.l.b16 %v24_v61 }
  0x55   :  { %v6255_v14 = vld [vmem:[%s11501_s1 + $0xb60] sm:$0xf]  ;;  %v7467_v15 = vld [vmem:[%s11501_s1 + $0xb6c] sm:$0xf0]  ;;  %v6128_v21 = vor.u32 %v7435_v13, %v6127_v12  ;;  %3664 = vmatpush.bf16.msra.mxu0 %v5872_v16 }
  0x56   :  { %v5855_v23 = vld [vmem:[%s11501_s1 + $0x840] sm:$0xf]  ;;  %v7367_v24 = vld [vmem:[%s11501_s1 + $0x84c] sm:$0xf0]  ;;  %v6256_v26 = vor.u32 %v7467_v15, %v6255_v14  ;;  %v633_v14 = vunpack.c.h.b16 %v24_v61 }
  0x57   :  { %v5983_v25 = vld [vmem:[%s11501_s1 + $0x940] sm:$0xf]  ;;  %v7399_v27 = vld [vmem:[%s11501_s1 + $0x94c] sm:$0xf0]  ;;  %v5856_v32 = vor.u32 %v7367_v24, %v5855_v23  ;;  %3677 = vmatpush.bf16.msra.mxu1 %v6000_v17  ;;  %3690 = vmatpush.bf16.msra.mxu2 %v6128_v21 }
  0x58   :  { %v6111_v28 = vld [vmem:[%s11501_s1 + $0xa40] sm:$0xf]  ;;  %v7431_v29 = vld [vmem:[%s11501_s1 + $0xa4c] sm:$0xf0]  ;;  %v5984_v33 = vor.u32 %v7399_v27, %v5983_v25  ;;  %3703 = vmatpush.bf16.msra.mxu3 %v6256_v26 }
  0x59   :  { %v6239_v30 = vld [vmem:[%s11501_s1 + $0xb40] sm:$0xf]  ;;  %v7463_v31 = vld [vmem:[%s11501_s1 + $0xb4c] sm:$0xf0]  ;;  %v6112_v34 = vor.u32 %v7431_v29, %v6111_v28  ;;  %3665 = vmatpush.bf16.msra.mxu0 %v5856_v32  ;;  %v8370_v29 = vpack.c.b16 %v632_v10, %v632_v10 }
  0x5a   :  { %v5839_v35 = vld [vmem:[%s11501_s1 + $0x820] sm:$0xf]  ;;  %v7363_v36 = vld [vmem:[%s11501_s1 + $0x82c] sm:$0xf0]  ;;  %v6240_v39 = vor.u32 %v7463_v31, %v6239_v30 }
  0x5b   :  { %v5967_v37 = vld [vmem:[%s11501_s1 + $0x920] sm:$0xf]  ;;  %v7395_v40 = vld [vmem:[%s11501_s1 + $0x92c] sm:$0xf0]  ;;  %v5840_v49 = vor.u32 %v7363_v36, %v5839_v35  ;;  %3678 = vmatpush.bf16.msra.mxu1 %v5984_v33  ;;  %3691 = vmatpush.bf16.msra.mxu2 %v6112_v34  ;;  %v8380_v33 = vpack.c.b16 %v633_v14, %v633_v14 }
  0x5c   :  { %v6095_v43 = vld [vmem:[%s11501_s1 + $0xa20] sm:$0xf]  ;;  %v7427_v45 = vld [vmem:[%s11501_s1 + $0xa2c] sm:$0xf0]  ;;  %v5968_v53 = vor.u32 %v7395_v40, %v5967_v37  ;;  %3704 = vmatpush.bf16.msra.mxu3 %v6240_v39 }
  0x5d   :  { %v6223_v46 = vld [vmem:[%s11501_s1 + $0xb20] sm:$0xf]  ;;  %v7459_v47 = vld [vmem:[%s11501_s1 + $0xb2c] sm:$0xf0]  ;;  %v6096_v54 = vor.u32 %v7427_v45, %v6095_v43  ;;  %3666 = vmatpush.bf16.msra.mxu0 %v5840_v49 }
  0x5e   :  { %v5823_v48 = vld [vmem:[%s11501_s1 + $0x800] sm:$0xf]  ;;  %v7359_v50 = vld [vmem:[%s11501_s1 + $0x80c] sm:$0xf0]  ;;  %v6224_v58 = vor.u32 %v7459_v47, %v6223_v46 }
  0x5f   :  { %v5951_v51 = vld [vmem:[%s11501_s1 + $0x900] sm:$0xf]  ;;  %v7391_v52 = vld [vmem:[%s11501_s1 + $0x90c] sm:$0xf0]  ;;  %v5824_v1 = vor.u32 %v7359_v50, %v5823_v48  ;;  %3679 = vmatpush.bf16.msra.mxu1 %v5968_v53  ;;  %3692 = vmatpush.bf16.msra.mxu2 %v6096_v54 }
  0x60   :  { %v6079_v55 = vld [vmem:[%s11501_s1 + $0xa00] sm:$0xf]  ;;  %v7423_v56 = vld [vmem:[%s11501_s1 + $0xa0c] sm:$0xf0]  ;;  %v5952_v6 = vor.u32 %v7391_v52, %v5951_v51  ;;  %3705 = vmatpush.bf16.msra.mxu3 %v6224_v58 }
  0x61   :  { %v23_v57 = vld [vmem:[%s11502_s0 + $0x20] sm:$0xff]  ;;  %v7455_v60 = vld [vmem:[%s11501_s1 + $0xb0c] sm:$0xf0]  ;;  %v6080_v7 = vor.u32 %v7423_v56, %v6079_v55  ;;  %3667 = vmatpush.bf16.msra.mxu0 %v5824_v1 }
  0x62   :  { %v6207_v59 = vld [vmem:[%s11501_s1 + $0xb00] sm:$0xf]  ;;  %v7515_v63 = vld [vmem:[%s11501_s1 + $0xcec] sm:$0xf0]  ;;  %v630_v5 = vunpack.c.l.b16 %v23_v57  ;;  %v631_v11 = vunpack.c.h.b16 %v23_v57 }
  0x63   :  { %v6447_v62 = vld [vmem:[%s11501_s1 + $0xce0] sm:$0xf]  ;;  %v7547_v2 = vld [vmem:[%s11501_s1 + $0xdec] sm:$0xf0]  ;;  %v6208_v12 = vor.u32 %v7455_v60, %v6207_v59  ;;  %3680 = vmatpush.bf16.msra.mxu1 %v5952_v6  ;;  %3693 = vmatpush.bf16.msra.mxu2 %v6080_v7 }
  0x64   :  { %v6575_v0 = vld [vmem:[%s11501_s1 + $0xde0] sm:$0xf]  ;;  %v7579_v4 = vld [vmem:[%s11501_s1 + $0xeec] sm:$0xf0]  ;;  %v6448_v13 = vor.u32 %v7515_v63, %v6447_v62  ;;  %v8359_v25 = vpack.c.b16 %v630_v5, %v630_v5  ;;  %v8372_v30 = vpack.c.b16 %v631_v11, %v631_v11 }
  0x65   :  { %v6703_v3 = vld [vmem:[%s11501_s1 + $0xee0] sm:$0xf]  ;;  %v7611_v9 = vld [vmem:[%s11501_s1 + $0xfec] sm:$0xf0]  ;;  %v6576_v15 = vor.u32 %v7547_v2, %v6575_v0  ;;  %3706 = vmatpush.bf16.msra.mxu3 %v6208_v12 }
  0x66   :  { %v6831_v8 = vld [vmem:[%s11501_s1 + $0xfe0] sm:$0xf]  ;;  %v6704_v16 = vor.u32 %v7579_v4, %v6703_v3  ;;  %v7511_v21 = vld [vmem:[%s11501_s1 + $0xccc] sm:$0xf0]  ;;  %3712 = vmatpush.bf16.msrb.mxu0 %v6448_v13  ;;  %3694 = vmatmul.bf16.vlgmr.msra.gmra.mxu2 %v8370_v29 }
  0x67   :  { %v6431_v17 = vld [vmem:[%s11501_s1 + $0xcc0] sm:$0xf]  ;;  %v6832_v24 = vor.u32 %v7611_v9, %v6831_v8  ;;  %v7543_v26 = vld [vmem:[%s11501_s1 + $0xdcc] sm:$0xf0]  ;;  %3725 = vmatpush.bf16.msrb.mxu1 %v6576_v15  ;;  %3668 = vmatmul.bf16.vlgmr.msra.gmra.mxu0 %v8359_v25 }
  0x68   :  { %v6559_v23 = vld [vmem:[%s11501_s1 + $0xdc0] sm:$0xf]  ;;  %v7575_v28 = vld [vmem:[%s11501_s1 + $0xecc] sm:$0xf0]  ;;  %v6432_v34 = vor.u32 %v7511_v21, %v6431_v17  ;;  %3738 = vmatpush.bf16.msrb.mxu2 %v6704_v16  ;;  %3681 = vmatmul.bf16.vlgmr.msra.gmra.mxu1 %v8372_v30 }
  0x69   :  { %v6687_v27 = vld [vmem:[%s11501_s1 + $0xec0] sm:$0xf]  ;;  %v7607_v32 = vld [vmem:[%s11501_s1 + $0xfcc] sm:$0xf0]  ;;  %v6560_v35 = vor.u32 %v7543_v26, %v6559_v23  ;;  %3751 = vmatpush.bf16.msrb.mxu3 %v6832_v24 }
  0x6a   :  { %v6815_v31 = vld [vmem:[%s11501_s1 + $0xfc0] sm:$0xf]  ;;  %v6688_v36 = vor.u32 %v7575_v28, %v6687_v27  ;;  %v7507_v39 = vld [vmem:[%s11501_s1 + $0xcac] sm:$0xf0]  ;;  %3707 = vmatmul.bf16.vlgmr.msra.gmra.mxu3 %v8380_v33  ;;  %3713 = vmatpush.bf16.msrb.mxu0 %v6432_v34 }
  0x6b   :  { %v6415_v37 = vld [vmem:[%s11501_s1 + $0xca0] sm:$0xf]  ;;  %v6816_v43 = vor.u32 %v7607_v32, %v6815_v31  ;;  %v7539_v45 = vld [vmem:[%s11501_s1 + $0xdac] sm:$0xf0]  ;;  %3726 = vmatpush.bf16.msrb.mxu1 %v6560_v35 }
  0x6c   :  { %v6543_v40 = vld [vmem:[%s11501_s1 + $0xda0] sm:$0xf]  ;;  %v7571_v47 = vld [vmem:[%s11501_s1 + $0xeac] sm:$0xf0]  ;;  %v6416_v50 = vor.u32 %v7507_v39, %v6415_v37  ;;  %3739 = vmatpush.bf16.msrb.mxu2 %v6688_v36 }
  0x6d   :  { %v6671_v46 = vld [vmem:[%s11501_s1 + $0xea0] sm:$0xf]  ;;  %v7603_v49 = vld [vmem:[%s11501_s1 + $0xfac] sm:$0xf0]  ;;  %v6544_v51 = vor.u32 %v7539_v45, %v6543_v40  ;;  %3752 = vmatpush.bf16.msrb.mxu3 %v6816_v43 }
  0x6e   :  { %v6799_v48 = vld [vmem:[%s11501_s1 + $0xfa0] sm:$0xf]  ;;  %v6672_v52 = vor.u32 %v7571_v47, %v6671_v46  ;;  %v7503_v54 = vld [vmem:[%s11501_s1 + $0xc8c] sm:$0xf0]  ;;  %3714 = vmatpush.bf16.msrb.mxu0 %v6416_v50 }
  0x6f   :  { %v6399_v53 = vld [vmem:[%s11501_s1 + $0xc80] sm:$0xf]  ;;  %v6800_v56 = vor.u32 %v7603_v49, %v6799_v48  ;;  %v7535_v57 = vld [vmem:[%s11501_s1 + $0xd8c] sm:$0xf0]  ;;  %3727 = vmatpush.bf16.msrb.mxu1 %v6544_v51 }
  0x70   :  { %v6527_v55 = vld [vmem:[%s11501_s1 + $0xd80] sm:$0xf]  ;;  %v7567_v59 = vld [vmem:[%s11501_s1 + $0xe8c] sm:$0xf0]  ;;  %v6400_v62 = vor.u32 %v7503_v54, %v6399_v53  ;;  %3740 = vmatpush.bf16.msrb.mxu2 %v6672_v52 }
  0x71   :  { %v6655_v58 = vld [vmem:[%s11501_s1 + $0xe80] sm:$0xf]  ;;  %v7599_v61 = vld [vmem:[%s11501_s1 + $0xf8c] sm:$0xf0]  ;;  %v6528_v63 = vor.u32 %v7535_v57, %v6527_v55  ;;  %3753 = vmatpush.bf16.msrb.mxu3 %v6800_v56 }
  0x72   :  { %v6783_v60 = vld [vmem:[%s11501_s1 + $0xf80] sm:$0xf]  ;;  %v6656_v0 = vor.u32 %v7567_v59, %v6655_v58  ;;  %v7499_v2 = vld [vmem:[%s11501_s1 + $0xc6c] sm:$0xf0]  ;;  %3715 = vmatpush.bf16.msrb.mxu0 %v6400_v62  ;;  %v26_v59 = vld [vmem:[%s11502_s0 + $0x38] sm:$0xff] }
  0x73   :  { %v6383_v1 = vld [vmem:[%s11501_s1 + $0xc60] sm:$0xf]  ;;  %v6784_v4 = vor.u32 %v7599_v61, %v6783_v60  ;;  %v7531_v5 = vld [vmem:[%s11501_s1 + $0xd6c] sm:$0xf0]  ;;  %3728 = vmatpush.bf16.msrb.mxu1 %v6528_v63 }
  0x74   :  { %v6511_v3 = vld [vmem:[%s11501_s1 + $0xd60] sm:$0xf]  ;;  %v7563_v7 = vld [vmem:[%s11501_s1 + $0xe6c] sm:$0xf0]  ;;  %v6384_v10 = vor.u32 %v7499_v2, %v6383_v1  ;;  %3741 = vmatpush.bf16.msrb.mxu2 %v6656_v0  ;;  %v7129_v1 = vld [vmem:[%s11501_s1 + $0xe4] sm:$0xf] }
  0x75   :  { %v6639_v6 = vld [vmem:[%s11501_s1 + $0xe60] sm:$0xf]  ;;  %v7595_v9 = vld [vmem:[%s11501_s1 + $0xf6c] sm:$0xf0]  ;;  %v6512_v11 = vor.u32 %v7531_v5, %v6511_v3  ;;  %3754 = vmatpush.bf16.msrb.mxu3 %v6784_v4  ;;  %v4913_v2 = vld [vmem:[%s11501_s1 + $0xf0] sm:$0xf0] }
  0x76   :  { %v6767_v8 = vld [vmem:[%s11501_s1 + $0xf60] sm:$0xf]  ;;  %v6640_v12 = vor.u32 %v7563_v7, %v6639_v6  ;;  %v7495_v14 = vld [vmem:[%s11501_s1 + $0xc4c] sm:$0xf0]  ;;  %3716 = vmatpush.bf16.msrb.mxu0 %v6384_v10  ;;  %v7161_v6 = vld [vmem:[%s11501_s1 + $0x1e4] sm:$0xf] }
  0x77   :  { %v6367_v13 = vld [vmem:[%s11501_s1 + $0xc40] sm:$0xf]  ;;  %v6768_v16 = vor.u32 %v7595_v9, %v6767_v8  ;;  %v7527_v17 = vld [vmem:[%s11501_s1 + $0xd4c] sm:$0xf0]  ;;  %3729 = vmatpush.bf16.msrb.mxu1 %v6512_v11  ;;  %v5041_v7 = vld [vmem:[%s11501_s1 + $0x1f0] sm:$0xf0]  ;;  %v636_v8 = vunpack.c.l.b16 %v26_v59 }
  0x78   :  { %v6495_v15 = vld [vmem:[%s11501_s1 + $0xd40] sm:$0xf]  ;;  %v7559_v23 = vld [vmem:[%s11501_s1 + $0xe4c] sm:$0xf0]  ;;  %v6368_v27 = vor.u32 %v7495_v14, %v6367_v13  ;;  %3742 = vmatpush.bf16.msrb.mxu2 %v6640_v12  ;;  %v637_v12 = vunpack.c.h.b16 %v26_v59  ;;  %v4916_v14 = vor.u32 %v7129_v1, %v4913_v2 }
  0x79   :  { %v6623_v21 = vld [vmem:[%s11501_s1 + $0xe40] sm:$0xf]  ;;  %v7591_v26 = vld [vmem:[%s11501_s1 + $0xf4c] sm:$0xf0]  ;;  %v6496_v28 = vor.u32 %v7527_v17, %v6495_v15  ;;  %3755 = vmatpush.bf16.msrb.mxu3 %v6768_v16 }
  0x7a   :  { %v6751_v24 = vld [vmem:[%s11501_s1 + $0xf40] sm:$0xf]  ;;  %v6624_v31 = vor.u32 %v7559_v23, %v6623_v21  ;;  %v7491_v34 = vld [vmem:[%s11501_s1 + $0xc2c] sm:$0xf0]  ;;  %3717 = vmatpush.bf16.msrb.mxu0 %v6368_v27  ;;  %v5044_v21 = vor.u32 %v7161_v6, %v5041_v7  ;;  %v4897_v27 = vld [vmem:[%s11501_s1 + $0xd0] sm:$0xf0] }
  0x7b   :  { %v6351_v32 = vld [vmem:[%s11501_s1 + $0xc20] sm:$0xf]  ;;  %v6752_v36 = vor.u32 %v7591_v26, %v6751_v24  ;;  %v7523_v37 = vld [vmem:[%s11501_s1 + $0xd2c] sm:$0xf0]  ;;  %3730 = vmatpush.bf16.msrb.mxu1 %v6496_v28  ;;  %v7125_v26 = vld [vmem:[%s11501_s1 + $0xc4] sm:$0xf]  ;;  %v8580_v28 = vpack.c.b16 %v636_v8, %v636_v8 }
  0x7c   :  { %v6479_v35 = vld [vmem:[%s11501_s1 + $0xd20] sm:$0xf]  ;;  %v7555_v40 = vld [vmem:[%s11501_s1 + $0xe2c] sm:$0xf0]  ;;  %v6352_v47 = vor.u32 %v7491_v34, %v6351_v32  ;;  %3743 = vmatpush.bf16.msrb.mxu2 %v6624_v31  ;;  %v7157_v32 = vld [vmem:[%s11501_s1 + $0x1c4] sm:$0xf] }
  0x7d   :  { %v6607_v39 = vld [vmem:[%s11501_s1 + $0xe20] sm:$0xf]  ;;  %v7587_v45 = vld [vmem:[%s11501_s1 + $0xf2c] sm:$0xf0]  ;;  %v6480_v51 = vor.u32 %v7523_v37, %v6479_v35  ;;  %3756 = vmatpush.bf16.msrb.mxu3 %v6752_v36  ;;  %v5025_v34 = vld [vmem:[%s11501_s1 + $0x1d0] sm:$0xf0]  ;;  %v8590_v35 = vpack.c.b16 %v637_v12, %v637_v12 }
  0x7e   :  { %v6735_v43 = vld [vmem:[%s11501_s1 + $0xf20] sm:$0xf]  ;;  %v7487_v48 = vld [vmem:[%s11501_s1 + $0xc0c] sm:$0xf0]  ;;  %v6608_v52 = vor.u32 %v7555_v40, %v6607_v39  ;;  %3718 = vmatpush.bf16.msrb.mxu0 %v6352_v47  ;;  %v4900_v39 = vor.u32 %v7125_v26, %v4897_v27  ;;  %v7113_v8 = vld [vmem:[%s11501_s1 + $0x64] sm:$0xf] }
  0x7f   :  { %v6335_v46 = vld [vmem:[%s11501_s1 + $0xc00] sm:$0xf]  ;;  %v7519_v50 = vld [vmem:[%s11501_s1 + $0xd0c] sm:$0xf0]  ;;  %v6736_v56 = vor.u32 %v7587_v45, %v6735_v43  ;;  %3731 = vmatpush.bf16.msrb.mxu1 %v6480_v51  ;;  %v5009_v51 = vld [vmem:[%s11501_s1 + $0x1b0] sm:$0xf0] }
  0x80   :  { %v6463_v49 = vld [vmem:[%s11501_s1 + $0xd00] sm:$0xf]  ;;  %v7551_v54 = vld [vmem:[%s11501_s1 + $0xe0c] sm:$0xf0]  ;;  %v6336_v63 = vor.u32 %v7487_v48, %v6335_v46  ;;  %3744 = vmatpush.bf16.msrb.mxu2 %v6608_v52  ;;  %v5028_v46 = vor.u32 %v7157_v32, %v5025_v34  ;;  %v7121_v48 = vld [vmem:[%s11501_s1 + $0xa4] sm:$0xf] }
  0x81   :  { %v6591_v53 = vld [vmem:[%s11501_s1 + $0xe00] sm:$0xf]  ;;  %v25_v55 = vld [vmem:[%s11502_s0 + $0x30] sm:$0xff]  ;;  %v6464_v4 = vor.u32 %v7519_v50, %v6463_v49  ;;  %3757 = vmatpush.bf16.msrb.mxu3 %v6736_v56  ;;  %v7153_v50 = vld [vmem:[%s11501_s1 + $0x1a4] sm:$0xf] }
  0x82   :  { %v6719_v57 = vld [vmem:[%s11501_s1 + $0xf00] sm:$0xf]  ;;  %v7583_v58 = vld [vmem:[%s11501_s1 + $0xf0c] sm:$0xf0]  ;;  %v634_v3 = vunpack.c.l.b16 %v25_v55  ;;  %v6592_v5 = vor.u32 %v7551_v54, %v6591_v53  ;;  %v635_v9 = vunpack.c.h.b16 %v25_v55  ;;  %3719 = vmatpush.bf16.msrb.mxu0 %v6336_v63  ;;  %v4881_v49 = vld [vmem:[%s11501_s1 + $0xb0] sm:$0xf0] }
  0x83   :  { %v6959_v60 = vld [vmem:[%s11501_s1 + $0x10e0] sm:$0xf]  ;;  %v7643_v61 = vld [vmem:[%s11501_s1 + $0x10ec] sm:$0xf0]  ;;  %v6720_v10 = vor.u32 %v7583_v58, %v6719_v57  ;;  %3732 = vmatpush.bf16.msrb.mxu1 %v6464_v4  ;;  %v4884_v54 = vor.u32 %v7121_v48, %v4881_v49  ;;  %v5012_v58 = vor.u32 %v7153_v50, %v5009_v51  ;;  %v4993_v63 = vld [vmem:[%s11501_s1 + $0x190] sm:$0xf0] }
  0x84   :  { %v7087_v62 = vld [vmem:[%s11501_s1 + $0x11e0] sm:$0xf]  ;;  %v7675_v0 = vld [vmem:[%s11501_s1 + $0x11ec] sm:$0xf0]  ;;  %v6960_v11 = vor.u32 %v7643_v61, %v6959_v60  ;;  %v8569_v23 = vpack.c.b16 %v634_v3, %v634_v3  ;;  %3745 = vmatpush.bf16.msrb.mxu2 %v6592_v5  ;;  %v8582_v31 = vpack.c.b16 %v635_v9, %v635_v9  ;;  %v7117_v60 = vld [vmem:[%s11501_s1 + $0x84] sm:$0xf] }
  0x85   :  { %v7088_v13 = vor.u32 %v7675_v0, %v7087_v62  ;;  %v6943_v15 = vld [vmem:[%s11501_s1 + $0x10c0] sm:$0xf]  ;;  %v7639_v16 = vld [vmem:[%s11501_s1 + $0x10cc] sm:$0xf0]  ;;  %3758 = vmatpush.bf16.msrb.mxu3 %v6720_v10  ;;  %v4865_v61 = vld [vmem:[%s11501_s1 + $0x90] sm:$0xf0] }
  0x86   :  { %v7071_v17 = vld [vmem:[%s11501_s1 + $0x11c0] sm:$0xf]  ;;  %v7671_v24 = vld [vmem:[%s11501_s1 + $0x11cc] sm:$0xf0]  ;;  %3764 = vmatpush.bf16.msra.mxu0 %v6960_v11  ;;  %v6944_v36 = vor.u32 %v7639_v16, %v6943_v15  ;;  %3733 = vmatmul.bf16.vlgmr.msrb.gmra.mxu1 %v8582_v31  ;;  %v7149_v62 = vld [vmem:[%s11501_s1 + $0x184] sm:$0xf]  ;;  %v4868_v2 = vor.u32 %v7117_v60, %v4865_v61 }
  0x87   :  { %3777 = vmatpush.bf16.msra.mxu1 %v7088_v13  ;;  %v7072_v37 = vor.u32 %v7671_v24, %v7071_v17  ;;  %v6927_v40 = vld [vmem:[%s11501_s1 + $0x10a0] sm:$0xf]  ;;  %v7635_v43 = vld [vmem:[%s11501_s1 + $0x10ac] sm:$0xf0]  ;;  %3720 = vmatmul.bf16.vlgmr.msrb.gmra.mxu0 %v8569_v23  ;;  %v4996_v6 = vor.u32 %v7149_v62, %v4993_v63  ;;  %v4849_v9 = vld [vmem:[%s11501_s1 + $0x70] sm:$0xf0] }
  0x88   :  { %3790 = vmatpush.bf16.msra.mxu2 %v4916_v14  ;;  %v7055_v45 = vld [vmem:[%s11501_s1 + $0x11a0] sm:$0xf]  ;;  %v7667_v47 = vld [vmem:[%s11501_s1 + $0x11ac] sm:$0xf0]  ;;  %3759 = vmatmul.bf16.vlgmr.msrb.gmra.mxu3 %v8590_v35  ;;  %v6928_v52 = vor.u32 %v7635_v43, %v6927_v40  ;;  %v7145_v10 = vld [vmem:[%s11501_s1 + $0x164] sm:$0xf]  ;;  %v4852_v14 = vor.u32 %v7113_v8, %v4849_v9 }
  0x89   :  { %3803 = vmatpush.bf16.msra.mxu3 %v5044_v21  ;;  %3746 = vmatmul.bf16.vlgmr.msrb.gmra.mxu2 %v8580_v28  ;;  %v7056_v53 = vor.u32 %v7667_v47, %v7055_v45  ;;  %v6911_v55 = vld [vmem:[%s11501_s1 + $0x1080] sm:$0xf]  ;;  %v7631_v56 = vld [vmem:[%s11501_s1 + $0x108c] sm:$0xf0]  ;;  %v4977_v11 = vld [vmem:[%s11501_s1 + $0x170] sm:$0xf0] }
  0x8a   :  { %3765 = vmatpush.bf16.msra.mxu0 %v6944_v36  ;;  %v7039_v57 = vld [vmem:[%s11501_s1 + $0x1180] sm:$0xf]  ;;  %v7663_v59 = vld [vmem:[%s11501_s1 + $0x118c] sm:$0xf0]  ;;  %v6912_v0 = vor.u32 %v7631_v56, %v6911_v55  ;;  %v4980_v21 = vor.u32 %v7145_v10, %v4977_v11  ;;  %v7109_v26 = vld [vmem:[%s11501_s1 + $0x44] sm:$0xf] }
  0x8b   :  { %3778 = vmatpush.bf16.msra.mxu1 %v7072_v37  ;;  %v7040_v1 = vor.u32 %v7663_v59, %v7039_v57  ;;  %v6895_v3 = vld [vmem:[%s11501_s1 + $0x1060] sm:$0xf]  ;;  %v7627_v4 = vld [vmem:[%s11501_s1 + $0x106c] sm:$0xf0]  ;;  %v4833_v27 = vld [vmem:[%s11501_s1 + $0x50] sm:$0xf0] }
  0x8c   :  { %3791 = vmatpush.bf16.msra.mxu2 %v4900_v39  ;;  %v7023_v5 = vld [vmem:[%s11501_s1 + $0x1160] sm:$0xf]  ;;  %v7659_v7 = vld [vmem:[%s11501_s1 + $0x116c] sm:$0xf0]  ;;  %v6896_v12 = vor.u32 %v7627_v4, %v6895_v3  ;;  %v7141_v32 = vld [vmem:[%s11501_s1 + $0x144] sm:$0xf]  ;;  %v4836_v39 = vor.u32 %v7109_v26, %v4833_v27 }
  0x8d   :  { %3804 = vmatpush.bf16.msra.mxu3 %v5028_v46  ;;  %v7024_v13 = vor.u32 %v7659_v7, %v7023_v5  ;;  %v6879_v15 = vld [vmem:[%s11501_s1 + $0x1040] sm:$0xf]  ;;  %v7623_v16 = vld [vmem:[%s11501_s1 + $0x104c] sm:$0xf0]  ;;  %v4961_v34 = vld [vmem:[%s11501_s1 + $0x150] sm:$0xf0] }
  0x8e   :  { %3766 = vmatpush.bf16.msra.mxu0 %v6928_v52  ;;  %v7007_v17 = vld [vmem:[%s11501_s1 + $0x1140] sm:$0xf]  ;;  %v7655_v24 = vld [vmem:[%s11501_s1 + $0x114c] sm:$0xf0]  ;;  %v6880_v36 = vor.u32 %v7623_v16, %v6879_v15  ;;  %v4964_v46 = vor.u32 %v7141_v32, %v4961_v34  ;;  %v7105_v48 = vld [vmem:[%s11501_s1 + $0x24] sm:$0xf] }
  0x8f   :  { %3779 = vmatpush.bf16.msra.mxu1 %v7056_v53  ;;  %v7008_v37 = vor.u32 %v7655_v24, %v7007_v17  ;;  %v6863_v40 = vld [vmem:[%s11501_s1 + $0x1020] sm:$0xf]  ;;  %v7619_v43 = vld [vmem:[%s11501_s1 + $0x102c] sm:$0xf0]  ;;  %v4817_v49 = vld [vmem:[%s11501_s1 + $0x30] sm:$0xf0] }
  0x90   :  { %3792 = vmatpush.bf16.msra.mxu2 %v4884_v54  ;;  %v6991_v45 = vld [vmem:[%s11501_s1 + $0x1120] sm:$0xf]  ;;  %v7651_v47 = vld [vmem:[%s11501_s1 + $0x112c] sm:$0xf0]  ;;  %v7137_v50 = vld [vmem:[%s11501_s1 + $0x124] sm:$0xf]  ;;  %v6864_v52 = vor.u32 %v7619_v43, %v6863_v40  ;;  %v4820_v57 = vor.u32 %v7105_v48, %v4817_v49 }
  0x91   :  { %3805 = vmatpush.bf16.msra.mxu3 %v5012_v58  ;;  %v4945_v51 = vld [vmem:[%s11501_s1 + $0x130] sm:$0xf0]  ;;  %v6847_v53 = vld [vmem:[%s11501_s1 + $0x1000] sm:$0xf]  ;;  %v7615_v54 = vld [vmem:[%s11501_s1 + $0x100c] sm:$0xf0]  ;;  %v6992_v56 = vor.u32 %v7651_v47, %v6991_v45 }
  0x92   :  { %3767 = vmatpush.bf16.msra.mxu0 %v6912_v0  ;;  %v6975_v55 = vld [vmem:[%s11501_s1 + $0x1100] sm:$0xf]  ;;  %v7647_v58 = vld [vmem:[%s11501_s1 + $0x110c] sm:$0xf0]  ;;  %v7101_v59 = vld [vmem:[%s11501_s1 + $0x4] sm:$0xf]  ;;  %v4948_v61 = vor.u32 %v7137_v50, %v4945_v51  ;;  %v6848_v4 = vor.u32 %v7615_v54, %v6847_v53 }
  0x93   :  { %3780 = vmatpush.bf16.msra.mxu1 %v7040_v1  ;;  %v27_v60 = vld [vmem:[%s11502_s0 + $0x40] sm:$0xff]  ;;  %v4801_v62 = vld [vmem:[%s11501_s1 + $0x10] sm:$0xf0]  ;;  %v6976_v9 = vor.u32 %v7647_v58, %v6975_v55 }
  0x94   :  { %3793 = vmatpush.bf16.msra.mxu2 %v4868_v2  ;;  %v7133_v63 = vld [vmem:[%s11501_s1 + $0x104] sm:$0xf]  ;;  %v4929_v0 = vld [vmem:[%s11501_s1 + $0x110] sm:$0xf0]  ;;  %v638_v8 = vunpack.c.l.b16 %v27_v60  ;;  %v4804_v10 = vor.u32 %v7101_v59, %v4801_v62 }
  0x95   :  { %3806 = vmatpush.bf16.msra.mxu3 %v4996_v6  ;;  %v7193_v1 = vld [vmem:[%s11501_s1 + $0x2e4] sm:$0xf]  ;;  %v5169_v2 = vld [vmem:[%s11501_s1 + $0x2f0] sm:$0xf0] }
  0x96   :  { %3768 = vmatpush.bf16.msra.mxu0 %v6896_v12  ;;  %v7225_v3 = vld [vmem:[%s11501_s1 + $0x3e4] sm:$0xf]  ;;  %v5297_v5 = vld [vmem:[%s11501_s1 + $0x3f0] sm:$0xf0]  ;;  %v5172_v15 = vor.u32 %v7193_v1, %v5169_v2  ;;  %v8776_v32 = vpack.c.b16 %v638_v8, %v638_v8 }
  0x97   :  { %3781 = vmatpush.bf16.msra.mxu1 %v7024_v13  ;;  %v7257_v6 = vld [vmem:[%s11501_s1 + $0x4e4] sm:$0xf]  ;;  %v5425_v7 = vld [vmem:[%s11501_s1 + $0x4f0] sm:$0xf0]  ;;  %v639_v13 = vunpack.c.h.b16 %v27_v60  ;;  %v5300_v16 = vor.u32 %v7225_v3, %v5297_v5 }
  0x98   :  { %3794 = vmatpush.bf16.msra.mxu2 %v4852_v14  ;;  %v7289_v11 = vld [vmem:[%s11501_s1 + $0x5e4] sm:$0xf]  ;;  %v5553_v12 = vld [vmem:[%s11501_s1 + $0x5f0] sm:$0xf0]  ;;  %v4932_v14 = vor.u32 %v7133_v63, %v4929_v0  ;;  %v5428_v17 = vor.u32 %v7257_v6, %v5425_v7 }
  0x99   :  { %3807 = vmatpush.bf16.msra.mxu3 %v4980_v21  ;;  %v7189_v21 = vld [vmem:[%s11501_s1 + $0x2c4] sm:$0xf]  ;;  %v5153_v24 = vld [vmem:[%s11501_s1 + $0x2d0] sm:$0xf0]  ;;  %v5556_v27 = vor.u32 %v7289_v11, %v5553_v12 }
  0x9a   :  { %3769 = vmatpush.bf16.msra.mxu0 %v6880_v36  ;;  %v7221_v26 = vld [vmem:[%s11501_s1 + $0x3c4] sm:$0xf]  ;;  %v5281_v34 = vld [vmem:[%s11501_s1 + $0x3d0] sm:$0xf0]  ;;  %v5156_v45 = vor.u32 %v7189_v21, %v5153_v24 }
  0x9b   :  { %3782 = vmatpush.bf16.msra.mxu1 %v7008_v37  ;;  %v7253_v36 = vld [vmem:[%s11501_s1 + $0x4c4] sm:$0xf]  ;;  %v5409_v37 = vld [vmem:[%s11501_s1 + $0x4d0] sm:$0xf0] }
  0x9c   :  { %3795 = vmatpush.bf16.msra.mxu2 %v4836_v39  ;;  %v8787_v39 = vpack.c.b16 %v639_v13, %v639_v13  ;;  %v7285_v40 = vld [vmem:[%s11501_s1 + $0x5c4] sm:$0xf]  ;;  %v5537_v43 = vld [vmem:[%s11501_s1 + $0x5d0] sm:$0xf0]  ;;  %v5412_v47 = vor.u32 %v7253_v36, %v5409_v37 }
  0x9d   :  { %3808 = vmatpush.bf16.msra.mxu3 %v4964_v46  ;;  %v5284_v46 = vor.u32 %v7221_v26, %v5281_v34  ;;  %v7185_v48 = vld [vmem:[%s11501_s1 + $0x2a4] sm:$0xf]  ;;  %v5137_v49 = vld [vmem:[%s11501_s1 + $0x2b0] sm:$0xf0]  ;;  %v5540_v51 = vor.u32 %v7285_v40, %v5537_v43 }
  0x9e   :  { %3770 = vmatpush.bf16.msra.mxu0 %v6864_v52  ;;  %v7217_v50 = vld [vmem:[%s11501_s1 + $0x3a4] sm:$0xf]  ;;  %v5265_v52 = vld [vmem:[%s11501_s1 + $0x3b0] sm:$0xf0] }
  0x9f   :  { %3783 = vmatpush.bf16.msra.mxu1 %v6992_v56  ;;  %v7249_v53 = vld [vmem:[%s11501_s1 + $0x4a4] sm:$0xf]  ;;  %v5393_v54 = vld [vmem:[%s11501_s1 + $0x4b0] sm:$0xf0]  ;;  %v5268_v58 = vor.u32 %v7217_v50, %v5265_v52 }
  0xa0   :  { %3796 = vmatpush.bf16.msra.mxu2 %v4820_v57  ;;  %v7281_v55 = vld [vmem:[%s11501_s1 + $0x5a4] sm:$0xf]  ;;  %v5521_v56 = vld [vmem:[%s11501_s1 + $0x5b0] sm:$0xf0]  ;;  %v5140_v57 = vor.u32 %v7185_v48, %v5137_v49  ;;  %v5396_v59 = vor.u32 %v7249_v53, %v5393_v54 }
  0xa1   :  { %3809 = vmatpush.bf16.msra.mxu3 %v4948_v61  ;;  %v7181_v60 = vld [vmem:[%s11501_s1 + $0x284] sm:$0xf]  ;;  %v5121_v61 = vld [vmem:[%s11501_s1 + $0x290] sm:$0xf0]  ;;  %v5524_v63 = vor.u32 %v7281_v55, %v5521_v56 }
  0xa2   :  { %3771 = vmatpush.bf16.msra.mxu0 %v6848_v4  ;;  %v7213_v62 = vld [vmem:[%s11501_s1 + $0x384] sm:$0xf]  ;;  %v5249_v0 = vld [vmem:[%s11501_s1 + $0x390] sm:$0xf0]  ;;  %v5124_v5 = vor.u32 %v7181_v60, %v5121_v61 }
  0xa3   :  { %3784 = vmatpush.bf16.msra.mxu1 %v6976_v9  ;;  %v7245_v1 = vld [vmem:[%s11501_s1 + $0x484] sm:$0xf]  ;;  %v5377_v2 = vld [vmem:[%s11501_s1 + $0x490] sm:$0xf0]  ;;  %v5252_v8 = vor.u32 %v7213_v62, %v5249_v0 }
  0xa4   :  { %3797 = vmatpush.bf16.msra.mxu2 %v4804_v10  ;;  %v7277_v3 = vld [vmem:[%s11501_s1 + $0x584] sm:$0xf]  ;;  %v5505_v4 = vld [vmem:[%s11501_s1 + $0x590] sm:$0xf0]  ;;  %v5380_v9 = vor.u32 %v7245_v1, %v5377_v2 }
  0xa5   :  { %3810 = vmatpush.bf16.msra.mxu3 %v4932_v14  ;;  %3772 = vmatmul.bf16.vlgmr.msra.gmra.mxu0 %v8776_v32  ;;  %v7177_v6 = vld [vmem:[%s11501_s1 + $0x264] sm:$0xf]  ;;  %v5105_v7 = vld [vmem:[%s11501_s1 + $0x270] sm:$0xf0]  ;;  %v5508_v13 = vor.u32 %v7277_v3, %v5505_v4 }
  0xa6   :  { %3816 = vmatpush.bf16.msrb.mxu0 %v5172_v15  ;;  %3785 = vmatmul.bf16.vlgmr.msra.gmra.mxu1 %v8787_v39  ;;  %v7209_v10 = vld [vmem:[%s11501_s1 + $0x364] sm:$0xf]  ;;  %v5233_v11 = vld [vmem:[%s11501_s1 + $0x370] sm:$0xf0]  ;;  %v5108_v21 = vor.u32 %v7177_v6, %v5105_v7 }
  0xa7   :  { %3829 = vmatpush.bf16.msrb.mxu1 %v5300_v16  ;;  %3798 = vmatmul.bf16.vlgmr.msra.gmra.mxu2 %v8004_v19  ;;  %v7241_v12 = vld [vmem:[%s11501_s1 + $0x464] sm:$0xf]  ;;  %v5361_v14 = vld [vmem:[%s11501_s1 + $0x470] sm:$0xf0]  ;;  %v5236_v26 = vor.u32 %v7209_v10, %v5233_v11 }
  0xa8   :  { %3842 = vmatpush.bf16.msrb.mxu2 %v5428_v17  ;;  %3811 = vmatmul.bf16.vlgmr.msra.gmra.mxu3 %v8008_v22  ;;  %v14_v15 = vld [vmem:[%s11503_s2] ss:$4 sm:$0xf]  ;;  %v5489_v17 = vld [vmem:[%s11501_s1 + $0x570] sm:$0xf0] }
  0xa9   :  { %3855 = vmatpush.bf16.msrb.mxu3 %v5556_v27  ;;  %v7273_v16 = vld [vmem:[%s11501_s1 + $0x564] sm:$0xf]  ;;  %v5364_v27 = vor.u32 %v7241_v12, %v5361_v14  ;;  %v5089_v34 = vld [vmem:[%s11501_s1 + $0x250] sm:$0xf0]  ;;  %v605_v37 = vperm.slane %v14_v15, 0  ;;  %v3604_v15 = vpop.f32.mrf.mxu3 }
  0xaa   :  { %3817 = vmatpush.bf16.msrb.mxu0 %v5156_v45  ;;  %v7173_v24 = vld [vmem:[%s11501_s1 + $0x244] sm:$0xf]  ;;  %v5492_v40 = vor.u32 %v7273_v16, %v5489_v17  ;;  %v5217_v43 = vld [vmem:[%s11501_s1 + $0x350] sm:$0xf0] }
  0xab   :  { %3830 = vmatpush.bf16.msrb.mxu1 %v5284_v46  ;;  %v7205_v36 = vld [vmem:[%s11501_s1 + $0x344] sm:$0xf]  ;;  %v5345_v46 = vld [vmem:[%s11501_s1 + $0x450] sm:$0xf0]  ;;  %v5092_v49 = vor.u32 %v7173_v24, %v5089_v34 }
  0xac   :  { %3843 = vmatpush.bf16.msrb.mxu2 %v5412_v47  ;;  %v7237_v45 = vld [vmem:[%s11501_s1 + $0x444] sm:$0xf]  ;;  %v5473_v48 = vld [vmem:[%s11501_s1 + $0x550] sm:$0xf0] }
  0xad   :  { %3856 = vmatpush.bf16.msrb.mxu3 %v5540_v51  ;;  %v7269_v47 = vld [vmem:[%s11501_s1 + $0x544] sm:$0xf]  ;;  %v5220_v51 = vor.u32 %v7205_v36, %v5217_v43  ;;  %v5348_v52 = vor.u32 %v7237_v45, %v5345_v46  ;;  %v5073_v54 = vld [vmem:[%s11501_s1 + $0x230] sm:$0xf0] }
  0xae   :  { %3818 = vmatpush.bf16.msrb.mxu0 %v5140_v57  ;;  %v7169_v53 = vld [vmem:[%s11501_s1 + $0x224] sm:$0xf]  ;;  %v5329_v61 = vld [vmem:[%s11501_s1 + $0x430] sm:$0xf0] }
  0xaf   :  { %3831 = vmatpush.bf16.msrb.mxu1 %v5268_v58  ;;  %v3565_v50 = vpop.f32.mrf.mxu0  ;;  %v7201_v55 = vld [vmem:[%s11501_s1 + $0x324] sm:$0xf]  ;;  %v3578_v57 = vpop.f32.mrf.mxu1  ;;  %v5476_v58 = vor.u32 %v7269_v47, %v5473_v48  ;;  %v5076_v1 = vor.u32 %v7169_v53, %v5073_v54  ;;  %v5057_v3 = vld [vmem:[%s11501_s1 + $0x210] sm:$0xf0] }
  0xb0   :  { %3844 = vmatpush.bf16.msrb.mxu2 %v5396_v59  ;;  %v3566_v56 = vadd.f32 %v3565_v50, %v605_v37  ;;  %v5201_v59 = vld [vmem:[%s11501_s1 + $0x330] sm:$0xf0]  ;;  %v7233_v60 = vld [vmem:[%s11501_s1 + $0x424] sm:$0xf] }
  0xb1   :  { %3857 = vmatpush.bf16.msrb.mxu3 %v5524_v63  ;;  %v7265_v62 = vld [vmem:[%s11501_s1 + $0x524] sm:$0xf]  ;;  %v5457_v63 = vld [vmem:[%s11501_s1 + $0x530] sm:$0xf0]  ;;  %v5204_v4 = vor.u32 %v7201_v55, %v5201_v59 }
  0xb2   :  { %3819 = vmatpush.bf16.msrb.mxu0 %v5124_v5  ;;  %v3579_v0 = vadd.f32 %v3578_v57, %v3566_v56  ;;  %v7165_v2 = vld [vmem:[%s11501_s1 + $0x204] sm:$0xf]  ;;  %v5332_v5 = vor.u32 %v7233_v60, %v5329_v61  ;;  %v5185_v7 = vld [vmem:[%s11501_s1 + $0x310] sm:$0xf0]  ;;  %v5460_v10 = vor.u32 %v7265_v62, %v5457_v63  ;;  %v3606_v63 = vpop.f32.mrf.mxu3 }
  0xb3   :  { %3832 = vmatpush.bf16.msrb.mxu1 %v5252_v8  ;;  %v7197_v6 = vld [vmem:[%s11501_s1 + $0x304] sm:$0xf]  ;;  %v5313_v11 = vld [vmem:[%s11501_s1 + $0x410] sm:$0xf0]  ;;  %v5060_v24 = vor.u32 %v7165_v2, %v5057_v3 }
  0xb4   :  { %3845 = vmatpush.bf16.msrb.mxu2 %v5380_v9  ;;  %v7229_v8 = vld [vmem:[%s11501_s1 + $0x404] sm:$0xf]  ;;  %v3591_v9 = vpop.f32.mrf.mxu2  ;;  %v5681_v17 = vld [vmem:[%s11501_s1 + $0x6f0] sm:$0xf0] }
  0xb5   :  { %3858 = vmatpush.bf16.msrb.mxu3 %v5508_v13  ;;  %v7261_v12 = vld [vmem:[%s11501_s1 + $0x504] sm:$0xf]  ;;  %v5441_v13 = vld [vmem:[%s11501_s1 + $0x510] sm:$0xf0]  ;;  %v3592_v14 = vadd.f32 %v3591_v9, %v3579_v0  ;;  %v5316_v43 = vor.u32 %v7229_v8, %v5313_v11 }
  0xb6   :  { %3820 = vmatpush.bf16.msrb.mxu0 %v5108_v21  ;;  %v7321_v16 = vld [vmem:[%s11501_s1 + $0x6e4] sm:$0xf]  ;;  %v5937_v34 = vld [vmem:[%s11501_s1 + $0x8f0] sm:$0xf0]  ;;  %v5444_v48 = vor.u32 %v7261_v12, %v5441_v13 }
  0xb7   :  { %3833 = vmatpush.bf16.msrb.mxu1 %v5236_v26  ;;  %v7353_v21 = vld [vmem:[%s11501_s1 + $0x7e4] sm:$0xf]  ;;  %v5809_v26 = vld [vmem:[%s11501_s1 + $0x7f0] sm:$0xf0]  ;;  %v8964_v36 = vadd.f32 %v3604_v15, %v3592_v14  ;;  %v3567_v37 = vpop.f32.mrf.mxu0  ;;  %v3580_v47 = vpop.f32.mrf.mxu1 }
  0xb8   :  { %3846 = vmatpush.bf16.msrb.mxu2 %v5364_v27  ;;  %v7385_v27 = vld [vmem:[%s11501_s1 + $0x8e4] sm:$0xf]  ;;  %v6065_v46 = vld [vmem:[%s11501_s1 + $0x9f0] sm:$0xf0]  ;;  %v5812_v50 = vor.u32 %v7353_v21, %v5809_v26 }
  0xb9   :  { %3859 = vmatpush.bf16.msrb.mxu3 %v5492_v40  ;;  %v5188_v40 = vor.u32 %v7197_v6, %v5185_v7  ;;  %v7417_v45 = vld [vmem:[%s11501_s1 + $0x9e4] sm:$0xf]  ;;  %v5665_v53 = vld [vmem:[%s11501_s1 + $0x6d0] sm:$0xf0] }
  0xba   :  { %3821 = vmatpush.bf16.msrb.mxu0 %v5092_v49  ;;  %v5684_v49 = vor.u32 %v7321_v16, %v5681_v17  ;;  %v7349_v54 = vld [vmem:[%s11501_s1 + $0x7c4] sm:$0xf]  ;;  %v6068_v55 = vor.u32 %v7417_v45, %v6065_v46  ;;  %v5793_v56 = vld [vmem:[%s11501_s1 + $0x7d0] sm:$0xf0] }
  0xbb   :  { %3834 = vmatpush.bf16.msrb.mxu1 %v5220_v51  ;;  %v5940_v51 = vor.u32 %v7385_v27, %v5937_v34  ;;  %v7381_v57 = vld [vmem:[%s11501_s1 + $0x8c4] sm:$0xf]  ;;  %v6049_v60 = vld [vmem:[%s11501_s1 + $0x9d0] sm:$0xf0]  ;;  %v5796_v0 = vor.u32 %v7349_v54, %v5793_v56 }
  0xbc   :  { %3847 = vmatpush.bf16.msrb.mxu2 %v5348_v52  ;;  %v7317_v52 = vld [vmem:[%s11501_s1 + $0x6c4] sm:$0xf]  ;;  %v3593_v61 = vpop.f32.mrf.mxu2  ;;  %v5649_v3 = vld [vmem:[%s11501_s1 + $0x6b0] sm:$0xf0] }
  0xbd   :  { %3860 = vmatpush.bf16.msrb.mxu3 %v5476_v58  ;;  %v5921_v58 = vld [vmem:[%s11501_s1 + $0x8d0] sm:$0xf0]  ;;  %v7413_v59 = vld [vmem:[%s11501_s1 + $0x9c4] sm:$0xf]  ;;  %v5668_v62 = vor.u32 %v7317_v52, %v5665_v53 }
  0xbe   :  { %3822 = vmatpush.bf16.msrb.mxu0 %v5076_v1  ;;  %v5924_v1 = vor.u32 %v7381_v57, %v5921_v58  ;;  %v7313_v2 = vld [vmem:[%s11501_s1 + $0x6a4] sm:$0xf]  ;;  %v5777_v6 = vld [vmem:[%s11501_s1 + $0x7b0] sm:$0xf0] }
  0xbf   :  { %3835 = vmatpush.bf16.msrb.mxu1 %v5204_v4  ;;  %v7345_v4 = vld [vmem:[%s11501_s1 + $0x7a4] sm:$0xf]  ;;  %v5905_v8 = vld [vmem:[%s11501_s1 + $0x8b0] sm:$0xf0]  ;;  %v5652_v11 = vor.u32 %v7313_v2, %v5649_v3 }
  0xc0   :  { %3848 = vmatpush.bf16.msrb.mxu2 %v5332_v5  ;;  %v6052_v5 = vor.u32 %v7413_v59, %v6049_v60  ;;  %v7377_v7 = vld [vmem:[%s11501_s1 + $0x8a4] sm:$0xf]  ;;  %v5780_v12 = vor.u32 %v7345_v4, %v5777_v6  ;;  %v5633_v15 = vld [vmem:[%s11501_s1 + $0x690] sm:$0xf0] }
  0xc1   :  { %3861 = vmatpush.bf16.msrb.mxu3 %v5460_v10  ;;  %v7409_v9 = vld [vmem:[%s11501_s1 + $0x9a4] sm:$0xf]  ;;  %v6033_v10 = vld [vmem:[%s11501_s1 + $0x9b0] sm:$0xf0]  ;;  %v5908_v13 = vor.u32 %v7377_v7, %v5905_v8 }
  0xc2   :  { %3823 = vmatpush.bf16.msrb.mxu0 %v5060_v24  ;;  %v7309_v14 = vld [vmem:[%s11501_s1 + $0x684] sm:$0xf]  ;;  %v6036_v17 = vor.u32 %v7409_v9, %v6033_v10  ;;  %v5761_v21 = vld [vmem:[%s11501_s1 + $0x790] sm:$0xf0] }
  0xc3   :  { %3836 = vmatpush.bf16.msrb.mxu1 %v5188_v40  ;;  %v7341_v16 = vld [vmem:[%s11501_s1 + $0x784] sm:$0xf]  ;;  %v5889_v26 = vld [vmem:[%s11501_s1 + $0x890] sm:$0xf0]  ;;  %v5636_v37 = vor.u32 %v7309_v14, %v5633_v15  ;;  %v3617_v40 = vpop.f32.mrf.mxu0 }
  0xc4   :  { %3849 = vmatpush.bf16.msrb.mxu2 %v5316_v43  ;;  %v7373_v24 = vld [vmem:[%s11501_s1 + $0x884] sm:$0xf]  ;;  %v6017_v34 = vld [vmem:[%s11501_s1 + $0x990] sm:$0xf0]  ;;  %v5764_v43 = vor.u32 %v7341_v16, %v5761_v21 }
  0xc5   :  { %3862 = vmatpush.bf16.msrb.mxu3 %v5444_v48  ;;  %3824 = vmatmul.bf16.vlgmr.msrb.gmra.mxu0 %v8002_v18  ;;  %v7405_v27 = vld [vmem:[%s11501_s1 + $0x984] sm:$0xf]  ;;  %v5892_v45 = vor.u32 %v7373_v24, %v5889_v26  ;;  %v5617_v47 = vld [vmem:[%s11501_s1 + $0x670] sm:$0xf0] }
  0xc6   :  { %3868 = vmatpush.bf16.msra.mxu0 %v5684_v49  ;;  %3837 = vmatmul.bf16.vlgmr.msrb.gmra.mxu1 %v8006_v20  ;;  %v7305_v46 = vld [vmem:[%s11501_s1 + $0x664] sm:$0xf]  ;;  %v3618_v49 = vadd.f32 %v3617_v40, %v8964_v36  ;;  %v5745_v52 = vld [vmem:[%s11501_s1 + $0x770] sm:$0xf0] }
  0xc7   :  { %3881 = vmatpush.bf16.msra.mxu1 %v5812_v50  ;;  %3850 = vmatmul.bf16.vlgmr.msrb.gmra.mxu2 %v8166_v41  ;;  %v7337_v48 = vld [vmem:[%s11501_s1 + $0x764] sm:$0xf]  ;;  %v3630_v50 = vpop.f32.mrf.mxu1  ;;  %v5873_v54 = vld [vmem:[%s11501_s1 + $0x870] sm:$0xf0]  ;;  %v5620_v57 = vor.u32 %v7305_v46, %v5617_v47 }
  0xc8   :  { %3894 = vmatpush.bf16.msra.mxu2 %v5940_v51  ;;  %3863 = vmatmul.bf16.vlgmr.msrb.gmra.mxu3 %v8170_v44  ;;  %v6020_v51 = vor.u32 %v7405_v27, %v6017_v34  ;;  %v7369_v53 = vld [vmem:[%s11501_s1 + $0x864] sm:$0xf]  ;;  %v6001_v36 = vld [vmem:[%s11501_s1 + $0x970] sm:$0xf0]  ;;  %v3631_v56 = vadd.f32 %v3630_v50, %v3618_v49  ;;  %v5748_v58 = vor.u32 %v7337_v48, %v5745_v52 }
  0xc9   :  { %3907 = vmatpush.bf16.msra.mxu3 %v6068_v55  ;;  %v7401_v55 = vld [vmem:[%s11501_s1 + $0x964] sm:$0xf]  ;;  %v5876_v59 = vor.u32 %v7369_v53, %v5873_v54  ;;  %v5601_v61 = vld [vmem:[%s11501_s1 + $0x650] sm:$0xf0]  ;;  %v3643_v63 = vpop.f32.mrf.mxu2 }
  0xca   :  { %3869 = vmatpush.bf16.msra.mxu0 %v5668_v62  ;;  %v7301_v60 = vld [vmem:[%s11501_s1 + $0x644] sm:$0xf]  ;;  %v5857_v3 = vld [vmem:[%s11501_s1 + $0x850] sm:$0xf0]  ;;  %v3644_v4 = vadd.f32 %v3643_v63, %v3631_v56 }
  0xcb   :  { %3882 = vmatpush.bf16.msra.mxu1 %v5796_v0  ;;  %v7333_v62 = vld [vmem:[%s11501_s1 + $0x744] sm:$0xf]  ;;  %v6004_v0 = vor.u32 %v7401_v55, %v6001_v36  ;;  %v5985_v7 = vld [vmem:[%s11501_s1 + $0x950] sm:$0xf0]  ;;  %v5604_v8 = vor.u32 %v7301_v60, %v5601_v61  ;;  %v3619_v10 = vpop.f32.mrf.mxu0 }
  0xcc   :  { %3895 = vmatpush.bf16.msra.mxu2 %v5924_v1  ;;  %v5729_v1 = vld [vmem:[%s11501_s1 + $0x750] sm:$0xf0]  ;;  %v7365_v2 = vld [vmem:[%s11501_s1 + $0x844] sm:$0xf] }
  0xcd   :  { %3908 = vmatpush.bf16.msra.mxu3 %v6052_v5  ;;  %v3656_v5 = vpop.f32.mrf.mxu3  ;;  %v7397_v6 = vld [vmem:[%s11501_s1 + $0x944] sm:$0xf]  ;;  %v5585_v14 = vld [vmem:[%s11501_s1 + $0x630] sm:$0xf0] }
  0xce   :  { %3870 = vmatpush.bf16.msra.mxu0 %v5652_v11  ;;  %v9097_v9 = vadd.f32 %v3656_v5, %v3644_v4  ;;  %v5732_v11 = vor.u32 %v7333_v62, %v5729_v1  ;;  %v7329_v15 = vld [vmem:[%s11501_s1 + $0x724] sm:$0xf]  ;;  %v5713_v21 = vld [vmem:[%s11501_s1 + $0x730] sm:$0xf0] }
  0xcf   :  { %3883 = vmatpush.bf16.msra.mxu1 %v5780_v12  ;;  %v5860_v12 = vor.u32 %v7365_v2, %v5857_v3  ;;  %v3632_v16 = vpop.f32.mrf.mxu1  ;;  %v7361_v24 = vld [vmem:[%s11501_s1 + $0x824] sm:$0xf]  ;;  %v5841_v26 = vld [vmem:[%s11501_s1 + $0x830] sm:$0xf0] }
  0xd0   :  { %3896 = vmatpush.bf16.msra.mxu2 %v5908_v13  ;;  %v7297_v13 = vld [vmem:[%s11501_s1 + $0x624] sm:$0xf]  ;;  %v5969_v34 = vld [vmem:[%s11501_s1 + $0x930] sm:$0xf0]  ;;  %v5844_v46 = vor.u32 %v7361_v24, %v5841_v26 }
  0xd1   :  { %3909 = vmatpush.bf16.msra.mxu3 %v6036_v17  ;;  %v5988_v17 = vor.u32 %v7397_v6, %v5985_v7  ;;  %v7393_v27 = vld [vmem:[%s11501_s1 + $0x924] sm:$0xf]  ;;  %v5697_v48 = vld [vmem:[%s11501_s1 + $0x710] sm:$0xf0]  ;;  %v3645_v50 = vpop.f32.mrf.mxu2 }
  0xd2   :  { %3871 = vmatpush.bf16.msra.mxu0 %v5636_v37  ;;  %v5588_v37 = vor.u32 %v7297_v13, %v5585_v14  ;;  %v7293_v40 = vld [vmem:[%s11501_s1 + $0x604] sm:$0xf]  ;;  %v5825_v52 = vld [vmem:[%s11501_s1 + $0x810] sm:$0xf0] }
  0xd3   :  { %3884 = vmatpush.bf16.msra.mxu1 %v5764_v43  ;;  %v5569_v43 = vld [vmem:[%s11501_s1 + $0x610] sm:$0xf0]  ;;  %v7325_v47 = vld [vmem:[%s11501_s1 + $0x704] sm:$0xf] }
  0xd4   :  { %3897 = vmatpush.bf16.msra.mxu2 %v5892_v45  ;;  %v5716_v45 = vor.u32 %v7329_v15, %v5713_v21  ;;  %v7357_v49 = vld [vmem:[%s11501_s1 + $0x804] sm:$0xf]  ;;  %v5953_v54 = vld [vmem:[%s11501_s1 + $0x910] sm:$0xf0]  ;;  %v5700_v62 = vor.u32 %v7325_v47, %v5697_v48 }
  0xd5   :  { %3910 = vmatpush.bf16.msra.mxu3 %v6020_v51  ;;  %v5972_v51 = vor.u32 %v7393_v27, %v5969_v34  ;;  %v7389_v53 = vld [vmem:[%s11501_s1 + $0x904] sm:$0xf]  ;;  %v3658_v55 = vpop.f32.mrf.mxu3  ;;  %v6193_v56 = vld [vmem:[%s11501_s1 + $0xaf0] sm:$0xf0]  ;;  %v5828_v63 = vor.u32 %v7357_v49, %v5825_v52 }
  0xd6   :  { %3872 = vmatpush.bf16.msra.mxu0 %v5620_v57  ;;  %v7449_v36 = vld [vmem:[%s11501_s1 + $0xae4] sm:$0xf]  ;;  %v6449_v61 = vld [vmem:[%s11501_s1 + $0xcf0] sm:$0xf0]  ;;  %v5956_v2 = vor.u32 %v7389_v53, %v5953_v54 }
  0xd7   :  { %3885 = vmatpush.bf16.msra.mxu1 %v5748_v58  ;;  %v7481_v57 = vld [vmem:[%s11501_s1 + $0xbe4] sm:$0xf]  ;;  %v5572_v58 = vor.u32 %v7293_v40, %v5569_v43  ;;  %v6577_v1 = vld [vmem:[%s11501_s1 + $0xdf0] sm:$0xf0]  ;;  %v6196_v3 = vor.u32 %v7449_v36, %v6193_v56 }
  0xd8   :  { %3898 = vmatpush.bf16.msra.mxu2 %v5876_v59  ;;  %v6321_v59 = vld [vmem:[%s11501_s1 + $0xbf0] sm:$0xf0]  ;;  %v7513_v60 = vld [vmem:[%s11501_s1 + $0xce4] sm:$0xf] }
  0xd9   :  { %3911 = vmatpush.bf16.msra.mxu3 %v6004_v0  ;;  %v7545_v0 = vld [vmem:[%s11501_s1 + $0xde4] sm:$0xf]  ;;  %v6324_v4 = vor.u32 %v7481_v57, %v6321_v59  ;;  %v6452_v5 = vor.u32 %v7513_v60, %v6449_v61  ;;  %v6177_v7 = vld [vmem:[%s11501_s1 + $0xad0] sm:$0xf0] }
  0xda   :  { %3873 = vmatpush.bf16.msra.mxu0 %v5604_v8  ;;  %v7445_v6 = vld [vmem:[%s11501_s1 + $0xac4] sm:$0xf]  ;;  %v6580_v10 = vor.u32 %v7545_v0, %v6577_v1  ;;  %v6433_v13 = vld [vmem:[%s11501_s1 + $0xcd0] sm:$0xf0] }
  0xdb   :  { %3886 = vmatpush.bf16.msra.mxu1 %v5732_v11  ;;  %v7477_v8 = vld [vmem:[%s11501_s1 + $0xbc4] sm:$0xf]  ;;  %v6305_v11 = vld [vmem:[%s11501_s1 + $0xbd0] sm:$0xf0]  ;;  %v6180_v16 = vor.u32 %v7445_v6, %v6177_v7 }
  0xdc   :  { %3899 = vmatpush.bf16.msra.mxu2 %v5860_v12  ;;  %v7509_v12 = vld [vmem:[%s11501_s1 + $0xcc4] sm:$0xf]  ;;  %v6561_v15 = vld [vmem:[%s11501_s1 + $0xdd0] sm:$0xf0] }
  0xdd   :  { %3912 = vmatpush.bf16.msra.mxu3 %v5988_v17  ;;  %v7541_v14 = vld [vmem:[%s11501_s1 + $0xdc4] sm:$0xf]  ;;  %v6308_v17 = vor.u32 %v7477_v8, %v6305_v11  ;;  %v6436_v21 = vor.u32 %v7509_v12, %v6433_v13  ;;  %v6161_v26 = vld [vmem:[%s11501_s1 + $0xab0] sm:$0xf0] }
  0xde   :  { %3874 = vmatpush.bf16.msra.mxu0 %v5588_v37  ;;  %v7441_v24 = vld [vmem:[%s11501_s1 + $0xaa4] sm:$0xf]  ;;  %v6564_v34 = vor.u32 %v7541_v14, %v6561_v15  ;;  %v6289_v37 = vld [vmem:[%s11501_s1 + $0xbb0] sm:$0xf0] }
  0xdf   :  { %3887 = vmatpush.bf16.msra.mxu1 %v5716_v45  ;;  %v7473_v27 = vld [vmem:[%s11501_s1 + $0xba4] sm:$0xf]  ;;  %v6417_v43 = vld [vmem:[%s11501_s1 + $0xcb0] sm:$0xf0]  ;;  %v6164_v47 = vor.u32 %v7441_v24, %v6161_v26 }
  0xe0   :  { %3900 = vmatpush.bf16.msra.mxu2 %v5844_v46  ;;  %v7505_v40 = vld [vmem:[%s11501_s1 + $0xca4] sm:$0xf]  ;;  %v6545_v46 = vld [vmem:[%s11501_s1 + $0xdb0] sm:$0xf0]  ;;  %v6292_v48 = vor.u32 %v7473_v27, %v6289_v37 }
  0xe1   :  { %3913 = vmatpush.bf16.msra.mxu3 %v5972_v51  ;;  %v7537_v45 = vld [vmem:[%s11501_s1 + $0xda4] sm:$0xf]  ;;  %v6420_v49 = vor.u32 %v7505_v40, %v6417_v43  ;;  %v6145_v51 = vld [vmem:[%s11501_s1 + $0xa90] sm:$0xf0] }
  0xe2   :  { %3875 = vmatpush.bf16.msra.mxu0 %v5572_v58  ;;  %v7437_v50 = vld [vmem:[%s11501_s1 + $0xa84] sm:$0xf]  ;;  %v6548_v53 = vor.u32 %v7537_v45, %v6545_v46  ;;  %v6273_v54 = vld [vmem:[%s11501_s1 + $0xb90] sm:$0xf0] }
  0xe3   :  { %3888 = vmatpush.bf16.msra.mxu1 %v5700_v62  ;;  %v7469_v52 = vld [vmem:[%s11501_s1 + $0xb84] sm:$0xf]  ;;  %v6401_v36 = vld [vmem:[%s11501_s1 + $0xc90] sm:$0xf0]  ;;  %v6148_v59 = vor.u32 %v7437_v50, %v6145_v51 }
  0xe4   :  { %3901 = vmatpush.bf16.msra.mxu2 %v5828_v63  ;;  %v7501_v55 = vld [vmem:[%s11501_s1 + $0xc84] sm:$0xf]  ;;  %v9241_v56 = vpop.f32.mrf.mxu0  ;;  %v6529_v58 = vld [vmem:[%s11501_s1 + $0xd90] sm:$0xf0]  ;;  %v6276_v61 = vor.u32 %v7469_v52, %v6273_v54 }
  0xe5   :  { %3914 = vmatpush.bf16.msra.mxu3 %v5956_v2  ;;  %3876 = vmatmul.bf16.vlgmr.msra.gmra.mxu0 %v8158_v38  ;;  %v7533_v57 = vld [vmem:[%s11501_s1 + $0xd84] sm:$0xf]  ;;  %v9249_v60 = vpop.f32.mrf.mxu1  ;;  %v6404_v62 = vor.u32 %v7501_v55, %v6401_v36  ;;  %v6129_v0 = vld [vmem:[%s11501_s1 + $0xa70] sm:$0xf0] }
  0xe6   :  { %3920 = vmatpush.bf16.msrb.mxu0 %v6196_v3  ;;  %3889 = vmatmul.bf16.vlgmr.msra.gmra.mxu1 %v8168_v42  ;;  %v7433_v63 = vld [vmem:[%s11501_s1 + $0xa64] sm:$0xf]  ;;  %v6532_v2 = vor.u32 %v7533_v57, %v6529_v58  ;;  %v6257_v3 = vld [vmem:[%s11501_s1 + $0xb70] sm:$0xf0] }
  0xe7   :  { %3933 = vmatpush.bf16.msrb.mxu1 %v6324_v4  ;;  %3902 = vmatmul.bf16.vlgmr.msra.gmra.mxu2 %v8359_v25  ;;  %v7465_v1 = vld [vmem:[%s11501_s1 + $0xb64] sm:$0xf]  ;;  %v6513_v7 = vld [vmem:[%s11501_s1 + $0xd70] sm:$0xf0]  ;;  %v6132_v8 = vor.u32 %v7433_v63, %v6129_v0 }
  0xe8   :  { %3946 = vmatpush.bf16.msrb.mxu2 %v6452_v5  ;;  %3915 = vmatmul.bf16.vlgmr.msra.gmra.mxu3 %v8372_v30  ;;  %v7497_v4 = vld [vmem:[%s11501_s1 + $0xc64] sm:$0xf]  ;;  %v6385_v5 = vld [vmem:[%s11501_s1 + $0xc70] sm:$0xf0] }
  0xe9   :  { %3959 = vmatpush.bf16.msrb.mxu3 %v6580_v10  ;;  %v7529_v6 = vld [vmem:[%s11501_s1 + $0xd64] sm:$0xf]  ;;  %v6260_v10 = vor.u32 %v7465_v1, %v6257_v3  ;;  %v6388_v11 = vor.u32 %v7497_v4, %v6385_v5  ;;  %v6113_v13 = vld [vmem:[%s11501_s1 + $0xa50] sm:$0xf0] }
  0xea   :  { %3921 = vmatpush.bf16.msrb.mxu0 %v6180_v16  ;;  %v7429_v12 = vld [vmem:[%s11501_s1 + $0xa44] sm:$0xf]  ;;  %v6516_v15 = vor.u32 %v7529_v6, %v6513_v7  ;;  %v9284_v16 = vpop.f32.mrf.mxu2  ;;  %v6369_v24 = vld [vmem:[%s11501_s1 + $0xc50] sm:$0xf0] }
  0xeb   :  { %3934 = vmatpush.bf16.msrb.mxu1 %v6308_v17  ;;  %v7461_v14 = vld [vmem:[%s11501_s1 + $0xb44] sm:$0xf]  ;;  %v6241_v17 = vld [vmem:[%s11501_s1 + $0xb50] sm:$0xf0]  ;;  %v6116_v40 = vor.u32 %v7429_v12, %v6113_v13 }
  0xec   :  { %3947 = vmatpush.bf16.msrb.mxu2 %v6436_v21  ;;  %v7493_v21 = vld [vmem:[%s11501_s1 + $0xc44] sm:$0xf]  ;;  %v3671_v37 = vpop.f32.mrf.mxu0  ;;  %v6244_v45 = vor.u32 %v7461_v14, %v6241_v17  ;;  %v6225_v51 = vld [vmem:[%s11501_s1 + $0xb30] sm:$0xf0] }
  0xed   :  { %3960 = vmatpush.bf16.msrb.mxu3 %v6564_v34  ;;  %v9295_v26 = vpop.f32.mrf.mxu3  ;;  %v7525_v27 = vld [vmem:[%s11501_s1 + $0xd44] sm:$0xf]  ;;  %v6497_v34 = vld [vmem:[%s11501_s1 + $0xd50] sm:$0xf0]  ;;  %v3684_v43 = vpop.f32.mrf.mxu1  ;;  %v6372_v46 = vor.u32 %v7493_v21, %v6369_v24 }
  0xee   :  { %3922 = vmatpush.bf16.msrb.mxu0 %v6164_v47  ;;  %v7425_v47 = vld [vmem:[%s11501_s1 + $0xa24] sm:$0xf]  ;;  %v6500_v50 = vor.u32 %v7525_v27, %v6497_v34  ;;  %v6481_v55 = vld [vmem:[%s11501_s1 + $0xd30] sm:$0xf0] }
  0xef   :  { %3935 = vmatpush.bf16.msrb.mxu1 %v6292_v48  ;;  %v6097_v48 = vld [vmem:[%s11501_s1 + $0xa30] sm:$0xf0]  ;;  %v7489_v52 = vld [vmem:[%s11501_s1 + $0xc24] sm:$0xf] }
  0xf0   :  { %3948 = vmatpush.bf16.msrb.mxu2 %v6420_v49  ;;  %v7457_v49 = vld [vmem:[%s11501_s1 + $0xb24] sm:$0xf]  ;;  %v6100_v36 = vor.u32 %v7425_v47, %v6097_v48  ;;  %v6081_v58 = vld [vmem:[%s11501_s1 + $0xa10] sm:$0xf0] }
  0xf1   :  { %3961 = vmatpush.bf16.msrb.mxu3 %v6548_v53  ;;  %v6353_v53 = vld [vmem:[%s11501_s1 + $0xc30] sm:$0xf0]  ;;  %v7521_v54 = vld [vmem:[%s11501_s1 + $0xd24] sm:$0xf] }
  0xf2   :  { %3923 = vmatpush.bf16.msrb.mxu0 %v6148_v59  ;;  %v7421_v57 = vld [vmem:[%s11501_s1 + $0xa04] sm:$0xf]  ;;  %v6228_v59 = vor.u32 %v7457_v49, %v6225_v51  ;;  %v6209_v63 = vld [vmem:[%s11501_s1 + $0xb10] sm:$0xf0]  ;;  %v6484_v1 = vor.u32 %v7521_v54, %v6481_v55  ;;  %v3697_v5 = vpop.f32.mrf.mxu2 }
  0xf3   :  { %3936 = vmatpush.bf16.msrb.mxu1 %v6276_v61  ;;  %v6356_v61 = vor.u32 %v7489_v52, %v6353_v53  ;;  %v7485_v0 = vld [vmem:[%s11501_s1 + $0xc04] sm:$0xf]  ;;  %v6465_v4 = vld [vmem:[%s11501_s1 + $0xd10] sm:$0xf0] }
  0xf4   :  { %3949 = vmatpush.bf16.msrb.mxu2 %v6404_v62  ;;  %v7453_v62 = vld [vmem:[%s11501_s1 + $0xb04] sm:$0xf]  ;;  %v6705_v7 = vld [vmem:[%s11501_s1 + $0xef0] sm:$0xf0] }
  0xf5   :  { %3962 = vmatpush.bf16.msrb.mxu3 %v6532_v2  ;;  %v6337_v2 = vld [vmem:[%s11501_s1 + $0xc10] sm:$0xf0]  ;;  %v7517_v3 = vld [vmem:[%s11501_s1 + $0xd04] sm:$0xf] }
  0xf6   :  { %3924 = vmatpush.bf16.msrb.mxu0 %v6132_v8  ;;  %v7577_v6 = vld [vmem:[%s11501_s1 + $0xee4] sm:$0xf]  ;;  %v6833_v12 = vld [vmem:[%s11501_s1 + $0xff0] sm:$0xf0]  ;;  %v6340_v17 = vor.u32 %v7485_v0, %v6337_v2  ;;  %v6468_v27 = vor.u32 %v7517_v3, %v6465_v4 }
  0xf7   :  { %3937 = vmatpush.bf16.msrb.mxu1 %v6260_v10  ;;  %v7609_v8 = vld [vmem:[%s11501_s1 + $0xfe4] sm:$0xf]  ;;  %v3710_v10 = vpop.f32.mrf.mxu3  ;;  %v6961_v14 = vld [vmem:[%s11501_s1 + $0x10f0] sm:$0xf0]  ;;  %v6708_v34 = vor.u32 %v7577_v6, %v6705_v7 }
  0xf8   :  { %3950 = vmatpush.bf16.msrb.mxu2 %v6388_v11  ;;  %v6084_v11 = vor.u32 %v7421_v57, %v6081_v58  ;;  %v7641_v13 = vld [vmem:[%s11501_s1 + $0x10e4] sm:$0xf]  ;;  %v7089_v24 = vld [vmem:[%s11501_s1 + $0x11f0] sm:$0xf0]  ;;  %v6836_v37 = vor.u32 %v7609_v8, %v6833_v12 }
  0xf9   :  { %3963 = vmatpush.bf16.msrb.mxu3 %v6516_v15  ;;  %v6212_v15 = vor.u32 %v7453_v62, %v6209_v63  ;;  %v7673_v21 = vld [vmem:[%s11501_s1 + $0x11e4] sm:$0xf]  ;;  %v6817_v48 = vld [vmem:[%s11501_s1 + $0xfd0] sm:$0xf0] }
  0xfa   :  { %3925 = vmatpush.bf16.msrb.mxu0 %v6116_v40  ;;  %v6964_v40 = vor.u32 %v7641_v13, %v6961_v14  ;;  %v7573_v43 = vld [vmem:[%s11501_s1 + $0xec4] sm:$0xf]  ;;  %v7092_v47 = vor.u32 %v7673_v21, %v7089_v24  ;;  %v7073_v52 = vld [vmem:[%s11501_s1 + $0x11d0] sm:$0xf0] }
  0xfb   :  { %3938 = vmatpush.bf16.msrb.mxu1 %v6244_v45  ;;  %v6689_v45 = vld [vmem:[%s11501_s1 + $0xed0] sm:$0xf0]  ;;  %v7637_v49 = vld [vmem:[%s11501_s1 + $0x10c4] sm:$0xf] }
  0xfc   :  { %3951 = vmatpush.bf16.msrb.mxu2 %v6372_v46  ;;  %v7605_v46 = vld [vmem:[%s11501_s1 + $0xfc4] sm:$0xf]  ;;  %v6692_v53 = vor.u32 %v7573_v43, %v6689_v45  ;;  %v6673_v57 = vld [vmem:[%s11501_s1 + $0xeb0] sm:$0xf0] }
  0xfd   :  { %3964 = vmatpush.bf16.msrb.mxu3 %v6500_v50  ;;  %v6945_v50 = vld [vmem:[%s11501_s1 + $0x10d0] sm:$0xf0]  ;;  %v7669_v51 = vld [vmem:[%s11501_s1 + $0x11c4] sm:$0xf]  ;;  %v6820_v54 = vor.u32 %v7605_v46, %v6817_v48 }
  0xfe   :  { %3926 = vmatpush.bf16.msrb.mxu0 %v6100_v36  ;;  %v6948_v55 = vor.u32 %v7637_v49, %v6945_v50  ;;  %v7569_v36 = vld [vmem:[%s11501_s1 + $0xea4] sm:$0xf]  ;;  %v6929_v63 = vld [vmem:[%s11501_s1 + $0x10b0] sm:$0xf0] }
  0xff   :  { %3939 = vmatpush.bf16.msrb.mxu1 %v6228_v59  ;;  %v7601_v58 = vld [vmem:[%s11501_s1 + $0xfa4] sm:$0xf]  ;;  %v7076_v59 = vor.u32 %v7669_v51, %v7073_v52  ;;  %v6676_v2 = vor.u32 %v7569_v36, %v6673_v57  ;;  %v6657_v6 = vld [vmem:[%s11501_s1 + $0xe90] sm:$0xf0]  ;;  %v3670_v36 = vadd.f32 %v9241_v56, %v9097_v9 }
 0x100   :  { %3952 = vmatpush.bf16.msrb.mxu2 %v6356_v61  ;;  %v6801_v61 = vld [vmem:[%s11501_s1 + $0xfb0] sm:$0xf0]  ;;  %v7633_v62 = vld [vmem:[%s11501_s1 + $0x10a4] sm:$0xf] }
 0x101   :  { %3965 = vmatpush.bf16.msrb.mxu3 %v6484_v1  ;;  %v7665_v0 = vld [vmem:[%s11501_s1 + $0x11a4] sm:$0xf]  ;;  %v7057_v1 = vld [vmem:[%s11501_s1 + $0x11b0] sm:$0xf0]  ;;  %v6804_v3 = vor.u32 %v7601_v58, %v6801_v61  ;;  %v6932_v4 = vor.u32 %v7633_v62, %v6929_v63 }
 0x102   :  { %3927 = vmatpush.bf16.msrb.mxu0 %v6084_v11  ;;  %v7565_v5 = vld [vmem:[%s11501_s1 + $0xe84] sm:$0xf]  ;;  %v7060_v8 = vor.u32 %v7665_v0, %v7057_v1  ;;  %v6785_v10 = vld [vmem:[%s11501_s1 + $0xf90] sm:$0xf0] }
 0x103   :  { %3940 = vmatpush.bf16.msrb.mxu1 %v6212_v15  ;;  %v7597_v7 = vld [vmem:[%s11501_s1 + $0xf84] sm:$0xf]  ;;  %v6913_v12 = vld [vmem:[%s11501_s1 + $0x1090] sm:$0xf0]  ;;  %v9453_v21 = vpop.f32.mrf.mxu1 }
 0x104   :  { %3953 = vmatpush.bf16.msrb.mxu2 %v6340_v17  ;;  %v7629_v11 = vld [vmem:[%s11501_s1 + $0x1084] sm:$0xf]  ;;  %v9445_v13 = vpop.f32.mrf.mxu0  ;;  %v7041_v15 = vld [vmem:[%s11501_s1 + $0x1190] sm:$0xf0]  ;;  %v6660_v17 = vor.u32 %v7565_v5, %v6657_v6  ;;  %v6788_v24 = vor.u32 %v7597_v7, %v6785_v10 }
 0x105   :  { %3966 = vmatpush.bf16.msrb.mxu3 %v6468_v27  ;;  %3928 = vmatmul.bf16.vlgmr.msrb.gmra.mxu0 %v8370_v29  ;;  %v7661_v14 = vld [vmem:[%s11501_s1 + $0x1184] sm:$0xf]  ;;  %v6916_v27 = vor.u32 %v7629_v11, %v6913_v12  ;;  %v6769_v45 = vld [vmem:[%s11501_s1 + $0xf70] sm:$0xf0] }
 0x106   :  { %3972 = vmatpush.bf16.msra.mxu0 %v6708_v34  ;;  %3941 = vmatmul.bf16.vlgmr.msrb.gmra.mxu1 %v8380_v33  ;;  %v7561_v34 = vld [vmem:[%s11501_s1 + $0xe64] sm:$0xf]  ;;  %v7044_v43 = vor.u32 %v7661_v14, %v7041_v15  ;;  %v7025_v49 = vld [vmem:[%s11501_s1 + $0x1170] sm:$0xf0] }
 0x107   :  { %3985 = vmatpush.bf16.msra.mxu1 %v6836_v37  ;;  %3954 = vmatmul.bf16.vlgmr.msrb.gmra.mxu2 %v8569_v23  ;;  %v6641_v37 = vld [vmem:[%s11501_s1 + $0xe70] sm:$0xf0]  ;;  %v7625_v46 = vld [vmem:[%s11501_s1 + $0x1064] sm:$0xf] }
 0x108   :  { %3998 = vmatpush.bf16.msra.mxu2 %v6964_v40  ;;  %3967 = vmatmul.bf16.vlgmr.msrb.gmra.mxu3 %v8582_v31  ;;  %v7593_v40 = vld [vmem:[%s11501_s1 + $0xf64] sm:$0xf]  ;;  %v6644_v50 = vor.u32 %v7561_v34, %v6641_v37  ;;  %v6881_v62 = vld [vmem:[%s11501_s1 + $0x1050] sm:$0xf0] }
 0x109   :  { %4011 = vmatpush.bf16.msra.mxu3 %v7092_v47  ;;  %v6897_v47 = vld [vmem:[%s11501_s1 + $0x1070] sm:$0xf0]  ;;  %v7657_v48 = vld [vmem:[%s11501_s1 + $0x1164] sm:$0xf]  ;;  %v6772_v51 = vor.u32 %v7593_v40, %v6769_v45 }
 0x10a   :  { %3973 = vmatpush.bf16.msra.mxu0 %v6692_v53  ;;  %v6900_v52 = vor.u32 %v7625_v46, %v6897_v47  ;;  %v7557_v53 = vld [vmem:[%s11501_s1 + $0xe44] sm:$0xf]  ;;  %v7028_v57 = vor.u32 %v7657_v48, %v7025_v49  ;;  %v7009_v56 = vld [vmem:[%s11501_s1 + $0x1150] sm:$0xf0] }
 0x10b   :  { %3986 = vmatpush.bf16.msra.mxu1 %v6820_v54  ;;  %v6625_v54 = vld [vmem:[%s11501_s1 + $0xe50] sm:$0xf0]  ;;  %v7621_v61 = vld [vmem:[%s11501_s1 + $0x1044] sm:$0xf]  ;;  %v9501_v63 = vpop.f32.mrf.mxu3 }
 0x10c   :  { %3999 = vmatpush.bf16.msra.mxu2 %v6948_v55  ;;  %v7589_v55 = vld [vmem:[%s11501_s1 + $0xf44] sm:$0xf]  ;;  %v9490_v58 = vpop.f32.mrf.mxu2  ;;  %v3723_v0 = vpop.f32.mrf.mxu0  ;;  %v6628_v1 = vor.u32 %v7557_v53, %v6625_v54  ;;  %v6609_v6 = vld [vmem:[%s11501_s1 + $0xe30] sm:$0xf0]  ;;  %v5047_v53 = vld [vmem:[%s11501_s1 + $0x1e8] sm:$0xf] }
 0x10d   :  { %4012 = vmatpush.bf16.msra.mxu3 %v7076_v59  ;;  %v6753_v59 = vld [vmem:[%s11501_s1 + $0xf50] sm:$0xf0]  ;;  %v7653_v9 = vld [vmem:[%s11501_s1 + $0x1144] sm:$0xf] }
 0x10e   :  { %3974 = vmatpush.bf16.msra.mxu0 %v6676_v2  ;;  %v3736_v2 = vpop.f32.mrf.mxu1  ;;  %v7553_v5 = vld [vmem:[%s11501_s1 + $0xe24] sm:$0xf]  ;;  %v7012_v10 = vor.u32 %v7653_v9, %v7009_v56  ;;  %v6737_v11 = vld [vmem:[%s11501_s1 + $0xf30] sm:$0xf0]  ;;  %v7228_v56 = vld [vmem:[%s11501_s1 + $0x3f4] sm:$0xf0] }
 0x10f   :  { %3987 = vmatpush.bf16.msra.mxu1 %v6804_v3  ;;  %v6756_v3 = vor.u32 %v7589_v55, %v6753_v59  ;;  %v7585_v7 = vld [vmem:[%s11501_s1 + $0xf24] sm:$0xf]  ;;  %v6865_v14 = vld [vmem:[%s11501_s1 + $0x1030] sm:$0xf0]  ;;  %v5175_v59 = vld [vmem:[%s11501_s1 + $0x2e8] sm:$0xf] }
 0x110   :  { %4000 = vmatpush.bf16.msra.mxu2 %v6932_v4  ;;  %v6884_v4 = vor.u32 %v7621_v61, %v6881_v62  ;;  %v7617_v12 = vld [vmem:[%s11501_s1 + $0x1024] sm:$0xf]  ;;  %v6593_v34 = vld [vmem:[%s11501_s1 + $0xe10] sm:$0xf0]  ;;  %v6740_v37 = vor.u32 %v7585_v7, %v6737_v11  ;;  %v7196_v61 = vld [vmem:[%s11501_s1 + $0x2f4] sm:$0xf0] }
 0x111   :  { %4013 = vmatpush.bf16.msra.mxu3 %v7060_v8  ;;  %v3683_v8 = vadd.f32 %v9249_v60, %v3670_v36  ;;  %v7649_v15 = vld [vmem:[%s11501_s1 + $0x1124] sm:$0xf]  ;;  %v6993_v60 = vld [vmem:[%s11501_s1 + $0x1130] sm:$0xf0]  ;;  %v6868_v40 = vor.u32 %v7617_v12, %v6865_v14  ;;  %v5031_v7 = vld [vmem:[%s11501_s1 + $0x1c8] sm:$0xf] }
 0x112   :  { %3975 = vmatpush.bf16.msra.mxu0 %v6660_v17  ;;  %v7613_v45 = vld [vmem:[%s11501_s1 + $0x1004] sm:$0xf]  ;;  %v6996_v46 = vor.u32 %v7649_v15, %v6993_v60  ;;  %v6849_v47 = vld [vmem:[%s11501_s1 + $0x1010] sm:$0xf0]  ;;  %v7192_v11 = vld [vmem:[%s11501_s1 + $0x2d4] sm:$0xf0] }
 0x113   :  { %3988 = vmatpush.bf16.msra.mxu1 %v6788_v24  ;;  %v3696_v17 = vadd.f32 %v9284_v16, %v3683_v8  ;;  %v6612_v24 = vor.u32 %v7553_v5, %v6609_v6  ;;  %v6721_v16 = vld [vmem:[%s11501_s1 + $0xf10] sm:$0xf0]  ;;  %v7645_v48 = vld [vmem:[%s11501_s1 + $0x1104] sm:$0xf]  ;;  %v3762_v54 = vpop.f32.mrf.mxu3  ;;  %v6852_v9 = vor.u32 %v7613_v45, %v6849_v47  ;;  %v4903_v5 = vld [vmem:[%s11501_s1 + $0xc8] sm:$0xf] }
 0x114   :  { %4001 = vmatpush.bf16.msra.mxu2 %v6916_v27  ;;  %v7549_v27 = vld [vmem:[%s11501_s1 + $0xe04] sm:$0xf]  ;;  %v6977_v49 = vld [vmem:[%s11501_s1 + $0x1110] sm:$0xf0]  ;;  %v7128_v6 = vld [vmem:[%s11501_s1 + $0xd4] sm:$0xf0] }
 0x115   :  { %4014 = vmatpush.bf16.msra.mxu3 %v7044_v43  ;;  %v7581_v43 = vld [vmem:[%s11501_s1 + $0xf04] sm:$0xf]  ;;  %v3709_v55 = vadd.f32 %v9295_v26, %v3696_v17  ;;  %v6596_v36 = vor.u32 %v7549_v27, %v6593_v34  ;;  %v5303_v26 = vld [vmem:[%s11501_s1 + $0x3e8] sm:$0xf]  ;;  %v7224_v14 = vld [vmem:[%s11501_s1 + $0x3d4] sm:$0xf0]  ;;  %v4904_v60 = vor.u32 %v7128_v6, %v4903_v5 }
 0x116   :  { %3976 = vmatpush.bf16.msra.mxu0 %v6644_v50  ;;  %v3749_v50 = vpop.f32.mrf.mxu2  ;;  %v6724_v62 = vor.u32 %v7581_v43, %v6721_v16  ;;  %v5304_v8 = vor.u32 %v7228_v56, %v5303_v26  ;;  %v5287_v12 = vld [vmem:[%s11501_s1 + $0x3c8] sm:$0xf]  ;;  %v7124_v34 = vld [vmem:[%s11501_s1 + $0xb4] sm:$0xf0] }
 0x117   :  { %3989 = vmatpush.bf16.msra.mxu1 %v6772_v51  ;;  %v4919_v51 = vld [vmem:[%s11501_s1 + $0xe8] sm:$0xf]  ;;  %v3722_v0 = vadd.f32 %v9445_v13, %v3709_v55  ;;  %v7160_v13 = vld [vmem:[%s11501_s1 + $0x1d4] sm:$0xf0] }
 0x118   :  { %4002 = vmatpush.bf16.msra.mxu2 %v6900_v52  ;;  %v7132_v52 = vld [vmem:[%s11501_s1 + $0xf4] sm:$0xf0]  ;;  %v5032_v17 = vor.u32 %v7160_v13, %v5031_v7  ;;  %v4887_v27 = vld [vmem:[%s11501_s1 + $0xa8] sm:$0xf] }
 0x119   :  { %4015 = vmatpush.bf16.msra.mxu3 %v7028_v57  ;;  %v7164_v57 = vld [vmem:[%s11501_s1 + $0x1f4] sm:$0xf0]  ;;  %v4920_v2 = vor.u32 %v7132_v52, %v4919_v51  ;;  %v3735_v15 = vadd.f32 %v9453_v21, %v3722_v0  ;;  %v5143_v16 = vld [vmem:[%s11501_s1 + $0x2a8] sm:$0xf]  ;;  %v4888_v47 = vor.u32 %v7124_v34, %v4887_v27 }
 0x11a   :  { %3977 = vmatpush.bf16.msra.mxu0 %v6628_v1  ;;  %v6980_v1 = vor.u32 %v7645_v48, %v6977_v49  ;;  %v7156_v43 = vld [vmem:[%s11501_s1 + $0x1b4] sm:$0xf0]  ;;  %v4871_v50 = vld [vmem:[%s11501_s1 + $0x88] sm:$0xf] }
 0x11b   :  { %3990 = vmatpush.bf16.msra.mxu1 %v6756_v3  ;;  %v5048_v3 = vor.u32 %v7164_v57, %v5047_v53  ;;  %v3748_v21 = vadd.f32 %v9490_v58, %v3735_v15  ;;  %v7188_v45 = vld [vmem:[%s11501_s1 + $0x2b4] sm:$0xf0]  ;;  %v5271_v58 = vld [vmem:[%s11501_s1 + $0x3a8] sm:$0xf] }
 0x11c   :  { %4003 = vmatpush.bf16.msra.mxu2 %v6884_v4  ;;  %v5176_v4 = vor.u32 %v7196_v61, %v5175_v59  ;;  %v5144_v49 = vor.u32 %v7188_v45, %v5143_v16  ;;  %v7120_v51 = vld [vmem:[%s11501_s1 + $0x94] sm:$0xf0]  ;;  %v4999_v52 = vld [vmem:[%s11501_s1 + $0x188] sm:$0xf] }
 0x11d   :  { %4016 = vmatpush.bf16.msra.mxu3 %v7012_v10  ;;  %v5159_v10 = vld [vmem:[%s11501_s1 + $0x2c8] sm:$0xf]  ;;  %v3761_v53 = vadd.f32 %v9501_v63, %v3748_v21  ;;  %v7152_v55 = vld [vmem:[%s11501_s1 + $0x194] sm:$0xf0] }
 0x11e   :  { %3978 = vmatpush.bf16.msra.mxu0 %v6612_v24  ;;  %v5160_v24 = vor.u32 %v7192_v11, %v5159_v10  ;;  %v7184_v57 = vld [vmem:[%s11501_s1 + $0x294] sm:$0xf0]  ;;  %v5255_v61 = vld [vmem:[%s11501_s1 + $0x388] sm:$0xf]  ;;  %v5000_v56 = vor.u32 %v7152_v55, %v4999_v52 }
 0x11f   :  { %3991 = vmatpush.bf16.msra.mxu1 %v6740_v37  ;;  %v5015_v37 = vld [vmem:[%s11501_s1 + $0x1a8] sm:$0xf]  ;;  %v7216_v63 = vld [vmem:[%s11501_s1 + $0x394] sm:$0xf0] }
 0x120   :  { %4004 = vmatpush.bf16.msra.mxu2 %v6868_v40  ;;  %v5288_v40 = vor.u32 %v7224_v14, %v5287_v12  ;;  %v5016_v48 = vor.u32 %v7156_v43, %v5015_v37  ;;  %v7148_v6 = vld [vmem:[%s11501_s1 + $0x174] sm:$0xf0]  ;;  %v5111_v7 = vld [vmem:[%s11501_s1 + $0x268] sm:$0xf] }
 0x121   :  { %4017 = vmatpush.bf16.msra.mxu3 %v6996_v46  ;;  %v7220_v46 = vld [vmem:[%s11501_s1 + $0x3b4] sm:$0xf0]  ;;  %v5239_v13 = vld [vmem:[%s11501_s1 + $0x368] sm:$0xf] }
 0x122   :  { %3979 = vmatpush.bf16.msra.mxu0 %v6596_v36  ;;  %v5272_v54 = vor.u32 %v7220_v46, %v5271_v58  ;;  %v5127_v36 = vld [vmem:[%s11501_s1 + $0x288] sm:$0xf]  ;;  %v3773_v59 = vpop.f32.mrf.mxu0  ;;  %v7212_v10 = vld [vmem:[%s11501_s1 + $0x374] sm:$0xf0] }
 0x123   :  { %3992 = vmatpush.bf16.msra.mxu1 %v6724_v62  ;;  %v3774_v62 = vadd.f32 %v3773_v59, %v3761_v53  ;;  %v3786_v26 = vpop.f32.mrf.mxu1  ;;  %v5128_v0 = vor.u32 %v7184_v57, %v5127_v36  ;;  %v4839_v12 = vld [vmem:[%s11501_s1 + $0x48] sm:$0xf]  ;;  %v5240_v27 = vor.u32 %v7212_v10, %v5239_v13  ;;  %v7176_v37 = vld [vmem:[%s11501_s1 + $0x254] sm:$0xf0] }
 0x124   :  { %4005 = vmatpush.bf16.msra.mxu2 %v6852_v9  ;;  %v4872_v9 = vor.u32 %v7120_v51, %v4871_v50  ;;  %v5095_v34 = vld [vmem:[%s11501_s1 + $0x248] sm:$0xf]  ;;  %v7208_v45 = vld [vmem:[%s11501_s1 + $0x354] sm:$0xf0] }
 0x125   :  { %4018 = vmatpush.bf16.msra.mxu3 %v6980_v1  ;;  %3980 = vmatmul.bf16.vlgmr.msra.gmra.mxu0 %v8580_v28  ;;  %v4855_v1 = vld [vmem:[%s11501_s1 + $0x68] sm:$0xf]  ;;  %v9673_v5 = vadd.f32 %v3786_v26, %v3774_v62  ;;  %v5096_v51 = vor.u32 %v7176_v37, %v5095_v34  ;;  %v7108_v53 = vld [vmem:[%s11501_s1 + $0x34] sm:$0xf0] }
 0x126   :  { %4024 = vmatpush.bf16.msrb.mxu0 %v4920_v2  ;;  %3993 = vmatmul.bf16.vlgmr.msra.gmra.mxu1 %v8590_v35  ;;  %v7116_v2 = vld [vmem:[%s11501_s1 + $0x74] sm:$0xf0]  ;;  %v7685_v21 = vld [vmem:[%s11503_s2] ss:$4 sm:$0xf] }
 0x127   :  { %4037 = vmatpush.bf16.msrb.mxu1 %v5048_v3  ;;  %4006 = vmatmul.bf16.vlgmr.msra.gmra.mxu2 %v8776_v32  ;;  %v4983_v3 = vld [vmem:[%s11501_s1 + $0x168] sm:$0xf]  ;;  %4492 = vst [vmem:[#allocation2 + $0x10] sm:$0xff] %v9673_v5  ;;  %v4856_v11 = vor.u32 %v7116_v2, %v4855_v1  ;;  %v7140_v36 = vld [vmem:[%s11501_s1 + $0x134] sm:$0xf0] }
 0x128   :  { %4050 = vmatpush.bf16.msrb.mxu2 %v5176_v4  ;;  %4019 = vmatmul.bf16.vlgmr.msra.gmra.mxu3 %v8787_v39  ;;  %v5256_v4 = vor.u32 %v7216_v63, %v5255_v61  ;;  %v4984_v14 = vor.u32 %v7148_v6, %v4983_v3  ;;  %v5223_v16 = vld [vmem:[%s11501_s1 + $0x348] sm:$0xf]  ;;  %v7172_v59 = vld [vmem:[%s11501_s1 + $0x234] sm:$0xf0] }
 0x129   :  { %4063 = vmatpush.bf16.msrb.mxu3 %v5304_v8  ;;  %v7180_v8 = vld [vmem:[%s11501_s1 + $0x274] sm:$0xf0]  ;;  %v4823_v52 = vld [vmem:[%s11501_s1 + $0x28] sm:$0xf]  ;;  %v5224_v55 = vor.u32 %v7208_v45, %v5223_v16 }
 0x12a   :  { %4025 = vmatpush.bf16.msrb.mxu0 %v4904_v60  ;;  %v5112_v15 = vor.u32 %v7180_v8, %v5111_v7  ;;  %v7112_v60 = vld [vmem:[%s11501_s1 + $0x54] sm:$0xf0]  ;;  %v3799_v43 = vpop.f32.mrf.mxu2  ;;  %v3775_v46 = vpop.f32.mrf.mxu0  ;;  %v5079_v57 = vld [vmem:[%s11501_s1 + $0x228] sm:$0xf] }
 0x12b   :  { %4038 = vmatpush.bf16.msrb.mxu1 %v5032_v17  ;;  %v4967_v17 = vld [vmem:[%s11501_s1 + $0x148] sm:$0xf]  ;;  %v3812_v58 = vpop.f32.mrf.mxu3  ;;  %v7204_v62 = vld [vmem:[%s11501_s1 + $0x334] sm:$0xf0]  ;;  %v5080_v1 = vor.u32 %v7172_v59, %v5079_v57 }
 0x12c   :  { %4051 = vmatpush.bf16.msrb.mxu2 %v5160_v24  ;;  %v7144_v24 = vld [vmem:[%s11501_s1 + $0x154] sm:$0xf0]  ;;  %v5207_v63 = vld [vmem:[%s11501_s1 + $0x328] sm:$0xf] }
 0x12d   :  { %4064 = vmatpush.bf16.msrb.mxu3 %v5288_v40  ;;  %v606_v40 = vperm.slane %v7685_v21, 1  ;;  %v4968_v50 = vor.u32 %v7144_v24, %v4967_v17  ;;  %v4807_v26 = vld [vmem:[%s11501_s1 + $0x8] sm:$0xf]  ;;  %v7136_v3 = vld [vmem:[%s11501_s1 + $0x114] sm:$0xf0]  ;;  %v5208_v6 = vor.u32 %v7204_v62, %v5207_v63 }
 0x12e   :  { %4026 = vmatpush.bf16.msrb.mxu0 %v4888_v47  ;;  %v4840_v47 = vor.u32 %v7112_v60, %v4839_v12  ;;  %v4935_v2 = vld [vmem:[%s11501_s1 + $0x108] sm:$0xf]  ;;  %v7168_v7 = vld [vmem:[%s11501_s1 + $0x214] sm:$0xf0] }
 0x12f   :  { %4039 = vmatpush.bf16.msrb.mxu1 %v5016_v48  ;;  %v3800_v48 = vadd.f32 %v3799_v43, %v606_v40  ;;  %v5191_v8 = vld [vmem:[%s11501_s1 + $0x308] sm:$0xf]  ;;  %v7200_v13 = vld [vmem:[%s11501_s1 + $0x314] sm:$0xf0]  ;;  %v4936_v34 = vor.u32 %v7136_v3, %v4935_v2 }
 0x130   :  { %4052 = vmatpush.bf16.msrb.mxu2 %v5144_v49  ;;  %v3788_v49 = vpop.f32.mrf.mxu1  ;;  %v7260_v12 = vld [vmem:[%s11501_s1 + $0x4f4] sm:$0xf0]  ;;  %v5687_v24 = vld [vmem:[%s11501_s1 + $0x6e8] sm:$0xf]  ;;  %v5192_v43 = vor.u32 %v7200_v13, %v5191_v8 }
 0x131   :  { %4065 = vmatpush.bf16.msrb.mxu3 %v5272_v54  ;;  %v4951_v54 = vld [vmem:[%s11501_s1 + $0x128] sm:$0xf]  ;;  %v9736_v61 = vadd.f32 %v3812_v58, %v3800_v48  ;;  %v7292_v17 = vld [vmem:[%s11501_s1 + $0x5f4] sm:$0xf0] }
 0x132   :  { %4027 = vmatpush.bf16.msrb.mxu0 %v4872_v9  ;;  %v4824_v9 = vor.u32 %v7108_v53, %v4823_v52  ;;  %v3801_v10 = vpop.f32.mrf.mxu2  ;;  %v5815_v21 = vld [vmem:[%s11501_s1 + $0x7e8] sm:$0xf]  ;;  %v7356_v40 = vld [vmem:[%s11501_s1 + $0x7f4] sm:$0xf0] }
 0x133   :  { %4040 = vmatpush.bf16.msrb.mxu1 %v5000_v56  ;;  %v7104_v56 = vld [vmem:[%s11501_s1 + $0x14] sm:$0xf0]  ;;  %v5415_v46 = vld [vmem:[%s11501_s1 + $0x4c8] sm:$0xf]  ;;  %v5816_v49 = vor.u32 %v7356_v40, %v5815_v21 }
 0x134   :  { %4053 = vmatpush.bf16.msrb.mxu2 %v5128_v0  ;;  %v4952_v0 = vor.u32 %v7140_v36, %v4951_v54  ;;  %v4808_v60 = vor.u32 %v7104_v56, %v4807_v26  ;;  %v5543_v48 = vld [vmem:[%s11501_s1 + $0x5c8] sm:$0xf]  ;;  %v7320_v52 = vld [vmem:[%s11501_s1 + $0x6d4] sm:$0xf0] }
 0x135   :  { %4066 = vmatpush.bf16.msrb.mxu3 %v5256_v4  ;;  %v5063_v4 = vld [vmem:[%s11501_s1 + $0x208] sm:$0xf]  ;;  %v7352_v54 = vld [vmem:[%s11501_s1 + $0x7d4] sm:$0xf0] }
 0x136   :  { %4028 = vmatpush.bf16.msrb.mxu0 %v4856_v11  ;;  %v5431_v11 = vld [vmem:[%s11501_s1 + $0x4e8] sm:$0xf]  ;;  %v5064_v37 = vor.u32 %v7168_v7, %v5063_v4  ;;  %v7252_v63 = vld [vmem:[%s11501_s1 + $0x4b4] sm:$0xf0] }
 0x137   :  { %4041 = vmatpush.bf16.msrb.mxu1 %v4984_v14  ;;  %v5559_v14 = vld [vmem:[%s11501_s1 + $0x5e8] sm:$0xf]  ;;  %v5432_v16 = vor.u32 %v7260_v12, %v5431_v11  ;;  %v7284_v26 = vld [vmem:[%s11501_s1 + $0x5b4] sm:$0xf0] }
 0x138   :  { %4054 = vmatpush.bf16.msrb.mxu2 %v5112_v15  ;;  %v3814_v15 = vpop.f32.mrf.mxu3  ;;  %v5560_v45 = vor.u32 %v7292_v17, %v5559_v14  ;;  %v5799_v53 = vld [vmem:[%s11501_s1 + $0x7c8] sm:$0xf]  ;;  %v7348_v2 = vld [vmem:[%s11501_s1 + $0x7b4] sm:$0xf0] }
 0x139   :  { %4067 = vmatpush.bf16.msrb.mxu3 %v5240_v27  ;;  %v7324_v27 = vld [vmem:[%s11501_s1 + $0x6f4] sm:$0xf0]  ;;  %v5399_v59 = vld [vmem:[%s11501_s1 + $0x4a8] sm:$0xf] }
 0x13a   :  { %4029 = vmatpush.bf16.msrb.mxu0 %v4840_v47  ;;  %v5688_v58 = vor.u32 %v7324_v27, %v5687_v24  ;;  %v7256_v47 = vld [vmem:[%s11501_s1 + $0x4d4] sm:$0xf0]  ;;  %v5527_v62 = vld [vmem:[%s11501_s1 + $0x5a8] sm:$0xf]  ;;  %v5400_v3 = vor.u32 %v7252_v63, %v5399_v59 }
 0x13b   :  { %4042 = vmatpush.bf16.msrb.mxu1 %v4968_v50  ;;  %v7288_v50 = vld [vmem:[%s11501_s1 + $0x5d4] sm:$0xf0]  ;;  %v5655_v56 = vld [vmem:[%s11501_s1 + $0x6a8] sm:$0xf]  ;;  %v5528_v4 = vor.u32 %v7284_v26, %v5527_v62 }
 0x13c   :  { %4055 = vmatpush.bf16.msrb.mxu2 %v5096_v51  ;;  %v5671_v51 = vld [vmem:[%s11501_s1 + $0x6c8] sm:$0xf]  ;;  %v5544_v36 = vor.u32 %v7288_v50, %v5543_v48  ;;  %v7248_v8 = vld [vmem:[%s11501_s1 + $0x494] sm:$0xf0] }
 0x13d   :  { %4068 = vmatpush.bf16.msrb.mxu3 %v5224_v55  ;;  %v5416_v55 = vor.u32 %v7256_v47, %v5415_v46  ;;  %v5672_v57 = vor.u32 %v7320_v52, %v5671_v51  ;;  %v5383_v7 = vld [vmem:[%s11501_s1 + $0x488] sm:$0xf]  ;;  %v7280_v11 = vld [vmem:[%s11501_s1 + $0x594] sm:$0xf0] }
 0x13e   :  { %4030 = vmatpush.bf16.msrb.mxu0 %v4824_v9  ;;  %v5800_v9 = vor.u32 %v7352_v54, %v5799_v53  ;;  %v5511_v13 = vld [vmem:[%s11501_s1 + $0x588] sm:$0xf]  ;;  %v7312_v14 = vld [vmem:[%s11501_s1 + $0x694] sm:$0xf0]  ;;  %v5384_v17 = vor.u32 %v7248_v8, %v5383_v7 }
 0x13f   :  { %4043 = vmatpush.bf16.msrb.mxu1 %v4952_v0  ;;  %v7316_v0 = vld [vmem:[%s11501_s1 + $0x6b4] sm:$0xf0]  ;;  %v5639_v12 = vld [vmem:[%s11501_s1 + $0x688] sm:$0xf]  ;;  %v5512_v27 = vor.u32 %v7280_v11, %v5511_v13 }
 0x140   :  { %4056 = vmatpush.bf16.msrb.mxu2 %v5080_v1  ;;  %v5783_v1 = vld [vmem:[%s11501_s1 + $0x7a8] sm:$0xf]  ;;  %v7244_v21 = vld [vmem:[%s11501_s1 + $0x474] sm:$0xf0] }
 0x141   :  { %4069 = vmatpush.bf16.msrb.mxu3 %v5208_v6  ;;  %v5656_v6 = vor.u32 %v7316_v0, %v5655_v56  ;;  %v5784_v10 = vor.u32 %v7348_v2, %v5783_v1  ;;  %v5767_v15 = vld [vmem:[%s11501_s1 + $0x788] sm:$0xf]  ;;  %v7308_v47 = vld [vmem:[%s11501_s1 + $0x674] sm:$0xf0] }
 0x142   :  { %4031 = vmatpush.bf16.msrb.mxu0 %v4808_v60  ;;  %v7344_v60 = vld [vmem:[%s11501_s1 + $0x794] sm:$0xf0]  ;;  %v3825_v24 = vpop.f32.mrf.mxu0  ;;  %v5495_v40 = vld [vmem:[%s11501_s1 + $0x568] sm:$0xf] }
 0x143   :  { %4044 = vmatpush.bf16.msrb.mxu1 %v4936_v34  ;;  %v5640_v34 = vor.u32 %v7312_v14, %v5639_v12  ;;  %v5623_v46 = vld [vmem:[%s11501_s1 + $0x668] sm:$0xf]  ;;  %v7240_v54 = vld [vmem:[%s11501_s1 + $0x454] sm:$0xf0] }
 0x144   :  { %4057 = vmatpush.bf16.msrb.mxu2 %v5064_v37  ;;  %v5367_v37 = vld [vmem:[%s11501_s1 + $0x468] sm:$0xf]  ;;  %v5624_v52 = vor.u32 %v7308_v47, %v5623_v46  ;;  %v7272_v59 = vld [vmem:[%s11501_s1 + $0x554] sm:$0xf0] }
 0x145   :  { %4070 = vmatpush.bf16.msrb.mxu3 %v5192_v43  ;;  %4032 = vmatmul.bf16.vlgmr.msrb.gmra.mxu0 %v8004_v19  ;;  %v3826_v43 = vadd.f32 %v3825_v24, %v9736_v61  ;;  %v5751_v48 = vld [vmem:[%s11501_s1 + $0x768] sm:$0xf]  ;;  %v7340_v61 = vld [vmem:[%s11501_s1 + $0x774] sm:$0xf0]  ;;  %v5368_v50 = vor.u32 %v7244_v21, %v5367_v37 }
 0x146   :  { %4076 = vmatpush.bf16.msra.mxu0 %v5432_v16  ;;  %4045 = vmatmul.bf16.vlgmr.msrb.gmra.mxu1 %v8008_v22  ;;  %v3838_v16 = vpop.f32.mrf.mxu1  ;;  %v5351_v53 = vld [vmem:[%s11501_s1 + $0x448] sm:$0xf]  ;;  %v7304_v62 = vld [vmem:[%s11501_s1 + $0x654] sm:$0xf0] }
 0x147   :  { %4089 = vmatpush.bf16.msra.mxu1 %v5560_v45  ;;  %4058 = vmatmul.bf16.vlgmr.msrb.gmra.mxu2 %v8002_v18  ;;  %v5768_v45 = vor.u32 %v7344_v60, %v5767_v15  ;;  %v5607_v63 = vld [vmem:[%s11501_s1 + $0x648] sm:$0xf]  ;;  %v7336_v0 = vld [vmem:[%s11501_s1 + $0x754] sm:$0xf0]  ;;  %v5352_v1 = vor.u32 %v7240_v54, %v5351_v53 }
 0x148   :  { %4102 = vmatpush.bf16.msra.mxu2 %v5688_v58  ;;  %4071 = vmatmul.bf16.vlgmr.msrb.gmra.mxu3 %v8006_v20  ;;  %v7276_v58 = vld [vmem:[%s11501_s1 + $0x574] sm:$0xf0]  ;;  %v5735_v56 = vld [vmem:[%s11501_s1 + $0x748] sm:$0xf] }
 0x149   :  { %4115 = vmatpush.bf16.msra.mxu3 %v5816_v49  ;;  %v3839_v49 = vadd.f32 %v3838_v16, %v3826_v43  ;;  %v5496_v51 = vor.u32 %v7276_v58, %v5495_v40  ;;  %v5335_v7 = vld [vmem:[%s11501_s1 + $0x428] sm:$0xf]  ;;  %v7236_v8 = vld [vmem:[%s11501_s1 + $0x434] sm:$0xf0]  ;;  %v5736_v11 = vor.u32 %v7336_v0, %v5735_v56 }
 0x14a   :  { %4077 = vmatpush.bf16.msra.mxu0 %v5416_v55  ;;  %v5479_v55 = vld [vmem:[%s11501_s1 + $0x548] sm:$0xf]  ;;  %v7268_v12 = vld [vmem:[%s11501_s1 + $0x534] sm:$0xf0]  ;;  %v5336_v24 = vor.u32 %v7236_v8, %v5335_v7 }
 0x14b   :  { %4090 = vmatpush.bf16.msra.mxu1 %v5544_v36  ;;  %v3851_v36 = vpop.f32.mrf.mxu2  ;;  %v3864_v26 = vpop.f32.mrf.mxu3  ;;  %v5463_v13 = vld [vmem:[%s11501_s1 + $0x528] sm:$0xf]  ;;  %v7300_v15 = vld [vmem:[%s11501_s1 + $0x634] sm:$0xf0] }
 0x14c   :  { %4103 = vmatpush.bf16.msra.mxu2 %v5672_v57  ;;  %v5752_v57 = vor.u32 %v7340_v61, %v5751_v48  ;;  %v5591_v14 = vld [vmem:[%s11501_s1 + $0x628] sm:$0xf]  ;;  %v5464_v37 = vor.u32 %v7268_v12, %v5463_v13  ;;  %v7264_v43 = vld [vmem:[%s11501_s1 + $0x514] sm:$0xf0] }
 0x14d   :  { %4116 = vmatpush.bf16.msra.mxu3 %v5800_v9  ;;  %v3852_v9 = vadd.f32 %v3851_v36, %v3839_v49  ;;  %v5719_v60 = vld [vmem:[%s11501_s1 + $0x728] sm:$0xf]  ;;  %v5592_v21 = vor.u32 %v7300_v15, %v5591_v14  ;;  %v7296_v46 = vld [vmem:[%s11501_s1 + $0x614] sm:$0xf0] }
 0x14e   :  { %4078 = vmatpush.bf16.msra.mxu0 %v5400_v3  ;;  %v3827_v3 = vpop.f32.mrf.mxu0  ;;  %v5447_v40 = vld [vmem:[%s11501_s1 + $0x508] sm:$0xf]  ;;  %v7328_v48 = vld [vmem:[%s11501_s1 + $0x714] sm:$0xf0] }
 0x14f   :  { %4091 = vmatpush.bf16.msra.mxu1 %v5528_v4  ;;  %v9917_v2 = vadd.f32 %v3864_v26, %v3852_v9  ;;  %v5480_v4 = vor.u32 %v7272_v59, %v5479_v55  ;;  %v5575_v16 = vld [vmem:[%s11501_s1 + $0x608] sm:$0xf]  ;;  %v7420_v53 = vld [vmem:[%s11501_s1 + $0x9f4] sm:$0xf0]  ;;  %v5448_v36 = vor.u32 %v7264_v43, %v5447_v40 }
 0x150   :  { %4104 = vmatpush.bf16.msra.mxu2 %v5656_v6  ;;  %v5608_v6 = vor.u32 %v7304_v62, %v5607_v63  ;;  %v5703_v47 = vld [vmem:[%s11501_s1 + $0x708] sm:$0xf]  ;;  %v7452_v55 = vld [vmem:[%s11501_s1 + $0xaf4] sm:$0xf0] }
 0x151   :  { %4117 = vmatpush.bf16.msra.mxu3 %v5784_v10  ;;  %v3840_v10 = vpop.f32.mrf.mxu1  ;;  %v5943_v49 = vld [vmem:[%s11501_s1 + $0x8e8] sm:$0xf]  ;;  %v7484_v63 = vld [vmem:[%s11501_s1 + $0xbf4] sm:$0xf0]  ;;  %v5704_v62 = vor.u32 %v7328_v48, %v5703_v47 }
 0x152   :  { %4079 = vmatpush.bf16.msra.mxu0 %v5384_v17  ;;  %v7332_v17 = vld [vmem:[%s11501_s1 + $0x734] sm:$0xf0]  ;;  %v6199_v54 = vld [vmem:[%s11501_s1 + $0xae8] sm:$0xf] }
 0x153   :  { %4092 = vmatpush.bf16.msra.mxu1 %v5512_v27  ;;  %v5319_v27 = vld [vmem:[%s11501_s1 + $0x408] sm:$0xf]  ;;  %v5720_v58 = vor.u32 %v7332_v17, %v5719_v60  ;;  %v3866_v61 = vpop.f32.mrf.mxu3  ;;  %v6200_v56 = vor.u32 %v7452_v55, %v6199_v54  ;;  %v7448_v8 = vld [vmem:[%s11501_s1 + $0xad4] sm:$0xf0] }
 0x154   :  { %4105 = vmatpush.bf16.msra.mxu2 %v5640_v34  ;;  %v7232_v34 = vld [vmem:[%s11501_s1 + $0x414] sm:$0xf0]  ;;  %v6327_v59 = vld [vmem:[%s11501_s1 + $0xbe8] sm:$0xf] }
 0x155   :  { %4118 = vmatpush.bf16.msra.mxu3 %v5768_v45  ;;  %v3853_v45 = vpop.f32.mrf.mxu2  ;;  %v5927_v0 = vld [vmem:[%s11501_s1 + $0x8c8] sm:$0xf]  ;;  %v7480_v10 = vld [vmem:[%s11501_s1 + $0xbd4] sm:$0xf0] }
 0x156   :  { %4080 = vmatpush.bf16.msra.mxu0 %v5368_v50  ;;  %v7388_v50 = vld [vmem:[%s11501_s1 + $0x8f4] sm:$0xf0]  ;;  %v6055_v3 = vld [vmem:[%s11501_s1 + $0x9c8] sm:$0xf] }
 0x157   :  { %4093 = vmatpush.bf16.msra.mxu1 %v5496_v51  ;;  %v6071_v51 = vld [vmem:[%s11501_s1 + $0x9e8] sm:$0xf]  ;;  %v5944_v9 = vor.u32 %v7388_v50, %v5943_v49  ;;  %v7380_v60 = vld [vmem:[%s11501_s1 + $0x8b4] sm:$0xf0] }
 0x158   :  { %4106 = vmatpush.bf16.msra.mxu2 %v5624_v52  ;;  %v5320_v52 = vor.u32 %v7232_v34, %v5319_v27  ;;  %v6072_v26 = vor.u32 %v7420_v53, %v6071_v51  ;;  %v6183_v7 = vld [vmem:[%s11501_s1 + $0xac8] sm:$0xf]  ;;  %v7412_v27 = vld [vmem:[%s11501_s1 + $0x9b4] sm:$0xf0] }
 0x159   :  { %4119 = vmatpush.bf16.msra.mxu3 %v5752_v57  ;;  %v5576_v57 = vor.u32 %v7296_v46, %v5575_v16  ;;  %v6311_v13 = vld [vmem:[%s11501_s1 + $0xbc8] sm:$0xf]  ;;  %v6184_v14 = vor.u32 %v7448_v8, %v6183_v7  ;;  %v7476_v40 = vld [vmem:[%s11501_s1 + $0xbb4] sm:$0xf0] }
 0x15a   :  { %4081 = vmatpush.bf16.msra.mxu0 %v5352_v1  ;;  %v7384_v1 = vld [vmem:[%s11501_s1 + $0x8d4] sm:$0xf0]  ;;  %v5911_v15 = vld [vmem:[%s11501_s1 + $0x8a8] sm:$0xf] }
 0x15b   :  { %4094 = vmatpush.bf16.msra.mxu1 %v5480_v4  ;;  %v6328_v4 = vor.u32 %v7484_v63, %v6327_v59  ;;  %v6039_v17 = vld [vmem:[%s11501_s1 + $0x9a8] sm:$0xf]  ;;  %v5912_v43 = vor.u32 %v7380_v60, %v5911_v15  ;;  %v7376_v46 = vld [vmem:[%s11501_s1 + $0x894] sm:$0xf0] }
 0x15c   :  { %4107 = vmatpush.bf16.msra.mxu2 %v5608_v6  ;;  %v7416_v6 = vld [vmem:[%s11501_s1 + $0x9d4] sm:$0xf0]  ;;  %v6167_v34 = vld [vmem:[%s11501_s1 + $0xaa8] sm:$0xf]  ;;  %v6040_v16 = vor.u32 %v7412_v27, %v6039_v17 }
 0x15d   :  { %4120 = vmatpush.bf16.msra.mxu3 %v5736_v11  ;;  %v5928_v11 = vor.u32 %v7384_v1, %v5927_v0  ;;  %v6056_v12 = vor.u32 %v7416_v6, %v6055_v3  ;;  %v6023_v47 = vld [vmem:[%s11501_s1 + $0x988] sm:$0xf]  ;;  %v7408_v61 = vld [vmem:[%s11501_s1 + $0x994] sm:$0xf0] }
 0x15e   :  { %4082 = vmatpush.bf16.msra.mxu0 %v5336_v24  ;;  %v6312_v24 = vor.u32 %v7480_v10, %v6311_v13  ;;  %v6151_v49 = vld [vmem:[%s11501_s1 + $0xa88] sm:$0xf]  ;;  %v7440_v50 = vld [vmem:[%s11501_s1 + $0xa94] sm:$0xf0] }
 0x15f   :  { %4095 = vmatpush.bf16.msra.mxu1 %v5464_v37  ;;  %v7444_v37 = vld [vmem:[%s11501_s1 + $0xab4] sm:$0xf0]  ;;  %v5879_v59 = vld [vmem:[%s11501_s1 + $0x868] sm:$0xf] }
 0x160   :  { %4108 = vmatpush.bf16.msra.mxu2 %v5592_v21  ;;  %v6295_v21 = vld [vmem:[%s11501_s1 + $0xba8] sm:$0xf]  ;;  %v6168_v45 = vor.u32 %v7444_v37, %v6167_v34  ;;  %v7472_v53 = vld [vmem:[%s11501_s1 + $0xb94] sm:$0xf0] }
 0x161   :  { %4121 = vmatpush.bf16.msra.mxu3 %v5720_v58  ;;  %v5895_v58 = vld [vmem:[%s11501_s1 + $0x888] sm:$0xf]  ;;  %v6296_v48 = vor.u32 %v7476_v40, %v6295_v21  ;;  %v7372_v63 = vld [vmem:[%s11501_s1 + $0x874] sm:$0xf0] }
 0x162   :  { %4083 = vmatpush.bf16.msra.mxu0 %v5320_v52  ;;  %v10061_v51 = vpop.f32.mrf.mxu0  ;;  %v6279_v52 = vld [vmem:[%s11501_s1 + $0xb88] sm:$0xf]  ;;  %v5896_v54 = vor.u32 %v7376_v46, %v5895_v58  ;;  %v7436_v0 = vld [vmem:[%s11501_s1 + $0xa74] sm:$0xf0] }
 0x163   :  { %4096 = vmatpush.bf16.msra.mxu1 %v5448_v36  ;;  %v10069_v55 = vpop.f32.mrf.mxu1  ;;  %v6024_v36 = vor.u32 %v7408_v61, %v6023_v47  ;;  %v6263_v1 = vld [vmem:[%s11501_s1 + $0xb68] sm:$0xf]  ;;  %v7468_v3 = vld [vmem:[%s11501_s1 + $0xb74] sm:$0xf0] }
 0x164   :  { %4109 = vmatpush.bf16.msra.mxu2 %v5576_v57  ;;  %v6152_v57 = vor.u32 %v7440_v50, %v6151_v49  ;;  %v5863_v8 = vld [vmem:[%s11501_s1 + $0x848] sm:$0xf]  ;;  %v7368_v13 = vld [vmem:[%s11501_s1 + $0x854] sm:$0xf0] }
 0x165   :  { %4122 = vmatpush.bf16.msra.mxu3 %v5704_v62  ;;  %4084 = vmatmul.bf16.vlgmr.msra.gmra.mxu0 %v8166_v41  ;;  %v6007_v62 = vld [vmem:[%s11501_s1 + $0x968] sm:$0xf]  ;;  %v7432_v60 = vld [vmem:[%s11501_s1 + $0xa54] sm:$0xf0]  ;;  %v5864_v37 = vor.u32 %v7368_v13, %v5863_v8 }
 0x166   :  { %4128 = vmatpush.bf16.msrb.mxu0 %v5944_v9  ;;  %4097 = vmatmul.bf16.vlgmr.msra.gmra.mxu1 %v8170_v44  ;;  %v6280_v9 = vor.u32 %v7472_v53, %v6279_v52  ;;  %v5991_v10 = vld [vmem:[%s11501_s1 + $0x948] sm:$0xf]  ;;  %v7464_v27 = vld [vmem:[%s11501_s1 + $0xb54] sm:$0xf0] }
 0x167   :  { %4141 = vmatpush.bf16.msrb.mxu1 %v6072_v26  ;;  %4110 = vmatmul.bf16.vlgmr.msra.gmra.mxu2 %v8158_v38  ;;  %v7404_v26 = vld [vmem:[%s11501_s1 + $0x974] sm:$0xf0]  ;;  %v6119_v15 = vld [vmem:[%s11501_s1 + $0xa48] sm:$0xf] }
 0x168   :  { %4154 = vmatpush.bf16.msrb.mxu2 %v6200_v56  ;;  %4123 = vmatmul.bf16.vlgmr.msra.gmra.mxu3 %v8168_v42  ;;  %v6135_v56 = vld [vmem:[%s11501_s1 + $0xa68] sm:$0xf]  ;;  %v6008_v6 = vor.u32 %v7404_v26, %v6007_v62  ;;  %v7396_v47 = vld [vmem:[%s11501_s1 + $0x934] sm:$0xf0] }
 0x169   :  { %4167 = vmatpush.bf16.msrb.mxu3 %v6328_v4  ;;  %v5880_v4 = vor.u32 %v7372_v63, %v5879_v59  ;;  %v6136_v7 = vor.u32 %v7436_v0, %v6135_v56  ;;  %v5975_v58 = vld [vmem:[%s11501_s1 + $0x928] sm:$0xf]  ;;  %v7428_v61 = vld [vmem:[%s11501_s1 + $0xa34] sm:$0xf0] }
 0x16a   :  { %4129 = vmatpush.bf16.msrb.mxu0 %v5928_v11  ;;  %v6264_v11 = vor.u32 %v7468_v3, %v6263_v1  ;;  %v3879_v34 = vpop.f32.mrf.mxu0  ;;  %v6231_v49 = vld [vmem:[%s11501_s1 + $0xb28] sm:$0xf]  ;;  %v7460_v50 = vld [vmem:[%s11501_s1 + $0xb34] sm:$0xf0] }
 0x16b   :  { %4142 = vmatpush.bf16.msrb.mxu1 %v6056_v12  ;;  %v10104_v12 = vpop.f32.mrf.mxu2  ;;  %v10115_v17 = vpop.f32.mrf.mxu3  ;;  %v5831_v53 = vld [vmem:[%s11501_s1 + $0x808] sm:$0xf]  ;;  %v7392_v63 = vld [vmem:[%s11501_s1 + $0x914] sm:$0xf0] }
 0x16c   :  { %4155 = vmatpush.bf16.msrb.mxu2 %v6184_v14  ;;  %v7400_v14 = vld [vmem:[%s11501_s1 + $0x954] sm:$0xf0]  ;;  %v3892_v21 = vpop.f32.mrf.mxu1  ;;  %v5959_v59 = vld [vmem:[%s11501_s1 + $0x908] sm:$0xf] }
 0x16d   :  { %4168 = vmatpush.bf16.msrb.mxu3 %v6312_v24  ;;  %v6247_v24 = vld [vmem:[%s11501_s1 + $0xb48] sm:$0xf]  ;;  %v5992_v40 = vor.u32 %v7400_v14, %v5991_v10  ;;  %v7424_v26 = vld [vmem:[%s11501_s1 + $0xa14] sm:$0xf0]  ;;  %v5960_v14 = vor.u32 %v7392_v63, %v5959_v59 }
 0x16e   :  { %4130 = vmatpush.bf16.msrb.mxu0 %v5912_v43  ;;  %v6120_v43 = vor.u32 %v7432_v60, %v6119_v15  ;;  %v6248_v46 = vor.u32 %v7464_v27, %v6247_v24  ;;  %v6087_v62 = vld [vmem:[%s11501_s1 + $0xa08] sm:$0xf]  ;;  %v7456_v0 = vld [vmem:[%s11501_s1 + $0xb14] sm:$0xf0] }
 0x16f   :  { %4143 = vmatpush.bf16.msrb.mxu1 %v6040_v16  ;;  %v5847_v16 = vld [vmem:[%s11501_s1 + $0x828] sm:$0xf]  ;;  %v7548_v13 = vld [vmem:[%s11501_s1 + $0xdf4] sm:$0xf0]  ;;  %v6088_v15 = vor.u32 %v7424_v26, %v6087_v62 }
 0x170   :  { %4156 = vmatpush.bf16.msrb.mxu2 %v6168_v45  ;;  %v7364_v45 = vld [vmem:[%s11501_s1 + $0x834] sm:$0xf0]  ;;  %v6215_v56 = vld [vmem:[%s11501_s1 + $0xb08] sm:$0xf] }
 0x171   :  { %4169 = vmatpush.bf16.msrb.mxu3 %v6296_v48  ;;  %v6103_v48 = vld [vmem:[%s11501_s1 + $0xa28] sm:$0xf]  ;;  %v5848_v52 = vor.u32 %v7364_v45, %v5847_v16  ;;  %v7612_v24 = vld [vmem:[%s11501_s1 + $0xff4] sm:$0xf0]  ;;  %v6216_v27 = vor.u32 %v7456_v0, %v6215_v56  ;;  %v4500_v56 = vrot.slane %v9673_v5, 4  ;;  %v4528_v0 = vmul.f32 %v9673_v5, %v9673_v5 }
 0x172   :  { %4131 = vmatpush.bf16.msrb.mxu0 %v5896_v54  ;;  %v7360_v54 = vld [vmem:[%s11501_s1 + $0x814] sm:$0xf0]  ;;  %v6455_v3 = vld [vmem:[%s11501_s1 + $0xce8] sm:$0xf] }
 0x173   :  { %4144 = vmatpush.bf16.msrb.mxu1 %v6024_v36  ;;  %v5976_v36 = vor.u32 %v7396_v47, %v5975_v58  ;;  %v3905_v1 = vpop.f32.mrf.mxu2  ;;  %v5832_v8 = vor.u32 %v7360_v54, %v5831_v53  ;;  %v6711_v10 = vld [vmem:[%s11501_s1 + $0xee8] sm:$0xf]  ;;  %v7544_v58 = vld [vmem:[%s11501_s1 + $0xdd4] sm:$0xf0] }
 0x174   :  { %4157 = vmatpush.bf16.msrb.mxu2 %v6152_v57  ;;  %v6104_v57 = vor.u32 %v7428_v61, %v6103_v48  ;;  %v6839_v60 = vld [vmem:[%s11501_s1 + $0xfe8] sm:$0xf]  ;;  %v7576_v47 = vld [vmem:[%s11501_s1 + $0xed4] sm:$0xf0] }
 0x175   :  { %4170 = vmatpush.bf16.msrb.mxu3 %v6280_v9  ;;  %v6232_v9 = vor.u32 %v7460_v50, %v6231_v49  ;;  %v6567_v16 = vld [vmem:[%s11501_s1 + $0xdc8] sm:$0xf]  ;;  %v6840_v45 = vor.u32 %v7612_v24, %v6839_v60  ;;  %v7608_v61 = vld [vmem:[%s11501_s1 + $0xfd4] sm:$0xf0] }
 0x176   :  { %4132 = vmatpush.bf16.msrb.mxu0 %v5880_v4  ;;  %v7516_v4 = vld [vmem:[%s11501_s1 + $0xcf4] sm:$0xf0]  ;;  %v6823_v48 = vld [vmem:[%s11501_s1 + $0xfc8] sm:$0xf]  ;;  %v6568_v50 = vor.u32 %v7544_v58, %v6567_v16 }
 0x177   :  { %4145 = vmatpush.bf16.msrb.mxu1 %v6008_v6  ;;  %v6583_v6 = vld [vmem:[%s11501_s1 + $0xde8] sm:$0xf]  ;;  %v6456_v34 = vor.u32 %v7516_v4, %v6455_v3  ;;  %v7508_v54 = vld [vmem:[%s11501_s1 + $0xcb4] sm:$0xf0] }
 0x178   :  { %4158 = vmatpush.bf16.msrb.mxu2 %v6136_v7  ;;  %v3918_v7 = vpop.f32.mrf.mxu3  ;;  %v6423_v53 = vld [vmem:[%s11501_s1 + $0xca8] sm:$0xf]  ;;  %v7540_v59 = vld [vmem:[%s11501_s1 + $0xdb4] sm:$0xf0] }
 0x179   :  { %4171 = vmatpush.bf16.msrb.mxu3 %v6264_v11  ;;  %v7580_v11 = vld [vmem:[%s11501_s1 + $0xef4] sm:$0xf0]  ;;  %v6679_v63 = vld [vmem:[%s11501_s1 + $0xea8] sm:$0xf]  ;;  %v6424_v1 = vor.u32 %v7508_v54, %v6423_v53 }
 0x17a   :  { %4133 = vmatpush.bf16.msrb.mxu0 %v5864_v37  ;;  %v6584_v37 = vor.u32 %v7548_v13, %v6583_v6  ;;  %v6712_v21 = vor.u32 %v7580_v11, %v6711_v10  ;;  %v7572_v62 = vld [vmem:[%s11501_s1 + $0xeb4] sm:$0xf0]  ;;  %v6407_v6 = vld [vmem:[%s11501_s1 + $0xc88] sm:$0xf] }
 0x17b   :  { %4146 = vmatpush.bf16.msrb.mxu1 %v5992_v40  ;;  %v6439_v40 = vld [vmem:[%s11501_s1 + $0xcc8] sm:$0xf]  ;;  %v7604_v26 = vld [vmem:[%s11501_s1 + $0xfb4] sm:$0xf0]  ;;  %v6680_v4 = vor.u32 %v7572_v62, %v6679_v63 }
 0x17c   :  { %4159 = vmatpush.bf16.msrb.mxu2 %v6120_v43  ;;  %v7512_v43 = vld [vmem:[%s11501_s1 + $0xcd4] sm:$0xf0]  ;;  %v6663_v11 = vld [vmem:[%s11501_s1 + $0xe88] sm:$0xf] }
 0x17d   :  { %4172 = vmatpush.bf16.msrb.mxu3 %v6248_v46  ;;  %v6695_v46 = vld [vmem:[%s11501_s1 + $0xec8] sm:$0xf]  ;;  %v6440_v49 = vor.u32 %v7512_v43, %v6439_v40  ;;  %v7504_v7 = vld [vmem:[%s11501_s1 + $0xc94] sm:$0xf0] }
 0x17e   :  { %4134 = vmatpush.bf16.msrb.mxu0 %v5848_v52  ;;  %v6696_v52 = vor.u32 %v7576_v47, %v6695_v46  ;;  %v7536_v10 = vld [vmem:[%s11501_s1 + $0xd94] sm:$0xf0]  ;;  %v6791_v60 = vld [vmem:[%s11501_s1 + $0xf88] sm:$0xf] }
 0x17f   :  { %4147 = vmatpush.bf16.msrb.mxu1 %v5976_v36  ;;  %v6551_v36 = vld [vmem:[%s11501_s1 + $0xda8] sm:$0xf]  ;;  %v7600_v24 = vld [vmem:[%s11501_s1 + $0xf94] sm:$0xf0] }
 0x180   :  { %4160 = vmatpush.bf16.msrb.mxu2 %v6104_v57  ;;  %v6824_v57 = vor.u32 %v7608_v61, %v6823_v48  ;;  %v6552_v3 = vor.u32 %v7540_v59, %v6551_v36  ;;  %v6391_v16 = vld [vmem:[%s11501_s1 + $0xc68] sm:$0xf]  ;;  %v6792_v58 = vor.u32 %v7600_v24, %v6791_v60  ;;  %v7532_v46 = vld [vmem:[%s11501_s1 + $0xd74] sm:$0xf0] }
 0x181   :  { %4173 = vmatpush.bf16.msrb.mxu3 %v6232_v9  ;;  %v6807_v9 = vld [vmem:[%s11501_s1 + $0xfa8] sm:$0xf]  ;;  %v7564_v48 = vld [vmem:[%s11501_s1 + $0xe74] sm:$0xf0] }
 0x182   :  { %4135 = vmatpush.bf16.msrb.mxu0 %v5832_v8  ;;  %v6535_v8 = vld [vmem:[%s11501_s1 + $0xd88] sm:$0xf]  ;;  %v6808_v13 = vor.u32 %v7604_v26, %v6807_v9  ;;  %v7496_v59 = vld [vmem:[%s11501_s1 + $0xc54] sm:$0xf0] }
 0x183   :  { %4148 = vmatpush.bf16.msrb.mxu1 %v5960_v14  ;;  %v7568_v14 = vld [vmem:[%s11501_s1 + $0xe94] sm:$0xf0]  ;;  %v6536_v40 = vor.u32 %v7536_v10, %v6535_v8  ;;  %v6647_v47 = vld [vmem:[%s11501_s1 + $0xe68] sm:$0xf] }
 0x184   :  { %4161 = vmatpush.bf16.msrb.mxu2 %v6088_v15  ;;  %v10268_v15 = vpop.f32.mrf.mxu0  ;;  %v6664_v43 = vor.u32 %v7568_v14, %v6663_v11  ;;  %v6775_v61 = vld [vmem:[%s11501_s1 + $0xf68] sm:$0xf]  ;;  %v6648_v36 = vor.u32 %v7564_v48, %v6647_v47  ;;  %v7528_v26 = vld [vmem:[%s11501_s1 + $0xd54] sm:$0xf0] }
 0x185   :  { %4174 = vmatpush.bf16.msrb.mxu3 %v6216_v27  ;;  %4136 = vmatmul.bf16.vlgmr.msrb.gmra.mxu0 %v8359_v25  ;;  %v4501_v27 = vadd.f32 %v4500_v56, %v9673_v5  ;;  %v6519_v5 = vld [vmem:[%s11501_s1 + $0xd68] sm:$0xf]  ;;  %v7492_v60 = vld [vmem:[%s11501_s1 + $0xc34] sm:$0xf0] }
 0x186   :  { %4180 = vmatpush.bf16.msra.mxu0 %v6456_v34  ;;  %4149 = vmatmul.bf16.vlgmr.msrb.gmra.mxu1 %v8372_v30  ;;  %v4532_v34 = vrot.slane %v4528_v0, 4  ;;  %v6520_v54 = vor.u32 %v7532_v46, %v6519_v5  ;;  %v6503_v63 = vld [vmem:[%s11501_s1 + $0xd48] sm:$0xf]  ;;  %v7488_v47 = vld [vmem:[%s11501_s1 + $0xc14] sm:$0xf0] }
 0x187   :  { %4193 = vmatpush.bf16.msra.mxu1 %v6584_v37  ;;  %4162 = vmatmul.bf16.vlgmr.msrb.gmra.mxu2 %v8370_v29  ;;  %v6408_v37 = vor.u32 %v7504_v7, %v6407_v6  ;;  %v6631_v56 = vld [vmem:[%s11501_s1 + $0xe48] sm:$0xf]  ;;  %v7592_v6 = vld [vmem:[%s11501_s1 + $0xf54] sm:$0xf0]  ;;  %v6504_v14 = vor.u32 %v7528_v26, %v6503_v63 }
 0x188   :  { %4206 = vmatpush.bf16.msra.mxu2 %v6712_v21  ;;  %4175 = vmatmul.bf16.vlgmr.msrb.gmra.mxu3 %v8380_v33  ;;  %v10277_v21 = vpop.f32.mrf.mxu1  ;;  %v6487_v24 = vld [vmem:[%s11501_s1 + $0xd28] sm:$0xf] }
 0x189   :  { %4219 = vmatpush.bf16.msra.mxu3 %v6840_v45  ;;  %v7500_v45 = vld [vmem:[%s11501_s1 + $0xc74] sm:$0xf0]  ;;  %v6343_v46 = vld [vmem:[%s11501_s1 + $0xc08] sm:$0xf] }
 0x18a   :  { %4181 = vmatpush.bf16.msra.mxu0 %v6440_v49  ;;  %v7596_v49 = vld [vmem:[%s11501_s1 + $0xf74] sm:$0xf0]  ;;  %v6392_v53 = vor.u32 %v7500_v45, %v6391_v16  ;;  %v10312_v9 = vpop.f32.mrf.mxu2  ;;  %v6743_v16 = vld [vmem:[%s11501_s1 + $0xf28] sm:$0xf] }
 0x18b   :  { %4194 = vmatpush.bf16.msra.mxu1 %v6568_v50  ;;  %v4502_v50 = vrot.slane %v4501_v27, 2  ;;  %v6776_v62 = vor.u32 %v7596_v49, %v6775_v61  ;;  %v7588_v45 = vld [vmem:[%s11501_s1 + $0xf34] sm:$0xf0]  ;;  %v6471_v49 = vld [vmem:[%s11501_s1 + $0xd08] sm:$0xf] }
 0x18c   :  { %4207 = vmatpush.bf16.msra.mxu2 %v6696_v52  ;;  %v4533_v52 = vadd.f32 %v4532_v34, %v4528_v0  ;;  %v7560_v0 = vld [vmem:[%s11501_s1 + $0xe54] sm:$0xf0]  ;;  %v3931_v7 = vpop.f32.mrf.mxu0  ;;  %v7095_v26 = vld [vmem:[%s11501_s1 + $0x11e8] sm:$0xf] }
 0x18d   :  { %4220 = vmatpush.bf16.msra.mxu3 %v6824_v57  ;;  %v6375_v57 = vld [vmem:[%s11501_s1 + $0xc48] sm:$0xf]  ;;  %v4503_v8 = vadd.f32 %v4502_v50, %v4501_v27  ;;  %v7524_v34 = vld [vmem:[%s11501_s1 + $0xd34] sm:$0xf0] }
 0x18e   :  { %4182 = vmatpush.bf16.msra.mxu0 %v6424_v1  ;;  %v3878_v1 = vadd.f32 %v10061_v51, %v9917_v2  ;;  %v6376_v10 = vor.u32 %v7496_v59, %v6375_v57  ;;  %v6632_v2 = vor.u32 %v7560_v0, %v6631_v56  ;;  %v6359_v51 = vld [vmem:[%s11501_s1 + $0xc28] sm:$0xf]  ;;  %v6488_v48 = vor.u32 %v7524_v34, %v6487_v24  ;;  %v7520_v50 = vld [vmem:[%s11501_s1 + $0xd14] sm:$0xf0] }
 0x18f   :  { %4195 = vmatpush.bf16.msra.mxu1 %v6552_v3  ;;  %v10325_v3 = vpop.f32.mrf.mxu3  ;;  %v4504_v5 = vrot.slane %v4503_v8, 1  ;;  %v6727_v57 = vld [vmem:[%s11501_s1 + $0xf08] sm:$0xf]  ;;  %v7584_v59 = vld [vmem:[%s11501_s1 + $0xf14] sm:$0xf0]  ;;  %v6344_v0 = vor.u32 %v7488_v47, %v6343_v46 }
 0x190   :  { %4208 = vmatpush.bf16.msra.mxu2 %v6680_v4  ;;  %v6759_v4 = vld [vmem:[%s11501_s1 + $0xf48] sm:$0xf]  ;;  %v3944_v11 = vpop.f32.mrf.mxu1 }
 0x191   :  { %4221 = vmatpush.bf16.msra.mxu3 %v6808_v13  ;;  %v4534_v13 = vrot.slane %v4533_v52, 2  ;;  %v6760_v27 = vor.u32 %v7592_v6, %v6759_v4  ;;  %v7130_v4 = vld [vmem:[%s11501_s1 + $0xec] sm:$0xf]  ;;  %v4921_v6 = vld [vmem:[%s11501_s1 + $0xf8] sm:$0xf0] }
 0x192   :  { %4183 = vmatpush.bf16.msra.mxu0 %v6408_v37  ;;  %v6615_v37 = vld [vmem:[%s11501_s1 + $0xe28] sm:$0xf]  ;;  %v3957_v63 = vpop.f32.mrf.mxu2  ;;  %v7162_v11 = vld [vmem:[%s11501_s1 + $0x1ec] sm:$0xf]  ;;  %v4924_v34 = vor.u32 %v7130_v4, %v4921_v6  ;;  %v7632_v4 = vld [vmem:[%s11501_s1 + $0x1094] sm:$0xf0] }
 0x193   :  { %4196 = vmatpush.bf16.msra.mxu1 %v6536_v40  ;;  %v7556_v40 = vld [vmem:[%s11501_s1 + $0xe34] sm:$0xf0]  ;;  %v7154_v63 = vld [vmem:[%s11501_s1 + $0x1ac] sm:$0xf]  ;;  %v7047_v6 = vld [vmem:[%s11501_s1 + $0x1188] sm:$0xf] }
 0x194   :  { %4209 = vmatpush.bf16.msra.mxu2 %v6664_v43  ;;  %v3891_v43 = vadd.f32 %v10069_v55, %v3878_v1  ;;  %v6616_v61 = vor.u32 %v7556_v40, %v6615_v37  ;;  %v7676_v1 = vld [vmem:[%s11501_s1 + $0x11f4] sm:$0xf0]  ;;  %v6951_v37 = vld [vmem:[%s11501_s1 + $0x10c8] sm:$0xf] }
 0x195   :  { %4222 = vmatpush.bf16.msra.mxu3 %v6792_v58  ;;  %v6360_v58 = vor.u32 %v7492_v60, %v6359_v51  ;;  %v6728_v60 = vor.u32 %v7584_v59, %v6727_v57  ;;  %v7640_v40 = vld [vmem:[%s11501_s1 + $0x10d4] sm:$0xf0]  ;;  %v4889_v57 = vld [vmem:[%s11501_s1 + $0xb8] sm:$0xf0] }
 0x196   :  { %4184 = vmatpush.bf16.msra.mxu0 %v6392_v53  ;;  %v3904_v55 = vadd.f32 %v10104_v12, %v3891_v43  ;;  %v6599_v53 = vld [vmem:[%s11501_s1 + $0xe08] sm:$0xf]  ;;  %v7552_v12 = vld [vmem:[%s11501_s1 + $0xe14] sm:$0xf0] }
 0x197   :  { %4197 = vmatpush.bf16.msra.mxu1 %v6520_v54  ;;  %v4535_v54 = vadd.f32 %v4534_v13, %v4533_v52  ;;  %v7644_v52 = vld [vmem:[%s11501_s1 + $0x10f4] sm:$0xf0]  ;;  %v3970_v56 = vpop.f32.mrf.mxu3  ;;  %v6472_v13 = vor.u32 %v7520_v50, %v6471_v49  ;;  %v6935_v50 = vld [vmem:[%s11501_s1 + $0x10a8] sm:$0xf] }
 0x198   :  { %4210 = vmatpush.bf16.msra.mxu2 %v6648_v36  ;;  %v6744_v36 = vor.u32 %v7588_v45, %v6743_v16  ;;  %v3917_v7 = vadd.f32 %v10115_v17, %v3904_v55  ;;  %v7096_v17 = vor.u32 %v7676_v1, %v7095_v26  ;;  %v7126_v16 = vld [vmem:[%s11501_s1 + $0xcc] sm:$0xf]  ;;  %v4905_v45 = vld [vmem:[%s11501_s1 + $0xd8] sm:$0xf0]  ;;  %v6952_v55 = vor.u32 %v7640_v40, %v6951_v37  ;;  %v6919_v1 = vld [vmem:[%s11501_s1 + $0x1088] sm:$0xf] }
 0x199   :  { %4223 = vmatpush.bf16.msra.mxu3 %v6776_v62  ;;  %v6967_v62 = vld [vmem:[%s11501_s1 + $0x10e8] sm:$0xf]  ;;  %v4536_v51 = vrot.slane %v4535_v54, 1  ;;  %v4908_v49 = vor.u32 %v7126_v16, %v4905_v45  ;;  %v7660_v16 = vld [vmem:[%s11501_s1 + $0x1174] sm:$0xf0] }
 0x19a   :  { %4185 = vmatpush.bf16.msra.mxu0 %v6376_v10  ;;  %v6600_v10 = vor.u32 %v7552_v12, %v6599_v53  ;;  %v6968_v24 = vor.u32 %v7644_v52, %v6967_v62  ;;  %v7636_v53 = vld [vmem:[%s11501_s1 + $0x10b4] sm:$0xf0]  ;;  %v7122_v12 = vld [vmem:[%s11501_s1 + $0xac] sm:$0xf]  ;;  %v5017_v62 = vld [vmem:[%s11501_s1 + $0x1b8] sm:$0xf0] }
 0x19b   :  { %4198 = vmatpush.bf16.msra.mxu1 %v6504_v14  ;;  %v5049_v14 = vld [vmem:[%s11501_s1 + $0x1f8] sm:$0xf0]  ;;  %v4537_v47 = vadd.f32 %v4536_v51, %v4535_v54  ;;  %v7063_v54 = vld [vmem:[%s11501_s1 + $0x11a8] sm:$0xf]  ;;  %v7150_v51 = vld [vmem:[%s11501_s1 + $0x18c] sm:$0xf] }
 0x19c   :  { %4211 = vmatpush.bf16.msra.mxu2 %v6632_v2  ;;  %v4505_v2 = vadd.f32 %v4504_v5, %v4503_v8  ;;  %v7079_v8 = vld [vmem:[%s11501_s1 + $0x11c8] sm:$0xf]  ;;  %v5052_v43 = vor.u32 %v7162_v11, %v5049_v14  ;;  %v7158_v5 = vld [vmem:[%s11501_s1 + $0x1cc] sm:$0xf]  ;;  %v4873_v11 = vld [vmem:[%s11501_s1 + $0x98] sm:$0xf0] }
 0x19d   :  { %4224 = vmatpush.bf16.msra.mxu3 %v6760_v27  ;;  %v3930_v27 = vadd.f32 %v10268_v15, %v3917_v7  ;;  %v7672_v15 = vld [vmem:[%s11501_s1 + $0x11d4] sm:$0xf0]  ;;  %v4556_v52 = vmul.f32 0.125, %v4537_v47  ;;  %v5020_v7 = vor.u32 %v7154_v63, %v5017_v62  ;;  %v7114_v45 = vld [vmem:[%s11501_s1 + $0x6c] sm:$0xf] }
 0x19e   :  { %4186 = vmatpush.bf16.msra.mxu0 %v6360_v58  ;;  %v5033_v58 = vld [vmem:[%s11501_s1 + $0x1d8] sm:$0xf0]  ;;  %v10433_v46 = vmul.f32 0.125, %v4505_v2 }
 0x19f   :  { %4199 = vmatpush.bf16.msra.mxu1 %v6488_v48  ;;  %v3943_v48 = vadd.f32 %v10277_v21, %v3930_v27  ;;  %v5036_v21 = vor.u32 %v7158_v5, %v5033_v58  ;;  %v6920_v27 = vor.u32 %v7632_v4, %v6919_v1  ;;  %v4857_v5 = vld [vmem:[%s11501_s1 + $0x78] sm:$0xf0]  ;;  %v7146_v58 = vld [vmem:[%s11501_s1 + $0x16c] sm:$0xf]  ;;  %v6871_v4 = vld [vmem:[%s11501_s1 + $0x1028] sm:$0xf] }
 0x1a0   :  { %4212 = vmatpush.bf16.msra.mxu2 %v6616_v61  ;;  %v7080_v61 = vor.u32 %v7672_v15, %v7079_v8  ;;  %v4560_v26 = vmul.f32 %v10433_v46, %v10433_v46  ;;  %v7628_v8 = vld [vmem:[%s11501_s1 + $0x1074] sm:$0xf0]  ;;  %v4985_v47 = vld [vmem:[%s11501_s1 + $0x178] sm:$0xf0] }
 0x1a1   :  { %4225 = vmatpush.bf16.msra.mxu3 %v6744_v36  ;;  %v7668_v36 = vld [vmem:[%s11501_s1 + $0x11b4] sm:$0xf0]  ;;  %v3956_v59 = vadd.f32 %v10312_v9, %v3943_v48  ;;  %v6936_v9 = vor.u32 %v7636_v53, %v6935_v50  ;;  %v4860_v50 = vor.u32 %v7114_v45, %v4857_v5  ;;  %v6887_v53 = vld [vmem:[%s11501_s1 + $0x1048] sm:$0xf]  ;;  %v4841_v63 = vld [vmem:[%s11501_s1 + $0x58] sm:$0xf0] }
 0x1a2   :  { %4187 = vmatpush.bf16.msra.mxu0 %v6344_v0  ;;  %v7064_v56 = vor.u32 %v7668_v36, %v7063_v54  ;;  %v4892_v0 = vor.u32 %v7122_v12, %v4889_v57  ;;  %v3981_v2 = vpop.f32.mrf.mxu0  ;;  %v7624_v54 = vld [vmem:[%s11501_s1 + $0x1054] sm:$0xf0]  ;;  %v4988_v36 = vor.u32 %v7146_v58, %v4985_v47  ;;  %v7102_v47 = vld [vmem:[%s11501_s1 + $0xc] sm:$0xf] }
 0x1a3   :  { %4200 = vmatpush.bf16.msra.mxu1 %v6472_v13  ;;  %v7664_v13 = vld [vmem:[%s11501_s1 + $0x1194] sm:$0xf0]  ;;  %v3969_v14 = vadd.f32 %v10325_v3, %v3956_v59  ;;  %v6903_v3 = vld [vmem:[%s11501_s1 + $0x1068] sm:$0xf]  ;;  %v7110_v59 = vld [vmem:[%s11501_s1 + $0x4c] sm:$0xf]  ;;  %v6888_v1 = vor.u32 %v7624_v54, %v6887_v53 }
 0x1a4   :  { %4213 = vmatpush.bf16.msra.mxu2 %v6600_v10  ;;  %v7118_v10 = vld [vmem:[%s11501_s1 + $0x8c] sm:$0xf]  ;;  %v7048_v37 = vor.u32 %v7664_v13, %v7047_v6  ;;  %v6904_v48 = vor.u32 %v7628_v8, %v6903_v3  ;;  %v7656_v57 = vld [vmem:[%s11501_s1 + $0x1154] sm:$0xf0] }
 0x1a5   :  { %4226 = vmatpush.bf16.msra.mxu3 %v6728_v60  ;;  %4188 = vmatmul.bf16.vlgmr.msra.gmra.mxu0 %v8569_v23  ;;  %v5001_v60 = vld [vmem:[%s11501_s1 + $0x198] sm:$0xf0]  ;;  %v4876_v40 = vor.u32 %v7118_v10, %v4873_v11  ;;  %v4844_v10 = vor.u32 %v7110_v59, %v4841_v63  ;;  %v7620_v11 = vld [vmem:[%s11501_s1 + $0x1034] sm:$0xf0] }
 0x1a6   :  { %4232 = vmatpush.bf16.msrb.mxu0 %v6968_v24  ;;  %4201 = vmatmul.bf16.vlgmr.msra.gmra.mxu1 %v8582_v31  ;;  %v4564_v24 = vsub.f32 %v4556_v52, %v4560_v26  ;;  %v5004_v15 = vor.u32 %v7150_v51, %v5001_v60  ;;  %v7142_v26 = vld [vmem:[%s11501_s1 + $0x14c] sm:$0xf]  ;;  %v6872_v3 = vor.u32 %v7620_v11, %v6871_v4  ;;  %v7616_v8 = vld [vmem:[%s11501_s1 + $0x1014] sm:$0xf0]  ;;  %v5305_v63 = vld [vmem:[%s11501_s1 + $0x3f8] sm:$0xf0] }
 0x1a7   :  { %4245 = vmatpush.bf16.msrb.mxu1 %v7096_v17  ;;  %4214 = vmatmul.bf16.vlgmr.msra.gmra.mxu2 %v8580_v28  ;;  %v3994_v17 = vpop.f32.mrf.mxu1  ;;  %v7106_v60 = vld [vmem:[%s11501_s1 + $0x2c] sm:$0xf] }
 0x1a8   :  { %4258 = vmatpush.bf16.msrb.mxu2 %v4924_v34  ;;  %4227 = vmatmul.bf16.vlgmr.msra.gmra.mxu3 %v8590_v35  ;;  %v3982_v34 = vadd.f32 %v3981_v2, %v3969_v14  ;;  %v6999_v14 = vld [vmem:[%s11501_s1 + $0x1128] sm:$0xf]  ;;  %v7652_v2 = vld [vmem:[%s11501_s1 + $0x1134] sm:$0xf0]  ;;  %v7290_v4 = vld [vmem:[%s11501_s1 + $0x5ec] sm:$0xf] }
 0x1a9   :  { %4271 = vmatpush.bf16.msrb.mxu3 %v5052_v43  ;;  %v7031_v43 = vld [vmem:[%s11501_s1 + $0x1168] sm:$0xf]  ;;  %v7000_v5 = vor.u32 %v7652_v2, %v6999_v14 }
 0x1aa   :  { %4233 = vmatpush.bf16.msrb.mxu0 %v6952_v55  ;;  %v4568_v55 = vmax.f32 %v4564_v24, 0.0  ;;  %v4007_v12 = vpop.f32.mrf.mxu2  ;;  %v4825_v24 = vld [vmem:[%s11501_s1 + $0x38] sm:$0xf0] }
 0x1ab   :  { %4246 = vmatpush.bf16.msrb.mxu1 %v7080_v61  ;;  %v3995_v61 = vadd.f32 %v3994_v17, %v3982_v34  ;;  %v4020_v52 = vpop.f32.mrf.mxu3  ;;  %v4828_v58 = vor.u32 %v7106_v60, %v4825_v24  ;;  %v5161_v60 = vld [vmem:[%s11501_s1 + $0x2d8] sm:$0xf0]  ;;  %v7222_v24 = vld [vmem:[%s11501_s1 + $0x3cc] sm:$0xf] }
 0x1ac   :  { %4259 = vmatpush.bf16.msrb.mxu2 %v4908_v49  ;;  %v7032_v49 = vor.u32 %v7660_v16, %v7031_v43  ;;  %v6983_v43 = vld [vmem:[%s11501_s1 + $0x1108] sm:$0xf] }
 0x1ad   :  { %4272 = vmatpush.bf16.msrb.mxu3 %v5036_v21  ;;  %v7015_v21 = vld [vmem:[%s11501_s1 + $0x1148] sm:$0xf]  ;;  %v4008_v62 = vadd.f32 %v4007_v12, %v3995_v61  ;;  %v7134_v61 = vld [vmem:[%s11501_s1 + $0x10c] sm:$0xf] }
 0x1ae   :  { %4234 = vmatpush.bf16.msrb.mxu0 %v6936_v9  ;;  %v4969_v9 = vld [vmem:[%s11501_s1 + $0x158] sm:$0xf0]  ;;  %v7016_v13 = vor.u32 %v7656_v57, %v7015_v21  ;;  %v7226_v12 = vld [vmem:[%s11501_s1 + $0x3ec] sm:$0xf] }
 0x1af   :  { %4247 = vmatpush.bf16.msrb.mxu1 %v7064_v56  ;;  %v3983_v56 = vpop.f32.mrf.mxu0  ;;  %v3996_v6 = vpop.f32.mrf.mxu1  ;;  %v4972_v51 = vor.u32 %v7142_v26, %v4969_v9  ;;  %v5308_v2 = vor.u32 %v7226_v12, %v5305_v63  ;;  %v7282_v12 = vld [vmem:[%s11501_s1 + $0x5ac] sm:$0xf] }
 0x1b0   :  { %4260 = vmatpush.bf16.msrb.mxu2 %v4892_v0  ;;  %v10540_v0 = vadd.f32 1e-05, %v4568_v55  ;;  %v4809_v55 = vld [vmem:[%s11501_s1 + $0x18] sm:$0xf0] }
 0x1b1   :  { %4273 = vmatpush.bf16.msrb.mxu3 %v5020_v7  ;;  %v4021_v7 = vadd.f32 %v4020_v52, %v4008_v62  ;;  %v7258_v62 = vld [vmem:[%s11501_s1 + $0x4ec] sm:$0xf]  ;;  %v5433_v52 = vld [vmem:[%s11501_s1 + $0x4f8] sm:$0xf0] }
 0x1b2   :  { %4235 = vmatpush.bf16.msrb.mxu0 %v6920_v27  ;;  %v7138_v27 = vld [vmem:[%s11501_s1 + $0x12c] sm:$0xf]  ;;  %v4009_v53 = vpop.f32.mrf.mxu2  ;;  %7677 = vrsqrt.f32 %v10540_v0  ;;  %v5561_v6 = vld [vmem:[%s11501_s1 + $0x5f8] sm:$0xf0]  ;;  %vm4582_vm4 = vweird.f32 %v10540_v0 }
 0x1b3   :  { %4248 = vmatpush.bf16.msrb.mxu1 %v7048_v37  ;;  %4493 = vst [vmem:[#allocation2] sm:$0xff] %v4021_v7  ;;  %v4506_v17 = vrot.slane %v4021_v7, 4  ;;  %v4529_v34 = vmul.f32 %v4021_v7, %v4021_v7  ;;  %v4953_v37 = vld [vmem:[%s11501_s1 + $0x138] sm:$0xf0]  ;;  %v4022_v57 = vpop.f32.mrf.mxu3  ;;  %v7250_v53 = vld [vmem:[%s11501_s1 + $0x4ac] sm:$0xf] }
 0x1b4   :  { %4261 = vmatpush.bf16.msrb.mxu2 %v4876_v40  ;;  %v6855_v40 = vld [vmem:[%s11501_s1 + $0x1008] sm:$0xf]  ;;  %v5529_v57 = vld [vmem:[%s11501_s1 + $0x5b8] sm:$0xf0] }
 0x1b5   :  { %4274 = vmatpush.bf16.msrb.mxu3 %v5004_v15  ;;  %v7648_v15 = vld [vmem:[%s11501_s1 + $0x1114] sm:$0xf0]  ;;  %v4507_v16 = vadd.f32 %v4506_v17, %v4021_v7  ;;  %v4538_v45 = vrot.slane %v4529_v34, 4  ;;  %v6856_v59 = vor.u32 %v7616_v8, %v6855_v40  ;;  %v5289_v17 = vld [vmem:[%s11501_s1 + $0x3d8] sm:$0xf0] }
 0x1b6   :  { %4236 = vmatpush.bf16.msrb.mxu0 %v6904_v48  ;;  %v4956_v48 = vor.u32 %v7138_v27, %v4953_v37  ;;  %v6984_v56 = vor.u32 %v7648_v15, %v6983_v43  ;;  %v5564_v27 = vor.u32 %v7290_v4, %v5561_v6  ;;  %v5417_v37 = vld [vmem:[%s11501_s1 + $0x4d8] sm:$0xf0]  ;;  %v7286_v8 = vld [vmem:[%s11501_s1 + $0x5cc] sm:$0xf] }
 0x1b7   :  { %4249 = vmatpush.bf16.msrb.mxu1 %v7032_v49  ;;  %v4937_v49 = vld [vmem:[%s11501_s1 + $0x118] sm:$0xf0]  ;;  %v4508_v54 = vrot.slane %v4507_v16, 2  ;;  %v4539_v21 = vadd.f32 %v4538_v45, %v4529_v34  ;;  %v7254_v34 = vld [vmem:[%s11501_s1 + $0x4cc] sm:$0xf] }
 0x1b8   :  { %4262 = vmatpush.bf16.msrb.mxu2 %v4860_v50  ;;  %v7194_v50 = vld [vmem:[%s11501_s1 + $0x2ec] sm:$0xf]  ;;  %v4940_v7 = vor.u32 %v7134_v61, %v4937_v49  ;;  %v5545_v43 = vld [vmem:[%s11501_s1 + $0x5d8] sm:$0xf0]  ;;  %v10639_v15 = vpop.eup %7677 }
 0x1b9   :  { %4275 = vmatpush.bf16.msrb.mxu3 %v4988_v36  ;;  %v5177_v36 = vld [vmem:[%s11501_s1 + $0x2f8] sm:$0xf0]  ;;  %v4509_v26 = vadd.f32 %v4508_v54, %v4507_v16  ;;  %v4540_v9 = vrot.slane %v4539_v21, 2  ;;  %v7186_v45 = vld [vmem:[%s11501_s1 + $0x2ac] sm:$0xf]  ;;  %v5548_v49 = vor.u32 %v7286_v8, %v5545_v43  ;;  %vm4583_vm1 = vweird.f32 %v10639_v15 }
 0x1ba   :  { %4237 = vmatpush.bf16.msrb.mxu0 %v6888_v1  ;;  %v4812_v1 = vor.u32 %v7102_v47, %v4809_v55  ;;  %v5292_v47 = vor.u32 %v7222_v24, %v5289_v17  ;;  %v5420_v55 = vor.u32 %v7254_v34, %v5417_v37  ;;  %v7218_v61 = vld [vmem:[%s11501_s1 + $0x3ac] sm:$0xf]  ;;  %v5401_v54 = vld [vmem:[%s11501_s1 + $0x4b8] sm:$0xf0]  ;;  %vm10865_vm6 = vmor %vm4582_vm4, %vm4583_vm1 }
 0x1bb   :  { %4250 = vmatpush.bf16.msrb.mxu1 %v7016_v13  ;;  %v5180_v13 = vor.u32 %v7194_v50, %v5177_v36  ;;  %v4510_v11 = vrot.slane %v4509_v26, 1  ;;  %v4541_v14 = vadd.f32 %v4540_v9, %v4539_v21  ;;  %v5273_v50 = vld [vmem:[%s11501_s1 + $0x3b8] sm:$0xf0]  ;;  %v5404_v9 = vor.u32 %v7250_v53, %v5401_v54  ;;  %v7174_v54 = vld [vmem:[%s11501_s1 + $0x24c] sm:$0xf] }
 0x1bc   :  { %4263 = vmatpush.bf16.msrb.mxu2 %v4844_v10  ;;  %v7190_v10 = vld [vmem:[%s11501_s1 + $0x2cc] sm:$0xf]  ;;  %v5257_v6 = vld [vmem:[%s11501_s1 + $0x398] sm:$0xf0] }
 0x1bd   :  { %4276 = vmatpush.bf16.msrb.mxu3 %v4972_v51  ;;  %v5436_v51 = vor.u32 %v7258_v62, %v5433_v52  ;;  %v4511_v40 = vadd.f32 %v4510_v11, %v4509_v26  ;;  %v5164_v16 = vor.u32 %v7190_v10, %v5161_v60  ;;  %v7182_v62 = vld [vmem:[%s11501_s1 + $0x28c] sm:$0xf]  ;;  %v5276_v26 = vor.u32 %v7218_v61, %v5273_v50  ;;  %v5113_v37 = vld [vmem:[%s11501_s1 + $0x278] sm:$0xf0] }
 0x1be   :  { %4238 = vmatpush.bf16.msrb.mxu0 %v6872_v3  ;;  %v4542_v3 = vrot.slane %v4541_v14, 1  ;;  %v7278_v11 = vld [vmem:[%s11501_s1 + $0x58c] sm:$0xf] }
 0x1bf   :  { %4251 = vmatpush.bf16.msrb.mxu1 %v7000_v5  ;;  %v10644_v5 = vmul.f32 0.125, %v4511_v40  ;;  %v7178_v60 = vld [vmem:[%s11501_s1 + $0x26c] sm:$0xf] }
 0x1c0   :  { %4264 = vmatpush.bf16.msrb.mxu2 %v4828_v58  ;;  %v4543_v58 = vadd.f32 %v4542_v3, %v4541_v14  ;;  %v5513_v14 = vld [vmem:[%s11501_s1 + $0x598] sm:$0xf0]  ;;  %v7210_v40 = vld [vmem:[%s11501_s1 + $0x36c] sm:$0xf] }
 0x1c1   :  { %4277 = vmatpush.bf16.msrb.mxu3 %v4956_v48  ;;  %v5145_v48 = vld [vmem:[%s11501_s1 + $0x2b8] sm:$0xf0]  ;;  %v4561_v36 = vmul.f32 %v10644_v5, %v10644_v5  ;;  %v5516_v43 = vor.u32 %v7278_v11, %v5513_v14  ;;  %v7202_v14 = vld [vmem:[%s11501_s1 + $0x32c] sm:$0xf] }
 0x1c2   :  { %4239 = vmatpush.bf16.msrb.mxu0 %v6856_v59  ;;  %v4557_v21 = vmul.f32 0.125, %v4543_v58  ;;  %v4577_v59 = vmul.f32 %v10639_v15, %v10540_v0  ;;  %v5148_v63 = vor.u32 %v7186_v45, %v5145_v48  ;;  %v4033_v24 = vpop.f32.mrf.mxu0  ;;  %v7242_v45 = vld [vmem:[%s11501_s1 + $0x46c] sm:$0xf]  ;;  %v5369_v58 = vld [vmem:[%s11501_s1 + $0x478] sm:$0xf0] }
 0x1c3   :  { %4252 = vmatpush.bf16.msrb.mxu1 %v6984_v56  ;;  %v7214_v56 = vld [vmem:[%s11501_s1 + $0x38c] sm:$0xf]  ;;  %v4046_v8 = vpop.f32.mrf.mxu1  ;;  %v5372_v53 = vor.u32 %v7242_v45, %v5369_v58  ;;  %v5081_v11 = vld [vmem:[%s11501_s1 + $0x238] sm:$0xf0] }
 0x1c4   :  { %4265 = vmatpush.bf16.msrb.mxu2 %v4812_v1  ;;  %v4565_v52 = vsub.f32 %v4557_v21, %v4561_v36  ;;  %v7686_v1 = vld [vmem:[%s11503_s2] ss:$4 sm:$0xf]  ;;  %v5260_v17 = vor.u32 %v7214_v56, %v5257_v6  ;;  %v5097_v21 = vld [vmem:[%s11501_s1 + $0x258] sm:$0xf0] }
 0x1c5   :  { %4278 = vmatpush.bf16.msrb.mxu3 %v4940_v7  ;;  %4240 = vmatmul.bf16.vlgmr.msrb.gmra.mxu0 %v8776_v32  ;;  %v607_v4 = vperm.slane %v7686_v1, 2  ;;  %v7246_v7 = vld [vmem:[%s11501_s1 + $0x48c] sm:$0xf]  ;;  %v5100_v1 = vor.u32 %v7174_v54, %v5097_v21  ;;  %v5193_v58 = vld [vmem:[%s11501_s1 + $0x318] sm:$0xf0] }
 0x1c6   :  { %4284 = vmatpush.bf16.msra.mxu0 %v5180_v13  ;;  %4253 = vmatmul.bf16.vlgmr.msrb.gmra.mxu1 %v8787_v39  ;;  %v5385_v13 = vld [vmem:[%s11501_s1 + $0x498] sm:$0xf0]  ;;  %v4569_v10 = vmax.f32 %v4565_v52, 0.0  ;;  %v7206_v36 = vld [vmem:[%s11501_s1 + $0x34c] sm:$0xf] }
 0x1c7   :  { %4297 = vmatpush.bf16.msra.mxu1 %v5308_v2  ;;  %4266 = vmatmul.bf16.vlgmr.msrb.gmra.mxu2 %v8004_v19  ;;  %v5129_v19 = vld [vmem:[%s11501_s1 + $0x298] sm:$0xf0]  ;;  %v4578_v2 = vmul.f32 %v10639_v15, %v4577_v59  ;;  %v5388_v34 = vor.u32 %v7246_v7, %v5385_v13  ;;  %v4034_v3 = vadd.f32 %v4033_v24, %v607_v4  ;;  %v7198_v45 = vld [vmem:[%s11501_s1 + $0x30c] sm:$0xf] }
 0x1c8   :  { %4310 = vmatpush.bf16.msra.mxu2 %v5436_v51  ;;  %4279 = vmatmul.bf16.vlgmr.msrb.gmra.mxu3 %v8008_v22  ;;  %v5532_v22 = vor.u32 %v7282_v12, %v5529_v57  ;;  %v5132_v51 = vor.u32 %v7182_v62, %v5129_v19  ;;  %v5225_v59 = vld [vmem:[%s11501_s1 + $0x358] sm:$0xf0] }
 0x1c9   :  { %4323 = vmatpush.bf16.msra.mxu3 %v5564_v27  ;;  %v10706_v27 = vadd.f32 1e-05, %v4569_v10  ;;  %v4047_v48 = vadd.f32 %v4046_v8, %v4034_v3  ;;  %v10730_v61 = vmul.f32 0.5, %v4578_v2  ;;  %v5353_v62 = vld [vmem:[%s11501_s1 + $0x458] sm:$0xf0]  ;;  %v5228_v7 = vor.u32 %v7206_v36, %v5225_v59 }
 0x1ca   :  { %4285 = vmatpush.bf16.msra.mxu0 %v5164_v16  ;;  %v5241_v16 = vld [vmem:[%s11501_s1 + $0x378] sm:$0xf0]  ;;  %v4059_v12 = vpop.f32.mrf.mxu2  ;;  %v7170_v10 = vld [vmem:[%s11501_s1 + $0x22c] sm:$0xf] }
 0x1cb   :  { %4298 = vmatpush.bf16.msra.mxu1 %v5292_v47  ;;  %7679 = vrsqrt.f32 %v10706_v27  ;;  %v7274_v47 = vld [vmem:[%s11501_s1 + $0x56c] sm:$0xf]  ;;  %v5244_v50 = vor.u32 %v7210_v40, %v5241_v16  ;;  %v4060_v52 = vadd.f32 %v4059_v12, %v4047_v48  ;;  %v5481_v19 = vld [vmem:[%s11501_s1 + $0x558] sm:$0xf0]  ;;  %v4580_v56 = vsub.f32 1.5, %v10730_v61  ;;  %v4048_v2 = vpop.f32.mrf.mxu1 }
 0x1cc   :  { %4311 = vmatpush.bf16.msra.mxu2 %v5420_v55  ;;  %v5497_v55 = vld [vmem:[%s11501_s1 + $0x578] sm:$0xf0]  ;;  %v7166_v3 = vld [vmem:[%s11501_s1 + $0x20c] sm:$0xf]  ;;  %vm4592_vm2 = vweird.f32 %v10706_v27 }
 0x1cd   :  { %4324 = vmatpush.bf16.msra.mxu3 %v5548_v49  ;;  %v5116_v49 = vor.u32 %v7178_v60, %v5113_v37  ;;  %v5500_v57 = vor.u32 %v7274_v47, %v5497_v55  ;;  %v5209_v24 = vld [vmem:[%s11501_s1 + $0x338] sm:$0xf0]  ;;  %v7266_v37 = vld [vmem:[%s11501_s1 + $0x52c] sm:$0xf] }
 0x1ce   :  { %4286 = vmatpush.bf16.msra.mxu0 %v5148_v63  ;;  %v7238_v63 = vld [vmem:[%s11501_s1 + $0x44c] sm:$0xf]  ;;  %v5465_v40 = vld [vmem:[%s11501_s1 + $0x538] sm:$0xf0]  ;;  %v5212_v47 = vor.u32 %v7202_v14, %v5209_v24 }
 0x1cf   :  { %4299 = vmatpush.bf16.msra.mxu1 %v5276_v26  ;;  %v4072_v26 = vpop.f32.mrf.mxu3  ;;  %v5356_v13 = vor.u32 %v7238_v63, %v5353_v62  ;;  %v5065_v16 = vld [vmem:[%s11501_s1 + $0x218] sm:$0xf0]  ;;  %v7230_v48 = vld [vmem:[%s11501_s1 + $0x40c] sm:$0xf]  ;;  %v5468_v54 = vor.u32 %v7266_v37, %v5465_v40 }
 0x1d0   :  { %4312 = vmatpush.bf16.msra.mxu2 %v5404_v9  ;;  %v7270_v9 = vld [vmem:[%s11501_s1 + $0x54c] sm:$0xf]  ;;  %v10757_v4 = vadd.f32 %v4072_v26, %v4060_v52  ;;  %v5321_v61 = vld [vmem:[%s11501_s1 + $0x418] sm:$0xf0]  ;;  %v5068_v52 = vor.u32 %v7166_v3, %v5065_v16 }
 0x1d1   :  { %4325 = vmatpush.bf16.msra.mxu3 %v5532_v22  ;;  %v4035_v22 = vpop.f32.mrf.mxu0  ;;  %v10759_v6 = vpop.eup %7679  ;;  %v5484_v60 = vor.u32 %v7270_v9, %v5481_v19  ;;  %v5449_v21 = vld [vmem:[%s11501_s1 + $0x518] sm:$0xf0]  ;;  %v7322_v36 = vld [vmem:[%s11501_s1 + $0x6ec] sm:$0xf]  ;;  %v4581_v19 = vmul.f32 %v10639_v15, %v4580_v56 }
 0x1d2   :  { %4287 = vmatpush.bf16.msra.mxu0 %v5132_v51  ;;  %v4587_v51 = vmul.f32 %v10759_v6, %v10706_v27  ;;  %v7354_v59 = vld [vmem:[%s11501_s1 + $0x7ec] sm:$0xf]  ;;  %v5817_v63 = vld [vmem:[%s11501_s1 + $0x7f8] sm:$0xf0]  ;;  %vm4593_vm0 = vweird.f32 %v10759_v6  ;;  %v5324_v22 = vor.u32 %v7230_v48, %v5321_v61 }
 0x1d3   :  { %4300 = vmatpush.bf16.msra.mxu1 %v5260_v17  ;;  %v7234_v17 = vld [vmem:[%s11501_s1 + $0x42c] sm:$0xf]  ;;  %v5945_v9 = vld [vmem:[%s11501_s1 + $0x8f8] sm:$0xf0]  ;;  %vm4594_vm3 = vmor %vm4592_vm2, %vm4593_vm0  ;;  %vm4787_vm0 = vcmask 1043456  }
 0x1d4   :  { %4313 = vmatpush.bf16.msra.mxu2 %v5388_v34  ;;  %v5337_v34 = vld [vmem:[%s11501_s1 + $0x438] sm:$0xf0]  ;;  %v4588_v8 = vmul.f32 %v10759_v6, %v4587_v51  ;;  %v7386_v26 = vld [vmem:[%s11501_s1 + $0x8ec] sm:$0xf]  ;;  %v5820_v51 = vor.u32 %v7354_v59, %v5817_v63 }
 0x1d5   :  { %4326 = vmatpush.bf16.msra.mxu3 %v5516_v43  ;;  %v5084_v43 = vor.u32 %v7170_v10, %v5081_v11  ;;  %v5340_v55 = vor.u32 %v7234_v17, %v5337_v34  ;;  %v7318_v14 = vld [vmem:[%s11501_s1 + $0x6cc] sm:$0xf]  ;;  %v5673_v2 = vld [vmem:[%s11501_s1 + $0x6d8] sm:$0xf0] }
 0x1d6   :  { %4288 = vmatpush.bf16.msra.mxu0 %v5116_v49  ;;  %v7262_v49 = vld [vmem:[%s11501_s1 + $0x50c] sm:$0xf]  ;;  %v5801_v24 = vld [vmem:[%s11501_s1 + $0x7d8] sm:$0xf0]  ;;  %v5676_v16 = vor.u32 %v7318_v14, %v5673_v2 }
 0x1d7   :  { %4301 = vmatpush.bf16.msra.mxu1 %v5244_v50  ;;  %v4061_v50 = vpop.f32.mrf.mxu2  ;;  %v4074_v12 = vpop.f32.mrf.mxu3  ;;  %v5452_v56 = vor.u32 %v7262_v49, %v5449_v21  ;;  %v7350_v27 = vld [vmem:[%s11501_s1 + $0x7cc] sm:$0xf]  ;;  %v5929_v40 = vld [vmem:[%s11501_s1 + $0x8d8] sm:$0xf0] }
 0x1d8   :  { %4314 = vmatpush.bf16.msra.mxu2 %v5372_v53  ;;  %v4589_v53 = vmul.f32 0.5, %v4588_v8  ;;  %v7382_v37 = vld [vmem:[%s11501_s1 + $0x8cc] sm:$0xf]  ;;  %v6057_v8 = vld [vmem:[%s11501_s1 + $0x9d8] sm:$0xf0] }
 0x1d9   :  { %4327 = vmatpush.bf16.msra.mxu3 %v5500_v57  ;;  %v5689_v57 = vld [vmem:[%s11501_s1 + $0x6f8] sm:$0xf0]  ;;  %v7346_v48 = vld [vmem:[%s11501_s1 + $0x7ac] sm:$0xf] }
 0x1da   :  { %4289 = vmatpush.bf16.msra.mxu0 %v5100_v1  ;;  %v4590_v62 = vsub.f32 1.5, %v4589_v53  ;;  %v5196_v1 = vor.u32 %v7198_v45, %v5193_v58  ;;  %v5692_v11 = vor.u32 %v7322_v36, %v5689_v57  ;;  %v5804_v45 = vor.u32 %v7350_v27, %v5801_v24  ;;  %v5785_v49 = vld [vmem:[%s11501_s1 + $0x7b8] sm:$0xf0]  ;;  %v7378_v50 = vld [vmem:[%s11501_s1 + $0x8ac] sm:$0xf] }
 0x1db   :  { %4302 = vmatpush.bf16.msra.mxu1 %v5228_v7  ;;  %v7418_v7 = vld [vmem:[%s11501_s1 + $0x9ec] sm:$0xf]  ;;  %v5932_v58 = vor.u32 %v7382_v37, %v5929_v40  ;;  %v5913_v53 = vld [vmem:[%s11501_s1 + $0x8b8] sm:$0xf0]  ;;  %v5788_v36 = vor.u32 %v7346_v48, %v5785_v49 }
 0x1dc   :  { %4315 = vmatpush.bf16.msra.mxu2 %v5356_v13  ;;  %v6073_v13 = vld [vmem:[%s11501_s1 + $0x9f8] sm:$0xf0]  ;;  %v4591_v10 = vmul.f32 %v10759_v6, %v4590_v62  ;;  %v5916_v12 = vor.u32 %v7378_v50, %v5913_v53  ;;  %v7310_v57 = vld [vmem:[%s11501_s1 + $0x68c] sm:$0xf] }
 0x1dd   :  { %4328 = vmatpush.bf16.msra.mxu3 %v5484_v60  ;;  %v5948_v60 = vor.u32 %v7386_v26, %v5945_v9  ;;  %v6076_v34 = vor.u32 %v7418_v7, %v6073_v13  ;;  %v5641_v59 = vld [vmem:[%s11501_s1 + $0x698] sm:$0xf0]  ;;  %v7374_v63 = vld [vmem:[%s11501_s1 + $0x88c] sm:$0xf] }
 0x1de   :  { %4290 = vmatpush.bf16.msra.mxu0 %v5084_v43  ;;  %v4595_v17 = vsel %vm4594_vm3, %v10759_v6, %v4591_v10  ;;  %v7414_v6 = vld [vmem:[%s11501_s1 + $0x9cc] sm:$0xf]  ;;  %v4585_v43 = vsel %vm10865_vm6, %v10639_v15, %v4581_v19  ;;  %v5897_v62 = vld [vmem:[%s11501_s1 + $0x898] sm:$0xf0]  ;;  %v5644_v9 = vor.u32 %v7310_v57, %v5641_v59 }
 0x1df   :  { %4303 = vmatpush.bf16.msra.mxu1 %v5212_v47  ;;  %v4620_v0 = vrot.slane %v4595_v17, 7  ;;  %v7314_v47 = vld [vmem:[%s11501_s1 + $0x6ac] sm:$0xf]  ;;  %v6060_v61 = vor.u32 %v7414_v6, %v6057_v8  ;;  %v6025_v26 = vld [vmem:[%s11501_s1 + $0x998] sm:$0xf0] }
 0x1e0   :  { %4316 = vmatpush.bf16.msra.mxu2 %v5340_v55  ;;  %v5657_v55 = vld [vmem:[%s11501_s1 + $0x6b8] sm:$0xf0]  ;;  %v7306_v7 = vld [vmem:[%s11501_s1 + $0x66c] sm:$0xf] }
 0x1e1   :  { %4329 = vmatpush.bf16.msra.mxu3 %v5468_v54  ;;  %v10888_v15 = vsel %vm4623_vm5, %v4585_v43, %v4620_v0  ;;  %v7410_v54 = vld [vmem:[%s11501_s1 + $0x9ac] sm:$0xf]  ;;  %v5660_v21 = vor.u32 %v7314_v47, %v5657_v55  ;;  %v5625_v13 = vld [vmem:[%s11501_s1 + $0x678] sm:$0xf0] }
 0x1e2   :  { %4291 = vmatpush.bf16.msra.mxu0 %v5068_v52  ;;  %v7406_v52 = vld [vmem:[%s11501_s1 + $0x98c] sm:$0xf]  ;;  %v4085_v19 = vpop.f32.mrf.mxu0  ;;  %v5753_v2 = vld [vmem:[%s11501_s1 + $0x778] sm:$0xf0]  ;;  %v5628_v17 = vor.u32 %v7306_v7, %v5625_v13 }
 0x1e3   :  { %4304 = vmatpush.bf16.msra.mxu1 %v5196_v1  ;;  %v7338_v10 = vld [vmem:[%s11501_s1 + $0x76c] sm:$0xf]  ;;  %v6028_v14 = vor.u32 %v7406_v52, %v6025_v26  ;;  %v5609_v3 = vld [vmem:[%s11501_s1 + $0x658] sm:$0xf0] }
 0x1e4   :  { %4317 = vmatpush.bf16.msra.mxu2 %v5324_v22  ;;  %v5900_v22 = vor.u32 %v7374_v63, %v5897_v62  ;;  %v7402_v27 = vld [vmem:[%s11501_s1 + $0x96c] sm:$0xf]  ;;  %v5737_v43 = vld [vmem:[%s11501_s1 + $0x758] sm:$0xf0] }
 0x1e5   :  { %4330 = vmatpush.bf16.msra.mxu3 %v5452_v56  ;;  %4292 = vmatmul.bf16.vlgmr.msra.gmra.mxu0 %v8002_v18  ;;  %v7342_v18 = vld [vmem:[%s11501_s1 + $0x78c] sm:$0xf]  ;;  %v4086_v56 = vadd.f32 %v4085_v19, %v10757_v4  ;;  %v6009_v4 = vld [vmem:[%s11501_s1 + $0x978] sm:$0xf0] }
 0x1e6   :  { %4336 = vmatpush.bf16.msrb.mxu0 %v5692_v11  ;;  %4305 = vmatmul.bf16.vlgmr.msra.gmra.mxu1 %v8006_v20  ;;  %v5769_v20 = vld [vmem:[%s11501_s1 + $0x798] sm:$0xf0]  ;;  %v4098_v11 = vpop.f32.mrf.mxu1  ;;  %v7302_v40 = vld [vmem:[%s11501_s1 + $0x64c] sm:$0xf]  ;;  %v6012_v8 = vor.u32 %v7402_v27, %v6009_v4 }
 0x1e7   :  { %4349 = vmatpush.bf16.msrb.mxu1 %v5820_v51  ;;  %4318 = vmatmul.bf16.vlgmr.msra.gmra.mxu2 %v8166_v41  ;;  %v6041_v41 = vld [vmem:[%s11501_s1 + $0x9b8] sm:$0xf0]  ;;  %v5772_v1 = vor.u32 %v7342_v18, %v5769_v20  ;;  %v7370_v51 = vld [vmem:[%s11501_s1 + $0x86c] sm:$0xf]  ;;  %v4099_v24 = vadd.f32 %v4098_v11, %v4086_v56 }
 0x1e8   :  { %4362 = vmatpush.bf16.msrb.mxu2 %v5948_v60  ;;  %4331 = vmatmul.bf16.vlgmr.msra.gmra.mxu3 %v8170_v44  ;;  %v6044_v44 = vor.u32 %v7410_v54, %v6041_v41  ;;  %v5881_v60 = vld [vmem:[%s11501_s1 + $0x878] sm:$0xf0]  ;;  %v7334_v0 = vld [vmem:[%s11501_s1 + $0x74c] sm:$0xf] }
 0x1e9   :  { %4375 = vmatpush.bf16.msrb.mxu3 %v6076_v34  ;;  %v5756_v34 = vor.u32 %v7338_v10, %v5753_v2  ;;  %v5884_v37 = vor.u32 %v7370_v51, %v5881_v60  ;;  %v7398_v55 = vld [vmem:[%s11501_s1 + $0x94c] sm:$0xf]  ;;  %v5993_v48 = vld [vmem:[%s11501_s1 + $0x958] sm:$0xf0]  ;;  %v5740_v53 = vor.u32 %v7334_v0, %v5737_v43 }
 0x1ea   :  { %4337 = vmatpush.bf16.msrb.mxu0 %v5676_v16  ;;  %v4111_v6 = vpop.f32.mrf.mxu2  ;;  %v7366_v16 = vld [vmem:[%s11501_s1 + $0x84c] sm:$0xf]  ;;  %v4087_v50 = vpop.f32.mrf.mxu0  ;;  %v5996_v57 = vor.u32 %v7398_v55, %v5993_v48  ;;  %v5721_v59 = vld [vmem:[%s11501_s1 + $0x738] sm:$0xf0] }
 0x1eb   :  { %4350 = vmatpush.bf16.msrb.mxu1 %v5804_v45  ;;  %v5865_v45 = vld [vmem:[%s11501_s1 + $0x858] sm:$0xf0]  ;;  %v4124_v47 = vpop.f32.mrf.mxu3  ;;  %v7298_v41 = vld [vmem:[%s11501_s1 + $0x62c] sm:$0xf] }
 0x1ec   :  { %4363 = vmatpush.bf16.msrb.mxu2 %v5932_v58  ;;  %v4112_v58 = vadd.f32 %v4111_v6, %v4099_v24  ;;  %v5868_v54 = vor.u32 %v7366_v16, %v5865_v45  ;;  %v7362_v18 = vld [vmem:[%s11501_s1 + $0x82c] sm:$0xf]  ;;  %v5977_v63 = vld [vmem:[%s11501_s1 + $0x938] sm:$0xf0] }
 0x1ed   :  { %4376 = vmatpush.bf16.msrb.mxu3 %v6060_v61  ;;  %v5612_v61 = vor.u32 %v7302_v40, %v5609_v3  ;;  %v7394_v20 = vld [vmem:[%s11501_s1 + $0x92c] sm:$0xf]  ;;  %v5577_v26 = vld [vmem:[%s11501_s1 + $0x618] sm:$0xf0] }
 0x1ee   :  { %4338 = vmatpush.bf16.msrb.mxu0 %v5660_v21  ;;  %v10982_v49 = vadd.f32 %v4124_v47, %v4112_v58  ;;  %v5593_v21 = vld [vmem:[%s11501_s1 + $0x638] sm:$0xf0]  ;;  %v7294_v52 = vld [vmem:[%s11501_s1 + $0x60c] sm:$0xf]  ;;  %v5980_v10 = vor.u32 %v7394_v20, %v5977_v63 }
 0x1ef   :  { %4351 = vmatpush.bf16.msrb.mxu1 %v5788_v36  ;;  %v7330_v36 = vld [vmem:[%s11501_s1 + $0x72c] sm:$0xf]  ;;  %v5596_v62 = vor.u32 %v7298_v41, %v5593_v21  ;;  %v5833_v56 = vld [vmem:[%s11501_s1 + $0x818] sm:$0xf0]  ;;  %v5580_v4 = vor.u32 %v7294_v52, %v5577_v26 }
 0x1f0   :  { %4364 = vmatpush.bf16.msrb.mxu2 %v5916_v12  ;;  %v4100_v12 = vpop.f32.mrf.mxu1  ;;  %v7358_v7 = vld [vmem:[%s11501_s1 + $0x80c] sm:$0xf]  ;;  %v6201_v60 = vld [vmem:[%s11501_s1 + $0xaf8] sm:$0xf0] }
 0x1f1   :  { %4377 = vmatpush.bf16.msrb.mxu3 %v6044_v44  ;;  %v5849_v44 = vld [vmem:[%s11501_s1 + $0x838] sm:$0xf0]  ;;  %v7390_v11 = vld [vmem:[%s11501_s1 + $0x90c] sm:$0xf]  ;;  %v5836_v40 = vor.u32 %v7358_v7, %v5833_v56 }
 0x1f2   :  { %4339 = vmatpush.bf16.msrb.mxu0 %v5644_v9  ;;  %v5724_v9 = vor.u32 %v7330_v36, %v5721_v59  ;;  %v5852_v19 = vor.u32 %v7362_v18, %v5849_v44  ;;  %v4113_v13 = vpop.f32.mrf.mxu2  ;;  %v7450_v51 = vld [vmem:[%s11501_s1 + $0xaec] sm:$0xf]  ;;  %v6329_v24 = vld [vmem:[%s11501_s1 + $0xbf8] sm:$0xf0] }
 0x1f3   :  { %4352 = vmatpush.bf16.msrb.mxu1 %v5772_v1  ;;  %v7326_v1 = vld [vmem:[%s11501_s1 + $0x70c] sm:$0xf]  ;;  %v4126_v2 = vpop.f32.mrf.mxu3  ;;  %v6585_v0 = vld [vmem:[%s11501_s1 + $0xdf8] sm:$0xf0] }
 0x1f4   :  { %4365 = vmatpush.bf16.msrb.mxu2 %v5900_v22  ;;  %v5705_v22 = vld [vmem:[%s11501_s1 + $0x718] sm:$0xf0]  ;;  %v7482_v27 = vld [vmem:[%s11501_s1 + $0xbec] sm:$0xf] }
 0x1f5   :  { %4378 = vmatpush.bf16.msrb.mxu3 %v6028_v14  ;;  %v5961_v14 = vld [vmem:[%s11501_s1 + $0x918] sm:$0xf0]  ;;  %v7546_v3 = vld [vmem:[%s11501_s1 + $0xdec] sm:$0xf]  ;;  %v6332_v43 = vor.u32 %v7482_v27, %v6329_v24 }
 0x1f6   :  { %4340 = vmatpush.bf16.msrb.mxu0 %v5628_v17  ;;  %v7514_v17 = vld [vmem:[%s11501_s1 + $0xcec] sm:$0xf]  ;;  %v5964_v6 = vor.u32 %v7390_v11, %v5961_v14  ;;  %v6185_v58 = vld [vmem:[%s11501_s1 + $0xad8] sm:$0xf0]  ;;  %v6588_v55 = vor.u32 %v7546_v3, %v6585_v0 }
 0x1f7   :  { %4353 = vmatpush.bf16.msrb.mxu1 %v5756_v34  ;;  %v6457_v34 = vld [vmem:[%s11501_s1 + $0xcf8] sm:$0xf0]  ;;  %v7446_v45 = vld [vmem:[%s11501_s1 + $0xacc] sm:$0xf] }
 0x1f8   :  { %4366 = vmatpush.bf16.msrb.mxu2 %v5884_v37  ;;  %v5708_v37 = vor.u32 %v7326_v1, %v5705_v22  ;;  %v6460_v16 = vor.u32 %v7514_v17, %v6457_v34  ;;  %v7478_v47 = vld [vmem:[%s11501_s1 + $0xbcc] sm:$0xf]  ;;  %v6313_v48 = vld [vmem:[%s11501_s1 + $0xbd8] sm:$0xf0]  ;;  %v6188_v41 = vor.u32 %v7446_v45, %v6185_v58 }
 0x1f9   :  { %4379 = vmatpush.bf16.msrb.mxu3 %v6012_v8  ;;  %v6204_v8 = vor.u32 %v7450_v51, %v6201_v60  ;;  %v6441_v50 = vld [vmem:[%s11501_s1 + $0xcd8] sm:$0xf0]  ;;  %v6316_v21 = vor.u32 %v7478_v47, %v6313_v48  ;;  %v7442_v12 = vld [vmem:[%s11501_s1 + $0xaac] sm:$0xf] }
 0x1fa   :  { %4341 = vmatpush.bf16.msrb.mxu0 %v5612_v61  ;;  %v7510_v61 = vld [vmem:[%s11501_s1 + $0xccc] sm:$0xf]  ;;  %v6297_v44 = vld [vmem:[%s11501_s1 + $0xbb8] sm:$0xf0] }
 0x1fb   :  { %4354 = vmatpush.bf16.msrb.mxu1 %v5740_v53  ;;  %v7542_v53 = vld [vmem:[%s11501_s1 + $0xdcc] sm:$0xf]  ;;  %v6444_v36 = vor.u32 %v7510_v61, %v6441_v50  ;;  %v6425_v63 = vld [vmem:[%s11501_s1 + $0xcb8] sm:$0xf0] }
 0x1fc   :  { %4367 = vmatpush.bf16.msrb.mxu2 %v5868_v54  ;;  %v6569_v54 = vld [vmem:[%s11501_s1 + $0xdd8] sm:$0xf0]  ;;  %v7474_v59 = vld [vmem:[%s11501_s1 + $0xbac] sm:$0xf] }
 0x1fd   :  { %4380 = vmatpush.bf16.msrb.mxu3 %v5996_v57  ;;  %v6169_v57 = vld [vmem:[%s11501_s1 + $0xab8] sm:$0xf0]  ;;  %v6572_v18 = vor.u32 %v7542_v53, %v6569_v54  ;;  %v7506_v20 = vld [vmem:[%s11501_s1 + $0xcac] sm:$0xf]  ;;  %v6300_v26 = vor.u32 %v7474_v59, %v6297_v44 }
 0x1fe   :  { %4342 = vmatpush.bf16.msrb.mxu0 %v5596_v62  ;;  %v6553_v62 = vld [vmem:[%s11501_s1 + $0xdb8] sm:$0xf0]  ;;  %v6172_v52 = vor.u32 %v7442_v12, %v6169_v57  ;;  %v7502_v22 = vld [vmem:[%s11501_s1 + $0xc8c] sm:$0xf] }
 0x1ff   :  { %4355 = vmatpush.bf16.msrb.mxu1 %v5724_v9  ;;  %v6428_v9 = vor.u32 %v7506_v20, %v6425_v63  ;;  %v6281_v1 = vld [vmem:[%s11501_s1 + $0xb98] sm:$0xf0]  ;;  %v7434_v60 = vld [vmem:[%s11501_s1 + $0xa6c] sm:$0xf] }
 0x200   :  { %4368 = vmatpush.bf16.msrb.mxu2 %v5852_v19  ;;  %v7470_v19 = vld [vmem:[%s11501_s1 + $0xb8c] sm:$0xf]  ;;  %v6409_v7 = vld [vmem:[%s11501_s1 + $0xc98] sm:$0xf0] }
 0x201   :  { %4381 = vmatpush.bf16.msrb.mxu3 %v5980_v10  ;;  %v7534_v10 = vld [vmem:[%s11501_s1 + $0xd8c] sm:$0xf]  ;;  %v6537_v56 = vld [vmem:[%s11501_s1 + $0xd98] sm:$0xf0]  ;;  %v6284_v2 = vor.u32 %v7470_v19, %v6281_v1  ;;  %v6412_v51 = vor.u32 %v7502_v22, %v6409_v7 }
 0x202   :  { %4343 = vmatpush.bf16.msrb.mxu0 %v5580_v4  ;;  %v11126_v13 = vpop.f32.mrf.mxu0  ;;  %v6137_v27 = vld [vmem:[%s11501_s1 + $0xa78] sm:$0xf0]  ;;  %v7466_v4 = vld [vmem:[%s11501_s1 + $0xb6c] sm:$0xf]  ;;  %v6540_v24 = vor.u32 %v7534_v10, %v6537_v56 }
 0x203   :  { %4356 = vmatpush.bf16.msrb.mxu1 %v5708_v37  ;;  %v11134_v14 = vpop.f32.mrf.mxu1  ;;  %v6265_v17 = vld [vmem:[%s11501_s1 + $0xb78] sm:$0xf0]  ;;  %v7498_v34 = vld [vmem:[%s11501_s1 + $0xc6c] sm:$0xf]  ;;  %v6140_v0 = vor.u32 %v7434_v60, %v6137_v27 }
 0x204   :  { %4369 = vmatpush.bf16.msrb.mxu2 %v5836_v40  ;;  %v6393_v37 = vld [vmem:[%s11501_s1 + $0xc78] sm:$0xf0]  ;;  %v7530_v40 = vld [vmem:[%s11501_s1 + $0xd6c] sm:$0xf] }
 0x205   :  { %4382 = vmatpush.bf16.msrb.mxu3 %v5964_v6  ;;  %4344 = vmatmul.bf16.vlgmr.msrb.gmra.mxu0 %v8158_v38  ;;  %v7538_v38 = vld [vmem:[%s11501_s1 + $0xdac] sm:$0xf]  ;;  %v6521_v3 = vld [vmem:[%s11501_s1 + $0xd78] sm:$0xf0]  ;;  %v6268_v6 = vor.u32 %v7466_v4, %v6265_v17 }
 0x206   :  { %4388 = vmatpush.bf16.msra.mxu0 %v6204_v8  ;;  %4357 = vmatmul.bf16.vlgmr.msrb.gmra.mxu1 %v8168_v42  ;;  %v7438_v42 = vld [vmem:[%s11501_s1 + $0xa8c] sm:$0xf]  ;;  %v6396_v8 = vor.u32 %v7498_v34, %v6393_v37  ;;  %v6524_v58 = vor.u32 %v7530_v40, %v6521_v3  ;;  %v6377_v61 = vld [vmem:[%s11501_s1 + $0xc58] sm:$0xf0] }
 0x207   :  { %4401 = vmatpush.bf16.msra.mxu1 %v6332_v43  ;;  %4370 = vmatmul.bf16.vlgmr.msrb.gmra.mxu2 %v8359_v25  ;;  %v6153_v25 = vld [vmem:[%s11501_s1 + $0xa98] sm:$0xf0]  ;;  %v7430_v43 = vld [vmem:[%s11501_s1 + $0xa4c] sm:$0xf] }
 0x208   :  { %4414 = vmatpush.bf16.msra.mxu2 %v6460_v16  ;;  %4383 = vmatmul.bf16.vlgmr.msrb.gmra.mxu3 %v8372_v30  ;;  %v6556_v30 = vor.u32 %v7538_v38, %v6553_v62  ;;  %v6156_v11 = vor.u32 %v7438_v42, %v6153_v25  ;;  %v6121_v16 = vld [vmem:[%s11501_s1 + $0xa58] sm:$0xf0]  ;;  %v7462_v45 = vld [vmem:[%s11501_s1 + $0xb4c] sm:$0xf] }
 0x209   :  { %4427 = vmatpush.bf16.msra.mxu3 %v6588_v55  ;;  %v6249_v55 = vld [vmem:[%s11501_s1 + $0xb58] sm:$0xf0]  ;;  %v7494_v48 = vld [vmem:[%s11501_s1 + $0xc4c] sm:$0xf] }
 0x20a   :  { %4389 = vmatpush.bf16.msra.mxu0 %v6188_v41  ;;  %v11169_v47 = vpop.f32.mrf.mxu2  ;;  %v7526_v53 = vld [vmem:[%s11501_s1 + $0xd4c] sm:$0xf]  ;;  %v6505_v54 = vld [vmem:[%s11501_s1 + $0xd58] sm:$0xf0]  ;;  %v4139_v41 = vpop.f32.mrf.mxu0  ;;  %v6252_v12 = vor.u32 %v7462_v45, %v6249_v55  ;;  %v6380_v57 = vor.u32 %v7494_v48, %v6377_v61 }
 0x20b   :  { %4402 = vmatpush.bf16.msra.mxu1 %v6316_v21  ;;  %v11180_v50 = vpop.f32.mrf.mxu3  ;;  %v6124_v21 = vor.u32 %v7430_v43, %v6121_v16  ;;  %v7426_v59 = vld [vmem:[%s11501_s1 + $0xa2c] sm:$0xf]  ;;  %v6508_v20 = vor.u32 %v7526_v53, %v6505_v54  ;;  %v6233_v63 = vld [vmem:[%s11501_s1 + $0xb38] sm:$0xf0] }
 0x20c   :  { %4415 = vmatpush.bf16.msra.mxu2 %v6444_v36  ;;  %v4152_v36 = vpop.f32.mrf.mxu1  ;;  %v7458_v44 = vld [vmem:[%s11501_s1 + $0xb2c] sm:$0xf]  ;;  %v6361_v62 = vld [vmem:[%s11501_s1 + $0xc38] sm:$0xf0] }
 0x20d   :  { %4428 = vmatpush.bf16.msra.mxu3 %v6572_v18  ;;  %v6105_v18 = vld [vmem:[%s11501_s1 + $0xa38] sm:$0xf0]  ;;  %v7490_v38 = vld [vmem:[%s11501_s1 + $0xc2c] sm:$0xf]  ;;  %v6236_v19 = vor.u32 %v7458_v44, %v6233_v63 }
 0x20e   :  { %4390 = vmatpush.bf16.msra.mxu0 %v6172_v52  ;;  %v7522_v52 = vld [vmem:[%s11501_s1 + $0xd2c] sm:$0xf]  ;;  %v6089_v25 = vld [vmem:[%s11501_s1 + $0xa18] sm:$0xf0] }
 0x20f   :  { %4403 = vmatpush.bf16.msra.mxu1 %v6300_v26  ;;  %v6489_v26 = vld [vmem:[%s11501_s1 + $0xd38] sm:$0xf0]  ;;  %v7422_v42 = vld [vmem:[%s11501_s1 + $0xa0c] sm:$0xf] }
 0x210   :  { %4416 = vmatpush.bf16.msra.mxu2 %v6428_v9  ;;  %v6108_v9 = vor.u32 %v7426_v59, %v6105_v18  ;;  %v7454_v1 = vld [vmem:[%s11501_s1 + $0xb0c] sm:$0xf]  ;;  %v6217_v22 = vld [vmem:[%s11501_s1 + $0xb18] sm:$0xf0]  ;;  %v6492_v10 = vor.u32 %v7522_v52, %v6489_v26  ;;  %v6092_v17 = vor.u32 %v7422_v42, %v6089_v25 }
 0x211   :  { %4429 = vmatpush.bf16.msra.mxu3 %v6556_v30  ;;  %v6364_v30 = vor.u32 %v7490_v38, %v6361_v62  ;;  %v7486_v7 = vld [vmem:[%s11501_s1 + $0xc0c] sm:$0xf]  ;;  %v6345_v56 = vld [vmem:[%s11501_s1 + $0xc18] sm:$0xf0]  ;;  %v6220_v3 = vor.u32 %v7454_v1, %v6217_v22 }
 0x212   :  { %4391 = vmatpush.bf16.msra.mxu0 %v6156_v11  ;;  %v7518_v11 = vld [vmem:[%s11501_s1 + $0xd0c] sm:$0xf]  ;;  %v6713_v27 = vld [vmem:[%s11501_s1 + $0xef8] sm:$0xf0] }
 0x213   :  { %4404 = vmatpush.bf16.msra.mxu1 %v6284_v2  ;;  %v6473_v2 = vld [vmem:[%s11501_s1 + $0xd18] sm:$0xf0]  ;;  %v7578_v60 = vld [vmem:[%s11501_s1 + $0xeec] sm:$0xf] }
 0x214   :  { %4417 = vmatpush.bf16.msra.mxu2 %v6412_v51  ;;  %v4165_v51 = vpop.f32.mrf.mxu2  ;;  %v7610_v4 = vld [vmem:[%s11501_s1 + $0xfec] sm:$0xf]  ;;  %v6841_v34 = vld [vmem:[%s11501_s1 + $0xff8] sm:$0xf0]  ;;  %v6476_v43 = vor.u32 %v7518_v11, %v6473_v2  ;;  %v6716_v16 = vor.u32 %v7578_v60, %v6713_v27 }
 0x215   :  { %4430 = vmatpush.bf16.msra.mxu3 %v6540_v24  ;;  %v4178_v24 = vpop.f32.mrf.mxu3  ;;  %v7642_v37 = vld [vmem:[%s11501_s1 + $0x10ec] sm:$0xf]  ;;  %v6969_v40 = vld [vmem:[%s11501_s1 + $0x10f8] sm:$0xf0]  ;;  %v6844_v45 = vor.u32 %v7610_v4, %v6841_v34 }
 0x216   :  { %4392 = vmatpush.bf16.msra.mxu0 %v6140_v0  ;;  %v6348_v0 = vor.u32 %v7486_v7, %v6345_v56  ;;  %v7574_v55 = vld [vmem:[%s11501_s1 + $0xecc] sm:$0xf]  ;;  %v6697_v48 = vld [vmem:[%s11501_s1 + $0xed8] sm:$0xf0] }
 0x217   :  { %4405 = vmatpush.bf16.msra.mxu1 %v6268_v6  ;;  %v7674_v6 = vld [vmem:[%s11501_s1 + $0x11ec] sm:$0xf]  ;;  %v6825_v54 = vld [vmem:[%s11501_s1 + $0xfd8] sm:$0xf0] }
 0x218   :  { %4418 = vmatpush.bf16.msra.mxu2 %v6396_v8  ;;  %v7097_v8 = vld [vmem:[%s11501_s1 + $0x11f8] sm:$0xf0]  ;;  %v7606_v61 = vld [vmem:[%s11501_s1 + $0xfcc] sm:$0xf] }
 0x219   :  { %4431 = vmatpush.bf16.msra.mxu3 %v6524_v58  ;;  %v6972_v58 = vor.u32 %v7642_v37, %v6969_v40  ;;  %v7100_v53 = vor.u32 %v7674_v6, %v7097_v8  ;;  %v7638_v41 = vld [vmem:[%s11501_s1 + $0x10cc] sm:$0xf]  ;;  %v6828_v59 = vor.u32 %v7606_v61, %v6825_v54  ;;  %v6809_v62 = vld [vmem:[%s11501_s1 + $0xfb8] sm:$0xf0] }
 0x21a   :  { %4393 = vmatpush.bf16.msra.mxu0 %v6124_v21  ;;  %v6953_v21 = vld [vmem:[%s11501_s1 + $0x10d8] sm:$0xf0]  ;;  %v7670_v36 = vld [vmem:[%s11501_s1 + $0x11cc] sm:$0xf] }
 0x21b   :  { %4406 = vmatpush.bf16.msra.mxu1 %v6252_v12  ;;  %v7081_v12 = vld [vmem:[%s11501_s1 + $0x11d8] sm:$0xf0]  ;;  %v6956_v18 = vor.u32 %v7638_v41, %v6953_v21  ;;  %v7570_v44 = vld [vmem:[%s11501_s1 + $0xeac] sm:$0xf] }
 0x21c   :  { %4419 = vmatpush.bf16.msra.mxu2 %v6380_v57  ;;  %v6700_v57 = vor.u32 %v7574_v55, %v6697_v48  ;;  %v7602_v63 = vld [vmem:[%s11501_s1 + $0xfac] sm:$0xf]  ;;  %v7084_v38 = vor.u32 %v7670_v36, %v7081_v12  ;;  %v6937_v26 = vld [vmem:[%s11501_s1 + $0x10b8] sm:$0xf0]  ;;  %v4138_v48 = vadd.f32 %v11126_v13, %v10982_v49 }
 0x21d   :  { %4432 = vmatpush.bf16.msra.mxu3 %v6508_v20  ;;  %v6681_v20 = vld [vmem:[%s11501_s1 + $0xeb8] sm:$0xf0]  ;;  %v7634_v52 = vld [vmem:[%s11501_s1 + $0x10ac] sm:$0xf]  ;;  %v6812_v25 = vor.u32 %v7602_v63, %v6809_v62 }
 0x21e   :  { %4394 = vmatpush.bf16.msra.mxu0 %v6108_v9  ;;  %v7065_v9 = vld [vmem:[%s11501_s1 + $0x11b8] sm:$0xf0]  ;;  %v6684_v42 = vor.u32 %v7570_v44, %v6681_v20  ;;  %v7630_v22 = vld [vmem:[%s11501_s1 + $0x108c] sm:$0xf]  ;;  %v4151_v62 = vadd.f32 %v11134_v14, %v4138_v48 }
 0x21f   :  { %4407 = vmatpush.bf16.msra.mxu1 %v6236_v19  ;;  %v6940_v19 = vor.u32 %v7634_v52, %v6937_v26  ;;  %v6793_v1 = vld [vmem:[%s11501_s1 + $0xf98] sm:$0xf0]  ;;  %v7662_v56 = vld [vmem:[%s11501_s1 + $0x118c] sm:$0xf] }
 0x220   :  { %4420 = vmatpush.bf16.msra.mxu2 %v6364_v30  ;;  %v7598_v30 = vld [vmem:[%s11501_s1 + $0xf8c] sm:$0xf]  ;;  %v6921_v7 = vld [vmem:[%s11501_s1 + $0x1098] sm:$0xf0] }
 0x221   :  { %4433 = vmatpush.bf16.msra.mxu3 %v6492_v10  ;;  %v7049_v11 = vld [vmem:[%s11501_s1 + $0x1198] sm:$0xf0]  ;;  %v6796_v60 = vor.u32 %v7598_v30, %v6793_v1  ;;  %v6924_v27 = vor.u32 %v7630_v22, %v6921_v7  ;;  %v7562_v4 = vld [vmem:[%s11501_s1 + $0xe6c] sm:$0xf] }
 0x222   :  { %4395 = vmatpush.bf16.msra.mxu0 %v6092_v17  ;;  %v11330_v10 = vpop.f32.mrf.mxu0  ;;  %v6649_v24 = vld [vmem:[%s11501_s1 + $0xe78] sm:$0xf0]  ;;  %v7594_v17 = vld [vmem:[%s11501_s1 + $0xf6c] sm:$0xf]  ;;  %v7052_v34 = vor.u32 %v7662_v56, %v7049_v11 }
 0x223   :  { %4408 = vmatpush.bf16.msra.mxu1 %v6220_v3  ;;  %v11338_v51 = vpop.f32.mrf.mxu1  ;;  %v6777_v37 = vld [vmem:[%s11501_s1 + $0xf78] sm:$0xf0]  ;;  %v7626_v40 = vld [vmem:[%s11501_s1 + $0x106c] sm:$0xf]  ;;  %v6652_v8 = vor.u32 %v7562_v4, %v6649_v24 }
 0x224   :  { %4421 = vmatpush.bf16.msra.mxu2 %v6348_v0  ;;  %v6905_v3 = vld [vmem:[%s11501_s1 + $0x1078] sm:$0xf0]  ;;  %v7658_v0 = vld [vmem:[%s11501_s1 + $0x116c] sm:$0xf] }
 0x225   :  { %4434 = vmatpush.bf16.msra.mxu3 %v6476_v43  ;;  %4396 = vmatmul.bf16.vlgmr.msra.gmra.mxu0 %v8370_v29  ;;  %v7666_v29 = vld [vmem:[%s11501_s1 + $0x11ac] sm:$0xf]  ;;  %v7033_v6 = vld [vmem:[%s11501_s1 + $0x1178] sm:$0xf0]  ;;  %v6780_v43 = vor.u32 %v7594_v17, %v6777_v37 }
 0x226   :  { %4440 = vmatpush.bf16.msrb.mxu0 %v6716_v16  ;;  %4409 = vmatmul.bf16.vlgmr.msra.gmra.mxu1 %v8380_v33  ;;  %v7566_v33 = vld [vmem:[%s11501_s1 + $0xe8c] sm:$0xf]  ;;  %v6908_v16 = vor.u32 %v7626_v40, %v6905_v3  ;;  %v7036_v61 = vor.u32 %v7658_v0, %v7033_v6  ;;  %v6761_v54 = vld [vmem:[%s11501_s1 + $0xf58] sm:$0xf0] }
 0x227   :  { %4453 = vmatpush.bf16.msrb.mxu1 %v6844_v45  ;;  %4422 = vmatmul.bf16.vlgmr.msra.gmra.mxu2 %v8569_v23  ;;  %v6665_v23 = vld [vmem:[%s11501_s1 + $0xe98] sm:$0xf0]  ;;  %v7558_v45 = vld [vmem:[%s11501_s1 + $0xe4c] sm:$0xf] }
 0x228   :  { %4466 = vmatpush.bf16.msrb.mxu2 %v6972_v58  ;;  %4435 = vmatmul.bf16.vlgmr.msra.gmra.mxu3 %v8582_v31  ;;  %v7068_v31 = vor.u32 %v7666_v29, %v7065_v9  ;;  %v6668_v2 = vor.u32 %v7566_v33, %v6665_v23  ;;  %v6633_v58 = vld [vmem:[%s11501_s1 + $0xe58] sm:$0xf0]  ;;  %v7590_v55 = vld [vmem:[%s11501_s1 + $0xf4c] sm:$0xf] }
 0x229   :  { %4479 = vmatpush.bf16.msrb.mxu3 %v7100_v53  ;;  %v7622_v41 = vld [vmem:[%s11501_s1 + $0x104c] sm:$0xf]  ;;  %v6889_v21 = vld [vmem:[%s11501_s1 + $0x1058] sm:$0xf0] }
 0x22a   :  { %4441 = vmatpush.bf16.msrb.mxu0 %v6700_v57  ;;  %v4215_v53 = vpop.f32.mrf.mxu2  ;;  %v7654_v49 = vld [vmem:[%s11501_s1 + $0x114c] sm:$0xf]  ;;  %v7017_v13 = vld [vmem:[%s11501_s1 + $0x1158] sm:$0xf0]  ;;  %v4191_v12 = vpop.f32.mrf.mxu0  ;;  %v6636_v57 = vor.u32 %v7558_v45, %v6633_v58  ;;  %v6892_v44 = vor.u32 %v7622_v41, %v6889_v21 }
 0x22b   :  { %4454 = vmatpush.bf16.msrb.mxu1 %v6828_v59  ;;  %v4228_v36 = vpop.f32.mrf.mxu3  ;;  %v4204_v59 = vpop.f32.mrf.mxu1  ;;  %v7554_v20 = vld [vmem:[%s11501_s1 + $0xe2c] sm:$0xf]  ;;  %v6617_v63 = vld [vmem:[%s11501_s1 + $0xe38] sm:$0xf0]  ;;  %v7020_v52 = vor.u32 %v7654_v49, %v7017_v13 }
 0x22c   :  { %4467 = vmatpush.bf16.msrb.mxu2 %v6956_v18  ;;  %v6764_v18 = vor.u32 %v7590_v55, %v6761_v54  ;;  %v6745_v26 = vld [vmem:[%s11501_s1 + $0xf38] sm:$0xf0]  ;;  %v7618_v29 = vld [vmem:[%s11501_s1 + $0x102c] sm:$0xf] }
 0x22d   :  { %4480 = vmatpush.bf16.msrb.mxu3 %v7084_v38  ;;  %v7586_v38 = vld [vmem:[%s11501_s1 + $0xf2c] sm:$0xf]  ;;  %v6873_v9 = vld [vmem:[%s11501_s1 + $0x1038] sm:$0xf0] }
 0x22e   :  { %4442 = vmatpush.bf16.msrb.mxu0 %v6684_v42  ;;  %v7650_v42 = vld [vmem:[%s11501_s1 + $0x112c] sm:$0xf]  ;;  %v7001_v14 = vld [vmem:[%s11501_s1 + $0x1138] sm:$0xf0]  ;;  %v6748_v33 = vor.u32 %v7586_v38, %v6745_v26  ;;  %v6876_v23 = vor.u32 %v7618_v29, %v6873_v9 }
 0x22f   :  { %4455 = vmatpush.bf16.msrb.mxu1 %v6812_v25  ;;  %v4164_v25 = vadd.f32 %v11169_v47, %v4151_v62  ;;  %v7550_v30 = vld [vmem:[%s11501_s1 + $0xe0c] sm:$0xf]  ;;  %v7004_v47 = vor.u32 %v7650_v42, %v7001_v14  ;;  %v6729_v22 = vld [vmem:[%s11501_s1 + $0xf18] sm:$0xf0] }
 0x230   :  { %4468 = vmatpush.bf16.msrb.mxu2 %v6940_v19  ;;  %v6620_v19 = vor.u32 %v7554_v20, %v6617_v63  ;;  %v7582_v1 = vld [vmem:[%s11501_s1 + $0xf0c] sm:$0xf]  ;;  %v6857_v56 = vld [vmem:[%s11501_s1 + $0x1018] sm:$0xf0] }
 0x231   :  { %4481 = vmatpush.bf16.msrb.mxu3 %v7068_v31  ;;  %v6601_v31 = vld [vmem:[%s11501_s1 + $0xe18] sm:$0xf0]  ;;  %v7614_v7 = vld [vmem:[%s11501_s1 + $0x100c] sm:$0xf]  ;;  %v4177_v4 = vadd.f32 %v11180_v50, %v4164_v25  ;;  %v6732_v17 = vor.u32 %v7582_v1, %v6729_v22 }
 0x232   :  { %4443 = vmatpush.bf16.msrb.mxu0 %v6668_v2  ;;  %v4217_v11 = vpop.f32.mrf.mxu2  ;;  %v7646_v2 = vld [vmem:[%s11501_s1 + $0x110c] sm:$0xf]  ;;  %v6604_v24 = vor.u32 %v7550_v30, %v6601_v31 }
 0x233   :  { %4456 = vmatpush.bf16.msrb.mxu1 %v6796_v60  ;;  %v6985_v60 = vld [vmem:[%s11501_s1 + $0x1118] sm:$0xf0]  ;;  %v4190_v37 = vadd.f32 %v11330_v10, %v4177_v4 }
 0x234   :  { %4469 = vmatpush.bf16.msrb.mxu2 %v6924_v27  ;;  %v4230_v27 = vpop.f32.mrf.mxu3  ;;  %v6988_v40 = vor.u32 %v7646_v2, %v6985_v60 }
 0x235   :  { %4482 = vmatpush.bf16.msrb.mxu3 %v7052_v34  ;;  %v6860_v34 = vor.u32 %v7614_v7, %v6857_v56  ;;  %v4203_v3 = vadd.f32 %v11338_v51, %v4190_v37  ;;  %v7687_v51 = vld [vmem:[%s11503_s2] ss:$4 sm:$0xf] }
 0x236   :  { %4444 = vmatpush.bf16.msrb.mxu0 %v6652_v8 }
 0x237   :  { %4457 = vmatpush.bf16.msrb.mxu1 %v6780_v43  ;;  %v4216_v0 = vadd.f32 %v4215_v53, %v4203_v3 }
 0x238   :  { %4470 = vmatpush.bf16.msrb.mxu2 %v6908_v16  ;;  %v608_v16 = vperm.slane %v7687_v51, 3 }
 0x239   :  { %4483 = vmatpush.bf16.msrb.mxu3 %v7036_v61  ;;  %v4229_v50 = vadd.f32 %v4228_v36, %v4216_v0 }
 0x23a   :  { %4445 = vmatpush.bf16.msrb.mxu0 %v6636_v57 }
 0x23b   :  { %4458 = vmatpush.bf16.msrb.mxu1 %v6764_v18 }
 0x23c   :  { %4471 = vmatpush.bf16.msrb.mxu2 %v6892_v44 }
 0x23d   :  { %4484 = vmatpush.bf16.msrb.mxu3 %v7020_v52 }
 0x23e   :  { %4446 = vmatpush.bf16.msrb.mxu0 %v6620_v19 }
 0x23f   :  { %4459 = vmatpush.bf16.msrb.mxu1 %v6748_v33 }
 0x240   :  { %4472 = vmatpush.bf16.msrb.mxu2 %v6876_v23 }
 0x241   :  { %4485 = vmatpush.bf16.msrb.mxu3 %v7004_v47 }
 0x242   :  { %4447 = vmatpush.bf16.msrb.mxu0 %v6604_v24  ;;  %v4241_v6 = vpop.f32.mrf.mxu0 }
 0x243   :  { %4460 = vmatpush.bf16.msrb.mxu1 %v6732_v17  ;;  %v4242_v10 = vadd.f32 %v4241_v6, %v4229_v50  ;;  %v4254_v8 = vpop.f32.mrf.mxu1 }
 0x244   :  { %4473 = vmatpush.bf16.msrb.mxu2 %v6860_v34 }
 0x245   :  { %4486 = vmatpush.bf16.msrb.mxu3 %v6988_v40  ;;  %4448 = vmatmul.bf16.vlgmr.msrb.gmra.mxu0 %v8580_v28  ;;  %v4255_v43 = vadd.f32 %v4254_v8, %v4242_v10 }
 0x246   :  { %4461 = vmatmul.bf16.vlgmr.msrb.gmra.mxu1 %v8590_v35 }
 0x247   :  { %4474 = vmatmul.bf16.vlgmr.msrb.gmra.mxu2 %v8776_v32  ;;  %4494 = vst [vmem:[#allocation2 + $0x18] sm:$0xff] %v4255_v43  ;;  %v4512_v14 = vrot.slane %v4255_v43, 4  ;;  %v4530_v25 = vmul.f32 %v4255_v43, %v4255_v43 }
 0x248   :  { %4487 = vmatmul.bf16.vlgmr.msrb.gmra.mxu3 %v8787_v39 }
 0x249   :  { %v4513_v31 = vadd.f32 %v4512_v14, %v4255_v43  ;;  %v4544_v1 = vrot.slane %v4530_v25, 4 }
 0x24a   :  { %v4267_v45 = vpop.f32.mrf.mxu2  ;;  %v4243_v55 = vpop.f32.mrf.mxu0 }
 0x24b   :  { %v4268_v28 = vadd.f32 %v4267_v45, %v608_v16  ;;  %v4280_v58 = vpop.f32.mrf.mxu3  ;;  %v4256_v35 = vpop.f32.mrf.mxu1  ;;  %v4514_v7 = vrot.slane %v4513_v31, 2  ;;  %v4545_v56 = vadd.f32 %v4544_v1, %v4530_v25 }
 0x24d   :  { %v4281_v48 = vadd.f32 %v4280_v58, %v4268_v28  ;;  %v4515_v27 = vadd.f32 %v4514_v7, %v4513_v31  ;;  %v4546_v4 = vrot.slane %v4545_v56, 2 }
 0x24f   :  { %v4516_v34 = vrot.slane %v4515_v27, 1  ;;  %v4547_v37 = vadd.f32 %v4546_v4, %v4545_v56 }
 0x251   :  { %v4517_v3 = vadd.f32 %v4516_v34, %v4515_v27  ;;  %v4548_v0 = vrot.slane %v4547_v37, 1  ;;  %v4795_v34 = vld [vmem:[%s11503_s2 + $0x1] ss:$4 sm:$0xf] }
 0x252   :  { %v4269_v32 = vpop.f32.mrf.mxu2 }
 0x253   :  { %v4282_v61 = vpop.f32.mrf.mxu3  ;;  %v11450_v6 = vmul.f32 0.125, %v4517_v3  ;;  %v4549_v10 = vadd.f32 %v4548_v0, %v4547_v37 }
 0x255   :  { %v4558_v45 = vmul.f32 0.125, %v4549_v10  ;;  %v4562_v28 = vmul.f32 %v11450_v6, %v11450_v6 }
 0x257   :  { %v4566_v35 = vsub.f32 %v4558_v45, %v4562_v28 }
 0x262   :  { %v4293_v39 = vpop.f32.mrf.mxu0 }
 0x263   :  { %v4294_v53 = vadd.f32 %v4293_v39, %v4281_v48  ;;  %v4306_v54 = vpop.f32.mrf.mxu1 }
 0x265   :  { %v4307_v41 = vadd.f32 %v4306_v54, %v4294_v53  ;;  %v4570_v54 = vmax.f32 %v4566_v35, 0.0  ;;  %v4656_v35 = vld [vmem:[#allocation2 + $0x10] sm:$0x3] }
 0x26a   :  { %v4319_v21 = vpop.f32.mrf.mxu2  ;;  %v4295_v12 = vpop.f32.mrf.mxu0 }
 0x26b   :  { %v4320_v36 = vadd.f32 %v4319_v21, %v4307_v41  ;;  %v4332_v49 = vpop.f32.mrf.mxu3  ;;  %v4308_v57 = vpop.f32.mrf.mxu1  ;;  %v4574_v12 = vadd.f32 1e-05, %v4570_v54  ;;  %v4682_v54 = vld [vmem:[#allocation2] sm:$0xc] }
 0x26d   :  { %v4333_v13 = vadd.f32 %v4332_v49, %v4320_v36  ;;  %7681 = vrsqrt.f32 %v4574_v12  ;;  %vm4602_vm8 = vweird.f32 %v4574_v12 }
 0x272   :  { %v4321_v59 = vpop.f32.mrf.mxu2 }
 0x273   :  { %v4334_v18 = vpop.f32.mrf.mxu3 }
 0x282   :  { %v4345_v44 = vpop.f32.mrf.mxu0 }
 0x283   :  { %v4358_v20 = vpop.f32.mrf.mxu1  ;;  %v4346_v19 = vadd.f32 %v4345_v44, %v4333_v13 }
 0x285   :  { %v4359_v22 = vadd.f32 %v4358_v20, %v4346_v19 }
 0x28a   :  { %v4371_v63 = vpop.f32.mrf.mxu2  ;;  %v4347_v62 = vpop.f32.mrf.mxu0 }
 0x28b   :  { %v4384_v38 = vpop.f32.mrf.mxu3  ;;  %v4360_v52 = vpop.f32.mrf.mxu1  ;;  %v4372_v11 = vadd.f32 %v4371_v63, %v4359_v22 }
 0x28d   :  { %v4385_v24 = vadd.f32 %v4384_v38, %v4372_v11 }
 0x292   :  { %v4373_v26 = vpop.f32.mrf.mxu2 }
 0x293   :  { %v4386_v29 = vpop.f32.mrf.mxu3 }
 0x2a2   :  { %v4397_v9 = vpop.f32.mrf.mxu0 }
 0x2a3   :  { %v4410_v42 = vpop.f32.mrf.mxu1  ;;  %v4398_v17 = vadd.f32 %v4397_v9, %v4385_v24  ;;  %v7682_v9 = vpop.eup %7681 }
 0x2a4   :  { %v4597_v19 = vmul.f32 %v7682_v9, %v4574_v12  ;;  %vm4603_vm7 = vweird.f32 %v7682_v9 }
 0x2a5   :  { %v4411_v40 = vadd.f32 %v4410_v42, %v4398_v17  ;;  %vm4604_vm10 = vmor %vm4602_vm8, %vm4603_vm7 }
 0x2aa   :  { %v4423_v33 = vpop.f32.mrf.mxu2  ;;  %v4399_v30 = vpop.f32.mrf.mxu0 }
 0x2ab   :  { %v4436_v23 = vpop.f32.mrf.mxu3  ;;  %v4412_v47 = vpop.f32.mrf.mxu1  ;;  %v4424_v50 = vadd.f32 %v4423_v33, %v4411_v40  ;;  %v4598_v30 = vmul.f32 %v7682_v9, %v4597_v19 }
 0x2ad   :  { %v4437_v8 = vadd.f32 %v4436_v23, %v4424_v50  ;;  %v4599_v31 = vmul.f32 0.5, %v4598_v30 }
 0x2af   :  { %v4600_v47 = vsub.f32 1.5, %v4599_v31 }
 0x2b1   :  { %v4601_v56 = vmul.f32 %v7682_v9, %v4600_v47 }
 0x2b2   :  { %v4425_v2 = vpop.f32.mrf.mxu2 }
 0x2b3   :  { %v4438_v60 = vpop.f32.mrf.mxu3 }
 0x2b4   :  { %v4605_v60 = vsel %vm4604_vm10, %v7682_v9, %v4601_v56 }
 0x2b5   :  { %v4621_v24 = vrot.slane %v4605_v60, 6 }
 0x2c2   :  { %v4449_v43 = vpop.f32.mrf.mxu0 }
 0x2c3   :  { %v4462_v51 = vpop.f32.mrf.mxu1  ;;  %v4450_v16 = vadd.f32 %v4449_v43, %v4437_v8 }
 0x2c5   :  { %v4463_v58 = vadd.f32 %v4462_v51, %v4450_v16 }
 0x2ca   :  { %v4475_v55 = vpop.f32.mrf.mxu2  ;;  %v4451_v61 = vpop.f32.mrf.mxu0 }
 0x2cb   :  { %v4476_v48 = vadd.f32 %v4475_v55, %v4463_v58  ;;  %v4488_v32 = vpop.f32.mrf.mxu3  ;;  %v4464_v39 = vpop.f32.mrf.mxu1  ;;  %v4796_v55 = vld [vmem:[%s11503_s2 + $0x2] ss:$4 sm:$0xf]  ;;  %v4657_v61 = vld [vmem:[#allocation2] sm:$0x3] }
 0x2cd   :  { %v4489_v53 = vadd.f32 %v4488_v32, %v4476_v48  ;;  %v4681_v48 = vld [vmem:[#allocation2 + $0x10] sm:$0xc] }
 0x2cf   :  { %4495 = vst [vmem:[#allocation2 + $0x8] sm:$0xff] %v4489_v53  ;;  %v4518_v41 = vrot.slane %v4489_v53, 4  ;;  %v4531_v21 = vmul.f32 %v4489_v53, %v4489_v53 }
 0x2d1   :  { %v4519_v36 = vadd.f32 %v4518_v41, %v4489_v53  ;;  %v4550_v49 = vrot.slane %v4531_v21, 4  ;;  %v4683_v41 = vld [vmem:[#allocation2 + $0x18] sm:$0xc] }
 0x2d2   :  { %v4477_v13 = vpop.f32.mrf.mxu2 }
 0x2d3   :  { %v4520_v57 = vrot.slane %v4519_v36, 2  ;;  %v4551_v59 = vadd.f32 %v4550_v49, %v4531_v21  ;;  %v4490_v18 = vpop.f32.mrf.mxu3 }
 0x2d4   :  { %v4715_v18 = vld [vmem:[#allocation2 + $0x18] sm:$0x30] }
 0x2d5   :  { %v4521_v44 = vadd.f32 %v4520_v57, %v4519_v36  ;;  %v4552_v20 = vrot.slane %v4551_v59, 2  ;;  %v4713_v57 = vld [vmem:[#allocation2 + $0x10] sm:$0x30] }
 0x2d6   :  { %v4684_v12 = vld [vmem:[#allocation2 + $0x8] sm:$0xc]  ;;  %v4716_v9 = vld [vmem:[#allocation2 + $0x8] sm:$0x30] }
 0x2d7   :  { %v4522_v63 = vrot.slane %v4521_v44, 1  ;;  %v4553_v38 = vadd.f32 %v4552_v20, %v4551_v59  ;;  %v4714_v59 = vld [vmem:[#allocation2] sm:$0x30] }
 0x2d9   :  { %v4523_v62 = vadd.f32 %v4522_v63, %v4521_v44  ;;  %v4554_v52 = vrot.slane %v4553_v38, 1 }
 0x2db   :  { %v4527_v26 = vmul.f32 0.125, %v4523_v62  ;;  %v4555_v29 = vadd.f32 %v4554_v52, %v4553_v38 }
 0x2dd   :  { %v4559_v42 = vmul.f32 0.125, %v4555_v29  ;;  %v4563_v14 = vmul.f32 %v4527_v26, %v4527_v26 }
 0x2df   :  { %v4567_v25 = vsub.f32 %v4559_v42, %v4563_v14 }
 0x2e1   :  { %v4571_v33 = vmax.f32 %v4567_v25, 0.0 }
 0x2e3   :  { %v4575_v23 = vadd.f32 1e-05, %v4571_v33 }
 0x2e5   :  { %7683 = vrsqrt.f32 %v4575_v23  ;;  %vm4612_vm11 = vweird.f32 %v4575_v23 }
 0x2eb   :  { %v7684_v1 = vpop.eup %7683 }
 0x2ec   :  { %v4607_v22 = vmul.f32 %v7684_v1, %v4575_v23  ;;  %vm4613_vm9 = vweird.f32 %v7684_v1 }
 0x2ed   :  { %vm4614_vm12 = vmor %vm4612_vm11, %vm4613_vm9 }
 0x2ee   :  { %v4608_v7 = vmul.f32 %v7684_v1, %v4607_v22 }
 0x2f0   :  { %v4609_v11 = vmul.f32 0.5, %v4608_v7 }
 0x2f2   :  { %v4610_v2 = vsub.f32 1.5, %v4609_v11 }
 0x2f4   :  { %v4611_v27 = vmul.f32 %v7684_v1, %v4610_v2 }
 0x2f6   :  { %v4615_v4 = vsel %vm4614_vm12, %v7684_v1, %v4611_v27 }
 0x2f7   :  { %v4622_v17 = vrot.slane %v4615_v4, 5 }
 0x2f9   :  { %v4626_v37 = vsel %vm4625_vm13, %v4621_v24, %v4622_v17 }
 0x2fa   :  { %v4628_v40 = vsel %vm4627_vm14, %v10888_v15, %v4626_v37  ;;  %v4730_v37 = vld [vmem:[#allocation2] sm:$0xc0] }
 0x2fb   :  { %v4630_v3 = vmul.f32 %v4795_v34, %v4628_v40  ;;  %v4729_v34 = vld [vmem:[#allocation2 + $0x10] sm:$0xc0]  ;;  %v4731_v40 = vld [vmem:[#allocation2 + $0x18] sm:$0xc0] }
 0x2fd   :  { %v11460_v0 = vperm.slane %v4630_v3, 0  ;;  %v11462_v50 = vperm.slane %v4630_v3, 1  ;;  %v11464_v10 = vperm.slane %v4630_v3, 2  ;;  %v11466_v8 = vperm.slane %v4630_v3, 3 }
 0x2ff   :  { %v4640_v43 = vmul.f32 %v11460_v0, %v10433_v46  ;;  %v4641_v51 = vmul.f32 %v11462_v50, %v10644_v5  ;;  %v4642_v16 = vmul.f32 %v11464_v10, %v11450_v6  ;;  %v4643_v15 = vmul.f32 %v11466_v8, %v4527_v26  ;;  %v4658_v5 = vld [vmem:[#allocation2 + $0x18] sm:$0x3]  ;;  %v4659_v6 = vld [vmem:[#allocation2 + $0x8] sm:$0x3] }
 0x300   :  { %v4660_v53 = vmul.f32 %v4656_v35, %v11460_v0  ;;  %v4661_v36 = vmul.f32 %v4657_v61, %v11462_v50  ;;  %v4662_v49 = vmul.f32 %v4658_v5, %v11464_v10  ;;  %v4663_v13 = vmul.f32 %v4659_v6, %v11466_v8 }
 0x301   :  { %v4648_v45 = vrot.slane %v4641_v51, 7  ;;  %v4649_v28 = vrot.slane %v4642_v16, 6  ;;  %v4650_v58 = vrot.slane %v4643_v15, 5  ;;  %v4685_v44 = vmul.f32 %v4681_v48, %v11460_v0 }
 0x302   :  { %v4686_v20 = vmul.f32 %v4682_v54, %v11462_v50  ;;  %v4687_v63 = vmul.f32 %v4683_v41, %v11464_v10  ;;  %v4688_v38 = vmul.f32 %v4684_v12, %v11466_v8  ;;  %v4717_v42 = vmul.f32 %v4713_v57, %v11460_v0 }
 0x303   :  { %v4651_v32 = vsel %vm4623_vm5, %v4640_v43, %v4648_v45  ;;  %v4652_v46 = vsel %vm4625_vm13, %v4649_v28, %v4650_v58  ;;  %v4718_v14 = vmul.f32 %v4714_v59, %v11462_v50  ;;  %v4719_v25 = vmul.f32 %v4715_v18, %v11464_v10 }
 0x304   :  { %v4653_v39 = vsel %vm4627_vm14, %v4651_v32, %v4652_v46  ;;  %v4720_v19 = vmul.f32 %v4716_v9, %v11466_v8  ;;  %v4733_v35 = vmul.f32 %v4729_v34, %v11460_v0  ;;  %v4734_v48 = vmul.f32 %v4730_v37, %v11462_v50 }
 0x305   :  { %v4655_v21 = vsub.f32 %v4796_v55, %v4653_v39  ;;  %v4732_v55 = vld [vmem:[#allocation2 + $0x8] sm:$0xc0]  ;;  %v4735_v32 = vmul.f32 %v4731_v40, %v11464_v10 }
 0x306   :  { %v4736_v46 = vmul.f32 %v4732_v55, %v11466_v8 }
 0x307   :  { %v4665_v62 = vperm.slane %v4655_v21, 0  ;;  %v4666_v52 = vperm.slane %v4655_v21, 1  ;;  %v4667_v26 = vperm.slane %v4655_v21, 2  ;;  %v4668_v29 = vperm.slane %v4655_v21, 3 }
 0x309   :  { %v4673_v33 = vadd.f32 %v4665_v62, %v4660_v53  ;;  %v4674_v23 = vadd.f32 %v4666_v52, %v4661_v36  ;;  %v4675_v30 = vadd.f32 %v4667_v26, %v4662_v49  ;;  %v4676_v31 = vadd.f32 %v4668_v29, %v4663_v13 }
 0x30a   :  { %v4689_v1 = vadd.f32 %v4685_v44, %v4665_v62  ;;  %v4690_v47 = vadd.f32 %v4686_v20, %v4666_v52  ;;  %v4691_v22 = vadd.f32 %v4687_v63, %v4667_v26  ;;  %v4692_v7 = vadd.f32 %v4688_v38, %v4668_v29 }
 0x30b   :  { %v4677_v56 = vmax.f32 %v4673_v33, 0.0  ;;  %v4678_v11 = vmax.f32 %v4674_v23, 0.0  ;;  %v4679_v2 = vmax.f32 %v4675_v30, 0.0  ;;  %v4680_v60 = vmax.f32 %v4676_v31, 0.0 }
 0x30c   :  { %v4693_v27 = vmax.f32 %v4689_v1, 0.0  ;;  %v4694_v4 = vmax.f32 %v4690_v47, 0.0  ;;  %v4695_v24 = vmax.f32 %v4691_v22, 0.0  ;;  %v4696_v17 = vmax.f32 %v4692_v7, 0.0 }
 0x30d   :  { %v4721_v3 = vadd.f32 %v4717_v42, %v4665_v62  ;;  %v4722_v43 = vadd.f32 %v4718_v14, %v4666_v52  ;;  %v4723_v51 = vadd.f32 %v4719_v25, %v4667_v26  ;;  %v4724_v16 = vadd.f32 %v4720_v19, %v4668_v29 }
 0x30e   :  { %v4701_v15 = vrot.slane %v4693_v27, 2  ;;  %v4702_v45 = vrot.slane %v4694_v4, 2  ;;  %v4703_v28 = vrot.slane %v4695_v24, 2  ;;  %v4704_v58 = vrot.slane %v4696_v17, 2 }
 0x30f   :  { %v4737_v53 = vadd.f32 %v4733_v35, %v4665_v62  ;;  %v4738_v54 = vadd.f32 %v4734_v48, %v4666_v52  ;;  %v4739_v41 = vadd.f32 %v4735_v32, %v4667_v26  ;;  %v4740_v21 = vadd.f32 %v4736_v46, %v4668_v29 }
 0x310   :  { %v4709_v61 = vmax.f32 %v4677_v56, %v4701_v15  ;;  %v4710_v5 = vmax.f32 %v4678_v11, %v4702_v45  ;;  %v4711_v39 = vmax.f32 %v4679_v2, %v4703_v28  ;;  %v4712_v6 = vmax.f32 %v4680_v60, %v4704_v58 }
 0x311   :  { %v4741_v36 = vmax.f32 %v4737_v53, 0.0  ;;  %v4742_v49 = vmax.f32 %v4738_v54, 0.0  ;;  %v4743_v13 = vmax.f32 %v4739_v41, 0.0  ;;  %v4744_v12 = vmax.f32 %v4740_v21, 0.0 }
 0x312   :  { %v4725_v57 = vmax.f32 %v4721_v3, 0.0  ;;  %v4726_v0 = vmax.f32 %v4722_v43, 0.0  ;;  %v4727_v59 = vmax.f32 %v4723_v51, 0.0  ;;  %v4728_v50 = vmax.f32 %v4724_v16, 0.0 }
 0x313   :  { %v4749_v18 = vrot.slane %v4741_v36, 2  ;;  %v4750_v10 = vrot.slane %v4742_v49, 2  ;;  %v4751_v44 = vrot.slane %v4743_v13, 2  ;;  %v4752_v8 = vrot.slane %v4744_v12, 2 }
 0x315   :  { %v4757_v20 = vmax.f32 %v4725_v57, %v4749_v18  ;;  %v4758_v63 = vmax.f32 %v4726_v0, %v4750_v10  ;;  %v4759_v38 = vmax.f32 %v4727_v59, %v4751_v44  ;;  %v4760_v9 = vmax.f32 %v4728_v50, %v4752_v8 }
 0x317   :  { %v4765_v62 = vrot.slane %v4757_v20, 4  ;;  %v4766_v52 = vrot.slane %v4758_v63, 4  ;;  %v4767_v26 = vrot.slane %v4759_v38, 4  ;;  %v4768_v29 = vrot.slane %v4760_v9, 4 }
 0x319   :  { %v4773_v42 = vmax.f32 %v4709_v61, %v4765_v62  ;;  %v4774_v14 = vmax.f32 %v4710_v5, %v4766_v52  ;;  %v4775_v25 = vmax.f32 %v4711_v39, %v4767_v26  ;;  %v4776_v19 = vmax.f32 %v4712_v6, %v4768_v29 }
 0x31b   :  { %v4781_v33 = vrot.slane %v4774_v14, 6  ;;  %v4782_v23 = vrot.slane %v4775_v25, 4  ;;  %v4783_v30 = vrot.slane %v4776_v19, 2 }
 0x31d   :  { %v4784_v31 = vsel %vm4627_vm14, %v4773_v42, %v4781_v33  ;;  %v4786_v1 = vsel %vm4785_vm15, %v4782_v23, %v4783_v30 }
 0x31e   :  { %v4788_v47 = vsel %vm4787_vm0, %v4784_v31, %v4786_v1 }
 0x31f   :  { %4790 = vst [vmem:[%s11504_s3] sm:$0xff] %v4788_v47 }

</bundles_post_ra>
